<compile_context>
chip_gen: v6e
topology: v6e:2x2x1
jax: 0.10.0
libtpu: 0.0.40
codegen_flags: <defaults>
</compile_context>

<pallas_src>
import functools
import math

import jax
import jax.numpy as jnp
import numpy as np
from jax.experimental import pallas as pl
from jax.experimental.pallas import tpu as pltpu


def _interp_matrix(n_in, n_out):
    """(n_out, n_in) linear-interpolation weights, align_corners=True (f32)."""
    if n_in == 1:
        return jnp.ones((n_out, 1), jnp.float32)
    src = jnp.arange(n_out, dtype=jnp.float32) * (n_in - 1) / (n_out - 1)
    lo = jnp.clip(jnp.floor(src).astype(jnp.int32), 0, n_in - 2)
    w = src - lo.astype(jnp.float32)
    rows = jnp.arange(n_out)
    m = jnp.zeros((n_out, n_in), jnp.float32)
    m = m.at[rows, lo].add(1.0 - w)
    m = m.at[rows, lo + 1].add(w)
    return m


def _vmem_limit_bytes():
    # Per-generation scoped-VMEM budget: 3/4 of physical, capped at 96 MiB
    # (=> ~48 MiB on v7x, 96 MiB on v5e/v6e).  Conservative fallback if the
    # trace-time query is unavailable.
    try:
        cap = pltpu.get_tpu_info().vmem_capacity_bytes
        return int(min(cap * 3 // 4, 96 * 1024 * 1024))
    except Exception:
        return 64 * 1024 * 1024


def _params(*sem):
    return pltpu.CompilerParams(dimension_semantics=sem,
                                vmem_limit_bytes=_vmem_limit_bytes())


def _pick_row_tile(total, cap=2048):
    if total <= cap:
        return total
    for t in (2048, 1024, 512, 256, 128):
        if total % t == 0:
            return t
    return total


# ---------------------------------------------------------------------------
# 1) W-pass of the separable bilinear upsample, already in NHWC layout:
#    per (n, h) row, (Wo, W) @ (W, Cin) — batched over row tiles of N*H,
#    writing (N, H, Wo, Cin) directly (no later full-res transposes needed).
# ---------------------------------------------------------------------------
def _wpass_kernel(u_ref, rx_ref, o_ref):
    u = u_ref[...]                                        # (TH, W, Cin) bf16
    rx = rx_ref[...]                                      # (Wo, W) bf16
    rx_b = jnp.broadcast_to(rx[None, :, :],
                            (u.shape[0], rx.shape[0], rx.shape[1]))
    out = jax.lax.dot_general(rx_b, u, (((2,), (1,)), ((0,), (0,))),
                              preferred_element_type=jnp.float32)
    o_ref[...] = out.astype(o_ref.dtype)                  # (TH, Wo, Cin)


# ---------------------------------------------------------------------------
# 2) H-pass fused with the skip-add: per image, (Ho,H) @ (H, Wo*Cin) + x.
#    Output is the conv input s in its final (Ho, Wo, Cin) order (bf16).
# ---------------------------------------------------------------------------
def _hpass_add_kernel(a_ref, x_ref, ry_ref, o_ref):
    up2 = jnp.dot(ry_ref[...], a_ref[0],                  # (Ho, Wo*Cin) f32
                  preferred_element_type=jnp.float32)
    o_ref[0] = (up2 + x_ref[0]).astype(o_ref.dtype)


# ---------------------------------------------------------------------------
# 3) 3x3 conv (pad=1) as a single im2col dot per image + per-image BN partials.
#    Layout: rows = Ho*Wo (spatial), lanes = channels.
# ---------------------------------------------------------------------------
def _conv_bn_stats_kernel(s_ref, wk_ref, b_ref, out_ref, sum_ref, sq_ref,
                          pbuf, slab, *, Ho, Wo, Cin, Cout, pad_top, pad_rows):
    HW = Ho * Wo
    interior_end = pad_top + HW

    # Zero-halo padded copy of the skip-added conv input (bf16).  The halo is
    # re-zeroed every step: scratch persists across grid iterations and the
    # batch axis is "parallel", so there is no portable "first step" to gate on.
    pbuf[0:pad_top, :] = jnp.zeros((pad_top, Cin), pbuf.dtype)
    pbuf[interior_end:pad_rows, :] = jnp.zeros((pad_rows - interior_end, Cin),
                                               pbuf.dtype)
    pbuf[pad_top:interior_end, :] = s_ref[0]

    # W-boundary wraparound masks, generated in-kernel (no DMA'd mask input).
    col = jax.lax.broadcasted_iota(jnp.int32, (HW, 1), 0) % Wo
    mask_kx0 = (col != 0).astype(pbuf.dtype)          # mask==0 where wo == 0
    mask_kx2 = (col != Wo - 1).astype(pbuf.dtype)     # mask==0 where wo == Wo-1

    # Build the bf16 im2col slab: 9 row-shifted slices, masks folded in.
    # TODO(synk): at production channel counts (Cin >= 128) the tap column
    # offsets t*Cin are lane-aligned; at tiny Cin these stores are masked.
    for ky in range(3):
        for kx in range(3):
            t = ky * 3 + kx
            start = pad_top + (ky - 1) * Wo + (kx - 1)
            patch = pbuf[start:start + HW, :]
            if kx == 0:
                patch = patch * mask_kx0
            elif kx == 2:
                patch = patch * mask_kx2
            slab[:, t * Cin:(t + 1) * Cin] = patch

    # One MXU dot with K = 9*Cin, f32 accumulation, then conv bias.
    acc = jnp.dot(slab[...], wk_ref[...], preferred_element_type=jnp.float32)
    acc = acc + b_ref[...]

    out_ref[0] = acc.astype(out_ref.dtype)            # bf16 intermediate
    # Per-image BN partial sums; reduced across the batch in the wrapper.
    sum_ref[0] = jnp.sum(acc, axis=0, keepdims=True)
    sq_ref[0] = jnp.sum(acc * acc, axis=0, keepdims=True)


# ---------------------------------------------------------------------------
# 4) BN + ReLU fused with the NHWC -> NCHW permutation.  The (rows, Cout) tile
#    is transposed in-kernel so the NCHW output stores are lane-dense.
# ---------------------------------------------------------------------------
def _bn_relu_nchw_kernel(y_ref, scale_ref, shift_ref, o_ref):
    y = y_ref[0].astype(jnp.float32)                          # (TR, Cout)
    z = jnp.maximum(y * scale_ref[...] + shift_ref[...], 0.0)
    o_ref[0] = z.T                                            # (Cout, TR)


@jax.jit
def unet_block_forward(up_p, x_p, weight, bias, gamma, beta, eps=1e-5):
    """Pallas TPU UnetBlock.forward.  Inputs/outputs are NCHW float32."""
    N, Cin, H, W = up_p.shape
    _, _, Ho, Wo = x_p.shape                       # Ho = 2H, Wo = 2W
    Cout = weight.shape[0]
    HW = Ho * Wo
    bf16 = jnp.bfloat16

    rx = _interp_matrix(W, Wo).astype(bf16)        # (Wo, W)
    ry = _interp_matrix(H, Ho).astype(bf16)        # (Ho, H)

    # ---- W-pass: transpose up_p to NHWC while small (1/4 the full-res bytes),
    #      then batched left-multiply by rx writes (N, H, Wo, Cin) directly.
    u_nhwc = up_p.transpose(0, 2, 3, 1).astype(bf16).reshape(N * H, W, Cin)
    th = min(N * H, 1024)
    a = pl.pallas_call(
        _wpass_kernel,
        out_shape=jax.ShapeDtypeStruct((N * H, Wo, Cin), bf16),
        grid=(pl.cdiv(N * H, th),),
        in_specs=[pl.BlockSpec((th, W, Cin), lambda i: (i, 0, 0)),
                  pl.BlockSpec((Wo, W), lambda i: (0, 0))],
        out_specs=pl.BlockSpec((th, Wo, Cin), lambda i: (i, 0, 0)),
        compiler_params=_params("parallel"),
    )(u_nhwc, rx)

    # ---- H-pass fused with skip-add; conv input s lands in (N, Ho*Wo, Cin).
    a = a.reshape(N, H, Wo * Cin)
    x_nhwc = x_p.transpose(0, 2, 3, 1).reshape(N, Ho, Wo * Cin)   # f32
    s = pl.pallas_call(
        _hpass_add_kernel,
        out_shape=jax.ShapeDtypeStruct((N, Ho, Wo * Cin), bf16),
        grid=(N,),
        in_specs=[pl.BlockSpec((1, H, Wo * Cin), lambda n: (n, 0, 0)),
                  pl.BlockSpec((1, Ho, Wo * Cin), lambda n: (n, 0, 0)),
                  pl.BlockSpec((Ho, H), lambda n: (0, 0))],
        out_specs=pl.BlockSpec((1, Ho, Wo * Cin), lambda n: (n, 0, 0)),
        compiler_params=_params("parallel"),
    )(a, x_nhwc, ry)
    s = s.reshape(N, HW, Cin)

    # ---- 3x3 conv as one im2col dot per image + BN partial statistics.
    # im2col weight rows match the slab's (ky, kx, ci) column order.
    wk = jnp.transpose(weight, (2, 3, 1, 0)).reshape(9 * Cin, Cout).astype(bf16)
    bvec = bias.reshape(1, Cout).astype(jnp.float32)

    pad_top = ((Wo + 1 + 31) // 32) * 32           # >= Wo+1 halo, bf16-tile aligned
    pad_rows = pad_top + HW + pad_top

    kernel = functools.partial(_conv_bn_stats_kernel, Ho=Ho, Wo=Wo, Cin=Cin,
                               Cout=Cout, pad_top=pad_top, pad_rows=pad_rows)
    # TODO(synk): at production resolutions add a spatial row-tile grid axis
    # (with per-tile halo and per-tile BN partials) so the per-step footprint
    # fits v7x's 64 MiB VMEM and both TensorCores stay fed at small N.
    conv_out, ssum, ssq = pl.pallas_call(
        kernel,
        out_shape=(jax.ShapeDtypeStruct((N, HW, Cout), bf16),
                   jax.ShapeDtypeStruct((N, 1, Cout), jnp.float32),
                   jax.ShapeDtypeStruct((N, 1, Cout), jnp.float32)),
        grid=(N,),
        in_specs=[
            pl.BlockSpec((1, HW, Cin), lambda n: (n, 0, 0)),
            pl.BlockSpec((9 * Cin, Cout), lambda n: (0, 0)),
            pl.BlockSpec((1, Cout), lambda n: (0, 0)),
        ],
        out_specs=(
            pl.BlockSpec((1, HW, Cout), lambda n: (n, 0, 0)),
            pl.BlockSpec((1, 1, Cout), lambda n: (n, 0, 0)),
            pl.BlockSpec((1, 1, Cout), lambda n: (n, 0, 0)),
        ),
        scratch_shapes=[pltpu.VMEM((pad_rows, Cin), bf16),
                        pltpu.VMEM((HW, 9 * Cin), bf16)],
        compiler_params=_params("parallel"),
    )(s, wk, bvec)

    # ---- finalize BN statistics (training-mode forward: biased batch variance)
    # TODO(synk): PyTorch also updates running_mean/var as a side effect; not modeled.
    cnt = float(N * HW)
    mean = jnp.sum(ssum, axis=0)[0] / cnt                      # (Cout,)
    var = jnp.maximum(jnp.sum(ssq, axis=0)[0] / cnt - mean * mean, 0.0)
    inv = gamma * jax.lax.rsqrt(var + eps)
    scale = inv.reshape(1, Cout).astype(jnp.float32)
    shift = (beta - mean * inv).reshape(1, Cout).astype(jnp.float32)

    # ---- BN + ReLU + NHWC->NCHW in one pass (lane-dense NCHW writes).
    tr = _pick_row_tile(HW)
    out_nchw = pl.pallas_call(
        _bn_relu_nchw_kernel,
        out_shape=jax.ShapeDtypeStruct((N, Cout, HW), jnp.float32),
        grid=(N, HW // tr),
        in_specs=[pl.BlockSpec((1, tr, Cout), lambda n, r: (n, r, 0)),
                  pl.BlockSpec((1, Cout), lambda n, r: (0, 0)),
                  pl.BlockSpec((1, Cout), lambda n, r: (0, 0))],
        out_specs=pl.BlockSpec((1, Cout, tr), lambda n, r: (n, 0, r)),
        compiler_params=_params("parallel", "parallel"),
    )(conv_out, scale, shift)

    return out_nchw.reshape(N, Cout, Ho, Wo)


def _reference_forward(up_p, x_p, weight, bias, gamma, beta, eps=1e-5):
    """Pure-JAX reference matching PyTorch UnetBlock.forward (training-mode BN)."""
    N, Cin, H, W = up_p.shape
    Ho, Wo = 2 * H, 2 * W
    ry = _interp_matrix(H, Ho)
    rx = _interp_matrix(W, Wo)
    up = jnp.einsum('oh,nchw->ncow', ry, up_p)
    up = jnp.einsum('pw,ncow->ncop', rx, up)
    s = up + x_p
    y = jax.lax.conv_general_dilated(
        s, weight, window_strides=(1, 1), padding='SAME',
        dimension_numbers=('NCHW', 'OIHW', 'NCHW')) + bias[None, :, None, None]
    mean = y.mean(axis=(0, 2, 3), keepdims=True)
    var = y.var(axis=(0, 2, 3), keepdims=True)    # biased, like PyTorch training BN
    yn = (y - mean) / jnp.sqrt(var + eps)
    yn = yn * gamma[None, :, None, None] + beta[None, :, None, None]
    return jnp.maximum(yn, 0.0)


if __name__ == "__main__":
    N, Cin, Cout, H, W = 2, 4, 8, 8, 8            # up_in1=4, up_out=8
    Ho, Wo = 2 * H, 2 * W

    key = jax.random.PRNGKey(0)
    k_w, k_b, k_up, k_x = jax.random.split(key, 4)

    # Deterministic init mirroring the module's __init__:
    # xavier_normal_ conv weight, PyTorch-default conv bias, bn.weight=1, bn.bias=0.
    fan_in, fan_out = Cin * 9, Cout * 9
    std = math.sqrt(2.0 / (fan_in + fan_out))
    weight = std * jax.random.normal(k_w, (Cout, Cin, 3, 3), jnp.float32)
    bound = 1.0 / math.sqrt(fan_in)
    bias = jax.random.uniform(k_b, (Cout,), jnp.float32, -bound, bound)
    gamma = jnp.ones((Cout,), jnp.float32)
    beta = jnp.zeros((Cout,), jnp.float32)

    up_p = jax.random.normal(k_up, (N, Cin, H, W), jnp.float32)
    x_p = jax.random.normal(k_x, (N, Cin, Ho, Wo), jnp.float32)

    out = unet_block_forward(up_p, x_p, weight, bias, gamma, beta)
    out = jax.block_until_ready(out)

    ref = _reference_forward(up_p, x_p, weight, bias, gamma, beta)
    np.testing.assert_allclose(np.asarray(out), np.asarray(ref), atol=3e-2, rtol=3e-2)
    print("KERNEL_OK")
</pallas_src>

<mosaic_0001>
module attributes {stable_mosaic.version = 11 : i64} {
  func.func private @main(%arg0: i32) attributes {dimension_semantics = [#tpu.dimension_semantics<core_parallel>], iteration_bounds = array<i64: 2>, tpu.core_type = #tpu.core_type<sc_scalar_subcore>, window_params = []} {
    return
  }
}

module attributes {stable_mosaic.version = 11 : i64} {
  func.func private @main(%arg0: i32) attributes {dimension_semantics = [#tpu.dimension_semantics<core_parallel>], iteration_bounds = array<i64: 2>, tpu.core_type = #tpu.core_type<sc_scalar_subcore>, window_params = []} {
    return
  }
}

module attributes {stable_mosaic.version = 11 : i64} {
  func.func @_wpass_kernel(%arg0: i32, %arg1: memref<16x8x4xbf16, #tpu.memory_space<vmem>>, %arg2: memref<16x8xbf16, #tpu.memory_space<vmem>>, %arg3: memref<16x16x4xbf16, #tpu.memory_space<vmem>>) attributes {dimension_semantics = [#tpu.dimension_semantics<parallel>], iteration_bounds = array<i64: 1>, scalar_prefetch = 0 : i64, scratch_operands = 0 : i64, tpu.core_type = #tpu.core_type<tc>, window_params = [{transform_indices = @transform_0, window_bounds = array<i64: 16, 8, 4>}, {pipeline_mode = #tpu.pipeline_mode<synchronous>, transform_indices = @transform_1, window_bounds = array<i64: 16, 8>}, {transform_indices = @transform_2, window_bounds = array<i64: 16, 16, 4>}]} {
    %c0 = arith.constant 0 : index
    %c0_0 = arith.constant 0 : index
    %c0_1 = arith.constant 0 : index
    %0 = vector.load %arg1[%c0, %c0_0, %c0_1] : memref<16x8x4xbf16, #tpu.memory_space<vmem>>, vector<16x8x4xbf16>
    %c0_2 = arith.constant 0 : index
    %c0_3 = arith.constant 0 : index
    %1 = vector.load %arg2[%c0_2, %c0_3] : memref<16x8xbf16, #tpu.memory_space<vmem>>, vector<16x8xbf16>
    %2 = vector.shape_cast %1 : vector<16x8xbf16> to vector<1x16x8xbf16>
    %3 = vector.shape_cast %2 : vector<1x16x8xbf16> to vector<1x16x8xbf16>
    %4 = vector.broadcast %3 : vector<1x16x8xbf16> to vector<16x16x8xbf16>
    %cst = arith.constant dense<0.000000e+00> : vector<16x16x4xf32>
    %5 = tpu.matmul %4, %0, %cst {dimension_numbers = #tpu.dot_dimension_numbers<[2], [1], [1], [2], [0, 0, 0, 1, 1, 2], [0], [0]>} : vector<16x16x8xbf16>, vector<16x8x4xbf16>, vector<16x16x4xf32> -> vector<16x16x4xf32>
    %6 = arith.truncf %5 : vector<16x16x4xf32> to vector<16x16x4xbf16>
    %c0_4 = arith.constant 0 : index
    %c0_5 = arith.constant 0 : index
    %c0_6 = arith.constant 0 : index
    %7 = vector.load %arg3[%c0_4, %c0_5, %c0_6] : memref<16x16x4xbf16, #tpu.memory_space<vmem>>, vector<16x16x4xbf16>
    tpu.vector_store %arg3[%c0_4, %c0_5, %c0_6], %6 {strides = array<i32>} : memref<16x16x4xbf16, #tpu.memory_space<vmem>>, vector<16x16x4xbf16>,
    return
  }
  func.func @transform_0(%arg0: i32) -> (i32, i32, i32) {
    %c0_i32 = arith.constant 0 : i32
    %c0_i32_0 = arith.constant 0 : i32
    %c0_i32_1 = arith.constant 0 : i32
    return %arg0, %c0_i32, %c0_i32_0 : i32, i32, i32
  }
  func.func @transform_1(%arg0: i32) -> (i32, i32) {
    %c0_i32 = arith.constant 0 : i32
    %c0_i32_0 = arith.constant 0 : i32
    %c0_i32_1 = arith.constant 0 : i32
    return %c0_i32, %c0_i32_0 : i32, i32
  }
  func.func @transform_2(%arg0: i32) -> (i32, i32, i32) {
    %c0_i32 = arith.constant 0 : i32
    %c0_i32_0 = arith.constant 0 : i32
    %c0_i32_1 = arith.constant 0 : i32
    return %arg0, %c0_i32, %c0_i32_0 : i32, i32, i32
  }
}

module attributes {stable_mosaic.version = 11 : i64} {
  func.func @_hpass_add_kernel(%arg0: i32, %arg1: memref<1x8x64xbf16, #tpu.memory_space<vmem>>, %arg2: memref<1x16x64xf32, #tpu.memory_space<vmem>>, %arg3: memref<16x8xbf16, #tpu.memory_space<vmem>>, %arg4: memref<1x16x64xbf16, #tpu.memory_space<vmem>>) attributes {dimension_semantics = [#tpu.dimension_semantics<parallel>], iteration_bounds = array<i64: 2>, scalar_prefetch = 0 : i64, scratch_operands = 0 : i64, tpu.core_type = #tpu.core_type<tc>, window_params = [{transform_indices = @transform_0, window_bounds = array<i64: 1, 8, 64>}, {transform_indices = @transform_1, window_bounds = array<i64: 1, 16, 64>}, {pipeline_mode = #tpu.pipeline_mode<synchronous>, transform_indices = @transform_2, window_bounds = array<i64: 16, 8>}, {transform_indices = @transform_3, window_bounds = array<i64: 1, 16, 64>}]} {
    %c0 = arith.constant 0 : index
    %c0_0 = arith.constant 0 : index
    %0 = vector.load %arg3[%c0, %c0_0] : memref<16x8xbf16, #tpu.memory_space<vmem>>, vector<16x8xbf16>
    %c0_1 = arith.constant 0 : index
    %c0_2 = arith.constant 0 : index
    %c0_3 = arith.constant 0 : index
    %1 = vector.load %arg1[%c0_1, %c0_2, %c0_3] : memref<1x8x64xbf16, #tpu.memory_space<vmem>>, vector<1x8x64xbf16>
    %2 = vector.shape_cast %1 : vector<1x8x64xbf16> to vector<8x64xbf16>
    %cst = arith.constant dense<0.000000e+00> : vector<16x64xf32>
    %3 = tpu.matmul %0, %2, %cst {dimension_numbers = #tpu.dot_dimension_numbers<[1], [0], [0], [1], [0, 0, 1, 1], [], []>} : vector<16x8xbf16>, vector<8x64xbf16>, vector<16x64xf32> -> vector<16x64xf32>
    %c0_4 = arith.constant 0 : index
    %c0_5 = arith.constant 0 : index
    %c0_6 = arith.constant 0 : index
    %4 = vector.load %arg2[%c0_4, %c0_5, %c0_6] : memref<1x16x64xf32, #tpu.memory_space<vmem>>, vector<1x16x64xf32>
    %5 = vector.shape_cast %4 : vector<1x16x64xf32> to vector<16x64xf32>
    %6 = arith.addf %3, %5 : vector<16x64xf32>
    %7 = arith.truncf %6 : vector<16x64xf32> to vector<16x64xbf16>
    %c0_7 = arith.constant 0 : index
    %c0_8 = arith.constant 0 : index
    %c0_9 = arith.constant 0 : index
    %8 = vector.load %arg4[%c0_7, %c0_8, %c0_9] : memref<1x16x64xbf16, #tpu.memory_space<vmem>>, vector<1x16x64xbf16>
    %9 = vector.shape_cast %8 : vector<1x16x64xbf16> to vector<16x64xbf16>
    %10 = vector.shape_cast %7 : vector<16x64xbf16> to vector<1x16x64xbf16>
    tpu.vector_store %arg4[%c0_7, %c0_8, %c0_9], %10 {strides = array<i32>} : memref<1x16x64xbf16, #tpu.memory_space<vmem>>, vector<1x16x64xbf16>,
    return
  }
  func.func @transform_0(%arg0: i32) -> (i32, i32, i32) {
    %c0_i32 = arith.constant 0 : i32
    %c0_i32_0 = arith.constant 0 : i32
    %c0_i32_1 = arith.constant 0 : i32
    return %arg0, %c0_i32, %c0_i32_0 : i32, i32, i32
  }
  func.func @transform_1(%arg0: i32) -> (i32, i32, i32) {
    %c0_i32 = arith.constant 0 : i32
    %c0_i32_0 = arith.constant 0 : i32
    %c0_i32_1 = arith.constant 0 : i32
    return %arg0, %c0_i32, %c0_i32_0 : i32, i32, i32
  }
  func.func @transform_2(%arg0: i32) -> (i32, i32) {
    %c0_i32 = arith.constant 0 : i32
    %c0_i32_0 = arith.constant 0 : i32
    %c0_i32_1 = arith.constant 0 : i32
    return %c0_i32, %c0_i32_0 : i32, i32
  }
  func.func @transform_3(%arg0: i32) -> (i32, i32, i32) {
    %c0_i32 = arith.constant 0 : i32
    %c0_i32_0 = arith.constant 0 : i32
    %c0_i32_1 = arith.constant 0 : i32
    return %arg0, %c0_i32, %c0_i32_0 : i32, i32, i32
  }
}

module attributes {stable_mosaic.version = 11 : i64} {
  func.func @_conv_bn_stats_kernel(%arg0: i32, %arg1: memref<1x256x4xbf16, #tpu.memory_space<vmem>>, %arg2: memref<36x8xbf16, #tpu.memory_space<vmem>>, %arg3: memref<1x8xf32, #tpu.memory_space<vmem>>, %arg4: memref<1x256x8xbf16, #tpu.memory_space<vmem>>, %arg5: memref<1x1x8xf32, #tpu.memory_space<vmem>>, %arg6: memref<1x1x8xf32, #tpu.memory_space<vmem>>, %arg7: memref<320x4xbf16, #tpu.memory_space<vmem>>, %arg8: memref<256x36xbf16, #tpu.memory_space<vmem>>) attributes {dimension_semantics = [#tpu.dimension_semantics<parallel>], iteration_bounds = array<i64: 2>, scalar_prefetch = 0 : i64, scratch_operands = 2 : i64, tpu.core_type = #tpu.core_type<tc>, window_params = [{transform_indices = @transform_0, window_bounds = array<i64: 1, 256, 4>}, {pipeline_mode = #tpu.pipeline_mode<synchronous>, transform_indices = @transform_1, window_bounds = array<i64: 36, 8>}, {pipeline_mode = #tpu.pipeline_mode<synchronous>, transform_indices = @transform_2, window_bounds = array<i64: 1, 8>}, {transform_indices = @transform_3, window_bounds = array<i64: 1, 256, 8>}, {transform_indices = @transform_4, window_bounds = array<i64: 1, 1, 8>}, {transform_indices = @transform_5, window_bounds = array<i64: 1, 1, 8>}]} {
    %cst = arith.constant 0.000000e+00 : bf16
    %0 = vector.broadcast %cst : bf16 to vector<32x4xbf16>
    %c0 = arith.constant 0 : index
    %c0_0 = arith.constant 0 : index
    %1 = vector.load %arg7[%c0, %c0_0] : memref<320x4xbf16, #tpu.memory_space<vmem>>, vector<32x4xbf16>
    tpu.vector_store %arg7[%c0, %c0_0], %0 {strides = array<i32>} : memref<320x4xbf16, #tpu.memory_space<vmem>>, vector<32x4xbf16>,
    %cst_1 = arith.constant 0.000000e+00 : bf16
    %2 = vector.broadcast %cst_1 : bf16 to vector<32x4xbf16>
    %c288 = arith.constant 288 : index
    %c0_2 = arith.constant 0 : index
    %3 = vector.load %arg7[%c288, %c0_2] : memref<320x4xbf16, #tpu.memory_space<vmem>>, vector<32x4xbf16>
    tpu.vector_store %arg7[%c288, %c0_2], %2 {strides = array<i32>} : memref<320x4xbf16, #tpu.memory_space<vmem>>, vector<32x4xbf16>,
    %c0_3 = arith.constant 0 : index
    %c0_4 = arith.constant 0 : index
    %c0_5 = arith.constant 0 : index
    %4 = vector.load %arg1[%c0_3, %c0_4, %c0_5] : memref<1x256x4xbf16, #tpu.memory_space<vmem>>, vector<1x256x4xbf16>
    %5 = vector.shape_cast %4 : vector<1x256x4xbf16> to vector<256x4xbf16>
    %c32 = arith.constant 32 : index
    %c0_6 = arith.constant 0 : index
    %6 = vector.load %arg7[%c32, %c0_6] : memref<320x4xbf16, #tpu.memory_space<vmem>>, vector<256x4xbf16>
    tpu.vector_store %arg7[%c32, %c0_6], %5 {strides = array<i32>} : memref<320x4xbf16, #tpu.memory_space<vmem>>, vector<256x4xbf16>,
    %7 = tpu.iota {dimensions = array<i32: 0>} : vector<256x1xi32>
    %c16_i32 = arith.constant 16 : i32
    %c0_i32 = arith.constant 0 : i32
    %8 = arith.cmpi eq, %c16_i32, %c0_i32 : i32
    %c1_i32 = arith.constant 1 : i32
    %9 = arith.select %8, %c1_i32, %c16_i32 : i32
    %10 = vector.broadcast %9 : i32 to vector<256x1xi32>
    %11 = arith.remsi %7, %10 : vector<256x1xi32>
    %c0_i32_7 = arith.constant 0 : i32
    %12 = vector.broadcast %c0_i32_7 : i32 to vector<256x1xi32>
    %13 = arith.cmpi ne, %11, %12 : vector<256x1xi32>
    %c0_i32_8 = arith.constant 0 : i32
    %14 = vector.broadcast %c0_i32_8 : i32 to vector<256x1xi32>
    %15 = arith.cmpi slt, %11, %14 : vector<256x1xi32>
    %c0_i32_9 = arith.constant 0 : i32
    %16 = arith.cmpi slt, %9, %c0_i32_9 : i32
    %17 = vector.broadcast %16 : i1 to vector<256x1xi1>
    %18 = vector.broadcast %17 : vector<256x1xi1> to vector<256x1xi1>
    %19 = arith.xori %15, %18 : vector<256x1xi1>
    %20 = arith.andi %19, %13 : vector<256x1xi1>
    %21 = vector.broadcast %9 : i32 to vector<256x1xi32>
    %22 = arith.addi %11, %21 : vector<256x1xi32>
    %23 = arith.select %20, %22, %11 : vector<256x1xi1>, vector<256x1xi32>
    %c0_i32_10 = arith.constant 0 : i32
    %24 = vector.broadcast %c0_i32_10 : i32 to vector<256x1xi32>
    %25 = arith.cmpi ne, %23, %24 : vector<256x1xi32>
    %26 = arith.extui %25 : vector<256x1xi1> to vector<256x1xi32>
    %27 = arith.sitofp %26 : vector<256x1xi32> to vector<256x1xf32>
    %28 = arith.truncf %27 : vector<256x1xf32> to vector<256x1xbf16>
    %c15_i32 = arith.constant 15 : i32
    %29 = vector.broadcast %c15_i32 : i32 to vector<256x1xi32>
    %30 = arith.cmpi ne, %23, %29 : vector<256x1xi32>
    %31 = arith.extui %30 : vector<256x1xi1> to vector<256x1xi32>
    %32 = arith.sitofp %31 : vector<256x1xi32> to vector<256x1xf32>
    %33 = arith.truncf %32 : vector<256x1xf32> to vector<256x1xbf16>
    %c15 = arith.constant 15 : index
    %c0_11 = arith.constant 0 : index
    %34 = vector.load %arg7[%c15, %c0_11] : memref<320x4xbf16, #tpu.memory_space<vmem>>, vector<256x4xbf16>
    %35 = vector.broadcast %28 : vector<256x1xbf16> to vector<256x4xbf16>
    %36 = arith.mulf %34, %35 : vector<256x4xbf16>
    %c0_12 = arith.constant 0 : index
    %c0_13 = arith.constant 0 : index
    %37 = vector.load %arg8[%c0_12, %c0_13] : memref<256x36xbf16, #tpu.memory_space<vmem>>, vector<256x4xbf16>
    tpu.vector_store %arg8[%c0_12, %c0_13], %36 {strides = array<i32>} : memref<256x36xbf16, #tpu.memory_space<vmem>>, vector<256x4xbf16>,
    %c16 = arith.constant 16 : index
    %c0_14 = arith.constant 0 : index
    %38 = vector.load %arg7[%c16, %c0_14] : memref<320x4xbf16, #tpu.memory_space<vmem>>, vector<256x4xbf16>
    %c0_15 = arith.constant 0 : index
    %c4 = arith.constant 4 : index
    %39 = vector.load %arg8[%c0_15, %c4] : memref<256x36xbf16, #tpu.memory_space<vmem>>, vector<256x4xbf16>
    tpu.vector_store %arg8[%c0_15, %c4], %38 {strides = array<i32>} : memref<256x36xbf16, #tpu.memory_space<vmem>>, vector<256x4xbf16>,
    %c17 = arith.constant 17 : index
    %c0_16 = arith.constant 0 : index
    %40 = vector.load %arg7[%c17, %c0_16] : memref<320x4xbf16, #tpu.memory_space<vmem>>, vector<256x4xbf16>
    %41 = vector.broadcast %33 : vector<256x1xbf16> to vector<256x4xbf16>
    %42 = arith.mulf %40, %41 : vector<256x4xbf16>
    %c0_17 = arith.constant 0 : index
    %c8 = arith.constant 8 : index
    %43 = vector.load %arg8[%c0_17, %c8] : memref<256x36xbf16, #tpu.memory_space<vmem>>, vector<256x4xbf16>
    tpu.vector_store %arg8[%c0_17, %c8], %42 {strides = array<i32>} : memref<256x36xbf16, #tpu.memory_space<vmem>>, vector<256x4xbf16>,
    %c31 = arith.constant 31 : index
    %c0_18 = arith.constant 0 : index
    %44 = vector.load %arg7[%c31, %c0_18] : memref<320x4xbf16, #tpu.memory_space<vmem>>, vector<256x4xbf16>
    %45 = vector.broadcast %28 : vector<256x1xbf16> to vector<256x4xbf16>
    %46 = arith.mulf %44, %45 : vector<256x4xbf16>
    %c0_19 = arith.constant 0 : index
    %c12 = arith.constant 12 : index
    %47 = vector.load %arg8[%c0_19, %c12] : memref<256x36xbf16, #tpu.memory_space<vmem>>, vector<256x4xbf16>
    tpu.vector_store %arg8[%c0_19, %c12], %46 {strides = array<i32>} : memref<256x36xbf16, #tpu.memory_space<vmem>>, vector<256x4xbf16>,
    %c32_20 = arith.constant 32 : index
    %c0_21 = arith.constant 0 : index
    %48 = vector.load %arg7[%c32_20, %c0_21] : memref<320x4xbf16, #tpu.memory_space<vmem>>, vector<256x4xbf16>
    %c0_22 = arith.constant 0 : index
    %c16_23 = arith.constant 16 : index
    %49 = vector.load %arg8[%c0_22, %c16_23] : memref<256x36xbf16, #tpu.memory_space<vmem>>, vector<256x4xbf16>
    tpu.vector_store %arg8[%c0_22, %c16_23], %48 {strides = array<i32>} : memref<256x36xbf16, #tpu.memory_space<vmem>>, vector<256x4xbf16>,
    %c33 = arith.constant 33 : index
    %c0_24 = arith.constant 0 : index
    %50 = vector.load %arg7[%c33, %c0_24] : memref<320x4xbf16, #tpu.memory_space<vmem>>, vector<256x4xbf16>
    %51 = vector.broadcast %33 : vector<256x1xbf16> to vector<256x4xbf16>
    %52 = arith.mulf %50, %51 : vector<256x4xbf16>
    %c0_25 = arith.constant 0 : index
    %c20 = arith.constant 20 : index
    %53 = vector.load %arg8[%c0_25, %c20] : memref<256x36xbf16, #tpu.memory_space<vmem>>, vector<256x4xbf16>
    tpu.vector_store %arg8[%c0_25, %c20], %52 {strides = array<i32>} : memref<256x36xbf16, #tpu.memory_space<vmem>>, vector<256x4xbf16>,
    %c47 = arith.constant 47 : index
    %c0_26 = arith.constant 0 : index
    %54 = vector.load %arg7[%c47, %c0_26] : memref<320x4xbf16, #tpu.memory_space<vmem>>, vector<256x4xbf16>
    %55 = vector.broadcast %28 : vector<256x1xbf16> to vector<256x4xbf16>
    %56 = arith.mulf %54, %55 : vector<256x4xbf16>
    %c0_27 = arith.constant 0 : index
    %c24 = arith.constant 24 : index
    %57 = vector.load %arg8[%c0_27, %c24] : memref<256x36xbf16, #tpu.memory_space<vmem>>, vector<256x4xbf16>
    tpu.vector_store %arg8[%c0_27, %c24], %56 {strides = array<i32>} : memref<256x36xbf16, #tpu.memory_space<vmem>>, vector<256x4xbf16>,
    %c48 = arith.constant 48 : index
    %c0_28 = arith.constant 0 : index
    %58 = vector.load %arg7[%c48, %c0_28] : memref<320x4xbf16, #tpu.memory_space<vmem>>, vector<256x4xbf16>
    %c0_29 = arith.constant 0 : index
    %c28 = arith.constant 28 : index
    %59 = vector.load %arg8[%c0_29, %c28] : memref<256x36xbf16, #tpu.memory_space<vmem>>, vector<256x4xbf16>
    tpu.vector_store %arg8[%c0_29, %c28], %58 {strides = array<i32>} : memref<256x36xbf16, #tpu.memory_space<vmem>>, vector<256x4xbf16>,
    %c49 = arith.constant 49 : index
    %c0_30 = arith.constant 0 : index
    %60 = vector.load %arg7[%c49, %c0_30] : memref<320x4xbf16, #tpu.memory_space<vmem>>, vector<256x4xbf16>
    %61 = vector.broadcast %33 : vector<256x1xbf16> to vector<256x4xbf16>
    %62 = arith.mulf %60, %61 : vector<256x4xbf16>
    %c0_31 = arith.constant 0 : index
    %c32_32 = arith.constant 32 : index
    %63 = vector.load %arg8[%c0_31, %c32_32] : memref<256x36xbf16, #tpu.memory_space<vmem>>, vector<256x4xbf16>
    tpu.vector_store %arg8[%c0_31, %c32_32], %62 {strides = array<i32>} : memref<256x36xbf16, #tpu.memory_space<vmem>>, vector<256x4xbf16>,
    %c0_33 = arith.constant 0 : index
    %c0_34 = arith.constant 0 : index
    %64 = vector.load %arg8[%c0_33, %c0_34] : memref<256x36xbf16, #tpu.memory_space<vmem>>, vector<256x36xbf16>
    %c0_35 = arith.constant 0 : index
    %c0_36 = arith.constant 0 : index
    %65 = vector.load %arg2[%c0_35, %c0_36] : memref<36x8xbf16, #tpu.memory_space<vmem>>, vector<36x8xbf16>
    %cst_37 = arith.constant dense<0.000000e+00> : vector<256x8xf32>
    %66 = tpu.matmul %64, %65, %cst_37 {dimension_numbers = #tpu.dot_dimension_numbers<[1], [0], [0], [1], [0, 0, 1, 1], [], []>} : vector<256x36xbf16>, vector<36x8xbf16>, vector<256x8xf32> -> vector<256x8xf32>
    %c0_38 = arith.constant 0 : index
    %c0_39 = arith.constant 0 : index
    %67 = vector.load %arg3[%c0_38, %c0_39] : memref<1x8xf32, #tpu.memory_space<vmem>>, vector<1x8xf32>
    %68 = vector.broadcast %67 : vector<1x8xf32> to vector<256x8xf32>
    %69 = arith.addf %66, %68 : vector<256x8xf32>
    %70 = arith.truncf %69 : vector<256x8xf32> to vector<256x8xbf16>
    %c0_40 = arith.constant 0 : index
    %c0_41 = arith.constant 0 : index
    %c0_42 = arith.constant 0 : index
    %71 = vector.load %arg4[%c0_40, %c0_41, %c0_42] : memref<1x256x8xbf16, #tpu.memory_space<vmem>>, vector<1x256x8xbf16>
    %72 = vector.shape_cast %71 : vector<1x256x8xbf16> to vector<256x8xbf16>
    %73 = vector.shape_cast %70 : vector<256x8xbf16> to vector<1x256x8xbf16>
    tpu.vector_store %arg4[%c0_40, %c0_41, %c0_42], %73 {strides = array<i32>} : memref<1x256x8xbf16, #tpu.memory_space<vmem>>, vector<1x256x8xbf16>,
    %cst_43 = arith.constant dense<0.000000e+00> : vector<8xf32>
    %74 = vector.multi_reduction <add>, %69, %cst_43 [0] : vector<256x8xf32> to vector<8xf32>
    %75 = vector.shape_cast %74 : vector<8xf32> to vector<1x8xf32>
    %c0_44 = arith.constant 0 : index
    %c0_45 = arith.constant 0 : index
    %c0_46 = arith.constant 0 : index
    %76 = vector.load %arg5[%c0_44, %c0_45, %c0_46] : memref<1x1x8xf32, #tpu.memory_space<vmem>>, vector<1x1x8xf32>
    %77 = vector.shape_cast %76 : vector<1x1x8xf32> to vector<1x8xf32>
    %78 = vector.shape_cast %75 : vector<1x8xf32> to vector<1x1x8xf32>
    tpu.vector_store %arg5[%c0_44, %c0_45, %c0_46], %78 {strides = array<i32>} : memref<1x1x8xf32, #tpu.memory_space<vmem>>, vector<1x1x8xf32>,
    %79 = arith.mulf %69, %69 : vector<256x8xf32>
    %cst_47 = arith.constant dense<0.000000e+00> : vector<8xf32>
    %80 = vector.multi_reduction <add>, %79, %cst_47 [0] : vector<256x8xf32> to vector<8xf32>
    %81 = vector.shape_cast %80 : vector<8xf32> to vector<1x8xf32>
    %c0_48 = arith.constant 0 : index
    %c0_49 = arith.constant 0 : index
    %c0_50 = arith.constant 0 : index
    %82 = vector.load %arg6[%c0_48, %c0_49, %c0_50] : memref<1x1x8xf32, #tpu.memory_space<vmem>>, vector<1x1x8xf32>
    %83 = vector.shape_cast %82 : vector<1x1x8xf32> to vector<1x8xf32>
    %84 = vector.shape_cast %81 : vector<1x8xf32> to vector<1x1x8xf32>
    tpu.vector_store %arg6[%c0_48, %c0_49, %c0_50], %84 {strides = array<i32>} : memref<1x1x8xf32, #tpu.memory_space<vmem>>, vector<1x1x8xf32>,
    return
  }
  func.func @transform_0(%arg0: i32) -> (i32, i32, i32) {
    %c0_i32 = arith.constant 0 : i32
    %c0_i32_0 = arith.constant 0 : i32
    %c0_i32_1 = arith.constant 0 : i32
    return %arg0, %c0_i32, %c0_i32_0 : i32, i32, i32
  }
  func.func @transform_1(%arg0: i32) -> (i32, i32) {
    %c0_i32 = arith.constant 0 : i32
    %c0_i32_0 = arith.constant 0 : i32
    %c0_i32_1 = arith.constant 0 : i32
    return %c0_i32, %c0_i32_0 : i32, i32
  }
  func.func @transform_2(%arg0: i32) -> (i32, i32) {
    %c0_i32 = arith.constant 0 : i32
    %c0_i32_0 = arith.constant 0 : i32
    %c0_i32_1 = arith.constant 0 : i32
    return %c0_i32, %c0_i32_0 : i32, i32
  }
  func.func @transform_3(%arg0: i32) -> (i32, i32, i32) {
    %c0_i32 = arith.constant 0 : i32
    %c0_i32_0 = arith.constant 0 : i32
    %c0_i32_1 = arith.constant 0 : i32
    return %arg0, %c0_i32, %c0_i32_0 : i32, i32, i32
  }
  func.func @transform_4(%arg0: i32) -> (i32, i32, i32) {
    %c0_i32 = arith.constant 0 : i32
    %c0_i32_0 = arith.constant 0 : i32
    %c0_i32_1 = arith.constant 0 : i32
    return %arg0, %c0_i32, %c0_i32_0 : i32, i32, i32
  }
  func.func @transform_5(%arg0: i32) -> (i32, i32, i32) {
    %c0_i32 = arith.constant 0 : i32
    %c0_i32_0 = arith.constant 0 : i32
    %c0_i32_1 = arith.constant 0 : i32
    return %arg0, %c0_i32, %c0_i32_0 : i32, i32, i32
  }
}

module attributes {stable_mosaic.version = 11 : i64} {
  func.func @_bn_relu_nchw_kernel(%arg0: i32, %arg1: i32, %arg2: memref<1x256x8xbf16, #tpu.memory_space<vmem>>, %arg3: memref<1x8xf32, #tpu.memory_space<vmem>>, %arg4: memref<1x8xf32, #tpu.memory_space<vmem>>, %arg5: memref<1x8x256xf32, #tpu.memory_space<vmem>>) attributes {dimension_semantics = [#tpu.dimension_semantics<parallel>, #tpu.dimension_semantics<parallel>], iteration_bounds = array<i64: 2, 1>, scalar_prefetch = 0 : i64, scratch_operands = 0 : i64, tpu.core_type = #tpu.core_type<tc>, window_params = [{transform_indices = @transform_0, window_bounds = array<i64: 1, 256, 8>}, {pipeline_mode = #tpu.pipeline_mode<synchronous>, transform_indices = @transform_1, window_bounds = array<i64: 1, 8>}, {pipeline_mode = #tpu.pipeline_mode<synchronous>, transform_indices = @transform_2, window_bounds = array<i64: 1, 8>}, {transform_indices = @transform_3, window_bounds = array<i64: 1, 8, 256>}]} {
    %c0 = arith.constant 0 : index
    %c0_0 = arith.constant 0 : index
    %c0_1 = arith.constant 0 : index
    %0 = vector.load %arg2[%c0, %c0_0, %c0_1] : memref<1x256x8xbf16, #tpu.memory_space<vmem>>, vector<1x256x8xbf16>
    %1 = vector.shape_cast %0 : vector<1x256x8xbf16> to vector<256x8xbf16>
    %2 = arith.extf %1 : vector<256x8xbf16> to vector<256x8xf32>
    %c0_2 = arith.constant 0 : index
    %c0_3 = arith.constant 0 : index
    %3 = vector.load %arg3[%c0_2, %c0_3] : memref<1x8xf32, #tpu.memory_space<vmem>>, vector<1x8xf32>
    %4 = vector.broadcast %3 : vector<1x8xf32> to vector<256x8xf32>
    %5 = arith.mulf %2, %4 : vector<256x8xf32>
    %c0_4 = arith.constant 0 : index
    %c0_5 = arith.constant 0 : index
    %6 = vector.load %arg4[%c0_4, %c0_5] : memref<1x8xf32, #tpu.memory_space<vmem>>, vector<1x8xf32>
    %7 = vector.broadcast %6 : vector<1x8xf32> to vector<256x8xf32>
    %8 = arith.addf %5, %7 : vector<256x8xf32>
    %cst = arith.constant 0.000000e+00 : f32
    %9 = vector.broadcast %cst : f32 to vector<256x8xf32>
    %10 = arith.maximumf %8, %9 : vector<256x8xf32>
    %11 = tpu.transpose %10, [1, 0] : vector<256x8xf32> -> vector<8x256xf32>
    %c0_6 = arith.constant 0 : index
    %c0_7 = arith.constant 0 : index
    %c0_8 = arith.constant 0 : index
    %12 = vector.load %arg5[%c0_6, %c0_7, %c0_8] : memref<1x8x256xf32, #tpu.memory_space<vmem>>, vector<1x8x256xf32>
    %13 = vector.shape_cast %12 : vector<1x8x256xf32> to vector<8x256xf32>
    %14 = vector.shape_cast %11 : vector<8x256xf32> to vector<1x8x256xf32>
    tpu.vector_store %arg5[%c0_6, %c0_7, %c0_8], %14 {strides = array<i32>} : memref<1x8x256xf32, #tpu.memory_space<vmem>>, vector<1x8x256xf32>,
    return
  }
  func.func @transform_0(%arg0: i32, %arg1: i32) -> (i32, i32, i32) {
    %c0_i32 = arith.constant 0 : i32
    %c0_i32_0 = arith.constant 0 : i32
    return %arg0, %arg1, %c0_i32 : i32, i32, i32
  }
  func.func @transform_1(%arg0: i32, %arg1: i32) -> (i32, i32) {
    %c0_i32 = arith.constant 0 : i32
    %c0_i32_0 = arith.constant 0 : i32
    %c0_i32_1 = arith.constant 0 : i32
    return %c0_i32, %c0_i32_0 : i32, i32
  }
  func.func @transform_2(%arg0: i32, %arg1: i32) -> (i32, i32) {
    %c0_i32 = arith.constant 0 : i32
    %c0_i32_0 = arith.constant 0 : i32
    %c0_i32_1 = arith.constant 0 : i32
    return %c0_i32, %c0_i32_0 : i32, i32
  }
  func.func @transform_3(%arg0: i32, %arg1: i32) -> (i32, i32, i32) {
    %c0_i32 = arith.constant 0 : i32
    %c0_i32_0 = arith.constant 0 : i32
    return %arg0, %c0_i32, %arg1 : i32, i32, i32
  }
}

</mosaic_0001>

<bundles_post_ra>
// kernel: unet_block_forward.5
= control target key start
LH: loop header
LB: loop body
LE: loop exit
PB: predicated region body
PF: predicated region fallthrough
CT: control target
= control target key end

     0   :  { %s395_s12 = smov 0   ;;  %s418_s0 = inlined_call_operand.vmem [shape: bf16[2,8,64], index: 0, kind: input, shape index: {}]   ;;  %s419_s1 = inlined_call_operand.vmem [shape: f32[2,16,64], index: 1, kind: input, shape index: {}]   ;;  %s420_s2 = inlined_call_operand.vmem [shape: bf16[16,8], index: 2, kind: input, shape index: {}]   ;;  %s421_s3 = inlined_call_operand.vmem [shape: bf16[2,16,64], index: 3, kind: output, shape index: {}]  }
   0x1 LB: > { %s326_s13 = sadd.s32 4294967295, %s371_s12   ;;  %p330_p0 = scmp.ge.s32.totalorder %s371_s12, 1  ;;  %s371_s12 = sphi %s395_s12, %s13_s12  }
   0x2   : > { %p146_p1 = scmp.lt.s32.totalorder %s371_s12, 3 }
   0x4   : > { %p147_p2 = pnand %p330_p0, %p146_p1 }
   0x5   : > { %p174_p3 = scmp.lt.s32.totalorder (!%p147_p2), %s326_s13, 1 }
   0x6   : > { %150 = sbr.rel (%p147_p2) target bundleno = 221 (0xdd), region = 32 }
   0xb   : > { %v373_v0 = vmov 0.0   ;;  %vm374_vm0 = vmmov 0   ;;  %s423_s13 = smov (!%p174_p3, %s326_s13), 1  ;;  %vm203_vm1 = vcmask 1043456   ;;  %v364_v3 = vld [vmem:[%s420_s2] sm:$0xff]   ;;  %vm199_vm2 = vcmask 64512  }
   0xc   : > { %348 = vmatprep.subr.bf16.mxu0 %v373_v0  ;;  %350 = vmatprep.mubr.msk.bf16.mxu0 %vm374_vm0, %v373_v0  ;;  %s331_s14 = sshll.u32 %s423_s13, 2  ;;  %s342_s20 = sshll.u32 %s423_s13, 4  ;;  %vm256_vm3 = vcmask 519168  }
   0xd   : > { %s177_s17 = scalar_lea.vmem %s418_s0, %s331_s14  ;;  %s182_s23 = scalar_lea.vmem %s419_s1, %s342_s20 }
   0xe   : > { %v191_v1 = vld [vmem:[%s177_s17] sm:$0xf]  ;;  %s343_s24 = sshll.u32 %s423_s13, 3  ;;  %v193_v8 = vld [vmem:[%s182_s23 + $0x8] sm:$0xff] }
   0xf   : > { %v205_v2 = vsel %vm203_vm1, %v191_v1, 0  ;;  %v192_v4 = vld [vmem:[%s182_s23] sm:$0xff]  ;;  %s187_s27 = scalar_lea.vmem %s421_s3, %s343_s24 }
  0x10   : > { %349 = vmatpush3.bf16.msra.mxu0 %v205_v2 }
  0x13   : > { %351 = vmatmul.mubr.msk.bf16.vlgmr.msra.gmra.mxu0 %vm199_vm2, %v364_v3 }
  0xd3   : > { %v241_v5 = vpop.f32.mrf.mxu0 }
  0xd4   : > { %v242_v6 = vadd.f32 %v241_v5, %v192_v4 }
  0xd5   : > { %v352_v7 = vpop.f32.mrf.mxu0 }
  0xd6   : > { %v344_v9 = vpack.c.bf16 %v242_v6, %v242_v6 }
  0xd7   : > { %v244_v10 = vpop.f32.mrf.mxu0 }
  0xd8   : > { %257 = vst.msk [vmem:[%s187_s27] sm:$0xf] %vm256_vm3, %v344_v9  ;;  %v245_v11 = vadd.f32 %v244_v10, %v193_v8 }
  0xd9   : > { %v353_v12 = vpop.f32.mrf.mxu0 }
  0xda   : > { %v345_v13 = vpack.c.bf16 %v245_v11, %v245_v11 }
  0xdc   : > { %258 = vst.msk [vmem:[%s187_s27 + $0x4] sm:$0xf] %vm256_vm3, %v345_v13 }
  0xdd PF: > { %s13_s12 = sadd.s32 1, %s371_s12  }
  0xde   : > { %p10_p4 = scmp.ge.s32.totalorder %s13_s12, 4  }
  0xe0   :  { %12 = sbr.rel (!%p10_p4) target bundleno = 1 (0x1), region = 65 }

// kernel: unet_block_forward.4
= control target key start
LH: loop header
LB: loop body
LE: loop exit
PB: predicated region body
PF: predicated region fallthrough
CT: control target
= control target key end

     0   :  { %vm39_vm0 = vcmask 1043456   ;;  %v1121_v0 = vmov 0.0   ;;  %vm1122_vm1 = vmmov 0   ;;  %vm35_vm2 = vcmask 64512   ;;  %s1415_s0 = inlined_call_operand.vmem [shape: bf16[16,8,4], index: 0, kind: input, shape index: {}]   ;;  %s1416_s1 = inlined_call_operand.vmem [shape: bf16[16,8], index: 1, kind: input, shape index: {}]   ;;  %s1417_s2 = inlined_call_operand.vmem [shape: bf16[16,16,4], index: 2, kind: output, shape index: {}]  }
   0x1   :  { %1022 = vmatprep.subr.bf16.mxu0 %v1121_v0  ;;  %1028 = vmatprep.subr.bf16.mxu1 %v1121_v0  ;;  %v12_v1 = vld [vmem:[%s1415_s0] sm:$0xf]  ;;  %v13_v2 = vld [vmem:[%s1415_s0 + $0x4] sm:$0xf]  ;;  %v14_v6 = vld [vmem:[%s1415_s0 + $0x8] sm:$0xf] }
   0x2   :  { %v41_v3 = vsel %vm39_vm0, %v12_v1, 0  ;;  %v85_v4 = vsel %vm39_vm0, %v13_v2, 0  ;;  %1024 = vmatprep.mubr.msk.bf16.mxu0 %vm1122_vm1, %v1121_v0  ;;  %1030 = vmatprep.mubr.msk.bf16.mxu1 %vm1122_vm1, %v1121_v0  ;;  %v1155_v5 = vld [vmem:[%s1416_s1] sm:$0xff]   ;;  %v15_v7 = vld [vmem:[%s1415_s0 + $0xc] sm:$0xf]  ;;  %v129_v8 = vsel %vm39_vm0, %v14_v6, 0 }
   0x3   :  { %1023 = vmatpush3.bf16.msra.mxu0 %v41_v3  ;;  %1029 = vmatpush3.bf16.msra.mxu1 %v85_v4  ;;  %v173_v9 = vsel %vm39_vm0, %v15_v7, 0  ;;  %v16_v10 = vld [vmem:[%s1415_s0 + $0x10] sm:$0xf]  ;;  %v17_v11 = vld [vmem:[%s1415_s0 + $0x14] sm:$0xf]  ;;  %vm872_vm3 = vcmask 27648  }
   0x4   :  { %1034 = vmatprep.subr.bf16.mxu0 %v1121_v0  ;;  %1040 = vmatprep.subr.bf16.mxu1 %v1121_v0  ;;  %v217_v12 = vsel %vm39_vm0, %v16_v10, 0  ;;  %v261_v13 = vsel %vm39_vm0, %v17_v11, 0  ;;  %v18_v14 = vld [vmem:[%s1415_s0 + $0x18] sm:$0xf]  ;;  %v19_v15 = vld [vmem:[%s1415_s0 + $0x1c] sm:$0xf] }
   0x5   :  { %v305_v16 = vsel %vm39_vm0, %v18_v14, 0  ;;  %v349_v17 = vsel %vm39_vm0, %v19_v15, 0  ;;  %v20_v18 = vld [vmem:[%s1415_s0 + $0x20] sm:$0xf]  ;;  %v21_v19 = vld [vmem:[%s1415_s0 + $0x24] sm:$0xf] }
   0x6   :  { %1025 = vmatmul.mubr.msk.bf16.vlgmr.msra.gmra.mxu0 %vm35_vm2, %v1155_v5  ;;  %1031 = vmatmul.mubr.msk.bf16.vlgmr.msra.gmra.mxu1 %vm35_vm2, %v1155_v5  ;;  %v393_v20 = vsel %vm39_vm0, %v20_v18, 0  ;;  %v437_v21 = vsel %vm39_vm0, %v21_v19, 0  ;;  %v22_v22 = vld [vmem:[%s1415_s0 + $0x28] sm:$0xf]  ;;  %v23_v23 = vld [vmem:[%s1415_s0 + $0x2c] sm:$0xf] }
   0x7   :  { %1035 = vmatpush3.bf16.msra.mxu0 %v129_v8  ;;  %1041 = vmatpush3.bf16.msra.mxu1 %v173_v9  ;;  %v481_v24 = vsel %vm39_vm0, %v22_v22, 0  ;;  %v525_v25 = vsel %vm39_vm0, %v23_v23, 0  ;;  %v24_v26 = vld [vmem:[%s1415_s0 + $0x30] sm:$0xf]  ;;  %v25_v27 = vld [vmem:[%s1415_s0 + $0x34] sm:$0xf] }
   0x8   :  { %1036 = vmatprep.mubr.msk.bf16.mxu0 %vm1122_vm1, %v1121_v0  ;;  %1042 = vmatprep.mubr.msk.bf16.mxu1 %vm1122_vm1, %v1121_v0  ;;  %v569_v28 = vsel %vm39_vm0, %v24_v26, 0  ;;  %v613_v29 = vsel %vm39_vm0, %v25_v27, 0  ;;  %v26_v30 = vld [vmem:[%s1415_s0 + $0x38] sm:$0xf]  ;;  %v27_v31 = vld [vmem:[%s1415_s0 + $0x3c] sm:$0xf] }
   0x9   :  { %1046 = vmatprep.subr.bf16.mxu0 %v1121_v0  ;;  %1052 = vmatprep.subr.bf16.mxu1 %v1121_v0  ;;  %v657_v32 = vsel %vm39_vm0, %v26_v30, 0  ;;  %v701_v33 = vsel %vm39_vm0, %v27_v31, 0 }
   0xe   :  { %1037 = vmatmul.mubr.msk.bf16.vlgmr.msra.gmra.mxu0 %vm35_vm2, %v1155_v5  ;;  %1043 = vmatmul.mubr.msk.bf16.vlgmr.msra.gmra.mxu1 %vm35_vm2, %v1155_v5 }
   0xf   :  { %1047 = vmatpush3.bf16.msra.mxu0 %v217_v12  ;;  %1053 = vmatpush3.bf16.msra.mxu1 %v261_v13 }
  0x10   :  { %1048 = vmatprep.mubr.msk.bf16.mxu0 %vm1122_vm1, %v1121_v0  ;;  %1054 = vmatprep.mubr.msk.bf16.mxu1 %vm1122_vm1, %v1121_v0 }
  0x11   :  { %1058 = vmatprep.subr.bf16.mxu0 %v1121_v0  ;;  %1064 = vmatprep.subr.bf16.mxu1 %v1121_v0 }
  0x16   :  { %1049 = vmatmul.mubr.msk.bf16.vlgmr.msra.gmra.mxu0 %vm35_vm2, %v1155_v5  ;;  %1055 = vmatmul.mubr.msk.bf16.vlgmr.msra.gmra.mxu1 %vm35_vm2, %v1155_v5 }
  0x17   :  { %1059 = vmatpush3.bf16.msra.mxu0 %v305_v16  ;;  %1065 = vmatpush3.bf16.msra.mxu1 %v349_v17 }
  0x18   :  { %1060 = vmatprep.mubr.msk.bf16.mxu0 %vm1122_vm1, %v1121_v0  ;;  %1066 = vmatprep.mubr.msk.bf16.mxu1 %vm1122_vm1, %v1121_v0 }
  0x19   :  { %1070 = vmatprep.subr.bf16.mxu0 %v1121_v0  ;;  %1076 = vmatprep.subr.bf16.mxu1 %v1121_v0 }
  0x1e   :  { %1061 = vmatmul.mubr.msk.bf16.vlgmr.msra.gmra.mxu0 %vm35_vm2, %v1155_v5  ;;  %1067 = vmatmul.mubr.msk.bf16.vlgmr.msra.gmra.mxu1 %vm35_vm2, %v1155_v5 }
  0x1f   :  { %1071 = vmatpush3.bf16.msra.mxu0 %v393_v20  ;;  %1077 = vmatpush3.bf16.msra.mxu1 %v437_v21 }
  0x20   :  { %1072 = vmatprep.mubr.msk.bf16.mxu0 %vm1122_vm1, %v1121_v0  ;;  %1078 = vmatprep.mubr.msk.bf16.mxu1 %vm1122_vm1, %v1121_v0 }
  0x21   :  { %1082 = vmatprep.subr.bf16.mxu0 %v1121_v0  ;;  %1088 = vmatprep.subr.bf16.mxu1 %v1121_v0 }
  0x26   :  { %1073 = vmatmul.mubr.msk.bf16.vlgmr.msra.gmra.mxu0 %vm35_vm2, %v1155_v5  ;;  %1079 = vmatmul.mubr.msk.bf16.vlgmr.msra.gmra.mxu1 %vm35_vm2, %v1155_v5 }
  0x27   :  { %1083 = vmatpush3.bf16.msra.mxu0 %v481_v24  ;;  %1089 = vmatpush3.bf16.msra.mxu1 %v525_v25 }
  0x28   :  { %1084 = vmatprep.mubr.msk.bf16.mxu0 %vm1122_vm1, %v1121_v0  ;;  %1090 = vmatprep.mubr.msk.bf16.mxu1 %vm1122_vm1, %v1121_v0 }
  0x29   :  { %1094 = vmatprep.subr.bf16.mxu0 %v1121_v0  ;;  %1100 = vmatprep.subr.bf16.mxu1 %v1121_v0 }
  0x2e   :  { %1085 = vmatmul.mubr.msk.bf16.vlgmr.msra.gmra.mxu0 %vm35_vm2, %v1155_v5  ;;  %1091 = vmatmul.mubr.msk.bf16.vlgmr.msra.gmra.mxu1 %vm35_vm2, %v1155_v5 }
  0x2f   :  { %1095 = vmatpush3.bf16.msra.mxu0 %v569_v28  ;;  %1101 = vmatpush3.bf16.msra.mxu1 %v613_v29 }
  0x30   :  { %1096 = vmatprep.mubr.msk.bf16.mxu0 %vm1122_vm1, %v1121_v0  ;;  %1102 = vmatprep.mubr.msk.bf16.mxu1 %vm1122_vm1, %v1121_v0 }
  0x31   :  { %1106 = vmatprep.subr.bf16.mxu0 %v1121_v0  ;;  %1112 = vmatprep.subr.bf16.mxu1 %v1121_v0 }
  0x36   :  { %1097 = vmatmul.mubr.msk.bf16.vlgmr.msra.gmra.mxu0 %vm35_vm2, %v1155_v5  ;;  %1103 = vmatmul.mubr.msk.bf16.vlgmr.msra.gmra.mxu1 %vm35_vm2, %v1155_v5 }
  0x37   :  { %1107 = vmatpush3.bf16.msra.mxu0 %v657_v32  ;;  %1113 = vmatpush3.bf16.msra.mxu1 %v701_v33 }
  0x38   :  { %1108 = vmatprep.mubr.msk.bf16.mxu0 %vm1122_vm1, %v1121_v0  ;;  %1114 = vmatprep.mubr.msk.bf16.mxu1 %vm1122_vm1, %v1121_v0 }
  0x3e   :  { %1109 = vmatmul.mubr.msk.bf16.vlgmr.msra.gmra.mxu0 %vm35_vm2, %v1155_v5  ;;  %1115 = vmatmul.mubr.msk.bf16.vlgmr.msra.gmra.mxu1 %vm35_vm2, %v1155_v5 }
  0xc6   :  { %v77_v34 = vpop.f32.mrf.mxu0  ;;  %v121_v35 = vpop.f32.mrf.mxu1 }
  0xc7   :  { %v958_v36 = vpack.c.bf16 %v77_v34, %v77_v34  ;;  %v960_v37 = vpack.c.bf16 %v121_v35, %v121_v35 }
  0xc8   :  { %v1026_v38 = vpop.f32.mrf.mxu0  ;;  %v1032_v39 = vpop.f32.mrf.mxu1 }
  0xc9   :  { %873 = vst.msk [vmem:[%s1417_s2] sm:$0xf] %vm872_vm3, %v958_v36  ;;  %875 = vst.msk [vmem:[%s1417_s2 + $0x8] sm:$0xf] %vm872_vm3, %v960_v37 }
  0xca   :  { %v80_v40 = vpop.f32.mrf.mxu0  ;;  %v124_v41 = vpop.f32.mrf.mxu1 }
  0xcb   :  { %v959_v42 = vpack.c.bf16 %v80_v40, %v80_v40  ;;  %v961_v43 = vpack.c.bf16 %v124_v41, %v124_v41 }
  0xcc   :  { %v1027_v44 = vpop.f32.mrf.mxu0  ;;  %v1033_v45 = vpop.f32.mrf.mxu1 }
  0xcd   :  { %874 = vst.msk [vmem:[%s1417_s2 + $0x4] sm:$0xf] %vm872_vm3, %v959_v42  ;;  %876 = vst.msk [vmem:[%s1417_s2 + $0xc] sm:$0xf] %vm872_vm3, %v961_v43 }
  0xce   :  { %v165_v46 = vpop.f32.mrf.mxu0  ;;  %v209_v47 = vpop.f32.mrf.mxu1 }
  0xcf   :  { %v962_v48 = vpack.c.bf16 %v165_v46, %v165_v46  ;;  %v964_v49 = vpack.c.bf16 %v209_v47, %v209_v47 }
  0xd0   :  { %v1038_v50 = vpop.f32.mrf.mxu0  ;;  %v1044_v51 = vpop.f32.mrf.mxu1 }
  0xd1   :  { %877 = vst.msk [vmem:[%s1417_s2 + $0x10] sm:$0xf] %vm872_vm3, %v962_v48  ;;  %879 = vst.msk [vmem:[%s1417_s2 + $0x18] sm:$0xf] %vm872_vm3, %v964_v49 }
  0xd2   :  { %v168_v52 = vpop.f32.mrf.mxu0  ;;  %v212_v53 = vpop.f32.mrf.mxu1 }
  0xd3   :  { %v963_v54 = vpack.c.bf16 %v168_v52, %v168_v52  ;;  %v965_v55 = vpack.c.bf16 %v212_v53, %v212_v53 }
  0xd4   :  { %v1039_v56 = vpop.f32.mrf.mxu0  ;;  %v1045_v57 = vpop.f32.mrf.mxu1 }
  0xd5   :  { %878 = vst.msk [vmem:[%s1417_s2 + $0x14] sm:$0xf] %vm872_vm3, %v963_v54  ;;  %880 = vst.msk [vmem:[%s1417_s2 + $0x1c] sm:$0xf] %vm872_vm3, %v965_v55 }
  0xd6   :  { %v253_v58 = vpop.f32.mrf.mxu0  ;;  %v297_v59 = vpop.f32.mrf.mxu1 }
  0xd7   :  { %v966_v60 = vpack.c.bf16 %v253_v58, %v253_v58  ;;  %v968_v61 = vpack.c.bf16 %v297_v59, %v297_v59 }
  0xd8   :  { %v1050_v62 = vpop.f32.mrf.mxu0  ;;  %v1056_v63 = vpop.f32.mrf.mxu1 }
  0xd9   :  { %881 = vst.msk [vmem:[%s1417_s2 + $0x20] sm:$0xf] %vm872_vm3, %v966_v60  ;;  %883 = vst.msk [vmem:[%s1417_s2 + $0x28] sm:$0xf] %vm872_vm3, %v968_v61 }
  0xda   :  { %v256_v0 = vpop.f32.mrf.mxu0  ;;  %v300_v1 = vpop.f32.mrf.mxu1 }
  0xdb   :  { %v967_v2 = vpack.c.bf16 %v256_v0, %v256_v0  ;;  %v969_v3 = vpack.c.bf16 %v300_v1, %v300_v1 }
  0xdc   :  { %v1051_v4 = vpop.f32.mrf.mxu0  ;;  %v1057_v5 = vpop.f32.mrf.mxu1 }
  0xdd   :  { %882 = vst.msk [vmem:[%s1417_s2 + $0x24] sm:$0xf] %vm872_vm3, %v967_v2  ;;  %884 = vst.msk [vmem:[%s1417_s2 + $0x2c] sm:$0xf] %vm872_vm3, %v969_v3 }
  0xde   :  { %v341_v6 = vpop.f32.mrf.mxu0  ;;  %v385_v7 = vpop.f32.mrf.mxu1 }
  0xdf   :  { %v970_v8 = vpack.c.bf16 %v341_v6, %v341_v6  ;;  %v972_v9 = vpack.c.bf16 %v385_v7, %v385_v7 }
  0xe0   :  { %v1062_v10 = vpop.f32.mrf.mxu0  ;;  %v1068_v11 = vpop.f32.mrf.mxu1 }
  0xe1   :  { %885 = vst.msk [vmem:[%s1417_s2 + $0x30] sm:$0xf] %vm872_vm3, %v970_v8  ;;  %887 = vst.msk [vmem:[%s1417_s2 + $0x38] sm:$0xf] %vm872_vm3, %v972_v9 }
  0xe2   :  { %v344_v12 = vpop.f32.mrf.mxu0  ;;  %v388_v13 = vpop.f32.mrf.mxu1 }
  0xe3   :  { %v971_v14 = vpack.c.bf16 %v344_v12, %v344_v12  ;;  %v973_v15 = vpack.c.bf16 %v388_v13, %v388_v13 }
  0xe4   :  { %v1063_v16 = vpop.f32.mrf.mxu0  ;;  %v1069_v17 = vpop.f32.mrf.mxu1 }
  0xe5   :  { %886 = vst.msk [vmem:[%s1417_s2 + $0x34] sm:$0xf] %vm872_vm3, %v971_v14  ;;  %888 = vst.msk [vmem:[%s1417_s2 + $0x3c] sm:$0xf] %vm872_vm3, %v973_v15 }
  0xe6   :  { %v429_v18 = vpop.f32.mrf.mxu0  ;;  %v473_v19 = vpop.f32.mrf.mxu1 }
  0xe7   :  { %v974_v20 = vpack.c.bf16 %v429_v18, %v429_v18  ;;  %v976_v21 = vpack.c.bf16 %v473_v19, %v473_v19 }
  0xe8   :  { %v1074_v22 = vpop.f32.mrf.mxu0  ;;  %v1080_v23 = vpop.f32.mrf.mxu1 }
  0xe9   :  { %889 = vst.msk [vmem:[%s1417_s2 + $0x40] sm:$0xf] %vm872_vm3, %v974_v20  ;;  %891 = vst.msk [vmem:[%s1417_s2 + $0x48] sm:$0xf] %vm872_vm3, %v976_v21 }
  0xea   :  { %v432_v24 = vpop.f32.mrf.mxu0  ;;  %v476_v25 = vpop.f32.mrf.mxu1 }
  0xeb   :  { %v975_v26 = vpack.c.bf16 %v432_v24, %v432_v24  ;;  %v977_v27 = vpack.c.bf16 %v476_v25, %v476_v25 }
  0xec   :  { %v1075_v28 = vpop.f32.mrf.mxu0  ;;  %v1081_v29 = vpop.f32.mrf.mxu1 }
  0xed   :  { %890 = vst.msk [vmem:[%s1417_s2 + $0x44] sm:$0xf] %vm872_vm3, %v975_v26  ;;  %892 = vst.msk [vmem:[%s1417_s2 + $0x4c] sm:$0xf] %vm872_vm3, %v977_v27 }
  0xee   :  { %v517_v30 = vpop.f32.mrf.mxu0  ;;  %v561_v31 = vpop.f32.mrf.mxu1 }
  0xef   :  { %v978_v32 = vpack.c.bf16 %v517_v30, %v517_v30  ;;  %v980_v33 = vpack.c.bf16 %v561_v31, %v561_v31 }
  0xf0   :  { %v1086_v34 = vpop.f32.mrf.mxu0  ;;  %v1092_v35 = vpop.f32.mrf.mxu1 }
  0xf1   :  { %893 = vst.msk [vmem:[%s1417_s2 + $0x50] sm:$0xf] %vm872_vm3, %v978_v32  ;;  %895 = vst.msk [vmem:[%s1417_s2 + $0x58] sm:$0xf] %vm872_vm3, %v980_v33 }
  0xf2   :  { %v520_v36 = vpop.f32.mrf.mxu0  ;;  %v564_v37 = vpop.f32.mrf.mxu1 }
  0xf3   :  { %v979_v38 = vpack.c.bf16 %v520_v36, %v520_v36  ;;  %v981_v39 = vpack.c.bf16 %v564_v37, %v564_v37 }
  0xf4   :  { %v1087_v40 = vpop.f32.mrf.mxu0  ;;  %v1093_v41 = vpop.f32.mrf.mxu1 }
  0xf5   :  { %894 = vst.msk [vmem:[%s1417_s2 + $0x54] sm:$0xf] %vm872_vm3, %v979_v38  ;;  %896 = vst.msk [vmem:[%s1417_s2 + $0x5c] sm:$0xf] %vm872_vm3, %v981_v39 }
  0xf6   :  { %v605_v42 = vpop.f32.mrf.mxu0  ;;  %v649_v43 = vpop.f32.mrf.mxu1 }
  0xf7   :  { %v982_v44 = vpack.c.bf16 %v605_v42, %v605_v42  ;;  %v984_v45 = vpack.c.bf16 %v649_v43, %v649_v43 }
  0xf8   :  { %v1098_v46 = vpop.f32.mrf.mxu0  ;;  %v1104_v47 = vpop.f32.mrf.mxu1 }
  0xf9   :  { %897 = vst.msk [vmem:[%s1417_s2 + $0x60] sm:$0xf] %vm872_vm3, %v982_v44  ;;  %899 = vst.msk [vmem:[%s1417_s2 + $0x68] sm:$0xf] %vm872_vm3, %v984_v45 }
  0xfa   :  { %v608_v48 = vpop.f32.mrf.mxu0  ;;  %v652_v49 = vpop.f32.mrf.mxu1 }
  0xfb   :  { %v983_v50 = vpack.c.bf16 %v608_v48, %v608_v48  ;;  %v985_v51 = vpack.c.bf16 %v652_v49, %v652_v49 }
  0xfc   :  { %v1099_v52 = vpop.f32.mrf.mxu0  ;;  %v1105_v53 = vpop.f32.mrf.mxu1 }
  0xfd   :  { %898 = vst.msk [vmem:[%s1417_s2 + $0x64] sm:$0xf] %vm872_vm3, %v983_v50  ;;  %900 = vst.msk [vmem:[%s1417_s2 + $0x6c] sm:$0xf] %vm872_vm3, %v985_v51 }
  0xfe   :  { %v693_v54 = vpop.f32.mrf.mxu0  ;;  %v737_v55 = vpop.f32.mrf.mxu1 }
  0xff   :  { %v986_v56 = vpack.c.bf16 %v693_v54, %v693_v54  ;;  %v988_v57 = vpack.c.bf16 %v737_v55, %v737_v55 }
 0x100   :  { %v1110_v58 = vpop.f32.mrf.mxu0  ;;  %v1116_v59 = vpop.f32.mrf.mxu1 }
 0x101   :  { %901 = vst.msk [vmem:[%s1417_s2 + $0x70] sm:$0xf] %vm872_vm3, %v986_v56  ;;  %903 = vst.msk [vmem:[%s1417_s2 + $0x78] sm:$0xf] %vm872_vm3, %v988_v57 }
 0x102   :  { %v696_v60 = vpop.f32.mrf.mxu0  ;;  %v740_v61 = vpop.f32.mrf.mxu1 }
 0x103   :  { %v987_v62 = vpack.c.bf16 %v696_v60, %v696_v60  ;;  %v989_v63 = vpack.c.bf16 %v740_v61, %v740_v61 }
 0x104   :  { %v1111_v0 = vpop.f32.mrf.mxu0  ;;  %v1117_v1 = vpop.f32.mrf.mxu1 }
 0x105   :  { %902 = vst.msk [vmem:[%s1417_s2 + $0x74] sm:$0xf] %vm872_vm3, %v987_v62  ;;  %904 = vst.msk [vmem:[%s1417_s2 + $0x7c] sm:$0xf] %vm872_vm3, %v989_v63 }

// kernel: unet_block_forward.7
= control target key start
LH: loop header
LB: loop body
LE: loop exit
PB: predicated region body
PF: predicated region fallthrough
CT: control target
= control target key end

     0   :  { %s699_s12 = smov 0   ;;  %s701_s13 = smov 0   ;;  %s828_s0 = inlined_call_operand.vmem [shape: bf16[2,256,8], index: 0, kind: input, shape index: {}]   ;;  %s829_s1 = inlined_call_operand.vmem [shape: f32[1,8], index: 1, kind: input, shape index: {}]   ;;  %s830_s2 = inlined_call_operand.vmem [shape: f32[1,8], index: 2, kind: input, shape index: {}]   ;;  %s831_s3 = inlined_call_operand.vmem [shape: f32[2,8,256], index: 3, kind: output, shape index: {}]  }
   0x1   :  { %s703_s14 = smov 0  }
   0x2 LB: > { %s25_s15 = sadd.s32 1, %s673_s13  ;;  %p541_p0 = scmp.ge.s32.totalorder %s677_s14, 1  ;;  %s677_s14 = sphi %s703_s14, %s13_s14   ;;  %s673_s13 = sphi %s701_s13, %s833_s13   ;;  %s669_s12 = sphi %s699_s12, %s832_s12  }
   0x3   : > { %p27_p1 = scmp.ge.s32.totalorder %s25_s15, 2  ;;  %p158_p2 = scmp.lt.s32.totalorder %s677_s14, 3 }
   0x5   : > { %s835_s15 = smov (%p27_p1, %s25_s15), 0  ;;  %p159_p3 = pnand %p541_p0, %p158_p2 }
   0x6   : > { %p191_p4 = scmp.lt.s32.totalorder (!%p159_p3), %s669_s12, 1 }
   0x7   : > { %162 = sbr.rel (%p159_p3) target bundleno = 151 (0x97), region = 32 }
   0xc   : > { %s837_s12 = smov (!%p191_p4, %s669_s12), 1  ;;  %v728_v0 = vld [vmem:[%s829_s1] ss:$0 sm:$0xff] }
   0xd   : > { %s550_s16 = sshll.u32 %s837_s12, 7  ;;  %v737_v9 = vld [vmem:[%s830_s2] ss:$0 sm:$0xff]  ;;  %s551_s24 = sshll.u32 %s837_s12, 4 }
   0xe   : > { %s723_s19 = scalar_lea.vmem %s828_s0, %s550_s16  ;;  %s208_s27 = scalar_lea.vmem %s831_s3, %s551_s24 }
   0xf   : > { %v623_v1 = vld [vmem:[%s723_s19 + $0x40] sm:$0xff]   ;;  %v624_v3 = vld [vmem:[%s723_s19 + $0x48] sm:$0xff]   ;;  %v625_v24 = vld [vmem:[%s723_s19 + $0x50] sm:$0xff]  }
  0x10   : > { %v553_v2 = vld [vmem:[%s723_s19] sm:$0xff]   ;;  %v586_v4 = vunpack.c.l.bf16 %v623_v1  ;;  %v587_v6 = vunpack.c.h.bf16 %v623_v1  ;;  %v616_v8 = vld [vmem:[%s723_s19 + $0x8] sm:$0xff]   ;;  %v590_v10 = vunpack.c.l.bf16 %v624_v3  ;;  %v591_v18 = vunpack.c.h.bf16 %v624_v3  ;;  %v617_v25 = vld [vmem:[%s723_s19 + $0x10] sm:$0xff]  }
  0x11   : > { %v554_v5 = vunpack.c.l.bf16 %v553_v2  ;;  %v555_v7 = vunpack.c.h.bf16 %v553_v2  ;;  %v558_v11 = vunpack.c.l.bf16 %v616_v8  ;;  %v559_v19 = vunpack.c.h.bf16 %v616_v8  ;;  %v626_v44 = vld [vmem:[%s723_s19 + $0x58] sm:$0xff]   ;;  %v627_v62 = vld [vmem:[%s723_s19 + $0x60] sm:$0xff]  }
  0x12   : > { %v297_v12 = vmul.f32 %v586_v4, %v728_v0  ;;  %v298_v14 = vmul.f32 %v587_v6, %v728_v0  ;;  %v299_v16 = vmul.f32 %v590_v10, %v728_v0  ;;  %v300_v30 = vmul.f32 %v591_v18, %v728_v0  ;;  %v618_v45 = vld [vmem:[%s723_s19 + $0x18] sm:$0xff]   ;;  %v619_v63 = vld [vmem:[%s723_s19 + $0x20] sm:$0xff]   ;;  %v628_v18 = vld [vmem:[%s723_s19 + $0x68] sm:$0xff]  }
  0x13   : > { %v281_v13 = vmul.f32 %v554_v5, %v728_v0  ;;  %v282_v15 = vmul.f32 %v555_v7, %v728_v0  ;;  %v283_v17 = vmul.f32 %v558_v11, %v728_v0  ;;  %v284_v31 = vmul.f32 %v559_v19, %v728_v0  ;;  %v620_v19 = vld [vmem:[%s723_s19 + $0x28] sm:$0xff]  }
  0x14   : > { %v336_v20 = vadd.f32 %v737_v9, %v297_v12  ;;  %v337_v22 = vadd.f32 %v737_v9, %v298_v14  ;;  %v338_v28 = vadd.f32 %v737_v9, %v299_v16  ;;  %v594_v34 = vunpack.c.l.bf16 %v625_v24 }
  0x15   : > { %v320_v21 = vadd.f32 %v737_v9, %v281_v13  ;;  %v321_v23 = vadd.f32 %v737_v9, %v282_v15  ;;  %v322_v29 = vadd.f32 %v737_v9, %v283_v17  ;;  %v562_v35 = vunpack.c.l.bf16 %v617_v25 }
  0x16   : > { %v368_v26 = vmax.f32 %v336_v20, 0.0  ;;  %v369_v32 = vmax.f32 %v337_v22, 0.0  ;;  %v370_v36 = vmax.f32 %v338_v28, 0.0  ;;  %v339_v37 = vadd.f32 %v737_v9, %v300_v30 }
  0x17   : > { %v352_v27 = vmax.f32 %v320_v21, 0.0  ;;  %v353_v33 = vmax.f32 %v321_v23, 0.0  ;;  %v323_v38 = vadd.f32 %v737_v9, %v284_v31  ;;  %v595_v39 = vunpack.c.h.bf16 %v625_v24 }
  0x18   : > { %416 = vxpose.xlu1.b32.start [1/16] (narrow) %v368_v26, 8  ;;  %v354_v40 = vmax.f32 %v322_v29, 0.0  ;;  %v301_v41 = vmul.f32 %v594_v34, %v728_v0  ;;  %v285_v42 = vmul.f32 %v562_v35, %v728_v0  ;;  %v563_v43 = vunpack.c.h.bf16 %v617_v25 }
  0x19   : > { %384 = vxpose.xlu0.b32.start [1/16] (narrow) %v352_v27, 8  ;;  %v371_v46 = vmax.f32 %v339_v37, 0.0  ;;  %v302_v47 = vmul.f32 %v595_v39, %v728_v0  ;;  %v598_v48 = vunpack.c.l.bf16 %v626_v44  ;;  %v566_v49 = vunpack.c.l.bf16 %v618_v45  ;;  %v621_v37 = vld [vmem:[%s723_s19 + $0x30] sm:$0xff]  }
  0x1a   : > { %v355_v50 = vmax.f32 %v323_v38, 0.0  ;;  %v340_v51 = vadd.f32 %v737_v9, %v301_v41  ;;  %v324_v52 = vadd.f32 %v737_v9, %v285_v42  ;;  %v286_v53 = vmul.f32 %v563_v43, %v728_v0 }
  0x1b   : > { %v303_v54 = vmul.f32 %v598_v48, %v728_v0  ;;  %v287_v55 = vmul.f32 %v566_v49, %v728_v0  ;;  %v599_v56 = vunpack.c.h.bf16 %v626_v44  ;;  %v567_v57 = vunpack.c.h.bf16 %v618_v45 }
  0x1c   : > { %417 = vxpose.xlu1.b32.cont [2/16] (narrow) %v369_v32, 8  ;;  %v372_v58 = vmax.f32 %v340_v51, 0.0  ;;  %v356_v59 = vmax.f32 %v324_v52, 0.0  ;;  %v341_v60 = vadd.f32 %v737_v9, %v302_v47  ;;  %v325_v61 = vadd.f32 %v737_v9, %v286_v53 }
  0x1d   : > { %385 = vxpose.xlu0.b32.cont [2/16] (narrow) %v353_v33, 8  ;;  %v342_v1 = vadd.f32 %v737_v9, %v303_v54  ;;  %v304_v2 = vmul.f32 %v599_v56, %v728_v0  ;;  %v288_v3 = vmul.f32 %v567_v57, %v728_v0  ;;  %v602_v4 = vunpack.c.l.bf16 %v627_v62  ;;  %v630_v54 = vld [vmem:[%s723_s19 + $0x78] sm:$0xff]  }
  0x1e   : > { %v373_v5 = vmax.f32 %v341_v60, 0.0  ;;  %v357_v6 = vmax.f32 %v325_v61, 0.0  ;;  %v326_v7 = vadd.f32 %v737_v9, %v287_v55  ;;  %v570_v8 = vunpack.c.l.bf16 %v619_v63  ;;  %v622_v55 = vld [vmem:[%s723_s19 + $0x38] sm:$0xff]  }
  0x1f   : > { %v374_v10 = vmax.f32 %v342_v1, 0.0  ;;  %v343_v11 = vadd.f32 %v737_v9, %v304_v2  ;;  %v327_v12 = vadd.f32 %v737_v9, %v288_v3  ;;  %v305_v13 = vmul.f32 %v602_v4, %v728_v0 }
  0x20   : > { %418 = vxpose.xlu1.b32.cont [3/16] (narrow) %v370_v36, 8  ;;  %v358_v14 = vmax.f32 %v326_v7, 0.0  ;;  %v289_v15 = vmul.f32 %v570_v8, %v728_v0  ;;  %v603_v16 = vunpack.c.h.bf16 %v627_v62  ;;  %v571_v17 = vunpack.c.h.bf16 %v619_v63  ;;  %v629_v36 = vld [vmem:[%s723_s19 + $0x70] sm:$0xff]  }
  0x21   : > { %386 = vxpose.xlu0.b32.cont [3/16] (narrow) %v354_v40, 8  ;;  %v375_v20 = vmax.f32 %v343_v11, 0.0  ;;  %v344_v21 = vadd.f32 %v737_v9, %v305_v13  ;;  %v606_v22 = vunpack.c.l.bf16 %v628_v18  ;;  %v574_v23 = vunpack.c.l.bf16 %v620_v19 }
  0x22   : > { %v359_v24 = vmax.f32 %v327_v12, 0.0  ;;  %v328_v25 = vadd.f32 %v737_v9, %v289_v15  ;;  %v306_v26 = vmul.f32 %v603_v16, %v728_v0  ;;  %v290_v27 = vmul.f32 %v571_v17, %v728_v0 }
  0x23   : > { %v307_v28 = vmul.f32 %v606_v22, %v728_v0  ;;  %v291_v29 = vmul.f32 %v574_v23, %v728_v0  ;;  %v607_v30 = vunpack.c.h.bf16 %v628_v18  ;;  %v575_v31 = vunpack.c.h.bf16 %v620_v19 }
  0x24   : > { %419 = vxpose.xlu1.b32.cont [4/16] (narrow) %v371_v46, 8  ;;  %v376_v32 = vmax.f32 %v344_v21, 0.0  ;;  %v360_v33 = vmax.f32 %v328_v25, 0.0  ;;  %v345_v34 = vadd.f32 %v737_v9, %v306_v26  ;;  %v329_v35 = vadd.f32 %v737_v9, %v290_v27 }
  0x25   : > { %387 = vxpose.xlu0.b32.cont [4/16] (narrow) %v355_v50, 8  ;;  %v346_v38 = vadd.f32 %v737_v9, %v307_v28  ;;  %v308_v39 = vmul.f32 %v607_v30, %v728_v0  ;;  %v292_v40 = vmul.f32 %v575_v31, %v728_v0  ;;  %v610_v41 = vunpack.c.l.bf16 %v629_v36 }
  0x26   : > { %v377_v42 = vmax.f32 %v345_v34, 0.0  ;;  %v361_v43 = vmax.f32 %v329_v35, 0.0  ;;  %v330_v44 = vadd.f32 %v737_v9, %v291_v29  ;;  %v578_v45 = vunpack.c.l.bf16 %v621_v37 }
  0x27   : > { %v378_v46 = vmax.f32 %v346_v38, 0.0  ;;  %v347_v47 = vadd.f32 %v737_v9, %v308_v39  ;;  %v331_v48 = vadd.f32 %v737_v9, %v292_v40  ;;  %v309_v49 = vmul.f32 %v610_v41, %v728_v0 }
  0x28   : > { %420 = vxpose.xlu1.b32.cont [5/16] (narrow) %v372_v58, 8  ;;  %v362_v50 = vmax.f32 %v330_v44, 0.0  ;;  %v293_v51 = vmul.f32 %v578_v45, %v728_v0  ;;  %v611_v52 = vunpack.c.h.bf16 %v629_v36  ;;  %v579_v53 = vunpack.c.h.bf16 %v621_v37 }
  0x29   : > { %388 = vxpose.xlu0.b32.cont [5/16] (narrow) %v356_v59, 8  ;;  %v379_v56 = vmax.f32 %v347_v47, 0.0  ;;  %v348_v57 = vadd.f32 %v737_v9, %v309_v49  ;;  %v614_v58 = vunpack.c.l.bf16 %v630_v54  ;;  %v582_v59 = vunpack.c.l.bf16 %v622_v55 }
  0x2a   : > { %v363_v60 = vmax.f32 %v331_v48, 0.0  ;;  %v332_v61 = vadd.f32 %v737_v9, %v293_v51  ;;  %v310_v62 = vmul.f32 %v611_v52, %v728_v0  ;;  %v294_v63 = vmul.f32 %v579_v53, %v728_v0 }
  0x2b   : > { %v311_v1 = vmul.f32 %v614_v58, %v728_v0  ;;  %v295_v2 = vmul.f32 %v582_v59, %v728_v0  ;;  %v615_v3 = vunpack.c.h.bf16 %v630_v54  ;;  %v583_v4 = vunpack.c.h.bf16 %v622_v55 }
  0x2c   : > { %421 = vxpose.xlu1.b32.cont [6/16] (narrow) %v373_v5, 8  ;;  %v380_v5 = vmax.f32 %v348_v57, 0.0  ;;  %v349_v7 = vadd.f32 %v737_v9, %v310_v62  ;;  %v333_v8 = vadd.f32 %v737_v9, %v294_v63 }
  0x2d   : > { %389 = vxpose.xlu0.b32.cont [6/16] (narrow) %v357_v6, 8  ;;  %v364_v6 = vmax.f32 %v332_v61, 0.0  ;;  %v296_v11 = vmul.f32 %v583_v4, %v728_v0  ;;  %v334_v15 = vadd.f32 %v737_v9, %v295_v2 }
  0x2e   : > { %v381_v12 = vmax.f32 %v349_v7, 0.0  ;;  %v365_v13 = vmax.f32 %v333_v8, 0.0 }
  0x2f   : > { %v366_v17 = vmax.f32 %v334_v15, 0.0  ;;  %v335_v19 = vadd.f32 %v737_v9, %v296_v11 }
  0x30   : > { %422 = vxpose.xlu1.b32.cont [7/16] (narrow) %v374_v10, 8  ;;  %v312_v10 = vmul.f32 %v615_v3, %v728_v0 }
  0x31   : > { %390 = vxpose.xlu0.b32.cont [7/16] (narrow) %v358_v14, 8  ;;  %v350_v14 = vadd.f32 %v737_v9, %v311_v1 }
  0x32   : > { %v351_v18 = vadd.f32 %v737_v9, %v312_v10 }
  0x33   : > { %v382_v16 = vmax.f32 %v350_v14, 0.0 }
  0x34   : > { %423 = vxpose.xlu1.b32.cont [8/16] (narrow) %v375_v20, 8  ;;  %v383_v0 = vmax.f32 %v351_v18, 0.0  ;;  %v367_v20 = vmax.f32 %v335_v19, 0.0 }
  0x35   : > { %391 = vxpose.xlu0.b32.cont [8/16] (narrow) %v359_v24, 8 }
  0x38   : > { %424 = vxpose.xlu1.b32.cont [9/16] (narrow) %v376_v32, 8 }
  0x39   : > { %392 = vxpose.xlu0.b32.cont [9/16] (narrow) %v360_v33, 8 }
  0x3c   : > { %425 = vxpose.xlu1.b32.cont [10/16] (narrow) %v377_v42, 8 }
  0x3d   : > { %393 = vxpose.xlu0.b32.cont [10/16] (narrow) %v361_v43, 8 }
  0x40   : > { %426 = vxpose.xlu1.b32.cont [11/16] (narrow) %v378_v46, 8 }
  0x41   : > { %394 = vxpose.xlu0.b32.cont [11/16] (narrow) %v362_v50, 8 }
  0x44   : > { %427 = vxpose.xlu1.b32.cont [12/16] (narrow) %v379_v56, 8 }
  0x45   : > { %395 = vxpose.xlu0.b32.cont [12/16] (narrow) %v363_v60, 8 }
  0x48   : > { %428 = vxpose.xlu1.b32.cont [13/16] (narrow) %v380_v5, 8 }
  0x49   : > { %396 = vxpose.xlu0.b32.cont [13/16] (narrow) %v364_v6, 8 }
  0x4c   : > { %429 = vxpose.xlu1.b32.cont [14/16] (narrow) %v381_v12, 8 }
  0x4d   : > { %397 = vxpose.xlu0.b32.cont [14/16] (narrow) %v365_v13, 8 }
  0x50   : > { %430 = vxpose.xlu1.b32.cont [15/16] (narrow) %v382_v16, 8 }
  0x51   : > { %398 = vxpose.xlu0.b32.cont [15/16] (narrow) %v366_v17, 8 }
  0x54   : > { %431 = vxpose.xlu1.b32.end [16/16] (narrow) %v383_v0, 8 }
  0x55   : > { %399 = vxpose.xlu0.b32.end [16/16] (narrow) %v367_v20, 8 }
  0x94   : > { %v432_v21 = vpop.trf.xlu1 }
  0x95   : > { %v400_v22 = vpop.trf.xlu0  ;;  %449 = vst [vmem:[%s208_s27 + $0x8] sm:$0xff] %v432_v21 }
  0x96   : > { %448 = vst [vmem:[%s208_s27] sm:$0xff] %v400_v22 }
  0x97 PF: > { %s13_s14 = sadd.s32 1, %s677_s14   ;;  %s832_s12 = smov %s673_s13 }
  0x98   : > { %p10_p5 = scmp.ge.s32.totalorder %s13_s14, 4   ;;  %s833_s13 = smov %s835_s15 }
  0x9a   :  { %12 = sbr.rel (!%p10_p5) target bundleno = 2 (0x2), region = 62 }

// kernel: unet_block_forward.6
= control target key start
LH: loop header
LB: loop body
LE: loop exit
PB: predicated region body
PF: predicated region fallthrough
CT: control target
= control target key end

     0   :  { %s6744_s18 = smov 0   ;;  %s9328_s0 = inlined_call_operand.vmem [shape: bf16[2,256,4], index: 0, kind: input, shape index: {}]   ;;  %s9329_s1 = inlined_call_operand.vmem [shape: bf16[36,8], index: 1, kind: input, shape index: {}]   ;;  %s9330_s2 = inlined_call_operand.vmem [shape: f32[1,8], index: 2, kind: input, shape index: {}]   ;;  %s9331_s3 = inlined_call_operand.vmem [shape: bf16[2,256,8], index: 3, kind: output, shape index: {0}]   ;;  %s9332_s4 = inlined_call_operand.vmem [shape: f32[2,1,8], index: 4, kind: output, shape index: {1}]   ;;  %s9333_s5 = inlined_call_operand.vmem [shape: f32[2,1,8], index: 5, kind: output, shape index: {2}]  }
   0x1 LB: > { %s6440_s19 = sadd.s32 4294967295, %s6699_s18   ;;  %p6444_p0 = scmp.ge.s32.totalorder %s6699_s18, 1  ;;  %s6699_s18 = sphi %s6744_s18, %s16_s18  }
   0x2   : > { %p192_p1 = scmp.lt.s32.totalorder %s6699_s18, 3 }
   0x4   : > { %p193_p2 = pnand %p6444_p0, %p192_p1 }
   0x6   : > { %196 = sbr.rel (%p193_p2) target bundleno = 1045 (0x415), region = 32 }
   0xb   : > { %vm243_vm0 = vcmask 27648   ;;  %p226_p3 = scmp.lt.s32.totalorder %s6440_s19, 1  ;;  %v6701_v0 = vmov 0   ;;  %s6702_s24 = smov 4   ;;  %v316_v19 = vlaneseq  ;;  %v6703_v32 = vmov 839922192  }
   0xc   : > { %246 = vst.msk [vmem:[#allocation2 + $0x8] sm:$0xf] %vm243_vm0, %v6701_v0  ;;  %245 = vst.msk [vmem:[#allocation2 + $0x4] sm:$0xf] %vm243_vm0, %v6701_v0  ;;  %v1007_v33 = vunpack.c.l.s4 %v6703_v32  ;;  %v6704_v34 = vmov 1985246804  }
   0xd   : > { %247 = vst.msk [vmem:[#allocation2 + $0xc] sm:$0xf] %vm243_vm0, %v6701_v0  ;;  %248 = vst.msk [vmem:[#allocation2 + $0x90] sm:$0xf] %vm243_vm0, %v6701_v0  ;;  %s9584_s19 = smov (!%p226_p3, %s6440_s19), 1  ;;  %v6815_v28 = vshrl.u32 %v316_v19, 7  ;;  %v1014_v35 = vunpack.c.l.s4 %v6704_v34 }
   0xe   : > { %249 = vst.msk [vmem:[#allocation2 + $0x94] sm:$0xf] %vm243_vm0, %v6701_v0  ;;  %250 = vst.msk [vmem:[#allocation2 + $0x98] sm:$0xf] %vm243_vm0, %v6701_v0  ;;  %s6554_s20 = sshll.u32 %s9584_s19, 7  ;;  %v1008_v41 = vunpack.c.0.s8 %v1007_v33  ;;  %v9336_v56 = vmov 0.0   ;;  %s238_s22 = scalar_lea.vmem %s9332_s4, %s9584_s19 }
   0xf   : > { %s6766_s23 = scalar_lea.vmem %s9328_s0, %s6554_s20  ;;  %v318_v37 = vadd.s32 8, %v6815_v28  ;;  %v320_v38 = vadd.s32 24, %v6815_v28  ;;  %v1015_v42 = vunpack.c.0.s8 %v1014_v35  ;;  %v322_v51 = vadd.s32 40, %v6815_v28  ;;  %s6707_s25 = smov 8  }
  0x10   : > { %v252_v1 = vld [vmem:[%s6766_s23] sm:$0xf]  ;;  %v254_v2 = vld [vmem:[%s6766_s23 + $0x8] sm:$0xf]  ;;  %v253_v3 = vld [vmem:[%s6766_s23 + $0x4] sm:$0xf]  ;;  %v6840_v52 = vsub.s32 %v1008_v41, %v6815_v28  ;;  %s9095_s17 = scalar_lea.vmem %s9331_s3, %s6554_s20 }
  0x11   : > { %284 = vst.msk [vmem:[#allocation2 + $0x10] sm:$0xf] %vm243_vm0, %v252_v1  ;;  %286 = vst.msk [vmem:[#allocation2 + $0x18] sm:$0xf] %vm243_vm0, %v254_v2  ;;  %v256_v4 = vld [vmem:[%s6766_s23 + $0x10] sm:$0xf]  ;;  %v6843_v53 = vsub.s32 %v1015_v42, %v6815_v28 }
  0x12   : > { %285 = vst.msk [vmem:[#allocation2 + $0x14] sm:$0xf] %vm243_vm0, %v253_v3  ;;  %v255_v5 = vld [vmem:[%s6766_s23 + $0xc] sm:$0xf]  ;;  %v258_v6 = vld [vmem:[%s6766_s23 + $0x18] sm:$0xf] }
  0x13   : > { %v1977_v7 = vld [vmem:[#allocation2 + $0x8] sm:$0xf]  ;;  %288 = vst.msk [vmem:[#allocation2 + $0x20] sm:$0xf] %vm243_vm0, %v256_v4  ;;  %287 = vst.msk [vmem:[#allocation2 + $0x1c] sm:$0xf] %vm243_vm0, %v255_v5 }
  0x14   : > { %v1978_v8 = vld [vmem:[#allocation2 + $0xc] sm:$0xf]  ;;  %290 = vst.msk [vmem:[#allocation2 + $0x28] sm:$0xf] %vm243_vm0, %v258_v6  ;;  %v257_v9 = vld [vmem:[%s6766_s23 + $0x14] sm:$0xf]  ;;  %2041 = vrot.lane.b32.xlu0 %v1977_v7, %s6702_s24 }
  0x15   : > { %289 = vst.msk [vmem:[#allocation2 + $0x24] sm:$0xf] %vm243_vm0, %v257_v9  ;;  %v260_v10 = vld [vmem:[%s6766_s23 + $0x20] sm:$0xf]  ;;  %v259_v11 = vld [vmem:[%s6766_s23 + $0x1c] sm:$0xf] }
  0x16   : > { %v262_v12 = vld [vmem:[%s6766_s23 + $0x28] sm:$0xf]  ;;  %292 = vst.msk [vmem:[#allocation2 + $0x30] sm:$0xf] %vm243_vm0, %v260_v10  ;;  %291 = vst.msk [vmem:[#allocation2 + $0x2c] sm:$0xf] %vm243_vm0, %v259_v11 }
  0x17   : > { %294 = vst.msk [vmem:[#allocation2 + $0x38] sm:$0xf] %vm243_vm0, %v262_v12  ;;  %v261_v13 = vld [vmem:[%s6766_s23 + $0x24] sm:$0xf]  ;;  %v264_v14 = vld [vmem:[%s6766_s23 + $0x30] sm:$0xf] }
  0x18   : > { %v263_v15 = vld [vmem:[%s6766_s23 + $0x2c] sm:$0xf]  ;;  %293 = vst.msk [vmem:[#allocation2 + $0x34] sm:$0xf] %vm243_vm0, %v261_v13  ;;  %296 = vst.msk [vmem:[#allocation2 + $0x40] sm:$0xf] %vm243_vm0, %v264_v14  ;;  %2043 = vrot.lane.b32.xlu0 %v1978_v8, %s6702_s24 }
  0x19   : > { %295 = vst.msk [vmem:[#allocation2 + $0x3c] sm:$0xf] %vm243_vm0, %v263_v15  ;;  %v266_v16 = vld [vmem:[%s6766_s23 + $0x38] sm:$0xf]  ;;  %v265_v17 = vld [vmem:[%s6766_s23 + $0x34] sm:$0xf] }
  0x1a   : > { %v268_v18 = vld [vmem:[%s6766_s23 + $0x40] sm:$0xf]  ;;  %298 = vst.msk [vmem:[#allocation2 + $0x48] sm:$0xf] %vm243_vm0, %v266_v16  ;;  %297 = vst.msk [vmem:[#allocation2 + $0x44] sm:$0xf] %vm243_vm0, %v265_v17 }
  0x1b   : > { %300 = vst.msk [vmem:[#allocation2 + $0x50] sm:$0xf] %vm243_vm0, %v268_v18  ;;  %v267_v20 = vld [vmem:[%s6766_s23 + $0x3c] sm:$0xf]  ;;  %v270_v21 = vld [vmem:[%s6766_s23 + $0x48] sm:$0xf] }
  0x1c   : > { %v269_v22 = vld [vmem:[%s6766_s23 + $0x44] sm:$0xf]  ;;  %299 = vst.msk [vmem:[#allocation2 + $0x4c] sm:$0xf] %vm243_vm0, %v267_v20  ;;  %302 = vst.msk [vmem:[#allocation2 + $0x58] sm:$0xf] %vm243_vm0, %v270_v21 }
  0x1d   : > { %301 = vst.msk [vmem:[#allocation2 + $0x54] sm:$0xf] %vm243_vm0, %v269_v22  ;;  %v272_v23 = vld [vmem:[%s6766_s23 + $0x50] sm:$0xf]  ;;  %v271_v24 = vld [vmem:[%s6766_s23 + $0x4c] sm:$0xf] }
  0x1e   : > { %v274_v25 = vld [vmem:[%s6766_s23 + $0x58] sm:$0xf]  ;;  %v1979_v26 = vld [vmem:[#allocation2 + $0x10] sm:$0xf]  ;;  %304 = vst.msk [vmem:[#allocation2 + $0x60] sm:$0xf] %vm243_vm0, %v272_v23 }
  0x1f   : > { %v1981_v27 = vld [vmem:[#allocation2 + $0x18] sm:$0xf]  ;;  %303 = vst.msk [vmem:[#allocation2 + $0x5c] sm:$0xf] %vm243_vm0, %v271_v24  ;;  %306 = vst.msk [vmem:[#allocation2 + $0x68] sm:$0xf] %vm243_vm0, %v274_v25  ;;  %2045 = vrot.lane.b32.xlu1 %v1979_v26, %s6702_s24 }
  0x20   : > { %v1980_v29 = vld [vmem:[#allocation2 + $0x14] sm:$0xf]  ;;  %v276_v31 = vld [vmem:[%s6766_s23 + $0x60] sm:$0xf]  ;;  %2049 = vrot.lane.b32.xlu0 %v1981_v27, %s6702_s24  ;;  %v1982_v39 = vld [vmem:[#allocation2 + $0x1c] sm:$0xf] }
  0x21   : > { %v273_v30 = vld [vmem:[%s6766_s23 + $0x54] sm:$0xf]  ;;  %308 = vst.msk [vmem:[#allocation2 + $0x70] sm:$0xf] %vm243_vm0, %v276_v31  ;;  %v1983_v36 = vld [vmem:[#allocation2 + $0x20] sm:$0xf] }
  0x22   : > { %305 = vst.msk [vmem:[#allocation2 + $0x64] sm:$0xf] %vm243_vm0, %v273_v30  ;;  %v1985_v40 = vld [vmem:[#allocation2 + $0x28] sm:$0xf]  ;;  %v275_v43 = vld [vmem:[%s6766_s23 + $0x5c] sm:$0xf] }
  0x23   : > { %2047 = vrot.lane.b32.xlu1 %v1980_v29, %s6702_s24  ;;  %v278_v44 = vld [vmem:[%s6766_s23 + $0x68] sm:$0xf]  ;;  %v277_v45 = vld [vmem:[%s6766_s23 + $0x64] sm:$0xf]  ;;  %307 = vst.msk [vmem:[#allocation2 + $0x6c] sm:$0xf] %vm243_vm0, %v275_v43 }
  0x24   : > { %2053 = vrot.lane.b32.xlu0 %v1983_v36, %s6702_s24  ;;  %310 = vst.msk [vmem:[#allocation2 + $0x78] sm:$0xf] %vm243_vm0, %v278_v44  ;;  %309 = vst.msk [vmem:[#allocation2 + $0x74] sm:$0xf] %vm243_vm0, %v277_v45  ;;  %v280_v46 = vld [vmem:[%s6766_s23 + $0x70] sm:$0xf] }
  0x25   : > { %v279_v47 = vld [vmem:[%s6766_s23 + $0x6c] sm:$0xf]  ;;  %v360_v48 = vand.u32 15, %v318_v37  ;;  %v374_v49 = vand.u32 15, %v320_v38  ;;  %v1984_v50 = vld [vmem:[#allocation2 + $0x24] sm:$0xf] }
  0x26   : > { %312 = vst.msk [vmem:[#allocation2 + $0x80] sm:$0xf] %vm243_vm0, %v280_v46  ;;  %311 = vst.msk [vmem:[#allocation2 + $0x7c] sm:$0xf] %vm243_vm0, %v279_v47  ;;  %v281_v54 = vld [vmem:[%s6766_s23 + $0x74] sm:$0xf] }
  0x27   : > { %2051 = vrot.lane.b32.xlu1 %v1982_v39, %s6702_s24  ;;  %vm846_vm1 = vcmp.ne.s32.totalorder %v360_v48, 15  ;;  %vm848_vm2 = vcmp.ne.s32.totalorder %v374_v49, 15  ;;  %v1987_v55 = vld [vmem:[#allocation2 + $0x30] sm:$0xf]  ;;  %313 = vst.msk [vmem:[#allocation2 + $0x84] sm:$0xf] %vm243_vm0, %v281_v54 }
  0x28   : > { %2057 = vrot.lane.b32.xlu0 %v1985_v40, %s6702_s24  ;;  %v6465_v57 = vsel %vm846_vm1, 1.0, %v9336_v56  ;;  %v6466_v58 = vsel %vm848_vm2, 1.0, %v9336_v56  ;;  %v324_v59 = vadd.s32 56, %v6815_v28  ;;  %v9334_v60 = vmov 1.0   ;;  %v1986_v1 = vld [vmem:[#allocation2 + $0x2c] sm:$0xf] }
  0x29   : > { %v941_v61 = vpack.c.bf16 %v6465_v57, %v9334_v60  ;;  %v942_v62 = vpack.c.bf16 %v6466_v58, %v9334_v60  ;;  %v6854_v63 = vadd.s32 72, %v6815_v28  ;;  %v6857_v0 = vadd.s32 88, %v6815_v28  ;;  %v1989_v7 = vld [vmem:[#allocation2 + $0x38] sm:$0xf]  ;;  %v1988_v13 = vld [vmem:[#allocation2 + $0x34] sm:$0xf] }
  0x2a   : > { %vm1618_vm3 = vsmask.f32 256  ;;  %v388_v2 = vand.u32 15, %v322_v51  ;;  %vm1619_vm4 = vsmask.f32 4368  ;;  %v402_v8 = vand.u32 15, %v324_v59 }
  0x2b   : > { %2055 = vrot.lane.b32.xlu1 %v1984_v50, %s6702_s24  ;;  %v2225_v3 = vrot.slane %v941_v61, %v6840_v52  ;;  %v2232_v4 = vrot.slane %v941_v61, %v6843_v53  ;;  %v2239_v5 = vrot.slane %v942_v62, %v6840_v52  ;;  %v2246_v6 = vrot.slane %v942_v62, %v6843_v53  ;;  %v1991_v18 = vld [vmem:[#allocation2 + $0x40] sm:$0xf]  ;;  %v2170_v22 = vld [vmem:[#allocation2 + $0x8] sm:$0xf]  ;;  %vm6876_vm9 = vmor %vm1618_vm3, %vm1619_vm4  ;;  %s6708_s26 = smov 12   ;;  %s6709_s27 = smov 16  }
  0x2c   : > { %2061 = vrot.lane.b32.xlu0 %v1987_v55, %s6702_s24  ;;  %v416_v11 = vand.u32 15, %v6854_v63  ;;  %v430_v12 = vand.u32 15, %v6857_v0  ;;  %vm1230_vm5 = vsmask.f32 3328  ;;  %vm1231_vm6 = vsmask.f32 7440 }
  0x2d   : > { %v2444_v9 = vshrl.u32 %v2225_v3, 16  ;;  %v2447_v10 = vshll.u32 %v2225_v3, 16  ;;  %v2452_v14 = vshrl.u32 %v2232_v4, 16  ;;  %v2455_v15 = vshll.u32 %v2232_v4, 16  ;;  %v1990_v33 = vld [vmem:[#allocation2 + $0x3c] sm:$0xf]  ;;  %vm6912_vm10 = vmor %vm1230_vm5, %vm1231_vm6 }
  0x2e   : > { %v2461_v16 = vshrl.u32 %v2239_v5, 16  ;;  %v2464_v17 = vshll.u32 %v2239_v5, 16  ;;  %v2470_v20 = vshrl.u32 %v2246_v6, 16  ;;  %v2473_v21 = vshll.u32 %v2246_v6, 16  ;;  %v2171_v34 = vld [vmem:[#allocation2 + $0xc] sm:$0xf] }
  0x2f   : > { %2059 = vrot.lane.b32.xlu1 %v1986_v1, %s6702_s24  ;;  %v2446_v19 = vrot.slane %v2444_v9, 7  ;;  %vm850_vm7 = vcmp.ne.s32.totalorder %v388_v2, 15  ;;  %v2454_v23 = vrot.slane %v2452_v14, 7  ;;  %vm6869_vm8 = vcmp.ne.s32.totalorder %v402_v8, 15  ;;  %v2172_v40 = vld [vmem:[#allocation2 + $0x10] sm:$0xf] }
  0x30   : > { %2065 = vrot.lane.b32.xlu0 %v1989_v7, %s6702_s24  ;;  %v2463_v24 = vrot.slane %v2461_v16, 7  ;;  %v6467_v25 = vsel %vm850_vm7, 1.0, %v9336_v56  ;;  %v2472_v31 = vrot.slane %v2470_v20, 7  ;;  %v2173_v41 = vld [vmem:[#allocation2 + $0x14] sm:$0xf]  ;;  %v6468_v49 = vsel %vm6869_vm8, 1.0, %v9336_v56 }
  0x31   : > { %v6880_v29 = vor.u32 %v2447_v10, %v2446_v19  ;;  %v2450_v30 = vrot.slane %v2446_v19, 4  ;;  %v943_v32 = vpack.c.bf16 %v6467_v25, %v9334_v60  ;;  %v2457_v35 = vor.u32 %v2455_v15, %v2454_v23  ;;  %v1993_v45 = vld [vmem:[#allocation2 + $0x48] sm:$0xf]  ;;  %v1992_v57 = vld [vmem:[#allocation2 + $0x44] sm:$0xf]  ;;  %s6710_s28 = smov 20  }
  0x32   : > { %v2459_v36 = vrot.slane %v2454_v23, 4  ;;  %v2466_v37 = vor.u32 %v2464_v17, %v2463_v24  ;;  %v2468_v38 = vrot.slane %v2463_v24, 4  ;;  %v2475_v42 = vor.u32 %v2473_v21, %v2472_v31  ;;  %v1995_v5 = vld [vmem:[#allocation2 + $0x50] sm:$0xf]  ;;  %v1994_v10 = vld [vmem:[#allocation2 + $0x4c] sm:$0xf] }
  0x33   : > { %2063 = vrot.lane.b32.xlu1 %v1988_v13, %s6702_s24  ;;  %v2763_v39 = vmul.bf16 %v6880_v29, %v2170_v22  ;;  %v2253_v43 = vrot.slane %v943_v32, %v6840_v52  ;;  %v2260_v44 = vrot.slane %v943_v32, %v6843_v53  ;;  %v6889_v46 = vsel %vm6876_vm9, %v2450_v30, %v2457_v35  ;;  %v2174_v21 = vld [vmem:[#allocation2 + $0x18] sm:$0xf]  ;;  %s6711_s29 = smov 24   ;;  %s6712_s30 = smov 28  }
  0x34   : > { %2069 = vrot.lane.b32.xlu0 %v1991_v18, %s6702_s24  ;;  %9439 = vst [vmem:[#allocation4_spill] sm:$0xff] %v6889_v46  ;;  %v6893_v47 = vsel %vm6876_vm9, %v2459_v36, %v2466_v37  ;;  %v2477_v48 = vrot.slane %v2472_v31, 4  ;;  %v2764_v50 = vmul.bf16 %v6889_v46, %v2171_v34  ;;  %v6902_v55 = vsel %vm6876_vm9, %v2468_v38, %v2475_v42  ;;  %v1997_v30 = vld [vmem:[#allocation2 + $0x58] sm:$0xf]  ;;  %v1996_v31 = vld [vmem:[#allocation2 + $0x54] sm:$0xf] }
  0x35   : > { %9440 = vst [vmem:[#allocation5_spill] sm:$0xff] %v6893_v47  ;;  %v2797_v51 = vshrl.u32 %v2763_v39, 16  ;;  %v2800_v54 = vshll.u32 %v2763_v39, 16  ;;  %v2765_v58 = vmul.bf16 %v6893_v47, %v2172_v40  ;;  %v2766_v59 = vmul.bf16 %v6902_v55, %v2173_v41  ;;  %v2175_v38 = vld [vmem:[#allocation2 + $0x1c] sm:$0xf]  ;;  %s6713_s6 = smov 32  }
  0x36   : > { %v2479_v61 = vshrl.u32 %v2253_v43, 16  ;;  %v2482_v62 = vshll.u32 %v2253_v43, 16  ;;  %v2806_v3 = vshll.u32 %v2764_v50, 16  ;;  %v2810_v4 = vshrl.u32 %v2764_v50, 16 }
  0x37   : > { %2067 = vrot.lane.b32.xlu1 %v1990_v33, %s6702_s24  ;;  %v2799_v1 = vrot.slane %v2797_v51, 4  ;;  %v2802_v2 = vrot.slane %v2800_v54, 5  ;;  %v2816_v6 = vshll.u32 %v2765_v58, 16  ;;  %v2820_v7 = vshrl.u32 %v2765_v58, 16  ;;  %v1999_v54 = vld [vmem:[#allocation2 + $0x60] sm:$0xf] }
  0x38   : > { %2073 = vrot.lane.b32.xlu0 %v1993_v45, %s6702_s24  ;;  %v2826_v8 = vshll.u32 %v2766_v59, 16  ;;  %v2481_v9 = vrot.slane %v2479_v61, 7  ;;  %v6908_v14 = vrot.slane %v2806_v3, 5  ;;  %v2812_v15 = vrot.slane %v2810_v4, 4  ;;  %v1998_v3 = vld [vmem:[#allocation2 + $0x5c] sm:$0xf] }
  0x39   : > { %v2803_v13 = vor.u32 %v2802_v2, %v2799_v1  ;;  %v2488_v16 = vshrl.u32 %v2260_v44, 16  ;;  %v6916_v18 = vrot.slane %v2816_v6, 5  ;;  %v2822_v19 = vrot.slane %v2820_v7, 4 }
  0x3a   : > { %v6918_v20 = vrot.slane %v2826_v8, 5  ;;  %v2484_v22 = vor.u32 %v2482_v62, %v2481_v9  ;;  %v2813_v24 = vor.u32 %v2812_v15, %v6908_v14  ;;  %v2486_v25 = vrot.slane %v2481_v9, 4  ;;  %v2001_v8 = vld [vmem:[#allocation2 + $0x68] sm:$0xf] }
  0x3b   : > { %2071 = vrot.lane.b32.xlu1 %v1992_v57, %s6702_s24  ;;  %v6921_v23 = vrot.slane %v2803_v13, 4  ;;  %v6924_v26 = vrot.slane %v2488_v16, 7  ;;  %v2823_v32 = vor.u32 %v2822_v19, %v6916_v18  ;;  %v2491_v34 = vshll.u32 %v2260_v44, 16  ;;  %v2000_v16 = vld [vmem:[#allocation2 + $0x64] sm:$0xf] }
  0x3c   : > { %2077 = vrot.lane.b32.xlu0 %v1995_v5, %s6702_s24  ;;  %v6929_v33 = vsel %vm6876_vm9, %v2477_v48, %v2484_v22  ;;  %v2830_v35 = vshrl.u32 %v2766_v59, 16  ;;  %v6936_v37 = vrot.slane %v2813_v24, 4  ;;  %v944_v40 = vpack.c.bf16 %v6468_v49, %v9334_v60 }
  0x3d   : > { %v2809_v36 = vsel %vm6912_vm10, %v6921_v23, %v6908_v14  ;;  %v2767_v39 = vmul.bf16 %v6929_v33, %v2174_v21  ;;  %v6940_v41 = vrot.slane %v2823_v32, 4  ;;  %v2493_v42 = vor.u32 %v2491_v34, %v6924_v26  ;;  %v2177_v32 = vld [vmem:[#allocation2 + $0x24] sm:$0xf] }
  0x3e   : > { %v2832_v43 = vrot.slane %v2830_v35, 4  ;;  %v2495_v44 = vrot.slane %v6924_v26, 4  ;;  %v2819_v45 = vsel %vm6912_vm10, %v6936_v37, %v6916_v18  ;;  %v2267_v51 = vrot.slane %v944_v40, %v6840_v52  ;;  %v2176_v26 = vld [vmem:[#allocation2 + $0x20] sm:$0xf] }
  0x3f   : > { %2075 = vrot.lane.b32.xlu1 %v1994_v10, %s6702_s24  ;;  %v2836_v48 = vshll.u32 %v2767_v39, 16  ;;  %v2840_v50 = vshrl.u32 %v2767_v39, 16  ;;  %v2829_v49 = vsel %vm6912_vm10, %v6940_v41, %v6918_v20  ;;  %v6956_v57 = vsel %vm6876_vm9, %v2486_v25, %v2493_v42 }
  0x40   : > { %2081 = vrot.lane.b32.xlu0 %v1997_v30, %s6702_s24  ;;  %9443 = vst [vmem:[#allocation6_spill] sm:$0xff] %v6956_v57  ;;  %v2833_v58 = vor.u32 %v2832_v43, %v6918_v20  ;;  %v2274_v59 = vrot.slane %v944_v40, %v6843_v53  ;;  %v2768_v61 = vmul.bf16 %v6956_v57, %v2175_v38  ;;  %v2497_v2 = vshrl.u32 %v2267_v51, 16  ;;  %v2003_v40 = vld [vmem:[#allocation2 + $0x70] sm:$0xf] }
  0x41   : > { %v6962_v62 = vrot.slane %v2836_v48, 5  ;;  %v2842_v1 = vrot.slane %v2840_v50, 4  ;;  %v2500_v5 = vshll.u32 %v2267_v51, 16  ;;  %vm854_vm11 = vcmp.ne.s32.totalorder %v416_v11, 15 }
  0x42   : > { %v6964_v4 = vrot.slane %v2833_v58, 4  ;;  %v2506_v6 = vshrl.u32 %v2274_v59, 16  ;;  %v2509_v7 = vshll.u32 %v2274_v59, 16  ;;  %v2846_v10 = vshll.u32 %v2768_v61, 16  ;;  %v2002_v59 = vld [vmem:[#allocation2 + $0x6c] sm:$0xf] }
  0x43   : > { %2079 = vrot.lane.b32.xlu1 %v1996_v31, %s6702_s24  ;;  %v2843_v9 = vor.u32 %v2842_v1, %v6962_v62  ;;  %v2499_v13 = vrot.slane %v2497_v2, 7  ;;  %v2850_v15 = vshrl.u32 %v2768_v61, 16  ;;  %vm6978_vm12 = vcmp.ne.s32.totalorder %v430_v12, 15 }
  0x44   : > { %2085 = vrot.lane.b32.xlu0 %v1999_v54, %s6702_s24  ;;  %v2839_v19 = vsel %vm6912_vm10, %v6964_v4, %v6962_v62  ;;  %v6972_v21 = vrot.slane %v2506_v6, 7  ;;  %v6985_v25 = vrot.slane %v2846_v10, 5  ;;  %v6469_v11 = vsel %vm854_vm11, 1.0, %v9336_v56  ;;  %v2005_v10 = vld [vmem:[#allocation2 + $0x78] sm:$0xf] }
  0x45   : > { %v6983_v24 = vrot.slane %v2843_v9, 4  ;;  %v2502_v30 = vor.u32 %v2500_v5, %v2499_v13  ;;  %v2504_v31 = vrot.slane %v2499_v13, 4  ;;  %v2852_v63 = vrot.slane %v2850_v15, 4  ;;  %v282_v9 = vld [vmem:[%s6766_s23 + $0x78] sm:$0xf] }
  0x46   : > { %v2511_v34 = vor.u32 %v2509_v7, %v6972_v21  ;;  %v2513_v0 = vrot.slane %v6972_v21, 4  ;;  %v945_v38 = vpack.c.bf16 %v6469_v11, %v9334_v60  ;;  %v6470_v39 = vsel %vm6978_vm12, 1.0, %v9336_v56  ;;  %314 = vst.msk [vmem:[#allocation2 + $0x88] sm:$0xf] %vm243_vm0, %v282_v9  ;;  %v2006_v9 = vld [vmem:[#allocation2 + $0x7c] sm:$0xf] }
  0x47   : > { %2083 = vrot.lane.b32.xlu1 %v1998_v3, %s6702_s24  ;;  %v2849_v12 = vsel %vm6912_vm10, %v6983_v24, %v6985_v25  ;;  %v6997_v35 = vsel %vm6876_vm9, %v2495_v44, %v2502_v30  ;;  %v2853_v48 = vor.u32 %v2852_v63, %v6985_v25  ;;  %v946_v50 = vpack.c.bf16 %v6470_v39, %v9334_v60  ;;  %v2178_v39 = vld [vmem:[#allocation2 + $0x28] sm:$0xf]  ;;  %v2182_v25 = vld [vmem:[#allocation2 + $0x38] sm:$0xf] }
  0x48   : > { %2089 = vrot.lane.b32.xlu0 %v2001_v8, %s6702_s24  ;;  %9446 = vst [vmem:[#allocation7_spill] sm:$0xff] %v6997_v35  ;;  %v7005_v42 = vsel %vm6876_vm9, %v2504_v31, %v2511_v34  ;;  %v2769_v43 = vmul.bf16 %v6997_v35, %v2176_v26  ;;  %v2281_v51 = vrot.slane %v945_v38, %v6840_v52  ;;  %v7015_v58 = vadd.s32 104, %v6815_v28 }
  0x49   : > { %9447 = vst [vmem:[#allocation8_spill] sm:$0xff] %v7005_v42  ;;  %v2770_v44 = vmul.bf16 %v7005_v42, %v2177_v32  ;;  %v2288_v54 = vrot.slane %v945_v38, %v6843_v53  ;;  %v7017_v2 = vrot.slane %v2853_v48, 4  ;;  %v2295_v3 = vrot.slane %v946_v50, %v6840_v52  ;;  %v2004_v32 = vld [vmem:[#allocation2 + $0x74] sm:$0xf]  ;;  %v967_v42 = vld [vmem:[#allocation2 + $0x2c] sm:$0xf] }
  0x4a   : > { %v2856_v61 = vshll.u32 %v2769_v43, 16  ;;  %v2860_v1 = vshrl.u32 %v2769_v43, 16  ;;  %v2515_v6 = vshrl.u32 %v2281_v51, 16  ;;  %v2518_v7 = vshll.u32 %v2281_v51, 16 }
  0x4b   : > { %2087 = vrot.lane.b32.xlu1 %v2000_v16, %s6702_s24  ;;  %v2866_v5 = vshll.u32 %v2770_v44, 16  ;;  %v2524_v8 = vshrl.u32 %v2288_v54, 16  ;;  %v2527_v16 = vshll.u32 %v2288_v54, 16  ;;  %v2870_v21 = vshrl.u32 %v2770_v44, 16  ;;  %v2007_v54 = vld [vmem:[#allocation2 + $0x80] sm:$0xf] }
  0x4c   : > { %2093 = vrot.lane.b32.xlu0 %v2003_v40, %s6702_s24  ;;  %v7022_v13 = vrot.slane %v2856_v61, 5  ;;  %v2862_v15 = vrot.slane %v2860_v1, 4  ;;  %v2517_v26 = vrot.slane %v2515_v6, 7  ;;  %v2302_v31 = vrot.slane %v946_v50, %v6843_v53  ;;  %v2179_v40 = vld [vmem:[#allocation2 + $0x2c] sm:$0xf] }
  0x4d   : > { %v7026_v22 = vrot.slane %v2866_v5, 5  ;;  %v2526_v30 = vrot.slane %v2524_v8, 7  ;;  %v2872_v11 = vrot.slane %v2870_v21, 4  ;;  %v2533_v38 = vshrl.u32 %v2295_v3, 16 }
  0x4e   : > { %v2863_v34 = vor.u32 %v2862_v15, %v7022_v13  ;;  %v2859_v63 = vsel %vm6912_vm10, %v7017_v2, %v7022_v13  ;;  %v2520_v43 = vor.u32 %v2518_v7, %v2517_v26  ;;  %v2522_v48 = vrot.slane %v2517_v26, 4 }
  0x4f   : > { %2091 = vrot.lane.b32.xlu1 %v2002_v59, %s6702_s24  ;;  %v2529_v44 = vor.u32 %v2527_v16, %v2526_v30  ;;  %v2531_v51 = vrot.slane %v2526_v30, 4  ;;  %v2873_v59 = vor.u32 %v2872_v11, %v7026_v22  ;;  %v2535_v61 = vrot.slane %v2533_v38, 7 }
  0x50   : > { %2097 = vrot.lane.b32.xlu0 %v2005_v10, %s6702_s24  ;;  %v7035_v50 = vrot.slane %v2863_v34, 4  ;;  %v2536_v1 = vshll.u32 %v2295_v3, 16  ;;  %v7041_v5 = vsel %vm6876_vm9, %v2513_v0, %v2520_v43  ;;  %v2542_v7 = vshrl.u32 %v2302_v31, 16  ;;  %v2180_v0 = vld [vmem:[#allocation2 + $0x30] sm:$0xf] }
  0x51   : > { %9448 = vst [vmem:[#allocation9_spill] sm:$0xff] %v7041_v5  ;;  %v7045_v6 = vsel %vm6876_vm9, %v2522_v48, %v2529_v44  ;;  %v2545_v8 = vshll.u32 %v2302_v31, 16  ;;  %v2771_v3 = vmul.bf16 %v7041_v5, %v2178_v39  ;;  %v7053_v16 = vrot.slane %v2873_v59, 4  ;;  %v2181_v39 = vld [vmem:[#allocation2 + $0x34] sm:$0xf] }
  0x52   : > { %9449 = vst [vmem:[#allocation10_spill] sm:$0xff] %v7045_v6  ;;  %v2869_v10 = vsel %vm6912_vm10, %v7035_v50, %v7026_v22  ;;  %v2772_v15 = vmul.bf16 %v7045_v6, %v2179_v40  ;;  %v2538_v21 = vor.u32 %v2536_v1, %v2535_v61  ;;  %v2540_v26 = vrot.slane %v2535_v61, 4  ;;  %v2008_v44 = vld [vmem:[#allocation2 + $0x84] sm:$0xf] }
  0x53   : > { %2095 = vrot.lane.b32.xlu1 %v2004_v32, %s6702_s24  ;;  %v7056_v30 = vrot.slane %v2542_v7, 7  ;;  %v444_v31 = vand.u32 15, %v7015_v58  ;;  %v2876_v32 = vshll.u32 %v2771_v3, 16  ;;  %v2880_v34 = vshrl.u32 %v2771_v3, 16 }
  0x54   : > { %2101 = vrot.lane.b32.xlu0 %v2007_v54, %s6702_s24  ;;  %v2886_v11 = vshll.u32 %v2772_v15, 16  ;;  %v2890_v38 = vshrl.u32 %v2772_v15, 16  ;;  %v7062_v40 = vsel %vm6876_vm9, %v2531_v51, %v2538_v21  ;;  %vm2137_vm6 = vcmask 60448  }
  0x55   : > { %9450 = vst [vmem:[#allocation11_spill] sm:$0xff] %v7062_v40  ;;  %v2547_v43 = vor.u32 %v2545_v8, %v7056_v30  ;;  %vm858_vm13 = vcmp.ne.s32.totalorder %v444_v31, 15  ;;  %v2549_v48 = vrot.slane %v7056_v30, 4  ;;  %v7066_v54 = vrot.slane %v2876_v32, 5 }
  0x56   : > { %v2882_v58 = vrot.slane %v2880_v34, 4  ;;  %v7068_v59 = vrot.slane %v2886_v11, 5  ;;  %v2773_v61 = vmul.bf16 %v7062_v40, %v2180_v0  ;;  %v2892_v1 = vrot.slane %v2890_v38, 4 }
  0x57   : > { %2099 = vrot.lane.b32.xlu1 %v2006_v9, %s6702_s24  ;;  %v7079_v51 = vsel %vm6876_vm9, %v2540_v26, %v2547_v43  ;;  %v6471_v7 = vsel %vm858_vm13, 1.0, %v9336_v56  ;;  %v332_v8 = vadd.s32 120, %v6815_v28  ;;  %v2879_v3 = vsel %vm6912_vm10, %v7053_v16, %v7066_v54 }
  0x58   : > { %3120 = vrot.lane.b32.xlu0 %v2809_v36, %s6707_s25  ;;  %9451 = vst [vmem:[#allocation12_spill] sm:$0xff] %v7079_v51  ;;  %v2883_v9 = vor.u32 %v2882_v58, %v7066_v54  ;;  %v2774_v15 = vmul.bf16 %v7079_v51, %v2181_v39  ;;  %v2896_v14 = vshll.u32 %v2773_v61, 16  ;;  %v2900_v23 = vshrl.u32 %v2773_v61, 16 }
  0x59   : > { %v2893_v36 = vor.u32 %v2892_v1, %v7068_v59  ;;  %v947_v0 = vpack.c.bf16 %v6471_v7, %v9334_v60  ;;  %v458_v21 = vand.u32 15, %v332_v8  ;;  %v329_v6 = vadd.s32 96, %v6815_v28 }
  0x5a   : > { %v2884_v26 = vrot.slane %v2883_v9, 4  ;;  %v7092_v31 = vrot.slane %v2896_v14, 5  ;;  %v2906_v32 = vshll.u32 %v2774_v15, 16  ;;  %v2910_v34 = vshrl.u32 %v2774_v15, 16 }
  0x5b   : > { %2103 = vrot.lane.b32.xlu1 %v2008_v44, %s6702_s24  ;;  %v2902_v11 = vrot.slane %v2900_v23, 4  ;;  %v7100_v38 = vrot.slane %v2893_v36, 4  ;;  %v2309_v39 = vrot.slane %v947_v0, %v6840_v52  ;;  %v2316_v43 = vrot.slane %v947_v0, %v6843_v53 }
  0x5c   : > { %3124 = vrot.lane.b32.xlu0 %v2829_v49, %s6707_s25  ;;  %v2889_v44 = vsel %vm6912_vm10, %v2884_v26, %v7068_v59  ;;  %v7107_v58 = vrot.slane %v2906_v32, 5  ;;  %v2912_v61 = vrot.slane %v2910_v34, 4  ;;  %vm860_vm14 = vcmp.ne.s32.totalorder %v458_v21, 15  ;;  %v2183_v32 = vld [vmem:[#allocation2 + $0x3c] sm:$0xf] }
  0x5d   : > { %v2903_v20 = vor.u32 %v2902_v11, %v7092_v31  ;;  %v2899_v41 = vsel %vm6912_vm10, %v7100_v38, %v7092_v31  ;;  %v2551_v49 = vshrl.u32 %v2309_v39, 16  ;;  %v2554_v59 = vshll.u32 %v2309_v39, 16 }
  0x5e   : > { %v2560_v1 = vshrl.u32 %v2316_v43, 16  ;;  %v2563_v7 = vshll.u32 %v2316_v43, 16  ;;  %v2913_v8 = vor.u32 %v2912_v61, %v7107_v58  ;;  %v6472_v9 = vsel %vm860_vm14, 1.0, %v9336_v56 }
  0x5f   : > { %3122 = vrot.lane.b32.xlu1 %v2819_v45, %s6707_s25  ;;  %v2904_v18 = vrot.slane %v2903_v20, 4  ;;  %v2553_v37 = vrot.slane %v2551_v49, 7  ;;  %v948_v45 = vpack.c.bf16 %v6472_v9, %v9334_v60  ;;  %v334_v15 = vadd.s32 136, %v6815_v28  ;;  %v2184_v9 = vld [vmem:[#allocation2 + $0x40] sm:$0xf] }
  0x60   : > { %3128 = vrot.lane.b32.xlu0 %v2849_v12, %s6707_s25  ;;  %v2562_v14 = vrot.slane %v2560_v1, 7  ;;  %v7130_v23 = vrot.slane %v2913_v8, 4  ;;  %v336_v36 = vadd.s32 152, %v6815_v28  ;;  %v7134_v0 = vadd.s32 168, %v6815_v28 }
  0x61   : > { %v2909_v24 = vsel %vm6912_vm10, %v2904_v18, %v7107_v58  ;;  %v2556_v12 = vor.u32 %v2554_v59, %v2553_v37  ;;  %v2558_v21 = vrot.slane %v2553_v37, 4  ;;  %v2323_v26 = vrot.slane %v948_v45, %v6840_v52 }
  0x62   : > { %v2565_v34 = vor.u32 %v2563_v7, %v2562_v14  ;;  %v2330_v11 = vrot.slane %v948_v45, %v6843_v53  ;;  %v2567_v39 = vrot.slane %v2562_v14, 4  ;;  %v472_v43 = vand.u32 15, %v334_v15  ;;  %v2185_v45 = vld [vmem:[#allocation2 + $0x44] sm:$0xf] }
  0x63   : > { %3126 = vrot.lane.b32.xlu1 %v2839_v19, %s6707_s25  ;;  %v7157_v62 = vsel %vm6876_vm9, %v2549_v48, %v2556_v12  ;;  %v2569_v4 = vshrl.u32 %v2323_v26, 16  ;;  %v2572_v19 = vshll.u32 %v2323_v26, 16  ;;  %v486_v58 = vand.u32 15, %v336_v36 }
  0x64   : > { %3132 = vrot.lane.b32.xlu0 %v2869_v10, %s6707_s25  ;;  %9452 = vst [vmem:[#allocation13_spill] sm:$0xff] %v7157_v62  ;;  %v7161_v61 = vsel %vm6876_vm9, %v2558_v21, %v2565_v34  ;;  %v2775_v20 = vmul.bf16 %v7157_v62, %v2182_v25  ;;  %v2578_v49 = vshrl.u32 %v2330_v11, 16  ;;  %v2581_v59 = vshll.u32 %v2330_v11, 16 }
  0x65   : > { %9453 = vst [vmem:[#allocation14_spill] sm:$0xff] %v7161_v61  ;;  %v2776_v22 = vmul.bf16 %v7161_v61, %v2183_v32  ;;  %v2571_v50 = vrot.slane %v2569_v4, 7  ;;  %vm862_vm15 = vcmp.ne.s32.totalorder %v472_v43, 15  ;;  %vm7171_vm1 = vcmp.ne.s32.totalorder %v486_v58, 15 }
  0x66   : > { %v2916_v30 = vshll.u32 %v2775_v20, 16  ;;  %v2920_v48 = vshrl.u32 %v2775_v20, 16  ;;  %v2580_v1 = vrot.slane %v2578_v49, 7  ;;  %v6473_v7 = vsel %vm862_vm15, 1.0, %v9336_v56 }
  0x67   : > { %3130 = vrot.lane.b32.xlu1 %v2859_v63, %s6707_s25  ;;  %v2926_v8 = vshll.u32 %v2776_v22, 16  ;;  %v2574_v18 = vor.u32 %v2572_v19, %v2571_v50  ;;  %v2576_v2 = vrot.slane %v2571_v50, 4  ;;  %v2930_v13 = vshrl.u32 %v2776_v22, 16 }
  0x68   : > { %3136 = vrot.lane.b32.xlu0 %v2889_v44, %s6707_s25  ;;  %v2918_v63 = vrot.slane %v2916_v30, 5  ;;  %v2922_v37 = vrot.slane %v2920_v48, 4  ;;  %v2583_v15 = vor.u32 %v2581_v59, %v2580_v1  ;;  %v949_v14 = vpack.c.bf16 %v6473_v7, %v9334_v60 }
  0x69   : > { %v2928_v36 = vrot.slane %v2926_v8, 5  ;;  %v7186_v44 = vsel %vm6876_vm9, %v2567_v39, %v2574_v18  ;;  %v2932_v25 = vrot.slane %v2930_v13, 4  ;;  %v2585_v12 = vrot.slane %v2580_v1, 4  ;;  %v2186_v8 = vld [vmem:[#allocation2 + $0x48] sm:$0xf] }
  0x6a   : > { %9456 = vst [vmem:[#allocation15_spill] sm:$0xff] %v7186_v44  ;;  %v2923_v21 = vor.u32 %v2922_v37, %v2918_v63  ;;  %v2919_v26 = vsel %vm6912_vm10, %v7130_v23, %v2918_v63  ;;  %v7193_v32 = vsel %vm6876_vm9, %v2576_v2, %v2583_v15  ;;  %v2777_v34 = vmul.bf16 %v7186_v44, %v2184_v9  ;;  %v2187_v37 = vld [vmem:[#allocation2 + $0x4c] sm:$0xf] }
  0x6b   : > { %3134 = vrot.lane.b32.xlu1 %v2879_v3, %s6707_s25  ;;  %9457 = vst [vmem:[#allocation16_spill] sm:$0xff] %v7193_v32  ;;  %v2778_v16 = vmul.bf16 %v7193_v32, %v2185_v45  ;;  %v2933_v54 = vor.u32 %v2932_v25, %v2928_v36  ;;  %v2337_v3 = vrot.slane %v949_v14, %v6840_v52  ;;  %v6474_v23 = vsel %vm7171_vm1, 1.0, %v9336_v56 }
  0x6c   : > { %3140 = vrot.lane.b32.xlu0 %v2909_v24, %s6707_s25  ;;  %v2344_v11 = vrot.slane %v949_v14, %v6843_v53  ;;  %v2924_v39 = vrot.slane %v2923_v21, 4  ;;  %v2936_v43 = vshll.u32 %v2777_v34, 16  ;;  %v2940_v4 = vshrl.u32 %v2777_v34, 16 }
  0x6d   : > { %v2946_v24 = vshll.u32 %v2778_v16, 16  ;;  %v2934_v19 = vrot.slane %v2933_v54, 4  ;;  %v2587_v58 = vshrl.u32 %v2337_v3, 16  ;;  %v2590_v20 = vshll.u32 %v2337_v3, 16 }
  0x6e   : > { %v2929_v49 = vsel %vm6912_vm10, %v2924_v39, %v2928_v36  ;;  %v2938_v59 = vrot.slane %v2936_v43, 5  ;;  %v2942_v22 = vrot.slane %v2940_v4, 4  ;;  %v2596_v50 = vshrl.u32 %v2344_v11, 16 }
  0x6f   : > { %3138 = vrot.lane.b32.xlu1 %v2899_v41, %s6707_s25  ;;  %v2948_v10 = vrot.slane %v2946_v24, 5  ;;  %v2589_v30 = vrot.slane %v2587_v58, 7  ;;  %v2599_v48 = vshll.u32 %v2344_v11, 16  ;;  %v2950_v1 = vshrl.u32 %v2778_v16, 16 }
  0x70   : > { %3144 = vrot.lane.b32.xlu0 %v2929_v49, %s6707_s25  ;;  %v2943_v7 = vor.u32 %v2942_v22, %v2938_v59  ;;  %v2939_v31 = vsel %vm6912_vm10, %v2934_v19, %v2938_v59  ;;  %v2598_v38 = vrot.slane %v2596_v50, 7  ;;  %v950_v41 = vpack.c.bf16 %v6474_v23, %v9334_v60  ;;  %v2188_v50 = vld [vmem:[#allocation2 + $0x50] sm:$0xf] }
  0x71   : > { %v2592_v9 = vor.u32 %v2590_v20, %v2589_v30  ;;  %v2594_v18 = vrot.slane %v2589_v30, 4  ;;  %v2952_v2 = vrot.slane %v2950_v1, 4  ;;  %v500_v13 = vand.u32 15, %v7134_v0  ;;  %v2189_v1 = vld [vmem:[#allocation2 + $0x54] sm:$0xf] }
  0x72   : > { %v2944_v63 = vrot.slane %v2943_v7, 4  ;;  %v2601_v45 = vor.u32 %v2599_v48, %v2598_v38  ;;  %v2351_v15 = vrot.slane %v950_v41, %v6840_v52  ;;  %v2358_v14 = vrot.slane %v950_v41, %v6843_v53 }
  0x73   : > { %3142 = vrot.lane.b32.xlu1 %v2919_v26, %s6707_s25  ;;  %v7221_v36 = vsel %vm6876_vm9, %v2585_v12, %v2592_v9  ;;  %v2953_v25 = vor.u32 %v2952_v2, %v2948_v10  ;;  %v2603_v21 = vrot.slane %v2598_v38, 4  ;;  %vm7223_vm2 = vcmp.ne.s32.totalorder %v500_v13, 15 }
  0x74   : > { %9458 = vst [vmem:[#allocation17_spill] sm:$0xff] %v7221_v36  ;;  %v2949_v0 = vsel %vm6912_vm10, %v2944_v63, %v2948_v10  ;;  %v7231_v34 = vsel %vm6876_vm9, %v2594_v18, %v2601_v45  ;;  %v2779_v16 = vmul.bf16 %v7221_v36, %v2186_v8  ;;  %v2605_v54 = vshrl.u32 %v2351_v15, 16  ;;  %v3250_v36 = vld [vmem:[#allocation2 + $0x10] sm:$0xf] }
  0x75   : > { %9461 = vst [vmem:[#allocation18_spill] sm:$0xff] %v7231_v34  ;;  %3148 = vrot.lane.b32.xlu0 %v2949_v0, %s6707_s25  ;;  %v2780_v12 = vmul.bf16 %v7231_v34, %v2187_v37  ;;  %v2954_v3 = vrot.slane %v2953_v25, 4  ;;  %v2608_v11 = vshll.u32 %v2351_v15, 16  ;;  %v2614_v39 = vshrl.u32 %v2358_v14, 16 }
  0x76   : > { %v2956_v43 = vshll.u32 %v2779_v16, 16  ;;  %v2960_v4 = vshrl.u32 %v2779_v16, 16  ;;  %v2607_v23 = vrot.slane %v2605_v54, 7  ;;  %v2617_v24 = vshll.u32 %v2358_v14, 16 }
  0x77   : > { %3146 = vrot.lane.b32.xlu1 %v2939_v31, %s6707_s25  ;;  %v2966_v19 = vshll.u32 %v2780_v12, 16  ;;  %v2616_v58 = vrot.slane %v2614_v39, 7  ;;  %v2970_v20 = vshrl.u32 %v2780_v12, 16  ;;  %v6475_v49 = vsel %vm7223_vm2, 1.0, %v9336_v56 }
  0x78   : > { %v2958_v59 = vrot.slane %v2956_v43, 5  ;;  %v2962_v22 = vrot.slane %v2960_v4, 4  ;;  %v2610_v10 = vor.u32 %v2608_v11, %v2607_v23  ;;  %v2612_v30 = vrot.slane %v2607_v23, 4 }
  0x79   : > { %v2968_v48 = vrot.slane %v2966_v19, 5  ;;  %v2619_v7 = vor.u32 %v2617_v24, %v2616_v58  ;;  %v2972_v31 = vrot.slane %v2970_v20, 4  ;;  %v951_v38 = vpack.c.bf16 %v6475_v49, %v9334_v60 }
  0x7a   : > { %v2963_v41 = vor.u32 %v2962_v22, %v2958_v59  ;;  %v2959_v8 = vsel %vm6912_vm10, %v2954_v3, %v2958_v59  ;;  %v7245_v9 = vsel %vm6876_vm9, %v2603_v21, %v2610_v10  ;;  %v2621_v18 = vrot.slane %v2616_v58, 4  ;;  %v2190_v22 = vld [vmem:[#allocation2 + $0x58] sm:$0xf] }
  0x7b   : > { %9462 = vst [vmem:[#allocation19_spill] sm:$0xff] %v7245_v9  ;;  %3150 = vrot.lane.b32.xlu1 %v2959_v8, %s6707_s25  ;;  %v7250_v2 = vsel %vm6876_vm9, %v2612_v30, %v2619_v7  ;;  %v2781_v13 = vmul.bf16 %v7245_v9, %v2188_v50  ;;  %v2973_v63 = vor.u32 %v2972_v31, %v2968_v48  ;;  %v340_v25 = vadd.s32 184, %v6815_v28  ;;  %v2191_v30 = vld [vmem:[#allocation2 + $0x5c] sm:$0xf] }
  0x7c   : > { %9463 = vst [vmem:[#allocation20_spill] sm:$0xff] %v7250_v2  ;;  %v2365_v37 = vrot.slane %v951_v38, %v6840_v52  ;;  %v2964_v45 = vrot.slane %v2963_v41, 4  ;;  %v2782_v15 = vmul.bf16 %v7250_v2, %v2189_v1  ;;  %v2372_v14 = vrot.slane %v951_v38, %v6843_v53 }
  0x7d   : > { %v2976_v21 = vshll.u32 %v2781_v13, 16  ;;  %v2980_v26 = vshrl.u32 %v2781_v13, 16  ;;  %v2974_v0 = vrot.slane %v2973_v63, 4  ;;  %v514_v20 = vand.u32 15, %v340_v25 }
  0x7e   : > { %v2623_v16 = vshrl.u32 %v2365_v37, 16  ;;  %v2969_v54 = vsel %vm6912_vm10, %v2964_v45, %v2968_v48  ;;  %v2986_v12 = vshll.u32 %v2782_v15, 16  ;;  %v2626_v3 = vshll.u32 %v2365_v37, 16 }
  0x7f   : > { %v2632_v11 = vshrl.u32 %v2372_v14, 16  ;;  %3152 = vrot.lane.b32.xlu0 %v2969_v54, %s6707_s25  ;;  %v2978_v39 = vrot.slane %v2976_v21, 5  ;;  %v2982_v43 = vrot.slane %v2980_v26, 4  ;;  %v2635_v23 = vshll.u32 %v2372_v14, 16 }
  0x80   : > { %v2625_v4 = vrot.slane %v2623_v16, 7  ;;  %v2988_v24 = vrot.slane %v2986_v12, 5  ;;  %v2990_v58 = vshrl.u32 %v2782_v15, 16  ;;  %vm868_vm3 = vcmp.ne.s32.totalorder %v514_v20, 15 }
  0x81   : > { %v7260_v19 = vrot.slane %v2632_v11, 7  ;;  %v2983_v49 = vor.u32 %v2982_v43, %v2978_v39  ;;  %v2979_v59 = vsel %vm6912_vm10, %v2974_v0, %v2978_v39  ;;  %v6476_v41 = vsel %vm868_vm3, 1.0, %v9336_v56 }
  0x82   : > { %v2628_v50 = vor.u32 %v2626_v3, %v2625_v4  ;;  %v2630_v10 = vrot.slane %v2625_v4, 4  ;;  %3154 = vrot.lane.b32.xlu1 %v2979_v59, %s6707_s25  ;;  %v2992_v1 = vrot.slane %v2990_v58, 4  ;;  %v342_v8 = vadd.s32 200, %v6815_v28 }
  0x83   : > { %v2637_v48 = vor.u32 %v2635_v23, %v7260_v19  ;;  %v2639_v7 = vrot.slane %v7260_v19, 4  ;;  %v2984_v31 = vrot.slane %v2983_v49, 4  ;;  %v952_v45 = vpack.c.bf16 %v6476_v41, %v9334_v60 }
  0x84   : > { %v7269_v38 = vsel %vm6876_vm9, %v2621_v18, %v2628_v50  ;;  %v2993_v37 = vor.u32 %v2992_v1, %v2988_v24  ;;  %v528_v18 = vand.u32 15, %v342_v8  ;;  %v353_v25 = vand.u32 15, %v6815_v28  ;;  %v2192_v1 = vld [vmem:[#allocation2 + $0x60] sm:$0xf] }
  0x85   : > { %9464 = vst [vmem:[#allocation21_spill] sm:$0xff] %v7269_v38  ;;  %v7275_v13 = vsel %vm6876_vm9, %v2630_v10, %v2637_v48  ;;  %v2783_v63 = vmul.bf16 %v7269_v38, %v2190_v22  ;;  %v2989_v15 = vsel %vm6912_vm10, %v2984_v31, %v2988_v24  ;;  %v2379_v16 = vrot.slane %v952_v45, %v6840_v52 }
  0x86   : > { %9465 = vst [vmem:[#allocation22_spill] sm:$0xff] %v7275_v13  ;;  %v2784_v14 = vmul.bf16 %v7275_v13, %v2191_v30  ;;  %3156 = vrot.lane.b32.xlu0 %v2989_v15, %s6707_s25  ;;  %v2994_v0 = vrot.slane %v2993_v37, 4  ;;  %v2386_v12 = vrot.slane %v952_v45, %v6843_v53  ;;  %vm870_vm4 = vcmp.ne.s32.totalorder %v528_v18, 15 }
  0x87   : > { %v2996_v21 = vshll.u32 %v2783_v63, 16  ;;  %v3000_v26 = vshrl.u32 %v2783_v63, 16  ;;  %v2641_v43 = vshrl.u32 %v2379_v16, 16  ;;  %v2644_v4 = vshll.u32 %v2379_v16, 16  ;;  %v2193_v63 = vld [vmem:[#allocation2 + $0x64] sm:$0xf] }
  0x88   : > { %v3006_v54 = vshll.u32 %v2784_v14, 16  ;;  %v3010_v3 = vshrl.u32 %v2784_v14, 16  ;;  %v2650_v24 = vshrl.u32 %v2386_v12, 16  ;;  %v2653_v19 = vshll.u32 %v2386_v12, 16 }
  0x89   : > { %v2998_v11 = vrot.slane %v2996_v21, 5  ;;  %v3002_v39 = vrot.slane %v3000_v26, 4  ;;  %v2643_v59 = vrot.slane %v2641_v43, 7  ;;  %v6477_v22 = vsel %vm870_vm4, 1.0, %v9336_v56 }
  0x8a   : > { %v3008_v23 = vrot.slane %v3006_v54, 5  ;;  %v3012_v58 = vrot.slane %v3010_v3, 4  ;;  %v2652_v50 = vrot.slane %v2650_v24, 7  ;;  %v953_v30 = vpack.c.bf16 %v6477_v22, %v9334_v60 }
  0x8b   : > { %v3003_v20 = vor.u32 %v3002_v39, %v2998_v11  ;;  %v2999_v49 = vsel %vm6912_vm10, %v2994_v0, %v2998_v11  ;;  %vm733_vm5 = vcmp.ne.s32.totalorder %v353_v25, 0  ;;  %v2646_v31 = vor.u32 %v2644_v4, %v2643_v59 }
  0x8c   : > { %3158 = vrot.lane.b32.xlu1 %v2999_v49, %s6707_s25  ;;  %v3013_v10 = vor.u32 %v3012_v58, %v3008_v23  ;;  %v2648_v41 = vrot.slane %v2643_v59, 4  ;;  %v6449_v8 = vsel %vm733_vm5, 1.0, %v9336_v56  ;;  %v2655_v37 = vor.u32 %v2653_v19, %v2652_v50 }
  0x8d   : > { %v3004_v48 = vrot.slane %v3003_v20, 4  ;;  %v2393_v15 = vrot.slane %v953_v30, %v6840_v52  ;;  %v2400_v14 = vrot.slane %v953_v30, %v6843_v53  ;;  %v7298_v21 = vsel %vm6876_vm9, %v2639_v7, %v2646_v31 }
  0x8e   : > { %v3014_v45 = vrot.slane %v3013_v10, 4  ;;  %9466 = vst [vmem:[#allocation23_spill] sm:$0xff] %v7298_v21  ;;  %v2657_v25 = vrot.slane %v2652_v50, 4  ;;  %v829_v26 = vpack.c.bf16 %v9334_v60, %v6449_v8  ;;  %v7304_v0 = vsel %vm6876_vm9, %v2648_v41, %v2655_v37  ;;  %v2194_v50 = vld [vmem:[#allocation2 + $0x68] sm:$0xf] }
  0x8f   : > { %v3009_v18 = vsel %vm6912_vm10, %v3004_v48, %v3008_v23  ;;  %9467 = vst [vmem:[#allocation24_spill] sm:$0xff] %v7304_v0  ;;  %v2785_v16 = vmul.bf16 %v7298_v21, %v2192_v1  ;;  %v2659_v54 = vshrl.u32 %v2393_v15, 16  ;;  %v2662_v12 = vshll.u32 %v2393_v15, 16  ;;  %v2195_v1 = vld [vmem:[#allocation2 + $0x6c] sm:$0xf] }
  0x90   : > { %3160 = vrot.lane.b32.xlu0 %v3009_v18, %s6707_s25  ;;  %v2786_v3 = vmul.bf16 %v7304_v0, %v2193_v63  ;;  %v2668_v11 = vshrl.u32 %v2400_v14, 16  ;;  %v2671_v39 = vshll.u32 %v2400_v14, 16  ;;  %v1012_v7 = vrot.slane %v829_v26, %v6840_v52  ;;  %v2199_v21 = vld [vmem:[#allocation2 + $0x7c] sm:$0xf] }
  0x91   : > { %v3016_v43 = vshll.u32 %v2785_v16, 16  ;;  %v3020_v4 = vshrl.u32 %v2785_v16, 16  ;;  %v2661_v23 = vrot.slane %v2659_v54, 7  ;;  %v1019_v24 = vrot.slane %v829_v26, %v6843_v53 }
  0x92   : > { %v3026_v19 = vshll.u32 %v2786_v3, 16  ;;  %v7310_v58 = vrot.slane %v2668_v11, 7  ;;  %v3030_v20 = vshrl.u32 %v2786_v3, 16  ;;  %v1234_v49 = vshll.u32 %v1012_v7, 16 }
  0x93   : > { %v3018_v59 = vrot.slane %v3016_v43, 5  ;;  %v3022_v22 = vrot.slane %v3020_v4, 4  ;;  %v2664_v10 = vor.u32 %v2662_v12, %v2661_v23  ;;  %v2666_v30 = vrot.slane %v2661_v23, 4  ;;  %v957_v12 = vld [vmem:[#allocation2 + $0x4] sm:$0x8] }
  0x94   : > { %v3028_v48 = vrot.slane %v3026_v19, 5  ;;  %v2673_v31 = vor.u32 %v2671_v39, %v7310_v58  ;;  %v3032_v41 = vrot.slane %v3030_v20, 4  ;;  %v7313_v8 = vrot.slane %v1234_v49, 5 }
  0x95   : > { %v3023_v63 = vor.u32 %v3022_v22, %v3018_v59  ;;  %v3019_v37 = vsel %vm6912_vm10, %v3014_v45, %v3018_v59  ;;  %v7319_v15 = vsel %vm6876_vm9, %v2657_v25, %v2664_v10  ;;  %v1237_v14 = vshrl.u32 %v1012_v7, 16 }
  0x96   : > { %9468 = vst [vmem:[#allocation25_spill] sm:$0xff] %v7313_v8  ;;  %9469 = vst [vmem:[#allocation26_spill] sm:$0xff] %v7319_v15  ;;  %3162 = vrot.lane.b32.xlu1 %v3019_v37, %s6707_s25  ;;  %v7324_v18 = vsel %vm6876_vm9, %v2666_v30, %v2673_v31  ;;  %v2787_v26 = vmul.bf16 %v7319_v15, %v2194_v50  ;;  %v3033_v16 = vor.u32 %v3032_v41, %v3028_v48 }
  0x97   : > { %9470 = vst [vmem:[#allocation27_spill] sm:$0xff] %v7324_v18  ;;  %v1243_v54 = vshll.u32 %v1019_v24, 16  ;;  %v3024_v3 = vrot.slane %v3023_v63, 4  ;;  %v2788_v11 = vmul.bf16 %v7324_v18, %v2195_v1  ;;  %v1239_v45 = vrot.slane %v1237_v14, 4  ;;  %v958_v1 = vld [vmem:[#allocation2 + $0x8] sm:$0xf] }
  0x98   : > { %v3036_v39 = vshll.u32 %v2787_v26, 16  ;;  %v3040_v43 = vshrl.u32 %v2787_v26, 16  ;;  %v3034_v25 = vrot.slane %v3033_v16, 4  ;;  %v1585_v20 = vmul.bf16 %v7313_v8, %v957_v12 }
  0x99   : > { %v1245_v4 = vrot.slane %v1243_v54, 5  ;;  %v3029_v7 = vsel %vm6912_vm10, %v3024_v3, %v3028_v48  ;;  %v3046_v23 = vshll.u32 %v2788_v11, 16  ;;  %v1240_v19 = vor.u32 %v1239_v45, %v7313_v8 }
  0x9a   : > { %3164 = vrot.lane.b32.xlu0 %v3029_v7, %s6707_s25  ;;  %v3038_v49 = vrot.slane %v3036_v39, 5  ;;  %v3042_v59 = vrot.slane %v3040_v43, 4  ;;  %v344_v22 = vadd.s32 216, %v6815_v28  ;;  %v2675_v50 = vrot.slane %v7310_v58, 4 }
  0x9b   : > { %v3048_v10 = vrot.slane %v3046_v23, 5  ;;  %v1241_v30 = vrot.slane %v1240_v19, 4  ;;  %v1622_v31 = vshrl.u32 %v1585_v20, 16  ;;  %v3050_v41 = vshrl.u32 %v2788_v11, 16 }
  0x9c   : > { %v3043_v63 = vor.u32 %v3042_v59, %v3038_v49  ;;  %v3039_v48 = vsel %vm6912_vm10, %v3034_v25, %v3038_v49  ;;  %v542_v37 = vand.u32 15, %v344_v22  ;;  %v319_v14 = vadd.s32 16, %v6815_v28 }
  0x9d   : > { %3166 = vrot.lane.b32.xlu1 %v3039_v48, %s6707_s25  ;;  %v7341_v26 = vsel %vm6912_vm10, %v1241_v30, %v1245_v4  ;;  %v6481_v16 = vrot.slane %v1622_v31, 11  ;;  %v3052_v54 = vrot.slane %v3050_v41, 4  ;;  %v1247_v12 = vshrl.u32 %v1019_v24, 16 }
  0x9e   : > { %9471 = vst [vmem:[#allocation28_spill] sm:$0xff] %v7341_v26  ;;  %v3044_v3 = vrot.slane %v3043_v63, 4  ;;  %v1586_v11 = vmul.bf16 %v7341_v26, %v958_v1  ;;  %vm872_vm7 = vcmp.ne.s32.totalorder %v542_v37, 15  ;;  %v367_v45 = vand.u32 15, %v319_v14 }
  0x9f   : > { %v6478_v39 = vsel %vm872_vm7, 1.0, %v9336_v56  ;;  %v3053_v43 = vor.u32 %v3052_v54, %v3048_v10  ;;  %v1249_v25 = vrot.slane %v1247_v12, 4  ;;  %v346_v7 = vadd.s32 232, %v6815_v28 }
  0xa0   : > { %v3049_v23 = vsel %vm6912_vm10, %v3044_v3, %v3048_v10  ;;  %v1627_v19 = vshrl.u32 %v1586_v11, 16  ;;  %v1630_v20 = vshll.u32 %v1586_v11, 16  ;;  %v954_v49 = vpack.c.bf16 %v6478_v39, %v9334_v60 }
  0xa1   : > { %3168 = vrot.lane.b32.xlu0 %v3049_v23, %s6707_s25  ;;  %v7350_v24 = vrot.slane %v3053_v43, 4  ;;  %vm735_vm8 = vcmp.ne.s32.totalorder %v367_v45, 0  ;;  %v1250_v59 = vor.u32 %v1249_v25, %v1245_v4  ;;  %v556_v22 = vand.u32 15, %v346_v7  ;;  %v2042_v23 = vpop.permute.xlu0 %2041 }
  0xa2   : > { %v7352_v30 = vrot.slane %v1627_v19, 7  ;;  %v2407_v1 = vrot.slane %v954_v49, %v6840_v52  ;;  %v2414_v31 = vrot.slane %v954_v49, %v6843_v53  ;;  %v6450_v41 = vsel %vm735_vm8, 1.0, %v9336_v56 }
  0xa3   : > { %v830_v10 = vpack.c.bf16 %v9334_v60, %v6450_v41  ;;  %v1251_v63 = vrot.slane %v1250_v59, 4  ;;  %vm874_vm11 = vcmp.ne.s32.totalorder %v556_v22, 15  ;;  %v7359_v48 = vadd.s32 32, %v6815_v28  ;;  %v2196_v22 = vld [vmem:[#allocation2 + $0x70] sm:$0xf] }
  0xa4   : > { %v1632_v37 = vor.u32 %v1630_v20, %v7352_v30  ;;  %v2677_v14 = vshrl.u32 %v2407_v1, 16  ;;  %v2680_v4 = vshll.u32 %v2407_v1, 16  ;;  %v2686_v54 = vshrl.u32 %v2414_v31, 16  ;;  %v2197_v1 = vld [vmem:[#allocation2 + $0x74] sm:$0xf] }
  0xa5   : > { %v2689_v12 = vshll.u32 %v2414_v31, 16  ;;  %v1026_v3 = vrot.slane %v830_v10, %v6840_v52  ;;  %v7365_v45 = vrot.slane %v830_v10, %v6843_v53  ;;  %v6479_v7 = vsel %vm874_vm11, 1.0, %v9336_v56  ;;  %v960_v56 = vld [vmem:[#allocation2 + $0x10] sm:$0xf] }
  0xa6   : > { %v1633_v39 = vsel %vm6876_vm9, %v6481_v16, %v1632_v37  ;;  %v2679_v43 = vrot.slane %v2677_v14, 7  ;;  %v7369_v25 = vrot.slane %v2686_v54, 7  ;;  %v955_v59 = vpack.c.bf16 %v6479_v7, %v9334_v60  ;;  %v959_v37 = vld [vmem:[#allocation2 + $0xc] sm:$0xf] }
  0xa7   : > { %1945 = vst.msk [vmem:[#allocation3] sm:$0xf] %vm243_vm0, %v1633_v39  ;;  %v1253_v19 = vshll.u32 %v1026_v3, 16  ;;  %v1257_v20 = vshrl.u32 %v1026_v3, 16  ;;  %v1263_v49 = vshll.u32 %v7365_v45, 16 }
  0xa8   : > { %2138 = vst.msk [vmem:[#allocation3] sm:$0xf] %vm2137_vm6, %v2042_v23  ;;  %v2682_v31 = vor.u32 %v2680_v4, %v2679_v43  ;;  %v2684_v16 = vrot.slane %v2679_v43, 4  ;;  %v2691_v41 = vor.u32 %v2689_v12, %v7369_v25  ;;  %v2693_v10 = vrot.slane %v7369_v25, 4 }
  0xa9   : > { %v1255_v14 = vrot.slane %v1253_v19, 5  ;;  %v1259_v54 = vrot.slane %v1257_v20, 4  ;;  %v7378_v39 = vrot.slane %v1263_v49, 5  ;;  %v2421_v3 = vrot.slane %v955_v59, %v6840_v52 }
  0xaa   : > { %v7385_v7 = vsel %vm6876_vm9, %v2675_v50, %v2682_v31  ;;  %v7389_v4 = vsel %vm6876_vm9, %v2684_v16, %v2691_v41  ;;  %v2428_v12 = vrot.slane %v955_v59, %v6843_v53  ;;  %v381_v43 = vand.u32 15, %v7359_v48 }
  0xab   : > { %9472 = vst [vmem:[#allocation29_spill] sm:$0xff] %v7385_v7  ;;  %9473 = vst [vmem:[#allocation30_spill] sm:$0xff] %v7389_v4  ;;  %v2789_v25 = vmul.bf16 %v7385_v7, %v2196_v22  ;;  %v2790_v23 = vmul.bf16 %v7389_v4, %v2197_v1  ;;  %v7397_v19 = vsel %vm6912_vm10, %v1251_v63, %v1255_v14  ;;  %v2695_v20 = vshrl.u32 %v2421_v3, 16 }
  0xac   : > { %9474 = vst [vmem:[#allocation31_spill] sm:$0xff] %v7397_v19  ;;  %v1260_v58 = vor.u32 %v1259_v54, %v1255_v14  ;;  %v1587_v50 = vmul.bf16 %v7397_v19, %v959_v37  ;;  %v2698_v49 = vshll.u32 %v2421_v3, 16  ;;  %v2704_v31 = vshrl.u32 %v2428_v12, 16  ;;  %v2046_v14 = vpop.permute.xlu1 %2045 }
  0xad   : > { %v3056_v16 = vshll.u32 %v2789_v25, 16  ;;  %v3060_v41 = vshrl.u32 %v2789_v25, 16  ;;  %v3066_v60 = vshll.u32 %v2790_v23, 16  ;;  %v2697_v22 = vrot.slane %v2695_v20, 7  ;;  %v2044_v20 = vpop.permute.xlu0 %2043 }
  0xae   : > { %v1261_v59 = vrot.slane %v1260_v58, 4  ;;  %v1636_v48 = vshrl.u32 %v1587_v50, 16  ;;  %v1639_v11 = vshll.u32 %v1587_v50, 16  ;;  %v7400_v7 = vrot.slane %v2704_v31, 7  ;;  %v2198_v31 = vld [vmem:[#allocation2 + $0x78] sm:$0xf] }
  0xaf   : > { %v3058_v1 = vrot.slane %v3056_v16, 5  ;;  %v3062_v4 = vrot.slane %v3060_v41, 4  ;;  %v3068_v63 = vrot.slane %v3066_v60, 5  ;;  %v2700_v25 = vor.u32 %v2698_v49, %v2697_v22 }
  0xb0   : > { %v7405_v37 = vsel %vm6912_vm10, %v1261_v59, %v7378_v39  ;;  %v1638_v54 = vrot.slane %v1636_v48, 7  ;;  %v2702_v58 = vrot.slane %v2697_v22, 4  ;;  %v2707_v16 = vshll.u32 %v2428_v12, 16 }
  0xb1   : > { %9475 = vst [vmem:[#allocation32_spill] sm:$0xff] %v7405_v37  ;;  %v1588_v3 = vmul.bf16 %v7405_v37, %v960_v56  ;;  %v3063_v18 = vor.u32 %v3062_v4, %v3058_v1  ;;  %v3059_v50 = vsel %vm6912_vm10, %v7350_v24, %v3058_v1  ;;  %v3070_v60 = vshrl.u32 %v2790_v23, 16 }
  0xb2   : > { %3170 = vrot.lane.b32.xlu1 %v3059_v50, %s6707_s25  ;;  %v1641_v41 = vor.u32 %v1639_v11, %v1638_v54  ;;  %v1643_v59 = vrot.slane %v1638_v54, 4  ;;  %v7414_v56 = vsel %vm6876_vm9, %v2693_v10, %v2700_v25  ;;  %v2709_v4 = vor.u32 %v2707_v16, %v7400_v7  ;;  %v7432_v54 = vpop.permute.xlu1 %2047 }
  0xb3   : > { %v1645_v15 = vshrl.u32 %v1588_v3, 16  ;;  %v1648_v0 = vshll.u32 %v1588_v3, 16  ;;  %v3064_v48 = vrot.slane %v3063_v18, 4  ;;  %9476 = vst [vmem:[#allocation33_spill] sm:$0xff] %v7414_v56  ;;  %v3072_v49 = vrot.slane %v3070_v60, 4 }
  0xb4   : > { %v9477_v24 = vrot.slane %v7352_v30, 4  ;;  %v2791_v11 = vmul.bf16 %v7414_v56, %v2198_v31  ;;  %vm737_vm12 = vcmp.ne.s32.totalorder %v381_v43, 0  ;;  %v7429_v10 = vsel %vm6876_vm9, %v2702_v58, %v2709_v4 }
  0xb5   : > { %v7421_v23 = vrot.slane %v1645_v15, 7  ;;  %v3069_v18 = vsel %vm6912_vm10, %v3064_v48, %v3068_v63  ;;  %9478 = vst [vmem:[#allocation34_spill] sm:$0xff] %v7429_v10  ;;  %v3073_v22 = vor.u32 %v3072_v49, %v3068_v63  ;;  %v9479_v1 = vmov 0.0   ;;  %v7440_v63 = vpop.permute.xlu0 %2049 }
  0xb6   : > { %v1642_v12 = vsel %vm6876_vm9, %v9477_v24, %v1641_v41  ;;  %v6451_v30 = vsel %vm737_vm12, 1.0, %v9479_v1  ;;  %3172 = vrot.lane.b32.xlu0 %v3069_v18, %s6707_s25  ;;  %v2792_v43 = vmul.bf16 %v7429_v10, %v2199_v21  ;;  %v3076_v3 = vshll.u32 %v2791_v11, 16 }
  0xb7   : > { %1946 = vst.msk [vmem:[#allocation3 + $0x4] sm:$0xf] %vm243_vm0, %v1642_v12  ;;  %v1650_v15 = vor.u32 %v1648_v0, %v7421_v23  ;;  %v3080_v25 = vshrl.u32 %v2791_v11, 16  ;;  %v3074_v50 = vrot.slane %v3073_v22, 4  ;;  %v9480_v31 = vmov 1.0  }
  0xb8   : > { %2139 = vst.msk [vmem:[#allocation3 + $0x4] sm:$0xf] %vm2137_vm6, %v2044_v20  ;;  %v831_v16 = vpack.c.bf16 %v9480_v31, %v6451_v30  ;;  %v1267_v58 = vshrl.u32 %v7365_v45, 16  ;;  %v3078_v48 = vrot.slane %v3076_v3, 5  ;;  %v3086_v4 = vshll.u32 %v2792_v43, 16  ;;  %v7455_v3 = vpop.permute.xlu1 %2051 }
  0xb9   : > { %v1651_v41 = vsel %vm6876_vm9, %v1643_v59, %v1650_v15  ;;  %v3082_v20 = vrot.slane %v3080_v25, 4  ;;  %v348_v24 = vadd.s32 248, %v6815_v28  ;;  %v7458_v59 = vpop.permute.xlu0 %2053 }
  0xba   : > { %1947 = vst.msk [vmem:[#allocation3 + $0x8] sm:$0xf] %vm243_vm0, %v1651_v41  ;;  %v1040_v21 = vrot.slane %v831_v16, %v6840_v52  ;;  %v1047_v0 = vrot.slane %v831_v16, %v6843_v53  ;;  %v1269_v49 = vrot.slane %v1267_v58, 4  ;;  %v3088_v12 = vrot.slane %v3086_v4, 5 }
  0xbb   : > { %2140 = vst.msk [vmem:[#allocation3 + $0x8] sm:$0xf] %vm2137_vm6, %v2046_v14  ;;  %v3083_v45 = vor.u32 %v3082_v20, %v3078_v48  ;;  %v3079_v11 = vsel %vm6912_vm10, %v3074_v50, %v3078_v48  ;;  %v570_v16 = vand.u32 15, %v348_v24  ;;  %v3090_v58 = vshrl.u32 %v2792_v43, 16  ;;  %v961_v48 = vld [vmem:[#allocation2 + $0x14] sm:$0xf] }
  0xbc   : > { %3174 = vrot.lane.b32.xlu1 %v3079_v11, %s6707_s25  ;;  %v1270_v18 = vor.u32 %v1269_v49, %v7378_v39  ;;  %v1273_v22 = vshll.u32 %v1040_v21, 16  ;;  %v1277_v30 = vshrl.u32 %v1040_v21, 16  ;;  %v1283_v15 = vshll.u32 %v1047_v0, 16  ;;  %v7462_v11 = vld [vmem:[#allocation2 + $0xc] sm:$0x8] }
  0xbd   : > { %v3084_v25 = vrot.slane %v3083_v45, 4  ;;  %v323_v14 = vadd.s32 48, %v6815_v28  ;;  %vm876_vm13 = vcmp.ne.s32.totalorder %v570_v16, 15  ;;  %v3092_v21 = vrot.slane %v3090_v58, 4  ;;  %v962_v16 = vld [vmem:[#allocation2 + $0x18] sm:$0xf] }
  0xbe   : > { %v1271_v41 = vrot.slane %v1270_v18, 4  ;;  %v1275_v20 = vrot.slane %v1273_v22, 5  ;;  %v1279_v4 = vrot.slane %v1277_v30, 4  ;;  %v1285_v50 = vrot.slane %v1283_v15, 5 }
  0xbf   : > { %v3089_v39 = vsel %vm6912_vm10, %v3084_v25, %v3088_v12  ;;  %v395_v49 = vand.u32 15, %v323_v14  ;;  %v6480_v45 = vsel %vm876_vm13, 1.0, %v9479_v1  ;;  %v1287_v18 = vshrl.u32 %v1047_v0, 16 }
  0xc0   : > { %3176 = vrot.lane.b32.xlu0 %v3089_v39, %s6707_s25  ;;  %v7467_v43 = vsel %vm6912_vm10, %v1271_v41, %v1275_v20  ;;  %v1280_v24 = vor.u32 %v1279_v4, %v1275_v20  ;;  %v956_v30 = vpack.c.bf16 %v6480_v45, %v9480_v31  ;;  %v3093_v15 = vor.u32 %v3092_v21, %v3088_v12  ;;  %v7475_v41 = vpop.permute.xlu1 %2055  ;;  %v7486_v45 = vpop.permute.xlu0 %2057 }
  0xc1   : > { %9481 = vst [vmem:[#allocation35_spill] sm:$0xff] %v7467_v43  ;;  %v1589_v22 = vmul.bf16 %v7467_v43, %v961_v48  ;;  %vm739_vm14 = vcmp.ne.s32.totalorder %v395_v49, 0  ;;  %v1289_v14 = vrot.slane %v1287_v18, 4  ;;  %v3282_v39 = vmul.bf16 %v7462_v11, %v7313_v8 }
  0xc2   : > { %v1281_v25 = vrot.slane %v1280_v24, 4  ;;  %v6452_v58 = vsel %vm739_vm14, 1.0, %v9479_v1  ;;  %v2435_v0 = vrot.slane %v956_v30, %v6840_v52  ;;  %v2442_v48 = vrot.slane %v956_v30, %v6843_v53 }
  0xc3   : > { %v1654_v20 = vshrl.u32 %v1589_v22, 16  ;;  %v1657_v4 = vshll.u32 %v1589_v22, 16  ;;  %v7483_v21 = vrot.slane %v3093_v15, 4  ;;  %v832_v49 = vpack.c.bf16 %v9480_v31, %v6452_v58 }
  0xc4   : > { %v7481_v12 = vsel %vm6912_vm10, %v1281_v25, %v1285_v50  ;;  %v1290_v24 = vor.u32 %v1289_v14, %v1285_v50  ;;  %v2713_v60 = vshrl.u32 %v2435_v0, 16  ;;  %v2716_v22 = vshll.u32 %v2435_v0, 16  ;;  %v7493_v34 = vpop.permute.xlu1 %2059  ;;  %v7503_v32 = vpop.permute.xlu0 %2061 }
  0xc5   : > { %9482 = vst [vmem:[#allocation36_spill] sm:$0xff] %v7481_v12  ;;  %v1590_v11 = vmul.bf16 %v7481_v12, %v962_v16  ;;  %v1656_v18 = vrot.slane %v1654_v20, 7  ;;  %v2722_v10 = vshrl.u32 %v2442_v48, 16  ;;  %v2725_v56 = vshll.u32 %v2442_v48, 16 }
  0xc6   : > { %v1054_v30 = vrot.slane %v832_v49, %v6840_v52  ;;  %v7491_v13 = vrot.slane %v832_v49, %v6843_v53  ;;  %v2715_v58 = vrot.slane %v2713_v60, 7  ;;  %v1291_v14 = vrot.slane %v1290_v24, 4  ;;  %v2201_v60 = vld [vmem:[#allocation2 + $0x84] sm:$0xf] }
  0xc7   : > { %v1661_v25 = vrot.slane %v1656_v18, 4  ;;  %v1663_v15 = vshrl.u32 %v1590_v11, 16  ;;  %v1666_v38 = vshll.u32 %v1590_v11, 16  ;;  %v1659_v2 = vor.u32 %v1657_v4, %v1656_v18  ;;  %v2200_v4 = vld [vmem:[#allocation2 + $0x80] sm:$0xf] }
  0xc8   : > { %v2724_v50 = vrot.slane %v2722_v10, 7  ;;  %v1293_v9 = vshll.u32 %v1054_v30, 16  ;;  %v9483_v20 = vrot.slane %v7421_v23, 4  ;;  %v1297_v48 = vshrl.u32 %v1054_v30, 16 }
  0xc9   : > { %v7495_v16 = vrot.slane %v1663_v15, 7  ;;  %v1303_v49 = vshll.u32 %v7491_v13, 16  ;;  %v2718_v10 = vor.u32 %v2716_v22, %v2715_v58  ;;  %v2720_v24 = vrot.slane %v2715_v58, 4 }
  0xca   : > { %v1660_v0 = vsel %vm6876_vm9, %v9483_v20, %v1659_v2  ;;  %v2727_v11 = vor.u32 %v2725_v56, %v2724_v50  ;;  %v1295_v18 = vrot.slane %v1293_v9, 5  ;;  %v963_v2 = vld [vmem:[#allocation2 + $0x1c] sm:$0xf]  ;;  %v1299_v23 = vrot.slane %v1297_v48, 4 }
  0xcb   : > { %1948 = vst.msk [vmem:[#allocation3 + $0xc] sm:$0xf] %vm243_vm0, %v1660_v0  ;;  %v1668_v15 = vor.u32 %v1666_v38, %v7495_v16  ;;  %v7508_v30 = vrot.slane %v1303_v49, 5  ;;  %v1670_v20 = vrot.slane %v7495_v16, 4  ;;  %v9484_v0 = vrot.slane %v7400_v7, 4 }
  0xcc   : > { %2141 = vst.msk [vmem:[#allocation3 + $0xc] sm:$0xf] %vm2137_vm6, %v7432_v54  ;;  %v7519_v9 = vsel %vm6876_vm9, %v2720_v24, %v2727_v11  ;;  %v7523_v38 = vsel %vm6912_vm10, %v1291_v14, %v1295_v18  ;;  %v3283_v56 = vmul.bf16 %v3250_v36, %v7341_v26  ;;  %v1300_v16 = vor.u32 %v1299_v23, %v1295_v18  ;;  %v7532_v11 = vpop.permute.xlu1 %2063 }
  0xcd   : > { %v7515_v22 = vsel %vm6876_vm9, %v9484_v0, %v2718_v10  ;;  %9486 = vst [vmem:[#allocation38_spill] sm:$0xff] %v7519_v9  ;;  %9487 = vst [vmem:[#allocation39_spill] sm:$0xff] %v7523_v38  ;;  %v1669_v54 = vsel %vm6876_vm9, %v1661_v25, %v1668_v15  ;;  %v2794_v7 = vmul.bf16 %v7519_v9, %v2201_v60  ;;  %v3316_v49 = vshrl.u32 %v3282_v39, 16  ;;  %v964_v15 = vld [vmem:[#allocation2 + $0x20] sm:$0xf] }
  0xce   : > { %9485 = vst [vmem:[#allocation37_spill] sm:$0xff] %v7515_v22  ;;  %v2793_v58 = vmul.bf16 %v7515_v22, %v2200_v4  ;;  %1949 = vst.msk [vmem:[#allocation3 + $0x10] sm:$0xf] %vm243_vm0, %v1669_v54  ;;  %v1591_v48 = vmul.bf16 %v7523_v38, %v963_v2  ;;  %v3321_v10 = vshrl.u32 %v3283_v56, 16  ;;  %v3324_v24 = vshll.u32 %v3283_v56, 16  ;;  %v7538_v54 = vpop.permute.xlu0 %2065 }
  0xcf   : > { %2142 = vst.msk [vmem:[#allocation3 + $0x10] sm:$0xf] %vm2137_vm6, %v7440_v63  ;;  %v3106_v25 = vshll.u32 %v2794_v7, 16  ;;  %v1301_v4 = vrot.slane %v1300_v16, 4  ;;  %v6482_v18 = vrot.slane %v3316_v49, 11 }
  0xd0   : > { %v3096_v36 = vshll.u32 %v2793_v58, 16  ;;  %v3100_v14 = vshrl.u32 %v2793_v58, 16  ;;  %v1672_v0 = vshrl.u32 %v1591_v48, 16  ;;  %v1675_v60 = vshll.u32 %v1591_v48, 16  ;;  %v2202_v22 = vld [vmem:[#allocation2 + $0x88] sm:$0x1]  ;;  %v7554_v61 = vpop.permute.xlu1 %2067 }
  0xd1   : > { %v7536_v23 = vrot.slane %v3321_v10, 7  ;;  %v3108_v56 = vrot.slane %v3106_v25, 5  ;;  %v7543_v9 = vsel %vm6912_vm10, %v1301_v4, %v7508_v30  ;;  %v7547_v48 = vrot.slane %v2724_v50, 4 }
  0xd2   : > { %v3098_v39 = vrot.slane %v3096_v36, 5  ;;  %v3102_v2 = vrot.slane %v3100_v14, 4  ;;  %9488 = vst [vmem:[#allocation40_spill] sm:$0xff] %v7543_v9  ;;  %v1592_v63 = vmul.bf16 %v7543_v9, %v964_v15  ;;  %v1674_v58 = vrot.slane %v1672_v0, 7  ;;  %v3251_v0 = vld [vmem:[#allocation2 + $0x14] sm:$0xf] }
  0xd3   : > { %v3326_v16 = vor.u32 %v3324_v24, %v7536_v23  ;;  %9489 = vst [vmem:[#allocation41_spill] sm:$0xff] %v7547_v48  ;;  %v3110_v36 = vshrl.u32 %v2794_v7, 16  ;;  %v325_v14 = vadd.s32 64, %v6815_v28 }
  0xd4   : > { %v3103_v49 = vor.u32 %v3102_v2, %v3098_v39  ;;  %v3099_v10 = vsel %vm6912_vm10, %v7483_v21, %v3098_v39  ;;  %v1679_v25 = vrot.slane %v1674_v58, 4  ;;  %v1681_v4 = vshrl.u32 %v1592_v63, 16 }
  0xd5   : > { %3178 = vrot.lane.b32.xlu1 %v3099_v10, %s6707_s25  ;;  %v1684_v44 = vshll.u32 %v1592_v63, 16  ;;  %v1677_v15 = vor.u32 %v1675_v60, %v1674_v58  ;;  %v3327_v50 = vsel %vm6876_vm9, %v6482_v18, %v3326_v16  ;;  %v2795_v2 = vmul.bf16 %v7547_v48, %v2202_v22  ;;  %v3252_v63 = vld [vmem:[#allocation2 + $0x18] sm:$0xf]  ;;  %v7564_v60 = vpop.permute.xlu0 %2069 }
  0xd6   : > { %v3104_v24 = vrot.slane %v3103_v49, 4  ;;  %v3112_v62 = vrot.slane %v3110_v36, 4  ;;  %v7559_v21 = vrot.slane %v1681_v4, 7  ;;  %v409_v39 = vand.u32 15, %v325_v14 }
  0xd7   : > { %v1678_v7 = vsel %vm6876_vm9, %v1670_v20, %v1677_v15  ;;  %v1307_v10 = vshrl.u32 %v7491_v13, 16  ;;  %v3116_v16 = vshll.u32 %v2795_v2, 16  ;;  %v3284_v22 = vmul.bf16 %v3251_v0, %v7397_v19 }
  0xd8   : > { %v3109_v58 = vsel %vm6912_vm10, %v3104_v24, %v3108_v56  ;;  %1950 = vst.msk [vmem:[#allocation3 + $0x14] sm:$0xf] %vm243_vm0, %v1678_v7  ;;  %v3113_v18 = vor.u32 %v3112_v62, %v3108_v56  ;;  %v1686_v49 = vor.u32 %v1684_v44, %v7559_v21  ;;  %vm741_vm15 = vcmp.ne.s32.totalorder %v409_v39, 0  ;;  %v3253_v24 = vld [vmem:[#allocation2 + $0x1c] sm:$0xf] }
  0xd9   : > { %3180 = vrot.lane.b32.xlu0 %v3109_v58, %s6707_s25  ;;  %2143 = vst.msk [vmem:[#allocation3 + $0x14] sm:$0xf] %vm2137_vm6, %v7455_v3  ;;  %v1309_v13 = vrot.slane %v1307_v10, 4  ;;  %v3118_v14 = vrot.slane %v3116_v16, 5  ;;  %v6453_v4 = vsel %vm741_vm15, 1.0, %v9479_v1  ;;  %v3285_v62 = vmul.bf16 %v3252_v63, %v7405_v37  ;;  %v7581_v3 = vpop.permute.xlu1 %2071 }
  0xda   : > { %v3114_v36 = vrot.slane %v3113_v18, 4  ;;  %v1687_v56 = vsel %vm6876_vm9, %v1679_v25, %v1686_v49  ;;  %v833_v15 = vpack.c.bf16 %v9480_v31, %v6453_v4  ;;  %v3330_v0 = vshrl.u32 %v3284_v22, 16  ;;  %v7593_v18 = vpop.permute.xlu0 %2073 }
  0xdb   : > { %v1310_v44 = vor.u32 %v1309_v13, %v7508_v30  ;;  %1951 = vst.msk [vmem:[#allocation3 + $0x18] sm:$0xf] %vm243_vm0, %v1687_v56  ;;  %v3339_v7 = vshrl.u32 %v3285_v62, 16  ;;  %v3342_v39 = vshll.u32 %v3285_v62, 16  ;;  %v3328_v10 = vrot.slane %v7536_v23, 4 }
  0xdc   : > { %v3119_v2 = vsel %vm6912_vm10, %v3114_v36, %v3118_v14  ;;  %2144 = vst.msk [vmem:[#allocation3 + $0x18] sm:$0xf] %vm2137_vm6, %v7458_v59  ;;  %v1068_v30 = vrot.slane %v833_v15, %v6840_v52  ;;  %v1075_v25 = vrot.slane %v833_v15, %v6843_v53  ;;  %v3332_v58 = vrot.slane %v3330_v0, 7  ;;  %v3254_v13 = vld [vmem:[#allocation2 + $0x20] sm:$0xf] }
  0xdd   : > { %3607 = vrot.lane.b32.xlu0 %v3327_v50, %s6708_s26  ;;  %3182 = vrot.lane.b32.xlu1 %v3119_v2, %s6707_s25  ;;  %v1311_v63 = vrot.slane %v1310_v44, 4  ;;  %v7595_v16 = vrot.slane %v3339_v7, 7  ;;  %v3333_v49 = vshll.u32 %v3284_v22, 16  ;;  %v327_v23 = vadd.s32 80, %v6815_v28  ;;  %v965_v0 = vld [vmem:[#allocation2 + $0x24] sm:$0xf]  ;;  %v7603_v48 = vpop.permute.xlu1 %2075  ;;  %s241_s25 = scalar_lea.vmem %s9333_s5, %s9584_s19 }
  0xde   : > { %v7599_v59 = vmul.bf16 %v3253_v24, %v7467_v43  ;;  %v1313_v50 = vshll.u32 %v1068_v30, 16  ;;  %v1317_v36 = vshrl.u32 %v1068_v30, 16  ;;  %v1323_v14 = vshll.u32 %v1075_v25, 16 }
  0xdf   : > { %v3337_v4 = vrot.slane %v3332_v58, 4  ;;  %v3344_v62 = vor.u32 %v3342_v39, %v7595_v16  ;;  %v3335_v56 = vor.u32 %v3333_v49, %v3332_v58  ;;  %v423_v15 = vand.u32 15, %v327_v23  ;;  %v7617_v23 = vpop.permute.xlu0 %2077 }
  0xe0   : > { %v1327_v44 = vshrl.u32 %v1075_v25, 16  ;;  %v1315_v2 = vrot.slane %v1313_v50, 5  ;;  %v1319_v7 = vrot.slane %v1317_v36, 4  ;;  %v1325_v20 = vrot.slane %v1323_v14, 5  ;;  %v966_v14 = vld [vmem:[#allocation2 + $0x28] sm:$0xf] }
  0xe1   : > { %v3287_v22 = vmul.bf16 %v3254_v13, %v7481_v12  ;;  %v3345_v24 = vsel %vm6876_vm9, %v3337_v4, %v3344_v62  ;;  %v3336_v30 = vsel %vm6876_vm9, %v3328_v10, %v3335_v56  ;;  %vm743_vm1 = vcmp.ne.s32.totalorder %v423_v15, 0  ;;  %v3255_v12 = vld [vmem:[#allocation2 + $0x24] sm:$0xf] }
  0xe2   : > { %v1329_v51 = vrot.slane %v1327_v44, 4  ;;  %v7611_v39 = vsel %vm6912_vm10, %v1311_v63, %v1315_v2  ;;  %v1320_v25 = vor.u32 %v1319_v7, %v1315_v2  ;;  %3611 = vrot.lane.b32.xlu0 %v3345_v24, %s6708_s26  ;;  %3609 = vrot.lane.b32.xlu1 %v3336_v30, %s6708_s26  ;;  %v6454_v58 = vsel %vm743_vm1, 1.0, %v9479_v1 }
  0xe3   : > { %9490 = vst [vmem:[#allocation42_spill] sm:$0xff] %v7611_v39  ;;  %v3348_v49 = vshrl.u32 %v7599_v59, 16  ;;  %v1593_v13 = vmul.bf16 %v7611_v39, %v965_v0  ;;  %v834_v10 = vpack.c.bf16 %v9480_v31, %v6454_v58  ;;  %v3357_v36 = vshrl.u32 %v3287_v22, 16  ;;  %v7630_v58 = vpop.permute.xlu1 %2079 }
  0xe4   : > { %v1330_v50 = vor.u32 %v1329_v51, %v1325_v20  ;;  %v1321_v63 = vrot.slane %v1320_v25, 4  ;;  %v3360_v62 = vshll.u32 %v3287_v22, 16  ;;  %v3346_v56 = vrot.slane %v7595_v16, 4 }
  0xe5   : > { %v3350_v4 = vrot.slane %v3348_v49, 7  ;;  %v1690_v15 = vshrl.u32 %v1593_v13, 16  ;;  %v1693_v44 = vshll.u32 %v1593_v13, 16  ;;  %v1082_v2 = vrot.slane %v834_v10, %v6840_v52 }
  0xe6   : > { %v1089_v7 = vrot.slane %v834_v10, %v6843_v53  ;;  %v7626_v24 = vsel %vm6912_vm10, %v1321_v63, %v1325_v20  ;;  %v1331_v0 = vrot.slane %v1330_v50, 4  ;;  %v7628_v51 = vrot.slane %v3357_v36, 7  ;;  %v7636_v20 = vpop.permute.xlu0 %2081 }
  0xe7   : > { %9491 = vst [vmem:[#allocation43_spill] sm:$0xff] %v7626_v24  ;;  %v3355_v30 = vrot.slane %v3350_v4, 4  ;;  %v1594_v22 = vmul.bf16 %v7626_v24, %v966_v14  ;;  %v1692_v25 = vrot.slane %v1690_v15, 7  ;;  %v1333_v16 = vshll.u32 %v1082_v2, 16 }
  0xe8   : > { %v1337_v49 = vshrl.u32 %v1082_v2, 16  ;;  %v1343_v13 = vshll.u32 %v1089_v7, 16  ;;  %v3362_v40 = vor.u32 %v3360_v62, %v7628_v51  ;;  %v3351_v10 = vshll.u32 %v7599_v59, 16 }
  0xe9   : > { %v1697_v50 = vrot.slane %v1692_v25, 4  ;;  %v1699_v63 = vshrl.u32 %v1594_v22, 16  ;;  %v1702_v36 = vshll.u32 %v1594_v22, 16  ;;  %v1695_v5 = vor.u32 %v1693_v44, %v1692_v25  ;;  %v3256_v22 = vld [vmem:[#allocation2 + $0x28] sm:$0xf] }
  0xea   : > { %v1335_v35 = vrot.slane %v1333_v16, 5  ;;  %v1339_v14 = vrot.slane %v1337_v49, 4  ;;  %v1345_v15 = vrot.slane %v1343_v13, 5  ;;  %v3363_v2 = vsel %vm6876_vm9, %v3355_v30, %v3362_v40  ;;  %v7651_v30 = vpop.permute.xlu1 %2083  ;;  %v968_v49 = vld [vmem:[#allocation2 + $0x30] sm:$0xf] }
  0xeb   : > { %v1701_v57 = vrot.slane %v1699_v63, 7  ;;  %v9492_v62 = vrot.slane %v7559_v21, 4  ;;  %3615 = vrot.lane.b32.xlu0 %v3363_v2, %s6708_s26  ;;  %v3353_v43 = vor.u32 %v3351_v10, %v3350_v4  ;;  %v437_v37 = vand.u32 15, %v329_v6 }
  0xec   : > { %v7648_v44 = vsel %vm6912_vm10, %v1331_v0, %v1335_v35  ;;  %v1340_v25 = vor.u32 %v1339_v14, %v1335_v35  ;;  %v1347_v16 = vshrl.u32 %v1089_v7, 16  ;;  %v3288_v40 = vmul.bf16 %v3255_v12, %v7523_v38  ;;  %v7660_v7 = vpop.permute.xlu0 %2085 }
  0xed   : > { %v1696_v59 = vsel %vm6876_vm9, %v9492_v62, %v1695_v5  ;;  %9493 = vst [vmem:[#allocation44_spill] sm:$0xff] %v7648_v44  ;;  %v1704_v21 = vor.u32 %v1702_v36, %v1701_v57  ;;  %v1595_v5 = vmul.bf16 %v7648_v44, %v967_v42  ;;  %v1706_v6 = vrot.slane %v1701_v57, 4 }
  0xee   : > { %1952 = vst.msk [vmem:[#allocation3 + $0x1c] sm:$0xf] %vm243_vm0, %v1696_v59  ;;  %v3354_v4 = vsel %vm6876_vm9, %v3346_v56, %v3353_v43  ;;  %v1341_v13 = vrot.slane %v1340_v25, 4  ;;  %vm745_vm2 = vcmp.ne.s32.totalorder %v437_v37, 0  ;;  %v1349_v35 = vrot.slane %v1347_v16, 4  ;;  %v7676_v25 = vpop.permute.xlu1 %2087 }
  0xef   : > { %2145 = vst.msk [vmem:[#allocation3 + $0x1c] sm:$0xf] %vm2137_vm6, %v7475_v41  ;;  %3613 = vrot.lane.b32.xlu1 %v3354_v4, %s6708_s26  ;;  %v3289_v12 = vmul.bf16 %v3256_v22, %v7543_v9  ;;  %v1705_v0 = vsel %vm6876_vm9, %v1697_v50, %v1704_v21  ;;  %v1708_v41 = vshrl.u32 %v1595_v5, 16  ;;  %v1711_v10 = vshll.u32 %v1595_v5, 16 }
  0xf0   : > { %v6455_v57 = vsel %vm745_vm2, 1.0, %v9479_v1  ;;  %1953 = vst.msk [vmem:[#allocation3 + $0x20] sm:$0xf] %vm243_vm0, %v1705_v0  ;;  %v7668_v42 = vsel %vm6912_vm10, %v1341_v13, %v1345_v15  ;;  %v1350_v43 = vor.u32 %v1349_v35, %v1345_v15  ;;  %v3366_v56 = vshrl.u32 %v3288_v40, 16 }
  0xf1   : > { %9494 = vst [vmem:[#allocation45_spill] sm:$0xff] %v7668_v42  ;;  %v835_v37 = vpack.c.bf16 %v9480_v31, %v6455_v57  ;;  %2146 = vst.msk [vmem:[#allocation3 + $0x20] sm:$0xf] %vm2137_vm6, %v7486_v45  ;;  %v1596_v63 = vmul.bf16 %v7668_v42, %v968_v49  ;;  %v1710_v50 = vrot.slane %v1708_v41, 7  ;;  %v3375_v36 = vshrl.u32 %v3289_v12, 16  ;;  %v7678_v49 = vpop.permute.xlu0 %2089 }
  0xf2   : > { %v3378_v14 = vshll.u32 %v3289_v12, 16  ;;  %v1351_v59 = vrot.slane %v1350_v43, 4  ;;  %v3368_v22 = vrot.slane %v3366_v56, 7  ;;  %v3364_v57 = vrot.slane %v7628_v51, 4 }
  0xf3   : > { %v1096_v2 = vrot.slane %v835_v37, %v6840_v52  ;;  %v1103_v62 = vrot.slane %v835_v37, %v6843_v53  ;;  %v1715_v16 = vrot.slane %v1710_v50, 4  ;;  %v1717_v21 = vshrl.u32 %v1596_v63, 16  ;;  %v969_v37 = vld [vmem:[#allocation2 + $0x34] sm:$0xf] }
  0xf4   : > { %v1720_v15 = vshll.u32 %v1596_v63, 16  ;;  %v1713_v5 = vor.u32 %v1711_v10, %v1710_v50  ;;  %v3373_v35 = vrot.slane %v3368_v22, 4  ;;  %v7684_v41 = vrot.slane %v3375_v36, 7 }
  0xf5   : > { %v1353_v4 = vshll.u32 %v1096_v2, 16  ;;  %v1357_v13 = vshrl.u32 %v1096_v2, 16  ;;  %v1363_v45 = vshll.u32 %v1103_v62, 16  ;;  %v7680_v0 = vrot.slane %v1717_v21, 7  ;;  %v3257_v21 = vld [vmem:[#allocation2 + $0x2c] sm:$0xf] }
  0xf6   : > { %v1714_v12 = vsel %vm6876_vm9, %v1706_v6, %v1713_v5  ;;  %v3369_v63 = vshll.u32 %v3288_v40, 16  ;;  %v3380_v6 = vor.u32 %v3378_v14, %v7684_v41  ;;  %v331_v36 = vadd.s32 112, %v6815_v28  ;;  %v3258_v40 = vld [vmem:[#allocation2 + $0x30] sm:$0xf] }
  0xf7   : > { %1954 = vst.msk [vmem:[#allocation3 + $0x24] sm:$0xf] %vm243_vm0, %v1714_v12  ;;  %v1355_v43 = vrot.slane %v1353_v4, 5  ;;  %v1359_v10 = vrot.slane %v1357_v13, 4  ;;  %v1365_v56 = vrot.slane %v1363_v45, 5  ;;  %v1722_v50 = vor.u32 %v1720_v15, %v7680_v0  ;;  %v7698_v45 = vpop.permute.xlu1 %2091 }
  0xf8   : > { %2147 = vst.msk [vmem:[#allocation3 + $0x24] sm:$0xf] %vm2137_vm6, %v7493_v34  ;;  %v1724_v2 = vrot.slane %v7680_v0, 4  ;;  %v3371_v4 = vor.u32 %v3369_v63, %v3368_v22  ;;  %v1367_v13 = vshrl.u32 %v1103_v62, 16  ;;  %v3381_v14 = vsel %vm6876_vm9, %v3373_v35, %v3380_v6  ;;  %v970_v12 = vld [vmem:[#allocation2 + $0x38] sm:$0xf] }
  0xf9   : > { %v7696_v51 = vsel %vm6912_vm10, %v1351_v59, %v1355_v43  ;;  %v1360_v5 = vor.u32 %v1359_v10, %v1355_v43  ;;  %v1723_v34 = vsel %vm6876_vm9, %v1715_v16, %v1722_v50  ;;  %v451_v0 = vand.u32 15, %v331_v36  ;;  %3619 = vrot.lane.b32.xlu0 %v3381_v14, %s6708_s26  ;;  %v7710_v10 = vpop.permute.xlu0 %2093 }
  0xfa   : > { %9495 = vst [vmem:[#allocation46_spill] sm:$0xff] %v7696_v51  ;;  %v1597_v15 = vmul.bf16 %v7696_v51, %v969_v37  ;;  %1955 = vst.msk [vmem:[#allocation3 + $0x28] sm:$0xf] %vm243_vm0, %v1723_v34  ;;  %v3372_v62 = vsel %vm6876_vm9, %v3364_v57, %v3371_v4  ;;  %v1369_v22 = vrot.slane %v1367_v13, 4  ;;  %v3290_v43 = vmul.bf16 %v3257_v21, %v7611_v39 }
  0xfb   : > { %v1361_v59 = vrot.slane %v1360_v5, 4  ;;  %2148 = vst.msk [vmem:[#allocation3 + $0x28] sm:$0xf] %vm2137_vm6, %v7503_v32  ;;  %3617 = vrot.lane.b32.xlu1 %v3372_v62, %s6708_s26  ;;  %vm747_vm3 = vcmp.ne.s32.totalorder %v451_v0, 0  ;;  %v3291_v37 = vmul.bf16 %v3258_v40, %v7626_v24  ;;  %v7724_v40 = vpop.permute.xlu1 %2095  ;;  %vm3216_vm15 = vcmask 93248  }
  0xfc   : > { %v1726_v16 = vshrl.u32 %v1597_v15, 16  ;;  %v1729_v35 = vshll.u32 %v1597_v15, 16  ;;  %v6456_v57 = vsel %vm747_vm3, 1.0, %v9479_v1  ;;  %v1370_v50 = vor.u32 %v1369_v22, %v1365_v56 }
  0xfd   : > { %v7718_v63 = vsel %vm6912_vm10, %v1361_v59, %v1365_v56  ;;  %v3384_v6 = vshrl.u32 %v3290_v43, 16  ;;  %v836_v32 = vpack.c.bf16 %v9480_v31, %v6456_v57  ;;  %v3393_v5 = vshrl.u32 %v3291_v37, 16  ;;  %v7730_v57 = vpop.permute.xlu0 %2097 }
  0xfe   : > { %9496 = vst [vmem:[#allocation47_spill] sm:$0xff] %v7718_v63  ;;  %v1598_v36 = vmul.bf16 %v7718_v63, %v970_v12  ;;  %v1728_v21 = vrot.slane %v1726_v16, 7  ;;  %v1371_v4 = vrot.slane %v1370_v50, 4  ;;  %v3396_v34 = vshll.u32 %v3291_v37, 16 }
  0xff   : > { %v3386_v13 = vrot.slane %v3384_v6, 7  ;;  %v3382_v15 = vrot.slane %v7684_v41, 4  ;;  %v1110_v56 = vrot.slane %v836_v32, %v6840_v52  ;;  %v1117_v22 = vrot.slane %v836_v32, %v6843_v53  ;;  %v7745_v8 = vpop.permute.xlu1 %2099 }
 0x100   : > { %v1733_v14 = vrot.slane %v1728_v21, 4  ;;  %v1735_v0 = vshrl.u32 %v1598_v36, 16  ;;  %v1738_v59 = vshll.u32 %v1598_v36, 16  ;;  %v1731_v62 = vor.u32 %v1729_v35, %v1728_v21  ;;  %9497 = vst [vmem:[#allocation48_spill] sm:$0xff] %v7745_v8 }
 0x101   : > { %v3391_v12 = vrot.slane %v3386_v13, 4  ;;  %v7728_v16 = vrot.slane %v3393_v5, 7  ;;  %v3387_v37 = vshll.u32 %v3290_v43, 16  ;;  %v333_v6 = vadd.s32 128, %v6815_v28  ;;  %v3259_v43 = vld [vmem:[#allocation2 + $0x34] sm:$0xf] }
 0x102   : > { %v7732_v50 = vrot.slane %v1735_v0, 7  ;;  %v1732_v41 = vsel %vm6876_vm9, %v1724_v2, %v1731_v62  ;;  %v1373_v35 = vshll.u32 %v1110_v56, 16  ;;  %v1377_v36 = vshrl.u32 %v1110_v56, 16  ;;  %v971_v0 = vld [vmem:[#allocation2 + $0x3c] sm:$0xf] }
 0x103   : > { %1956 = vst.msk [vmem:[#allocation3 + $0x2c] sm:$0xf] %vm243_vm0, %v1732_v41  ;;  %v1383_v21 = vshll.u32 %v1117_v22, 16  ;;  %v3398_v32 = vor.u32 %v3396_v34, %v7728_v16  ;;  %v3389_v39 = vor.u32 %v3387_v37, %v3386_v13  ;;  %v465_v2 = vand.u32 15, %v333_v6  ;;  %v3260_v41 = vld [vmem:[#allocation2 + $0x38] sm:$0xf]  ;;  %v7760_v37 = vpop.permute.xlu0 %2101 }
 0x104   : > { %v1740_v5 = vor.u32 %v1738_v59, %v7732_v50  ;;  %2149 = vst.msk [vmem:[#allocation3 + $0x2c] sm:$0xf] %vm2137_vm6, %v7532_v11  ;;  %v1742_v24 = vrot.slane %v7732_v50, 4  ;;  %v1375_v62 = vrot.slane %v1373_v35, 5  ;;  %v1379_v9 = vrot.slane %v1377_v36, 4  ;;  %9499 = vst [vmem:[#allocation50_spill] sm:$0xff] %v7760_v37 }
 0x105   : > { %v1385_v38 = vrot.slane %v1383_v21, 5  ;;  %v3399_v56 = vsel %vm6876_vm9, %v3391_v12, %v3398_v32  ;;  %v3390_v11 = vsel %vm6876_vm9, %v3382_v15, %v3389_v39  ;;  %vm749_vm4 = vcmp.ne.s32.totalorder %v465_v2, 0  ;;  %v972_v6 = vld [vmem:[#allocation2 + $0x40] sm:$0xf] }
 0x106   : > { %v1741_v34 = vsel %vm6876_vm9, %v1733_v14, %v1740_v5  ;;  %3623 = vrot.lane.b32.xlu0 %v3399_v56, %s6708_s26  ;;  %v1387_v13 = vshrl.u32 %v1117_v22, 16  ;;  %v7755_v59 = vsel %vm6912_vm10, %v1371_v4, %v1375_v62  ;;  %v1380_v12 = vor.u32 %v1379_v9, %v1375_v62  ;;  %3621 = vrot.lane.b32.xlu1 %v3390_v11, %s6708_s26 }
 0x107   : > { %1957 = vst.msk [vmem:[#allocation3 + $0x30] sm:$0xf] %vm243_vm0, %v1741_v34  ;;  %9498 = vst [vmem:[#allocation49_spill] sm:$0xff] %v7755_v59  ;;  %v6457_v50 = vsel %vm749_vm4, 1.0, %v9479_v1  ;;  %v3292_v14 = vmul.bf16 %v3259_v43, %v7648_v44  ;;  %v1599_v39 = vmul.bf16 %v7755_v59, %v971_v0  ;;  %v3293_v4 = vmul.bf16 %v3260_v41, %v7668_v42  ;;  %v7774_v41 = vpop.permute.xlu1 %2103 }
 0x108   : > { %2150 = vst.msk [vmem:[#allocation3 + $0x30] sm:$0xf] %vm2137_vm6, %v7538_v54  ;;  %v837_v15 = vpack.c.bf16 %v9480_v31, %v6457_v50  ;;  %v1389_v22 = vrot.slane %v1387_v13, 4  ;;  %v1381_v9 = vrot.slane %v1380_v12, 4  ;;  %v3400_v36 = vrot.slane %v7728_v16, 4  ;;  %9501 = vst [vmem:[#allocation52_spill] sm:$0xff] %v7774_v41 }
 0x109   : > { %v3402_v35 = vshrl.u32 %v3292_v14, 16  ;;  %v3405_v21 = vshll.u32 %v3292_v14, 16  ;;  %v1744_v32 = vshrl.u32 %v1599_v39, 16  ;;  %v1747_v5 = vshll.u32 %v1599_v39, 16 }
 0x10a   : > { %v1124_v2 = vrot.slane %v837_v15, %v6840_v52  ;;  %v1131_v43 = vrot.slane %v837_v15, %v6843_v53  ;;  %v7772_v54 = vsel %vm6912_vm10, %v1381_v9, %v1385_v38  ;;  %v1390_v0 = vor.u32 %v1389_v22, %v1385_v38  ;;  %v7779_v15 = vpop.permute.xlu0 %3120  ;;  %v973_v22 = vld [vmem:[#allocation2 + $0x44] sm:$0xf] }
 0x10b   : > { %9500 = vst [vmem:[#allocation51_spill] sm:$0xff] %v7772_v54  ;;  %v3404_v62 = vrot.slane %v3402_v35, 7  ;;  %v3411_v56 = vshrl.u32 %v3293_v4, 16  ;;  %v1600_v34 = vmul.bf16 %v7772_v54, %v972_v6  ;;  %v1746_v11 = vrot.slane %v1744_v32, 7  ;;  %3217 = vst.msk [vmem:[#allocation3] sm:$0xf] %vm3216_vm15, %v7779_v15 }
 0x10c   : > { %v1393_v16 = vshll.u32 %v1124_v2, 16  ;;  %v1397_v13 = vshrl.u32 %v1124_v2, 16  ;;  %v1391_v12 = vrot.slane %v1390_v0, 4  ;;  %v1403_v50 = vshll.u32 %v1131_v43, 16 }
 0x10d   : > { %v3409_v14 = vrot.slane %v3404_v62, 4  ;;  %v7777_v39 = vrot.slane %v3411_v56, 7  ;;  %v1751_v42 = vrot.slane %v1746_v11, 4  ;;  %v1753_v9 = vshrl.u32 %v1600_v34, 16 }
 0x10e   : > { %v1756_v44 = vshll.u32 %v1600_v34, 16  ;;  %v1749_v38 = vor.u32 %v1747_v5, %v1746_v11  ;;  %v1395_v35 = vrot.slane %v1393_v16, 5  ;;  %v1399_v37 = vrot.slane %v1397_v13, 4  ;;  %v3261_v16 = vld [vmem:[#allocation2 + $0x3c] sm:$0xf]  ;;  %v7790_v13 = vpop.permute.xlu1 %3122 }
 0x10f   : > { %v1405_v41 = vrot.slane %v1403_v50, 5  ;;  %v3414_v8 = vshll.u32 %v3293_v4, 16  ;;  %v1755_v6 = vrot.slane %v1753_v9, 7  ;;  %v3407_v2 = vor.u32 %v3405_v21, %v3404_v62  ;;  %v3262_v50 = vld [vmem:[#allocation2 + $0x40] sm:$0xf] }
 0x110   : > { %v1750_v32 = vsel %vm6876_vm9, %v1742_v24, %v1749_v38  ;;  %v335_v0 = vadd.s32 144, %v6815_v28  ;;  %v7787_v56 = vsel %vm6912_vm10, %v1391_v12, %v1395_v35  ;;  %v1400_v34 = vor.u32 %v1399_v37, %v1395_v35  ;;  %v974_v12 = vld [vmem:[#allocation2 + $0x48] sm:$0xf]  ;;  %3218 = vst.msk [vmem:[#allocation3 + $0x4] sm:$0xf] %vm3216_vm15, %v7790_v13 }
 0x111   : > { %1958 = vst.msk [vmem:[#allocation3 + $0x34] sm:$0xf] %vm243_vm0, %v1750_v32  ;;  %9502 = vst [vmem:[#allocation53_spill] sm:$0xff] %v7787_v56  ;;  %v3416_v5 = vor.u32 %v3414_v8, %v7777_v39  ;;  %v1407_v11 = vshrl.u32 %v1131_v43, 16  ;;  %v1758_v4 = vor.u32 %v1756_v44, %v1755_v6  ;;  %v1601_v24 = vmul.bf16 %v7787_v56, %v973_v22  ;;  %v7800_v44 = vpop.permute.xlu0 %3124 }
 0x112   : > { %2151 = vst.msk [vmem:[#allocation3 + $0x34] sm:$0xf] %vm2137_vm6, %v7554_v61  ;;  %v1760_v21 = vrot.slane %v1755_v6, 4  ;;  %v3408_v62 = vsel %vm6876_vm9, %v3400_v36, %v3407_v2  ;;  %v1401_v9 = vrot.slane %v1400_v34, 4  ;;  %v479_v37 = vand.u32 15, %v335_v0 }
 0x113   : > { %v3417_v8 = vsel %vm6876_vm9, %v3409_v14, %v3416_v5  ;;  %3625 = vrot.lane.b32.xlu1 %v3408_v62, %s6708_s26  ;;  %v1409_v43 = vrot.slane %v1407_v11, 4  ;;  %v1759_v61 = vsel %vm6876_vm9, %v1751_v42, %v1758_v4  ;;  %v1762_v38 = vshrl.u32 %v1601_v24, 16  ;;  %v7817_v4 = vpop.permute.xlu1 %3126  ;;  %3219 = vst.msk [vmem:[#allocation3 + $0x8] sm:$0xf] %vm3216_vm15, %v7800_v44  ;;  %v9521_v44 = vld [vmem:[#allocation28_spill] sm:$0xff] }
 0x114   : > { %v1765_v22 = vshll.u32 %v1601_v24, 16  ;;  %3627 = vrot.lane.b32.xlu0 %v3417_v8, %s6708_s26  ;;  %v3294_v36 = vmul.bf16 %v3261_v16, %v7696_v51  ;;  %1959 = vst.msk [vmem:[#allocation3 + $0x38] sm:$0xf] %vm243_vm0, %v1759_v61  ;;  %v7809_v14 = vsel %vm6912_vm10, %v1401_v9, %v1405_v41  ;;  %vm751_vm5 = vcmp.ne.s32.totalorder %v479_v37, 0 }
 0x115   : > { %9503 = vst [vmem:[#allocation54_spill] sm:$0xff] %v7809_v14  ;;  %v1410_v35 = vor.u32 %v1409_v43, %v1405_v41  ;;  %v3295_v6 = vmul.bf16 %v3262_v50, %v7718_v63  ;;  %2152 = vst.msk [vmem:[#allocation3 + $0x38] sm:$0xf] %vm2137_vm6, %v7564_v60  ;;  %v1602_v42 = vmul.bf16 %v7809_v14, %v974_v12  ;;  %v1764_v32 = vrot.slane %v1762_v38, 7  ;;  %v7823_v37 = vpop.permute.xlu0 %3128 }
 0x116   : > { %v6458_v2 = vsel %vm751_vm5, 1.0, %v9479_v1  ;;  %v3420_v0 = vshrl.u32 %v3294_v36, 16  ;;  %v3418_v38 = vrot.slane %v7777_v39, 4  ;;  %3221 = vst.msk [vmem:[#allocation3 + $0x10] sm:$0xf] %vm3216_vm15, %v7823_v37  ;;  %v9522_v37 = vld [vmem:[#allocation31_spill] sm:$0xff] }
 0x117   : > { %v838_v34 = vpack.c.bf16 %v9480_v31, %v6458_v2  ;;  %v1411_v5 = vrot.slane %v1410_v35, 4  ;;  %v3429_v11 = vshrl.u32 %v3295_v6, 16  ;;  %v3432_v16 = vshll.u32 %v3295_v6, 16  ;;  %v7837_v63 = vpop.permute.xlu1 %3130  ;;  %3220 = vst.msk [vmem:[#allocation3 + $0xc] sm:$0xf] %vm3216_vm15, %v7817_v4 }
 0x118   : > { %v1769_v24 = vrot.slane %v1764_v32, 4  ;;  %v1771_v41 = vshrl.u32 %v1602_v42, 16  ;;  %v1774_v62 = vshll.u32 %v1602_v42, 16  ;;  %v1767_v50 = vor.u32 %v1765_v22, %v1764_v32  ;;  %3222 = vst.msk [vmem:[#allocation3 + $0x14] sm:$0xf] %vm3216_vm15, %v7837_v63 }
 0x119   : > { %v1138_v9 = vrot.slane %v838_v34, %v6840_v52  ;;  %v1145_v60 = vrot.slane %v838_v34, %v6843_v53  ;;  %v3422_v12 = vrot.slane %v3420_v0, 7  ;;  %v7821_v8 = vrot.slane %v3429_v11, 7  ;;  %v975_v0 = vld [vmem:[#allocation2 + $0x4c] sm:$0xf] }
 0x11a   : > { %v7825_v43 = vrot.slane %v1771_v41, 7  ;;  %v1768_v61 = vsel %vm6876_vm9, %v1760_v21, %v1767_v50  ;;  %v3423_v35 = vshll.u32 %v3294_v36, 16  ;;  %v3263_v41 = vld [vmem:[#allocation2 + $0x44] sm:$0xf]  ;;  %vm3896_vm1 = vcmask 158848  }
 0x11b   : > { %1960 = vst.msk [vmem:[#allocation3 + $0x3c] sm:$0xf] %vm243_vm0, %v1768_v61  ;;  %v1413_v22 = vshll.u32 %v1138_v9, 16  ;;  %v1417_v6 = vshrl.u32 %v1138_v9, 16  ;;  %v1423_v42 = vshll.u32 %v1145_v60, 16  ;;  %v3427_v32 = vrot.slane %v3422_v12, 4 }
 0x11c   : > { %v1776_v2 = vor.u32 %v1774_v62, %v7825_v43  ;;  %2153 = vst.msk [vmem:[#allocation3 + $0x3c] sm:$0xf] %vm2137_vm6, %v7581_v3  ;;  %v1778_v34 = vrot.slane %v7825_v43, 4  ;;  %v3434_v11 = vor.u32 %v3432_v16, %v7821_v8  ;;  %v3425_v21 = vor.u32 %v3423_v35, %v3422_v12  ;;  %v3264_v9 = vld [vmem:[#allocation2 + $0x48] sm:$0xf] }
 0x11d   : > { %v1415_v39 = vrot.slane %v1413_v22, 5  ;;  %v1419_v36 = vrot.slane %v1417_v6, 4  ;;  %v1425_v50 = vrot.slane %v1423_v42, 5  ;;  %v337_v61 = vadd.s32 160, %v6815_v28  ;;  %v7853_v6 = vpop.permute.xlu0 %3132 }
 0x11e   : > { %v1777_v62 = vsel %vm6876_vm9, %v1769_v24, %v1776_v2  ;;  %v3435_v3 = vsel %vm6876_vm9, %v3427_v32, %v3434_v11  ;;  %v3426_v43 = vsel %vm6876_vm9, %v3418_v38, %v3425_v21  ;;  %v1427_v16 = vshrl.u32 %v1145_v60, 16  ;;  %v976_v32 = vld [vmem:[#allocation2 + $0x50] sm:$0xf]  ;;  %3223 = vst.msk [vmem:[#allocation3 + $0x18] sm:$0xf] %vm3216_vm15, %v7853_v6 }
 0x11f   : > { %1961 = vst.msk [vmem:[#allocation3 + $0x40] sm:$0xf] %vm243_vm0, %v1777_v62  ;;  %v7848_v12 = vsel %vm6912_vm10, %v1411_v5, %v1415_v39  ;;  %v1420_v35 = vor.u32 %v1419_v36, %v1415_v39  ;;  %3631 = vrot.lane.b32.xlu0 %v3435_v3, %s6708_s26  ;;  %3629 = vrot.lane.b32.xlu1 %v3426_v43, %s6708_s26  ;;  %v493_v22 = vand.u32 15, %v337_v61  ;;  %v3436_v5 = vrot.slane %v7821_v8, 4  ;;  %v7866_v3 = vpop.permute.xlu1 %3134 }
 0x120   : > { %9504 = vst [vmem:[#allocation55_spill] sm:$0xff] %v7848_v12  ;;  %v3296_v24 = vmul.bf16 %v3263_v41, %v7755_v59  ;;  %2154 = vst.msk [vmem:[#allocation3 + $0x40] sm:$0xf] %vm2137_vm6, %v7593_v18  ;;  %v1603_v60 = vmul.bf16 %v7848_v12, %v975_v0  ;;  %v1429_v38 = vrot.slane %v1427_v16, 4  ;;  %v3297_v42 = vmul.bf16 %v3264_v9, %v7772_v54 }
 0x121   : > { %v1421_v2 = vrot.slane %v1420_v35, 4  ;;  %vm753_vm7 = vcmp.ne.s32.totalorder %v493_v22, 0  ;;  %3224 = vst.msk [vmem:[#allocation3 + $0x1c] sm:$0xf] %vm3216_vm15, %v7866_v3  ;;  %v988_v3 = vld [vmem:[#allocation2 + $0x80] sm:$0xf] }
 0x122   : > { %v3438_v11 = vshrl.u32 %v3296_v24, 16  ;;  %v3441_v21 = vshll.u32 %v3296_v24, 16  ;;  %v1780_v39 = vshrl.u32 %v1603_v60, 16  ;;  %v1783_v36 = vshll.u32 %v1603_v60, 16 }
 0x123   : > { %v6459_v41 = vsel %vm753_vm7, 1.0, %v9479_v1  ;;  %v1430_v61 = vor.u32 %v1429_v38, %v1425_v50  ;;  %v7863_v18 = vsel %vm6912_vm10, %v1421_v2, %v1425_v50  ;;  %v3447_v9 = vshrl.u32 %v3297_v42, 16  ;;  %v7873_v50 = vpop.permute.xlu0 %3136 }
 0x124   : > { %9505 = vst [vmem:[#allocation56_spill] sm:$0xff] %v7863_v18  ;;  %v839_v0 = vpack.c.bf16 %v9480_v31, %v6459_v41  ;;  %v3440_v62 = vrot.slane %v3438_v11, 7  ;;  %v1604_v8 = vmul.bf16 %v7863_v18, %v976_v32  ;;  %v1782_v43 = vrot.slane %v1780_v39, 7  ;;  %v3265_v18 = vld [vmem:[#allocation2 + $0x4c] sm:$0xf] }
 0x125   : > { %v1431_v16 = vrot.slane %v1430_v61, 4  ;;  %v3450_v35 = vshll.u32 %v3297_v42, 16  ;;  %v7871_v38 = vrot.slane %v3447_v9, 7  ;;  %v977_v61 = vld [vmem:[#allocation2 + $0x54] sm:$0xf]  ;;  %v339_v9 = vadd.s32 176, %v6815_v28 }
 0x126   : > { %v1152_v22 = vrot.slane %v839_v0, %v6840_v52  ;;  %v1159_v24 = vrot.slane %v839_v0, %v6843_v53  ;;  %v3445_v60 = vrot.slane %v3440_v62, 4  ;;  %v1787_v2 = vrot.slane %v1782_v43, 4  ;;  %3225 = vst.msk [vmem:[#allocation3 + $0x20] sm:$0xf] %vm3216_vm15, %v7873_v50 }
 0x127   : > { %v1789_v41 = vshrl.u32 %v1604_v8, 16  ;;  %v1792_v11 = vshll.u32 %v1604_v8, 16  ;;  %v1785_v12 = vor.u32 %v1783_v36, %v1782_v43  ;;  %v3452_v32 = vor.u32 %v3450_v35, %v7871_v38  ;;  %v7884_v35 = vpop.permute.xlu1 %3138 }
 0x128   : > { %v1433_v54 = vshll.u32 %v1152_v22, 16  ;;  %v1437_v59 = vshrl.u32 %v1152_v22, 16  ;;  %v1443_v51 = vshll.u32 %v1159_v24, 16  ;;  %v3443_v0 = vor.u32 %v3441_v21, %v3440_v62  ;;  %v3266_v22 = vld [vmem:[#allocation2 + $0x50] sm:$0xf] }
 0x129   : > { %v7876_v39 = vrot.slane %v1789_v41, 7  ;;  %v1786_v42 = vsel %vm6876_vm9, %v1778_v34, %v1785_v12  ;;  %v3453_v43 = vsel %vm6876_vm9, %v3445_v60, %v3452_v32  ;;  %v1447_v21 = vshrl.u32 %v1159_v24, 16  ;;  %v7899_v60 = vpop.permute.xlu0 %3140  ;;  %3226 = vst.msk [vmem:[#allocation3 + $0x24] sm:$0xf] %vm3216_vm15, %v7884_v35 }
 0x12a   : > { %1962 = vst.msk [vmem:[#allocation3 + $0x44] sm:$0xf] %vm243_vm0, %v1786_v42  ;;  %v1435_v19 = vrot.slane %v1433_v54, 5  ;;  %v1439_v8 = vrot.slane %v1437_v59, 4  ;;  %v1445_v36 = vrot.slane %v1443_v51, 5  ;;  %3635 = vrot.lane.b32.xlu0 %v3453_v43, %s6708_s26  ;;  %v3444_v54 = vsel %vm6876_vm9, %v3436_v5, %v3443_v0 }
 0x12b   : > { %v1794_v41 = vor.u32 %v1792_v11, %v7876_v39  ;;  %2155 = vst.msk [vmem:[#allocation3 + $0x44] sm:$0xf] %vm2137_vm6, %v7603_v48  ;;  %v1796_v34 = vrot.slane %v7876_v39, 4  ;;  %v507_v59 = vand.u32 15, %v339_v9  ;;  %3633 = vrot.lane.b32.xlu1 %v3444_v54, %s6708_s26  ;;  %v3298_v62 = vmul.bf16 %v3265_v18, %v7787_v56 }
 0x12c   : > { %v7895_v51 = vsel %vm6912_vm10, %v1431_v16, %v1435_v19  ;;  %v1440_v12 = vor.u32 %v1439_v8, %v1435_v19  ;;  %v3299_v5 = vmul.bf16 %v3266_v22, %v7809_v14  ;;  %v978_v16 = vld [vmem:[#allocation2 + $0x58] sm:$0xf]  ;;  %v1449_v39 = vrot.slane %v1447_v21, 4  ;;  %v7914_v22 = vpop.permute.xlu1 %3142  ;;  %3227 = vst.msk [vmem:[#allocation3 + $0x28] sm:$0xf] %vm3216_vm15, %v7899_v60 }
 0x12d   : > { %9506 = vst [vmem:[#allocation57_spill] sm:$0xff] %v7895_v51  ;;  %v1795_v48 = vsel %vm6876_vm9, %v1787_v2, %v1794_v41  ;;  %v1605_v11 = vmul.bf16 %v7895_v51, %v977_v61  ;;  %vm755_vm8 = vcmp.ne.s32.totalorder %v507_v59, 0  ;;  %v3456_v24 = vshrl.u32 %v3298_v62, 16  ;;  %3228 = vst.msk [vmem:[#allocation3 + $0x2c] sm:$0xf] %vm3216_vm15, %v7914_v22 }
 0x12e   : > { %1963 = vst.msk [vmem:[#allocation3 + $0x48] sm:$0xf] %vm243_vm0, %v1795_v48  ;;  %v1441_v32 = vrot.slane %v1440_v12, 4  ;;  %v6460_v19 = vsel %vm755_vm8, 1.0, %v9479_v1  ;;  %v3465_v0 = vshrl.u32 %v3299_v5, 16  ;;  %v1450_v9 = vor.u32 %v1449_v39, %v1445_v36 }
 0x12f   : > { %2156 = vst.msk [vmem:[#allocation3 + $0x48] sm:$0xf] %vm2137_vm6, %v7617_v23  ;;  %v1798_v18 = vshrl.u32 %v1605_v11, 16  ;;  %v1801_v42 = vshll.u32 %v1605_v11, 16  ;;  %v840_v2 = vpack.c.bf16 %v9480_v31, %v6460_v19  ;;  %v3458_v8 = vrot.slane %v3456_v24, 7 }
 0x130   : > { %v7912_v61 = vsel %vm6912_vm10, %v1441_v32, %v1445_v36  ;;  %v3468_v43 = vshll.u32 %v3299_v5, 16  ;;  %v1451_v12 = vrot.slane %v1450_v9, 4  ;;  %v7919_v48 = vrot.slane %v3465_v0, 7  ;;  %v7922_v32 = vpop.permute.xlu0 %3144 }
 0x131   : > { %9507 = vst [vmem:[#allocation58_spill] sm:$0xff] %v7912_v61  ;;  %v1606_v41 = vmul.bf16 %v7912_v61, %v978_v16  ;;  %v1800_v54 = vrot.slane %v1798_v18, 7  ;;  %v1166_v59 = vrot.slane %v840_v2, %v6840_v52  ;;  %v1173_v23 = vrot.slane %v840_v2, %v6843_v53  ;;  %3229 = vst.msk [vmem:[#allocation3 + $0x30] sm:$0xf] %vm3216_vm15, %v7922_v32 }
 0x132   : > { %v3463_v21 = vrot.slane %v3458_v8, 4  ;;  %9508 = vst [vmem:[#allocation59_spill] sm:$0xff] %v7919_v48  ;;  %v3454_v11 = vrot.slane %v7871_v38, 4  ;;  %v3470_v18 = vor.u32 %v3468_v43, %v7919_v48  ;;  %v3459_v0 = vshll.u32 %v3298_v62, 16  ;;  %v979_v38 = vld [vmem:[#allocation2 + $0x5c] sm:$0xf] }
 0x133   : > { %v1805_v36 = vrot.slane %v1800_v54, 4  ;;  %v1807_v19 = vshrl.u32 %v1606_v41, 16  ;;  %v1810_v5 = vshll.u32 %v1606_v41, 16  ;;  %v1803_v39 = vor.u32 %v1801_v42, %v1800_v54  ;;  %v7933_v54 = vpop.permute.xlu1 %3146 }
 0x134   : > { %v1453_v24 = vshll.u32 %v1166_v59, 16  ;;  %v1457_v14 = vshrl.u32 %v1166_v59, 16  ;;  %v1463_v16 = vshll.u32 %v1173_v23, 16  ;;  %v341_v9 = vadd.s32 192, %v6815_v28  ;;  %3230 = vst.msk [vmem:[#allocation3 + $0x34] sm:$0xf] %vm3216_vm15, %v7933_v54 }
 0x135   : > { %v7925_v61 = vrot.slane %v1807_v19, 7  ;;  %v1804_v2 = vsel %vm6876_vm9, %v1796_v34, %v1803_v39  ;;  %v3471_v42 = vsel %vm6876_vm9, %v3463_v21, %v3470_v18  ;;  %v3461_v62 = vor.u32 %v3459_v0, %v3458_v8  ;;  %v3737_v21 = vld [vmem:[#allocation2 + $0x14] sm:$0xf] }
 0x136   : > { %1964 = vst.msk [vmem:[#allocation3 + $0x4c] sm:$0xf] %vm243_vm0, %v1804_v2  ;;  %v1455_v51 = vrot.slane %v1453_v24, 5  ;;  %v1459_v56 = vrot.slane %v1457_v14, 4  ;;  %v1465_v41 = vrot.slane %v1463_v16, 5  ;;  %3639 = vrot.lane.b32.xlu0 %v3471_v42, %s6708_s26  ;;  %v521_v59 = vand.u32 15, %v341_v9  ;;  %v7945_v16 = vpop.permute.xlu0 %3148 }
 0x137   : > { %v1812_v43 = vor.u32 %v1810_v5, %v7925_v61  ;;  %2157 = vst.msk [vmem:[#allocation3 + $0x4c] sm:$0xf] %vm2137_vm6, %v7630_v58  ;;  %v1814_v34 = vrot.slane %v7925_v61, 4  ;;  %v1467_v39 = vshrl.u32 %v1173_v23, 16  ;;  %v343_v24 = vadd.s32 208, %v6815_v28 }
 0x138   : > { %v7942_v14 = vsel %vm6912_vm10, %v1451_v12, %v1455_v51  ;;  %v1460_v19 = vor.u32 %v1459_v56, %v1455_v51  ;;  %v980_v5 = vld [vmem:[#allocation2 + $0x60] sm:$0xf]  ;;  %v3462_v8 = vsel %vm6876_vm9, %v3454_v11, %v3461_v62  ;;  %vm757_vm11 = vcmp.ne.s32.totalorder %v521_v59, 0  ;;  %v3930_v18 = vld [vmem:[#allocation2 + $0x14] sm:$0xf] }
 0x139   : > { %9509 = vst [vmem:[#allocation60_spill] sm:$0xff] %v7942_v14  ;;  %v1813_v58 = vsel %vm6876_vm9, %v1805_v36, %v1812_v43  ;;  %v1607_v61 = vmul.bf16 %v7942_v14, %v979_v38  ;;  %3637 = vrot.lane.b32.xlu1 %v3462_v8, %s6708_s26  ;;  %v6461_v51 = vsel %vm757_vm11, 1.0, %v9479_v1  ;;  %v1469_v23 = vrot.slane %v1467_v39, 4  ;;  %v3736_v12 = vld [vmem:[#allocation2 + $0x10] sm:$0xf] }
 0x13a   : > { %1965 = vst.msk [vmem:[#allocation3 + $0x50] sm:$0xf] %vm243_vm0, %v1813_v58  ;;  %v1461_v56 = vrot.slane %v1460_v19, 4  ;;  %v535_v2 = vand.u32 15, %v343_v24  ;;  %v841_v9 = vpack.c.bf16 %v9480_v31, %v6461_v51  ;;  %3802 = vrot.lane.b32.xlu0 %v3737_v21, %s6709_s27  ;;  %v345_v11 = vadd.s32 224, %v6815_v28 }
 0x13b   : > { %2158 = vst.msk [vmem:[#allocation3 + $0x50] sm:$0xf] %vm2137_vm6, %v7636_v20  ;;  %v1816_v36 = vshrl.u32 %v1607_v61, 16  ;;  %v1819_v0 = vshll.u32 %v1607_v61, 16  ;;  %v3931_v38 = vld [vmem:[#allocation2 + $0x18] sm:$0xf]  ;;  %v1470_v43 = vor.u32 %v1469_v23, %v1465_v41  ;;  %v7965_v59 = vmul.bf16 %v3930_v18, %v6889_v46  ;;  %v7967_v20 = vpop.permute.xlu1 %3150  ;;  %v7977_v18 = vpop.permute.xlu0 %3152 }
 0x13c   : > { %v7962_v42 = vsel %vm6912_vm10, %v1461_v56, %v1465_v41  ;;  %vm759_vm12 = vcmp.ne.s32.totalorder %v535_v2, 0  ;;  %v3739_v62 = vld [vmem:[#allocation2 + $0x1c] sm:$0xf]  ;;  %v1180_v21 = vrot.slane %v841_v9, %v6840_v52  ;;  %v1187_v24 = vrot.slane %v841_v9, %v6843_v53  ;;  %v3738_v2 = vld [vmem:[#allocation2 + $0x18] sm:$0xf] }
 0x13d   : > { %9510 = vst [vmem:[#allocation61_spill] sm:$0xff] %v7962_v42  ;;  %v1608_v19 = vmul.bf16 %v7962_v42, %v980_v5  ;;  %v1818_v39 = vrot.slane %v1816_v36, 7  ;;  %v1471_v58 = vrot.slane %v1470_v43, 4  ;;  %3800 = vrot.lane.b32.xlu1 %v3736_v12, %s6709_s27  ;;  %v6462_v61 = vsel %vm759_vm12, 1.0, %v9479_v1  ;;  %3231 = vst.msk [vmem:[#allocation3 + $0x38] sm:$0xf] %vm3216_vm15, %v7945_v16 }
 0x13e   : > { %v549_v41 = vand.u32 15, %v345_v11  ;;  %v7975_v8 = vmul.bf16 %v3931_v38, %v6893_v47  ;;  %3806 = vrot.lane.b32.xlu0 %v3739_v62, %s6709_s27  ;;  %v1473_v36 = vshll.u32 %v1180_v21, 16  ;;  %v1477_v9 = vshrl.u32 %v1180_v21, 16  ;;  %3233 = vst.msk [vmem:[#allocation3 + $0x40] sm:$0xf] %vm3216_vm15, %v7977_v18 }
 0x13f   : > { %v1823_v56 = vrot.slane %v1818_v39, 4  ;;  %v1825_v51 = vshrl.u32 %v1608_v19, 16  ;;  %v1828_v23 = vshll.u32 %v1608_v19, 16  ;;  %v1821_v5 = vor.u32 %v1819_v0, %v1818_v39  ;;  %v981_v0 = vld [vmem:[#allocation2 + $0x64] sm:$0xf] }
 0x140   : > { %v1483_v43 = vshll.u32 %v1187_v24, 16  ;;  %v842_v12 = vpack.c.bf16 %v9480_v31, %v6462_v61  ;;  %v1487_v38 = vshrl.u32 %v1187_v24, 16  ;;  %vm7985_vm13 = vcmp.ne.s32.totalorder %v549_v41, 0  ;;  %v7992_v61 = vpop.permute.xlu1 %3154  ;;  %3232 = vst.msk [vmem:[#allocation3 + $0x3c] sm:$0xf] %vm3216_vm15, %v7967_v20 }
 0x141   : > { %v7981_v42 = vrot.slane %v1825_v51, 7  ;;  %v1822_v11 = vsel %vm6876_vm9, %v1814_v34, %v1821_v5  ;;  %v1475_v62 = vrot.slane %v1473_v36, 5  ;;  %v1479_v19 = vrot.slane %v1477_v9, 4  ;;  %3804 = vrot.lane.b32.xlu1 %v3738_v2, %s6709_s27  ;;  %v8003_v2 = vpop.permute.xlu0 %3156  ;;  %3234 = vst.msk [vmem:[#allocation3 + $0x44] sm:$0xf] %vm3216_vm15, %v7992_v61 }
 0x142   : > { %1966 = vst.msk [vmem:[#allocation3 + $0x54] sm:$0xf] %vm243_vm0, %v1822_v11  ;;  %v1485_v39 = vrot.slane %v1483_v43, 5  ;;  %v1194_v21 = vrot.slane %v842_v12, %v6840_v52  ;;  %v1201_v24 = vrot.slane %v842_v12, %v6843_v53  ;;  %v1489_v41 = vrot.slane %v1487_v38, 4  ;;  %v4448_v18 = vld [vmem:[#allocation2 + $0x14] sm:$0x8] }
 0x143   : > { %v1830_v51 = vor.u32 %v1828_v23, %v7981_v42  ;;  %2159 = vst.msk [vmem:[#allocation3 + $0x54] sm:$0xf] %vm2137_vm6, %v7651_v30  ;;  %v1832_v34 = vrot.slane %v7981_v42, 4  ;;  %v8001_v5 = vsel %vm6912_vm10, %v1471_v58, %v1475_v62  ;;  %v1480_v36 = vor.u32 %v1479_v19, %v1475_v62  ;;  %v982_v42 = vld [vmem:[#allocation2 + $0x68] sm:$0xf] }
 0x144   : > { %9513 = vst [vmem:[#allocation62_spill] sm:$0xff] %v8001_v5  ;;  %v1493_v9 = vshll.u32 %v1194_v21, 16  ;;  %v1497_v43 = vshrl.u32 %v1194_v21, 16  ;;  %v1609_v11 = vmul.bf16 %v8001_v5, %v981_v0  ;;  %v1490_v30 = vor.u32 %v1489_v41, %v1485_v39  ;;  %3235 = vst.msk [vmem:[#allocation3 + $0x48] sm:$0xf] %vm3216_vm15, %v8003_v2 }
 0x145   : > { %v1831_v23 = vsel %vm6876_vm9, %v1823_v56, %v1830_v51  ;;  %v1503_v48 = vshll.u32 %v1201_v24, 16  ;;  %v1481_v12 = vrot.slane %v1480_v36, 4  ;;  %v6463_v58 = vsel %vm7985_vm13, 1.0, %v9479_v1  ;;  %v983_v56 = vld [vmem:[#allocation2 + $0x6c] sm:$0xf] }
 0x146   : > { %1967 = vst.msk [vmem:[#allocation3 + $0x58] sm:$0xf] %vm243_vm0, %v1831_v23  ;;  %v1495_v38 = vrot.slane %v1493_v9, 5  ;;  %v1499_v47 = vrot.slane %v1497_v43, 4  ;;  %v1834_v62 = vshrl.u32 %v1609_v11, 16  ;;  %v1837_v19 = vshll.u32 %v1609_v11, 16  ;;  %v8019_v43 = vpop.permute.xlu1 %3158 }
 0x147   : > { %2160 = vst.msk [vmem:[#allocation3 + $0x58] sm:$0xf] %vm2137_vm6, %v7660_v7  ;;  %v1491_v21 = vrot.slane %v1490_v30, 4  ;;  %v1505_v0 = vrot.slane %v1503_v48, 5  ;;  %v8016_v51 = vsel %vm6912_vm10, %v1481_v12, %v1485_v39  ;;  %v843_v36 = vpack.c.bf16 %v9480_v31, %v6463_v58  ;;  %9515 = vst [vmem:[#allocation64_spill] sm:$0xff] %v8019_v43 }
 0x148   : > { %9514 = vst [vmem:[#allocation63_spill] sm:$0xff] %v8016_v51  ;;  %v1500_v41 = vor.u32 %v1499_v47, %v1495_v38  ;;  %v1507_v9 = vshrl.u32 %v1201_v24, 16  ;;  %v1610_v14 = vmul.bf16 %v8016_v51, %v982_v42  ;;  %v1836_v23 = vrot.slane %v1834_v62, 7  ;;  %v984_v48 = vld [vmem:[#allocation2 + $0x70] sm:$0xf]  ;;  %v8032_v24 = vpop.permute.xlu0 %3160 }
 0x149   : > { %v8024_v7 = vsel %vm6912_vm10, %v1491_v21, %v1495_v38  ;;  %v4005_v11 = vshll.u32 %v7965_v59, 16  ;;  %v1208_v47 = vrot.slane %v843_v36, %v6840_v52  ;;  %v8030_v12 = vrot.slane %v843_v36, %v6843_v53  ;;  %9517 = vst [vmem:[#allocation66_spill] sm:$0xff] %v8032_v24 }
 0x14a   : > { %9516 = vst [vmem:[#allocation65_spill] sm:$0xff] %v8024_v7  ;;  %v1501_v30 = vrot.slane %v1500_v41, 4  ;;  %v1611_v39 = vmul.bf16 %v8024_v7, %v983_v56  ;;  %v1841_v58 = vrot.slane %v1836_v23, 4  ;;  %v1843_v42 = vshrl.u32 %v1610_v14, 16 }
 0x14b   : > { %v1846_v62 = vshll.u32 %v1610_v14, 16  ;;  %v1839_v51 = vor.u32 %v1837_v19, %v1836_v23  ;;  %v1509_v41 = vrot.slane %v1507_v9, 4  ;;  %v1513_v7 = vshll.u32 %v1208_v47, 16  ;;  %v8043_v23 = vpop.permute.xlu1 %3162 }
 0x14c   : > { %v8036_v38 = vsel %vm6912_vm10, %v1501_v30, %v1505_v0  ;;  %v1852_v21 = vshrl.u32 %v1611_v39, 16  ;;  %v1855_v5 = vshll.u32 %v1611_v39, 16  ;;  %v1845_v46 = vrot.slane %v1843_v42, 7  ;;  %3238 = vst.msk [vmem:[#allocation3 + $0x54] sm:$0xf] %vm3216_vm15, %v8043_v23 }
 0x14d   : > { %9518 = vst [vmem:[#allocation67_spill] sm:$0xff] %v8036_v38  ;;  %v1840_v56 = vsel %vm6876_vm9, %v1832_v34, %v1839_v51  ;;  %v1612_v36 = vmul.bf16 %v8036_v38, %v984_v48  ;;  %v1510_v43 = vor.u32 %v1509_v41, %v1505_v0  ;;  %v1517_v14 = vshrl.u32 %v1208_v47, 16  ;;  %v985_v48 = vld [vmem:[#allocation2 + $0x74] sm:$0xf] }
 0x14e   : > { %1968 = vst.msk [vmem:[#allocation3 + $0x5c] sm:$0xf] %vm243_vm0, %v1840_v56  ;;  %v1854_v26 = vrot.slane %v1852_v21, 7  ;;  %v1523_v19 = vshll.u32 %v8030_v12, 16  ;;  %v1848_v30 = vor.u32 %v1846_v62, %v1845_v46  ;;  %v1850_v42 = vrot.slane %v1845_v46, 4  ;;  %v8047_v56 = vpop.permute.xlu0 %3164 }
 0x14f   : > { %2161 = vst.msk [vmem:[#allocation3 + $0x5c] sm:$0xf] %vm2137_vm6, %v7676_v25  ;;  %v1861_v9 = vshrl.u32 %v1612_v36, 16  ;;  %v1864_v39 = vshll.u32 %v1612_v36, 16  ;;  %v1511_v38 = vrot.slane %v1510_v43, 4  ;;  %v1515_v24 = vrot.slane %v1513_v7, 5 }
 0x150   : > { %v1859_v34 = vrot.slane %v1854_v26, 4  ;;  %v1857_v51 = vor.u32 %v1855_v5, %v1854_v26  ;;  %v1849_v0 = vsel %vm6876_vm9, %v1841_v58, %v1848_v30  ;;  %v1519_v21 = vrot.slane %v1517_v14, 4  ;;  %v3929_v62 = vld [vmem:[#allocation2 + $0x10] sm:$0xf]  ;;  %v986_v30 = vld [vmem:[#allocation2 + $0x78] sm:$0xf] }
 0x151   : > { %v1863_v47 = vrot.slane %v1861_v9, 7  ;;  %v8051_v41 = vrot.slane %v1523_v19, 5  ;;  %1969 = vst.msk [vmem:[#allocation3 + $0x60] sm:$0xf] %vm243_vm0, %v1849_v0  ;;  %v8058_v26 = vsel %vm6912_vm10, %v1511_v38, %v1515_v24  ;;  %v8060_v25 = vrot.slane %v4005_v11, 5  ;;  %v8072_v19 = vpop.permute.xlu1 %3166  ;;  %v9519_v63 = vld [vmem:[#allocation66_spill] sm:$0xff] }
 0x152   : > { %v1858_v46 = vsel %vm6876_vm9, %v1850_v42, %v1857_v51  ;;  %v4009_v5 = vshrl.u32 %v7965_v59, 16  ;;  %2162 = vst.msk [vmem:[#allocation3 + $0x60] sm:$0xf] %vm2137_vm6, %v7678_v49  ;;  %v1520_v7 = vor.u32 %v1519_v21, %v1515_v24  ;;  %v1613_v58 = vmul.bf16 %v8058_v26, %v985_v48  ;;  %v8080_v0 = vpop.permute.xlu0 %3168 }
 0x153   : > { %v1866_v43 = vor.u32 %v1864_v39, %v1863_v47  ;;  %1970 = vst.msk [vmem:[#allocation3 + $0x64] sm:$0xf] %vm243_vm0, %v1858_v46  ;;  %v1868_v36 = vrot.slane %v1863_v47, 4  ;;  %v4015_v38 = vshll.u32 %v7975_v8, 16  ;;  %v3962_v11 = vmul.bf16 %v3929_v62, %v6880_v29 }
 0x154   : > { %2163 = vst.msk [vmem:[#allocation3 + $0x64] sm:$0xf] %vm2137_vm6, %v7698_v45  ;;  %v4011_v14 = vrot.slane %v4009_v5, 4  ;;  %v347_v59 = vadd.s32 240, %v6815_v28  ;;  %v1521_v24 = vrot.slane %v1520_v7, 4  ;;  %v1870_v9 = vshrl.u32 %v1613_v58, 16 }
 0x155   : > { %v1867_v49 = vsel %vm6876_vm9, %v1859_v34, %v1866_v43  ;;  %v1873_v39 = vshll.u32 %v1613_v58, 16  ;;  %v8078_v42 = vrot.slane %v4015_v38, 5  ;;  %v3996_v51 = vshrl.u32 %v3962_v11, 16  ;;  %v3932_v7 = vld [vmem:[#allocation2 + $0x1c] sm:$0xf] }
 0x156   : > { %1971 = vst.msk [vmem:[#allocation3 + $0x68] sm:$0xf] %vm243_vm0, %v1867_v49  ;;  %v4012_v45 = vor.u32 %v4011_v14, %v8060_v25  ;;  %v3999_v48 = vshll.u32 %v3962_v11, 16  ;;  %v8087_v28 = vsel %vm6912_vm10, %v1521_v24, %v8051_v41  ;;  %v1872_v34 = vrot.slane %v1870_v9, 7  ;;  %v8094_v9 = vpop.permute.xlu1 %3170 }
 0x157   : > { %2164 = vst.msk [vmem:[#allocation3 + $0x68] sm:$0xf] %vm2137_vm6, %v7710_v10  ;;  %v563_v47 = vand.u32 15, %v347_v59  ;;  %v1527_v21 = vshrl.u32 %v8030_v12, 16  ;;  %v1614_v62 = vmul.bf16 %v8087_v28, %v986_v30  ;;  %v3998_v5 = vrot.slane %v3996_v51, 4 }
 0x158   : > { %v4013_v46 = vrot.slane %v4012_v45, 4  ;;  %v4001_v43 = vrot.slane %v3999_v48, 5  ;;  %v1877_v58 = vrot.slane %v1872_v34, 4  ;;  %v1875_v14 = vor.u32 %v1873_v39, %v1872_v34  ;;  %v3933_v10 = vld [vmem:[#allocation2 + $0x20] sm:$0xf] }
 0x159   : > { %vm763_vm14 = vcmp.ne.s32.totalorder %v563_v47, 0  ;;  %v1529_v38 = vrot.slane %v1527_v21, 4  ;;  %v1879_v11 = vshrl.u32 %v1614_v62, 16  ;;  %v1882_v49 = vshll.u32 %v1614_v62, 16  ;;  %3237 = vst.msk [vmem:[#allocation3 + $0x50] sm:$0xf] %vm3216_vm15, %v9519_v63 }
 0x15a   : > { %v4018_v24 = vsel %vm6912_vm10, %v4013_v46, %v8078_v42  ;;  %v4002_v59 = vor.u32 %v4001_v43, %v3998_v5  ;;  %v1876_v12 = vsel %vm6876_vm9, %v1868_v36, %v1875_v14  ;;  %v6464_v30 = vsel %vm763_vm14, 1.0, %v9479_v1  ;;  %v3173_v36 = vpop.permute.xlu0 %3172  ;;  %3239 = vst.msk [vmem:[#allocation3 + $0x58] sm:$0xf] %vm3216_vm15, %v8047_v56  ;;  %3241 = vst.msk [vmem:[#allocation3 + $0x60] sm:$0xf] %vm3216_vm15, %v8080_v0 }
 0x15b   : > { %4321 = vrot.lane.b32.xlu0 %v4018_v24, %s6710_s28  ;;  %v1530_v39 = vor.u32 %v1529_v38, %v8051_v41  ;;  %v3965_v45 = vmul.bf16 %v3932_v7, %v6902_v55  ;;  %v8102_v51 = vrot.slane %v1879_v11, 7  ;;  %1972 = vst.msk [vmem:[#allocation3 + $0x6c] sm:$0xf] %vm243_vm0, %v1876_v12  ;;  %v844_v34 = vpack.c.bf16 %v9480_v31, %v6464_v30  ;;  %v3175_v11 = vpop.permute.xlu1 %3174  ;;  %v4449_v24 = vld [vmem:[#allocation2 + $0x18] sm:$0xf] }
 0x15c   : > { %v4003_v48 = vrot.slane %v4002_v59, 4  ;;  %v8107_v47 = vmul.bf16 %v3933_v10, %v6929_v33  ;;  %2165 = vst.msk [vmem:[#allocation3 + $0x6c] sm:$0xf] %vm2137_vm6, %v7724_v40  ;;  %v4019_v41 = vshrl.u32 %v7975_v8, 16  ;;  %v4450_v59 = vld [vmem:[#allocation2 + $0x1c] sm:$0xf]  ;;  %v4482_v4 = vmul.bf16 %v4449_v24, %v9521_v44 }
 0x15d   : > { %v4025_v21 = vshll.u32 %v3965_v45, 16  ;;  %v4029_v1 = vshrl.u32 %v3965_v45, 16  ;;  %v1884_v62 = vor.u32 %v1882_v49, %v8102_v51  ;;  %v1222_v5 = vrot.slane %v844_v34, %v6840_v52  ;;  %v987_v12 = vld [vmem:[#allocation2 + $0x7c] sm:$0xf]  ;;  %3240 = vst.msk [vmem:[#allocation3 + $0x5c] sm:$0xf] %vm3216_vm15, %v8072_v19 }
 0x15e   : > { %v4008_v46 = vsel %vm6912_vm10, %v4003_v48, %v8060_v25  ;;  %v8118_v31 = vrot.slane %v844_v34, %v6843_v53  ;;  %v1531_v43 = vrot.slane %v1530_v39, 4  ;;  %v4035_v14 = vshll.u32 %v8107_v47, 16  ;;  %v3177_v39 = vpop.permute.xlu0 %3176  ;;  %3243 = vst.msk [vmem:[#allocation3 + $0x68] sm:$0xf] %vm3216_vm15, %v3173_v36  ;;  %3242 = vst.msk [vmem:[#allocation3 + $0x64] sm:$0xf] %vm3216_vm15, %v8094_v9 }
 0x15f   : > { %4319 = vrot.lane.b32.xlu1 %v4008_v46, %s6710_s28  ;;  %v8121_v7 = vrot.slane %v4025_v21, 5  ;;  %v4031_v40 = vrot.slane %v4029_v1, 4  ;;  %v1885_v8 = vsel %vm6876_vm9, %v1877_v58, %v1884_v62  ;;  %v1533_v38 = vshll.u32 %v1222_v5, 16  ;;  %3244 = vst.msk [vmem:[#allocation3 + $0x6c] sm:$0xf] %vm3216_vm15, %v3175_v11  ;;  %v3179_v1 = vpop.permute.xlu1 %3178 }
 0x160   : > { %v1537_v10 = vshrl.u32 %v1222_v5, 16  ;;  %v1543_v25 = vshll.u32 %v8118_v31, 16  ;;  %1973 = vst.msk [vmem:[#allocation3 + $0x70] sm:$0xf] %vm243_vm0, %v1885_v8  ;;  %v8129_v53 = vrot.slane %v4035_v14, 5  ;;  %v4021_v49 = vrot.slane %v4019_v41, 4 }
 0x161   : > { %v4032_v52 = vor.u32 %v4031_v40, %v8121_v7  ;;  %2166 = vst.msk [vmem:[#allocation3 + $0x70] sm:$0xf] %vm2137_vm6, %v7730_v57  ;;  %v1535_v30 = vrot.slane %v1533_v38, 5  ;;  %v1547_v21 = vshrl.u32 %v8118_v31, 16  ;;  %v9520_v57 = vld [vmem:[#allocation64_spill] sm:$0xff]  ;;  %v4483_v6 = vmul.bf16 %v4450_v59, %v9522_v37  ;;  %v9523_v5 = vld [vmem:[#allocation25_spill] sm:$0xff] }
 0x162   : > { %v1539_v58 = vrot.slane %v1537_v10, 4  ;;  %v8133_v45 = vrot.slane %v1543_v25, 5  ;;  %v4022_v34 = vor.u32 %v4021_v49, %v8078_v42  ;;  %3236 = vst.msk [vmem:[#allocation3 + $0x4c] sm:$0xf] %vm3216_vm15, %v9520_v57  ;;  %3245 = vst.msk [vmem:[#allocation3 + $0x70] sm:$0xf] %vm3216_vm15, %v3177_v39  ;;  %v8216_v36 = vpop.permute.xlu0 %3180  ;;  %v4481_v31 = vmul.bf16 %v4448_v18, %v9523_v5 }
 0x163   : > { %v4033_v48 = vrot.slane %v4032_v52, 4  ;;  %v8194_v15 = vsel %vm6912_vm10, %v1531_v43, %v1535_v30  ;;  %v1886_v35 = vrot.slane %v8102_v51, 4  ;;  %v1549_v54 = vrot.slane %v1547_v21, 4  ;;  %v4451_v19 = vld [vmem:[#allocation2 + $0x20] sm:$0xf]  ;;  %v9529_v5 = vld [vmem:[#allocation50_spill] sm:$0xff] }
 0x164   : > { %v1540_v13 = vor.u32 %v1539_v58, %v1535_v30  ;;  %v1615_v50 = vmul.bf16 %v8194_v15, %v987_v12  ;;  %v4023_v22 = vrot.slane %v4022_v34, 4  ;;  %v4520_v16 = vshrl.u32 %v4482_v4, 16  ;;  %v989_v46 = vld [vmem:[#allocation2 + $0x84] sm:$0xf]  ;;  %v5129_v21 = vld [vmem:[#allocation2 + $0x1c] sm:$0xf] }
 0x165   : > { %v4038_v60 = vsel %vm6912_vm10, %v4033_v48, %v8129_v53  ;;  %v4529_v20 = vshrl.u32 %v4483_v6, 16  ;;  %v4532_v56 = vshll.u32 %v4483_v6, 16  ;;  %v1550_v0 = vor.u32 %v1549_v54, %v8133_v45  ;;  %v4452_v8 = vld [vmem:[#allocation2 + $0x24] sm:$0xf]  ;;  %v3183_v6 = vpop.permute.xlu1 %3182 }
 0x166   : > { %v1541_v32 = vrot.slane %v1540_v13, 4  ;;  %4325 = vrot.lane.b32.xlu0 %v4038_v60, %s6710_s28  ;;  %v1888_v61 = vshrl.u32 %v1615_v50, 16  ;;  %v1891_v2 = vshll.u32 %v1615_v50, 16  ;;  %v4028_v23 = vsel %vm6912_vm10, %v4023_v22, %v8121_v7  ;;  %v9524_v38 = vld [vmem:[#allocation32_spill] sm:$0xff]  ;;  %v8233_v37 = vpop.permute.xlu0 %3607 }
 0x167   : > { %4323 = vrot.lane.b32.xlu1 %v4028_v23, %s6710_s28  ;;  %v4522_v9 = vrot.slane %v4520_v16, 7  ;;  %v8214_v51 = vrot.slane %v4529_v20, 7  ;;  %v4523_v43 = vshll.u32 %v4482_v4, 16  ;;  %v8220_v7 = vrot.slane %v1550_v0, 4  ;;  %v5128_v4 = vld [vmem:[#allocation2 + $0x18] sm:$0xf] }
 0x168   : > { %v8210_v42 = vsel %vm6912_vm10, %v1541_v32, %v8133_v45  ;;  %v1890_v62 = vrot.slane %v1888_v61, 7  ;;  %v4484_v10 = vmul.bf16 %v4451_v19, %v9524_v38  ;;  %v4515_v12 = vshrl.u32 %v4481_v31, 16  ;;  %v9525_v45 = vld [vmem:[#allocation35_spill] sm:$0xff]  ;;  %v9526_v50 = vld [vmem:[#allocation48_spill] sm:$0xff] }
 0x169   : > { %v1616_v41 = vmul.bf16 %v8210_v42, %v988_v3  ;;  %v4527_v40 = vrot.slane %v4522_v9, 4  ;;  %v4534_v14 = vor.u32 %v4532_v56, %v8214_v51  ;;  %v1617_v24 = vmul.bf16 %v8220_v7, %v989_v46  ;;  %v5130_v32 = vld [vmem:[#allocation2 + $0x20] sm:$0xf]  ;;  %v5131_v61 = vld [vmem:[#allocation2 + $0x24] sm:$0xf] }
 0x16a   : > { %v1895_v25 = vrot.slane %v1890_v62, 4  ;;  %v1893_v49 = vor.u32 %v1891_v2, %v1890_v62  ;;  %v4525_v30 = vor.u32 %v4523_v43, %v4522_v9  ;;  %v4485_v48 = vmul.bf16 %v4452_v8, %v9525_v45  ;;  %v9527_v19 = vld [vmem:[#allocation4_spill] sm:$0xff] }
 0x16b   : > { %v1897_v11 = vshrl.u32 %v1616_v41, 16  ;;  %v1900_v52 = vshll.u32 %v1616_v41, 16  ;;  %v4535_v59 = vsel %vm6876_vm9, %v4527_v40, %v4534_v14  ;;  %v4538_v34 = vshrl.u32 %v4484_v10, 16  ;;  %v9528_v41 = vld [vmem:[#allocation5_spill] sm:$0xff] }
 0x16c   : > { %v1894_v39 = vsel %vm6876_vm9, %v1886_v35, %v1893_v49  ;;  %4808 = vrot.lane.b32.xlu0 %v4535_v59, %s6711_s29  ;;  %v1906_v63 = vshrl.u32 %v1617_v24, 16  ;;  %v1909_v57 = vshll.u32 %v1617_v24, 16  ;;  %v6483_v13 = vrot.slane %v4515_v12, 11  ;;  %v5132_v40 = vld [vmem:[#allocation2 + $0x28] sm:$0xf]  ;;  %v9530_v12 = vld [vmem:[#allocation52_spill] sm:$0xff] }
 0x16d   : > { %v1899_v58 = vrot.slane %v1897_v11, 7  ;;  %1974 = vst.msk [vmem:[#allocation3 + $0x74] sm:$0xf] %vm243_vm0, %v1894_v39  ;;  %v4536_v44 = vrot.slane %v8214_v51, 4  ;;  %v4540_v60 = vrot.slane %v4538_v34, 7  ;;  %v4547_v22 = vshrl.u32 %v4485_v48, 16  ;;  %v8261_v11 = vpop.permute.xlu1 %3609 }
 0x16e   : > { %2167 = vst.msk [vmem:[#allocation3 + $0x74] sm:$0xf] %vm2137_vm6, %v9526_v50  ;;  %v1908_v54 = vrot.slane %v1906_v63, 7  ;;  %v4526_v16 = vsel %vm6876_vm9, %v6483_v13, %v4525_v30  ;;  %v4550_v20 = vshll.u32 %v4485_v48, 16  ;;  %v4541_v18 = vshll.u32 %v4484_v10, 16 }
 0x16f   : > { %v1902_v3 = vor.u32 %v1900_v52, %v1899_v58  ;;  %v1904_v35 = vrot.slane %v1899_v58, 4  ;;  %3246 = vst.msk [vmem:[#allocation3 + $0x74] sm:$0xf] %vm3216_vm15, %v3179_v1  ;;  %4806 = vrot.lane.b32.xlu1 %v4526_v16, %s6711_s29  ;;  %v4545_v23 = vrot.slane %v4540_v60, 4  ;;  %v8243_v56 = vrot.slane %v4547_v22, 7 }
 0x170   : > { %v5162_v0 = vmul.bf16 %v5129_v21, %v9527_v19  ;;  %v1911_v9 = vor.u32 %v1909_v57, %v1908_v54  ;;  %v4543_v51 = vor.u32 %v4541_v18, %v4540_v60  ;;  %v5163_v62 = vmul.bf16 %v5130_v32, %v9528_v41  ;;  %v4936_v52 = vld [vmem:[#allocation2 + $0x1c] sm:$0xf]  ;;  %v3934_v57 = vld [vmem:[#allocation2 + $0x24] sm:$0xf]  ;;  %v4937_v50 = vld [vmem:[#allocation2 + $0x20] sm:$0xf] }
 0x171   : > { %v1903_v2 = vsel %vm6876_vm9, %v1895_v25, %v1902_v3  ;;  %v5161_v46 = vmul.bf16 %v5128_v4, %v6880_v29  ;;  %v4552_v1 = vor.u32 %v4550_v20, %v8243_v56  ;;  %v5164_v14 = vmul.bf16 %v5131_v61, %v6902_v55  ;;  %v8259_v29 = vpop.permute.xlu0 %3611  ;;  %v9531_v60 = vld [vmem:[#allocation6_spill] sm:$0xff]  ;;  %v8280_v54 = vpop.permute.xlu1 %3613  ;;  %v9532_v19 = vld [vmem:[#allocation7_spill] sm:$0xff] }
 0x172   : > { %1975 = vst.msk [vmem:[#allocation3 + $0x78] sm:$0xf] %vm243_vm0, %v1903_v2  ;;  %v5204_v31 = vshll.u32 %v5162_v0, 16  ;;  %v5208_v43 = vshrl.u32 %v5162_v0, 16  ;;  %v1912_v8 = vsel %vm6876_vm9, %v1904_v35, %v1911_v9  ;;  %v4544_v38 = vsel %vm6876_vm9, %v4536_v44, %v4543_v51  ;;  %v3935_v35 = vld [vmem:[#allocation2 + $0x28] sm:$0xf] }
 0x173   : > { %2168 = vst.msk [vmem:[#allocation3 + $0x78] sm:$0xf] %vm2137_vm6, %v9529_v5  ;;  %v5214_v10 = vshll.u32 %v5163_v62, 16  ;;  %v5195_v25 = vshrl.u32 %v5161_v46, 16  ;;  %v4553_v55 = vsel %vm6876_vm9, %v4545_v23, %v4552_v1  ;;  %4810 = vrot.lane.b32.xlu1 %v4544_v38, %s6711_s29  ;;  %v5198_v59 = vshll.u32 %v5161_v46, 16 }
 0x174   : > { %3247 = vst.msk [vmem:[#allocation3 + $0x78] sm:$0xf] %vm3216_vm15, %v8216_v36  ;;  %v5206_v49 = vrot.slane %v5204_v31, 5  ;;  %v5210_v24 = vrot.slane %v5208_v43, 4  ;;  %4812 = vrot.lane.b32.xlu0 %v4553_v55, %s6711_s29  ;;  %v4935_v36 = vld [vmem:[#allocation2 + $0x18] sm:$0xf]  ;;  %v8271_v39 = vmul.bf16 %v5132_v40, %v6929_v33  ;;  %v3967_v22 = vmul.bf16 %v3934_v57, %v9531_v60 }
 0x175   : > { %1976 = vst.msk [vmem:[#allocation3 + $0x7c] sm:$0xf] %vm243_vm0, %v1912_v8  ;;  %v5216_v30 = vrot.slane %v5214_v10, 5  ;;  %v5197_v58 = vrot.slane %v5195_v25, 4  ;;  %v5224_v45 = vshll.u32 %v5164_v14, 16  ;;  %v5200_v34 = vrot.slane %v5198_v59, 5  ;;  %v8278_v32 = vpop.permute.xlu0 %3615  ;;  %v8295_v40 = vpop.permute.xlu1 %3617 }
 0x176   : > { %2169 = vst.msk [vmem:[#allocation3 + $0x7c] sm:$0xf] %vm2137_vm6, %v9530_v12  ;;  %v5211_v48 = vor.u32 %v5210_v24, %v5206_v49  ;;  %v5228_v21 = vshrl.u32 %v5164_v14, 16  ;;  %v5218_v63 = vshrl.u32 %v5163_v62, 16  ;;  %v5234_v33 = vshll.u32 %v8271_v39, 16  ;;  %v9533_v31 = vld [vmem:[#allocation8_spill] sm:$0xff] }
 0x177   : > { %3248 = vst.msk [vmem:[#allocation3 + $0x7c] sm:$0xf] %vm3216_vm15, %v3183_v6  ;;  %v5226_v13 = vrot.slane %v5224_v45, 5  ;;  %4999 = vrot.lane.b32.xlu1 %v4935_v36, %s6712_s30  ;;  %v5201_v44 = vor.u32 %v5200_v34, %v5197_v58  ;;  %v4938_v6 = vld [vmem:[#allocation2 + $0x24] sm:$0xf]  ;;  %v4039_v23 = vshrl.u32 %v8107_v47, 16  ;;  %v3968_v0 = vmul.bf16 %v3935_v35, %v9532_v19 }
 0x178   : > { %v5230_v4 = vrot.slane %v5228_v21, 4  ;;  %v5220_v3 = vrot.slane %v5218_v63, 4  ;;  %5001 = vrot.lane.b32.xlu0 %v4936_v52, %s6712_s30  ;;  %v5212_v16 = vrot.slane %v5211_v48, 4  ;;  %v3936_v2 = vld [vmem:[#allocation2 + $0x2c] sm:$0xf]  ;;  %v8288_v51 = vrot.slane %v5234_v33, 5 }
 0x179   : > { %v5202_v20 = vrot.slane %v5201_v44, 4  ;;  %v4045_v62 = vshll.u32 %v3967_v22, 16  ;;  %v4049_v1 = vshrl.u32 %v3967_v22, 16  ;;  %v3969_v47 = vmul.bf16 %v3936_v2, %v9533_v31  ;;  %v8293_v43 = vpop.permute.xlu0 %3619  ;;  %v4453_v55 = vld [vmem:[#allocation2 + $0x28] sm:$0xf]  ;;  %v9534_v48 = vld [vmem:[#allocation36_spill] sm:$0xff]  ;;  %v3622_v44 = vpop.permute.xlu1 %3621 }
 0x17a   : > { %v5231_v18 = vor.u32 %v5230_v4, %v5226_v13  ;;  %v5221_v61 = vor.u32 %v5220_v3, %v5216_v30  ;;  %v5217_v46 = vsel %vm6912_vm10, %v5212_v16, %v5216_v30  ;;  %v4041_v14 = vrot.slane %v4039_v23, 4  ;;  %v4454_v12 = vld [vmem:[#allocation2 + $0x2c] sm:$0xf]  ;;  %v3937_v36 = vld [vmem:[#allocation2 + $0x30] sm:$0xf]  ;;  %v9535_v63 = vld [vmem:[#allocation39_spill] sm:$0xff] }
 0x17b   : > { %5003 = vrot.lane.b32.xlu1 %v4937_v50, %s6712_s30  ;;  %v5207_v9 = vsel %vm6912_vm10, %v5202_v20, %v5206_v49  ;;  %v4055_v8 = vshll.u32 %v3968_v0, 16  ;;  %v4059_v38 = vshrl.u32 %v3968_v0, 16  ;;  %v8301_v25 = vrot.slane %v4045_v62, 5  ;;  %v3740_v21 = vld [vmem:[#allocation2 + $0x20] sm:$0xf]  ;;  %v9536_v50 = vld [vmem:[#allocation9_spill] sm:$0xff] }
 0x17c   : > { %5005 = vrot.lane.b32.xlu0 %v4938_v6, %s6712_s30  ;;  %v5222_v41 = vrot.slane %v5221_v61, 4  ;;  %v5232_v5 = vrot.slane %v5231_v18, 4  ;;  %v4051_v49 = vrot.slane %v4049_v1, 4  ;;  %v4065_v24 = vshll.u32 %v3969_v47, 16  ;;  %v3741_v4 = vld [vmem:[#allocation2 + $0x24] sm:$0xf] }
 0x17d   : > { %v4069_v59 = vshrl.u32 %v3969_v47, 16  ;;  %v4042_v30 = vor.u32 %v4041_v14, %v8129_v53  ;;  %v4057_v58 = vrot.slane %v4055_v8, 5  ;;  %v4061_v45 = vrot.slane %v4059_v38, 4  ;;  %v4455_v22 = vld [vmem:[#allocation2 + $0x30] sm:$0xf]  ;;  %v9537_v23 = vld [vmem:[#allocation40_spill] sm:$0xff] }
 0x17e   : > { %v5227_v10 = vsel %vm6912_vm10, %v5222_v41, %v5226_v13  ;;  %v5237_v52 = vsel %vm6912_vm10, %v5232_v5, %v8288_v51  ;;  %v4486_v34 = vmul.bf16 %v4453_v55, %v9534_v48  ;;  %v4487_v57 = vmul.bf16 %v4454_v12, %v9535_v63  ;;  %v3624_v13 = vpop.permute.xlu0 %3623  ;;  %v4456_v6 = vld [vmem:[#allocation2 + $0x34] sm:$0xf]  ;;  %v3742_v61 = vld [vmem:[#allocation2 + $0x28] sm:$0xf] }
 0x17f   : > { %5518 = vrot.lane.b32.xlu1 %v5207_v9, %s6713_s6  ;;  %v4052_v3 = vor.u32 %v4051_v49, %v8301_v25  ;;  %v8313_v33 = vmul.bf16 %v3937_v36, %v9536_v50  ;;  %v8315_v53 = vrot.slane %v4065_v24, 5  ;;  %v4071_v35 = vrot.slane %v4069_v59, 4  ;;  %v3743_v9 = vld [vmem:[#allocation2 + $0x2c] sm:$0xf]  ;;  %v9538_v5 = vld [vmem:[#allocation42_spill] sm:$0xff] }
 0x180   : > { %5520 = vrot.lane.b32.xlu0 %v5217_v46, %s6713_s6  ;;  %v4043_v16 = vrot.slane %v4042_v30, 4  ;;  %v4062_v20 = vor.u32 %v4061_v45, %v4057_v58  ;;  %v4556_v18 = vshrl.u32 %v4486_v34, 16  ;;  %v4565_v2 = vshrl.u32 %v4487_v57, 16  ;;  %v5133_v59 = vld [vmem:[#allocation2 + $0x2c] sm:$0xf] }
 0x181   : > { %v4488_v0 = vmul.bf16 %v4455_v22, %v9537_v23  ;;  %v4053_v41 = vrot.slane %v4052_v3, 4  ;;  %v4072_v62 = vor.u32 %v4071_v35, %v8315_v53  ;;  %v4075_v46 = vshll.u32 %v8313_v33, 16  ;;  %v5136_v23 = vld [vmem:[#allocation2 + $0x38] sm:$0xf] }
 0x182   : > { %v4489_v1 = vmul.bf16 %v4456_v6, %v9538_v5  ;;  %v4048_v8 = vsel %vm6912_vm10, %v4043_v16, %v8301_v25  ;;  %v4063_v38 = vrot.slane %v4062_v20, 4  ;;  %v4559_v55 = vshll.u32 %v4486_v34, 16  ;;  %v4939_v5 = vld [vmem:[#allocation2 + $0x28] sm:$0xf] }
 0x183   : > { %5522 = vrot.lane.b32.xlu1 %v5227_v10, %s6713_s6  ;;  %v4558_v10 = vrot.slane %v4556_v18, 7  ;;  %v4568_v49 = vshll.u32 %v4487_v57, 16  ;;  %v4574_v24 = vshrl.u32 %v4488_v0, 16  ;;  %vm3703_vm6 = vcmask 126048  }
 0x184   : > { %5524 = vrot.lane.b32.xlu0 %v5237_v52, %s6713_s6  ;;  %v4567_v52 = vrot.slane %v4565_v2, 7  ;;  %v4058_v12 = vsel %vm6912_vm10, %v4053_v41, %v4057_v58  ;;  %v4073_v36 = vrot.slane %v4072_v62, 4  ;;  %v8330_v30 = vrot.slane %v4075_v46, 5  ;;  %3704 = vst.msk [vmem:[#allocation3] sm:$0xf] %vm3703_vm6, %v8233_v37 }
 0x185   : > { %v3626_v14 = vpop.permute.xlu1 %3625  ;;  %v4583_v45 = vshrl.u32 %v4489_v1, 16  ;;  %3706 = vst.msk [vmem:[#allocation3 + $0x8] sm:$0xf] %vm3703_vm6, %v8259_v29  ;;  %3705 = vst.msk [vmem:[#allocation3 + $0x4] sm:$0xf] %vm3703_vm6, %v8261_v11  ;;  %v4068_v37 = vsel %vm6912_vm10, %v4063_v38, %v8315_v53  ;;  %v4554_v29 = vrot.slane %v8243_v56, 4  ;;  %v4561_v11 = vor.u32 %v4559_v55, %v4558_v10 }
 0x186   : > { %v3628_v47 = vpop.permute.xlu0 %3627  ;;  %3708 = vst.msk [vmem:[#allocation3 + $0x10] sm:$0xf] %vm3703_vm6, %v8278_v32  ;;  %3707 = vst.msk [vmem:[#allocation3 + $0xc] sm:$0xf] %vm3703_vm6, %v8280_v54  ;;  %v5166_v32 = vmul.bf16 %v5133_v59, %v9531_v60  ;;  %v4563_v54 = vrot.slane %v4558_v10, 4  ;;  %v4577_v25 = vshll.u32 %v4488_v0, 16 }
 0x187   : > { %3808 = vrot.lane.b32.xlu1 %v3740_v21, %s6709_s27  ;;  %3710 = vst.msk [vmem:[#allocation3 + $0x18] sm:$0xf] %vm3703_vm6, %v8293_v43  ;;  %3709 = vst.msk [vmem:[#allocation3 + $0x14] sm:$0xf] %vm3703_vm6, %v8295_v40  ;;  %v4570_v43 = vor.u32 %v4568_v49, %v4567_v52  ;;  %v4576_v40 = vrot.slane %v4574_v24, 7  ;;  %v4078_v21 = vsel %vm6912_vm10, %v4073_v36, %v8330_v30  ;;  %v8360_v63 = vrot.slane %v4583_v45, 7 }
 0x188   : > { %3810 = vrot.lane.b32.xlu0 %v3741_v4, %s6709_s27  ;;  %3712 = vst.msk [vmem:[#allocation3 + $0x20] sm:$0xf] %vm3703_vm6, %v3624_v13  ;;  %3711 = vst.msk [vmem:[#allocation3 + $0x1c] sm:$0xf] %vm3703_vm6, %v3622_v44  ;;  %v5134_v58 = vld [vmem:[#allocation2 + $0x30] sm:$0xf]  ;;  %v4562_v60 = vsel %vm6876_vm9, %v4554_v29, %v4561_v11 }
 0x189   : > { %3714 = vst.msk [vmem:[#allocation3 + $0x28] sm:$0xf] %vm3703_vm6, %v3628_v47  ;;  %3713 = vst.msk [vmem:[#allocation3 + $0x24] sm:$0xf] %vm3703_vm6, %v3626_v14  ;;  %v4586_v57 = vshll.u32 %v4489_v1, 16  ;;  %v4572_v13 = vrot.slane %v4567_v52, 4  ;;  %v5167_v44 = vmul.bf16 %v5134_v58, %v9532_v19  ;;  %v4571_v4 = vsel %vm6876_vm9, %v4563_v54, %v4570_v43 }
 0x18a   : > { %v5135_v56 = vld [vmem:[#allocation2 + $0x34] sm:$0xf]  ;;  %v4579_v3 = vor.u32 %v4577_v25, %v4576_v40  ;;  %v5244_v53 = vshll.u32 %v5166_v32, 16  ;;  %v5238_v35 = vshrl.u32 %v8271_v39, 16  ;;  %v4581_v22 = vrot.slane %v4576_v40, 4  ;;  %v9540_v58 = vld [vmem:[#allocation11_spill] sm:$0xff] }
 0x18b   : > { %3812 = vrot.lane.b32.xlu1 %v3742_v61, %s6709_s27  ;;  %v4588_v6 = vor.u32 %v4586_v57, %v8360_v63  ;;  %v5248_v16 = vshrl.u32 %v5166_v32, 16  ;;  %v5168_v20 = vmul.bf16 %v5135_v56, %v9533_v31  ;;  %v5254_v18 = vshll.u32 %v5167_v44, 16  ;;  %v4940_v38 = vld [vmem:[#allocation2 + $0x2c] sm:$0xf]  ;;  %v3938_v49 = vld [vmem:[#allocation2 + $0x34] sm:$0xf] }
 0x18c   : > { %3814 = vrot.lane.b32.xlu0 %v3743_v9, %s6709_s27  ;;  %v4580_v19 = vsel %vm6876_vm9, %v4572_v13, %v4579_v3  ;;  %v5246_v61 = vrot.slane %v5244_v53, 5  ;;  %v5240_v2 = vrot.slane %v5238_v35, 4  ;;  %v5258_v0 = vshrl.u32 %v5167_v44, 16  ;;  %v4941_v24 = vld [vmem:[#allocation2 + $0x30] sm:$0xf] }
 0x18d   : > { %v4589_v39 = vsel %vm6876_vm9, %v4581_v22, %v4588_v6  ;;  %v5250_v9 = vrot.slane %v5248_v16, 4  ;;  %v5264_v41 = vshll.u32 %v5168_v20, 16  ;;  %v5268_v62 = vshrl.u32 %v5168_v20, 16  ;;  %v4942_v45 = vld [vmem:[#allocation2 + $0x34] sm:$0xf] }
 0x18e   : > { %v8382_v31 = vmul.bf16 %v5136_v23, %v9536_v50  ;;  %v5256_v1 = vrot.slane %v5254_v18, 5  ;;  %v5241_v47 = vor.u32 %v5240_v2, %v8288_v51  ;;  %v5260_v14 = vrot.slane %v5258_v0, 4  ;;  %v3939_v11 = vld [vmem:[#allocation2 + $0x38] sm:$0xf]  ;;  %v3940_v32 = vld [vmem:[#allocation2 + $0x3c] sm:$0xf] }
 0x18f   : > { %4327 = vrot.lane.b32.xlu1 %v4048_v8, %s6710_s28  ;;  %v5251_v10 = vor.u32 %v5250_v9, %v5246_v61  ;;  %v5266_v55 = vrot.slane %v5264_v41, 5  ;;  %v5270_v52 = vrot.slane %v5268_v62, 4  ;;  %v4079_v43 = vshrl.u32 %v8313_v33, 16  ;;  %v4457_v22 = vld [vmem:[#allocation2 + $0x38] sm:$0xf] }
 0x190   : > { %4329 = vrot.lane.b32.xlu0 %v4058_v12, %s6710_s28  ;;  %v5274_v50 = vshll.u32 %v8382_v31, 16  ;;  %v5242_v59 = vrot.slane %v5241_v47, 4  ;;  %v5261_v51 = vor.u32 %v5260_v14, %v5256_v1  ;;  %v9539_v12 = vld [vmem:[#allocation10_spill] sm:$0xff]  ;;  %v9542_v0 = vld [vmem:[#allocation43_spill] sm:$0xff]  ;;  %vm5835_vm2 = vcmask 1041408  }
 0x191   : > { %v3632_v48 = vpop.permute.xlu0 %3631  ;;  %v3630_v34 = vpop.permute.xlu1 %3629  ;;  %v3971_v36 = vmul.bf16 %v3938_v49, %v9539_v12  ;;  %v5271_v29 = vor.u32 %v5270_v52, %v5266_v55  ;;  %v4081_v44 = vrot.slane %v4079_v43, 4  ;;  %v3744_v41 = vld [vmem:[#allocation2 + $0x30] sm:$0xf]  ;;  %v3745_v47 = vld [vmem:[#allocation2 + $0x34] sm:$0xf]  ;;  %vm4415_vm3 = vcmask 191648  }
 0x192   : > { %3716 = vst.msk [vmem:[#allocation3 + $0x30] sm:$0xf] %vm3703_vm6, %v3632_v48  ;;  %3715 = vst.msk [vmem:[#allocation3 + $0x2c] sm:$0xf] %vm3703_vm6, %v3630_v34  ;;  %v8393_v54 = vrot.slane %v5274_v50, 5  ;;  %v5247_v40 = vsel %vm6912_vm10, %v5242_v59, %v5246_v61  ;;  %v5262_v25 = vrot.slane %v5261_v51, 4  ;;  %v3972_v48 = vmul.bf16 %v3939_v11, %v9540_v58 }
 0x193   : > { %4331 = vrot.lane.b32.xlu1 %v4068_v37, %s6710_s28  ;;  %v5252_v37 = vrot.slane %v5251_v10, 4  ;;  %v4085_v34 = vshll.u32 %v3971_v36, 16  ;;  %v5272_v57 = vrot.slane %v5271_v29, 4  ;;  %v4089_v56 = vshrl.u32 %v3971_v36, 16  ;;  %v3941_v61 = vld [vmem:[#allocation2 + $0x40] sm:$0xf] }
 0x194   : > { %4333 = vrot.lane.b32.xlu0 %v4078_v21, %s6710_s28  ;;  %v4095_v53 = vshll.u32 %v3972_v48, 16  ;;  %v4099_v35 = vshrl.u32 %v3972_v48, 16  ;;  %v4082_v23 = vor.u32 %v4081_v44, %v8330_v30  ;;  %v4460_v52 = vld [vmem:[#allocation2 + $0x44] sm:$0xf]  ;;  %v3746_v51 = vld [vmem:[#allocation2 + $0x38] sm:$0xf] }
 0x195   : > { %v5257_v21 = vsel %vm6912_vm10, %v5252_v37, %v5256_v1  ;;  %v8407_v3 = vrot.slane %v4085_v34, 5  ;;  %v5277_v6 = vsel %vm6912_vm10, %v5272_v57, %v8393_v54  ;;  %v4091_v16 = vrot.slane %v4089_v56, 4  ;;  %v9545_v37 = vld [vmem:[#allocation45_spill] sm:$0xff]  ;;  %v3747_v11 = vld [vmem:[#allocation2 + $0x3c] sm:$0xf] }
 0x196   : > { %v4097_v62 = vrot.slane %v4095_v53, 5  ;;  %v4083_v50 = vrot.slane %v4082_v23, 4  ;;  %vm4902_vm4 = vcmask 224448   ;;  %vm5095_vm5 = vcmask 257248  }
 0x197   : > { %4814 = vrot.lane.b32.xlu1 %v4562_v60, %s6711_s29  ;;  %v9541_v60 = vld [vmem:[#allocation12_spill] sm:$0xff]  ;;  %v4092_v14 = vor.u32 %v4091_v16, %v8407_v3  ;;  %vm5614_vm7 = vcmask 290048   ;;  %vm5786_vm8 = vcmask 293888  }
 0x198   : > { %4816 = vrot.lane.b32.xlu0 %v4571_v4, %s6711_s29  ;;  %v3973_v13 = vmul.bf16 %v3940_v32, %v9541_v60  ;;  %v5267_v4 = vsel %vm6912_vm10, %v5262_v25, %v5266_v55  ;;  %v4459_v55 = vld [vmem:[#allocation2 + $0x40] sm:$0xf]  ;;  %v9546_v25 = vld [vmem:[#allocation46_spill] sm:$0xff] }
 0x199   : > { %v4492_v29 = vmul.bf16 %v4459_v55, %v9545_v37  ;;  %v4093_v32 = vrot.slane %v4092_v14, 4  ;;  %v4493_v48 = vmul.bf16 %v4460_v52, %v9546_v25  ;;  %v5140_v37 = vld [vmem:[#allocation2 + $0x48] sm:$0xf]  ;;  %v4943_v25 = vld [vmem:[#allocation2 + $0x38] sm:$0xf] }
 0x19a   : > { %v4105_v20 = vshll.u32 %v3973_v13, 16  ;;  %v4109_v18 = vshrl.u32 %v3973_v13, 16  ;;  %v6674_v13 = vld [vmem:[%s9329_s1 + $0x10] ss:$0 sps:$4 sm:$0x33]  }
 0x19b   : > { %4818 = vrot.lane.b32.xlu1 %v4580_v19, %s6711_s29  ;;  %v4458_v19 = vld [vmem:[#allocation2 + $0x3c] sm:$0xf]  ;;  %v4610_v53 = vshrl.u32 %v4492_v29, 16  ;;  %v4619_v16 = vshrl.u32 %v4493_v48, 16  ;;  %6651 = vmatprep.subr.msk.bf16.mxu0 %vm5835_vm2, %v6674_v13  ;;  %v5837_v23 = vsel %vm5835_vm2, %v6674_v13, 0 }
 0x19c   : > { %v3636_v46 = vpop.permute.xlu0 %3635  ;;  %4820 = vrot.lane.b32.xlu0 %v4589_v39, %s6711_s29  ;;  %v4490_v39 = vmul.bf16 %v4457_v22, %v9542_v0  ;;  %v4111_v10 = vrot.slane %v4109_v18, 4  ;;  %v4098_v22 = vsel %vm6912_vm10, %v4093_v32, %v4097_v62  ;;  %v4590_v18 = vrot.slane %v8360_v63, 4  ;;  %6608 = vmatpush3.bf16.msra.mxu0 %v5837_v23 }
 0x19d   : > { %3718 = vst.msk [vmem:[#allocation3 + $0x38] sm:$0xf] %vm3703_vm6, %v3636_v46  ;;  %v3634_v8 = vpop.permute.xlu1 %3633  ;;  %v4101_v46 = vrot.slane %v4099_v35, 4  ;;  %v5137_v35 = vld [vmem:[#allocation2 + $0x3c] sm:$0xf]  ;;  %6652 = vmatprep.subr.msk.bf16.mxu1 %vm5835_vm2, %v6674_v13 }
 0x19e   : > { %3717 = vst.msk [vmem:[#allocation3 + $0x34] sm:$0xf] %vm3703_vm6, %v3634_v8  ;;  %v9544_v8 = vld [vmem:[#allocation13_spill] sm:$0xff]  ;;  %v4595_v56 = vshll.u32 %v4490_v39, 16  ;;  %6648 = vmatpush3.bf16.msra.mxu1 %v5837_v23  ;;  %v9548_v23 = vld [vmem:[#allocation15_spill] sm:$0xff] }
 0x19f   : > { %5007 = vrot.lane.b32.xlu1 %v4939_v5, %s6712_s30  ;;  %v9543_v5 = vld [vmem:[#allocation44_spill] sm:$0xff]  ;;  %v8422_v30 = vmul.bf16 %v3941_v61, %v9544_v8  ;;  %v4102_v36 = vor.u32 %v4101_v46, %v4097_v62  ;;  %v8458_v62 = vrot.slane %v4619_v16, 7 }
 0x1a0   : > { %5009 = vrot.lane.b32.xlu0 %v4940_v38, %s6712_s30  ;;  %v4491_v1 = vmul.bf16 %v4458_v19, %v9543_v5  ;;  %v4107_v38 = vrot.slane %v4105_v20, 5  ;;  %v6675_v20 = vld [vmem:[%s9329_s1 + $0x8] sm:$0xff]   ;;  %v5138_v46 = vld [vmem:[#allocation2 + $0x40] sm:$0xf] }
 0x1a1   : > { %v4103_v44 = vrot.slane %v4102_v36, 4  ;;  %6609 = vmatprep.subr.bf16.mxu0 %v6675_v20  ;;  %v6676_v5 = vld [vmem:[%s9329_s1] sm:$0xff]   ;;  %6646 = vmatprep.subr.bf16.mxu1 %v6675_v20  ;;  %v5171_v52 = vmul.bf16 %v5138_v46, %v9540_v58 }
 0x1a2   : > { %v4112_v43 = vor.u32 %v4111_v10, %v4107_v38  ;;  %6610 = vmatpush3.bf16.msra.mxu0 %v6675_v20  ;;  %6649 = vmatpush3.bf16.msra.mxu1 %v6675_v20  ;;  %v4946_v20 = vld [vmem:[#allocation2 + $0x44] sm:$0xf] }
 0x1a3   : > { %5011 = vrot.lane.b32.xlu1 %v4941_v24, %s6712_s30  ;;  %v4592_v24 = vshrl.u32 %v4490_v39, 16  ;;  %v4108_v0 = vsel %vm6912_vm10, %v4103_v44, %v4107_v38  ;;  %6611 = vmatprep.subr.bf16.mxu0 %v6676_v5 }
 0x1a4   : > { %5013 = vrot.lane.b32.xlu0 %v4942_v45, %s6712_s30  ;;  %v4601_v45 = vshrl.u32 %v4491_v1, 16  ;;  %6647 = vmatprep.subr.bf16.mxu1 %v6676_v5 }
 0x1a5   : > { %v4594_v57 = vrot.slane %v4592_v24, 7 }
 0x1a6   : > { %6612 = vmatpush3.bf16.msra.mxu0 %v6676_v5  ;;  %6650 = vmatpush3.bf16.msra.mxu1 %v6676_v5 }
 0x1a7   : > { %5526 = vrot.lane.b32.xlu1 %v5247_v40, %s6713_s6  ;;  %v4115_v40 = vshll.u32 %v8422_v30, 16  ;;  %v4599_v19 = vrot.slane %v4594_v57, 4  ;;  %v4597_v61 = vor.u32 %v4595_v56, %v4594_v57  ;;  %v4944_v57 = vld [vmem:[#allocation2 + $0x3c] sm:$0xf] }
 0x1a8   : > { %v3640_v33 = vpop.permute.xlu0 %3639  ;;  %5528 = vrot.lane.b32.xlu0 %v5257_v21, %s6713_s6  ;;  %v4088_v21 = vsel %vm6912_vm10, %v4083_v50, %v8407_v3 }
 0x1a9   : > { %3720 = vst.msk [vmem:[#allocation3 + $0x40] sm:$0xf] %vm3703_vm6, %v3640_v33  ;;  %v4603_v33 = vrot.slane %v4601_v45, 7  ;;  %v8442_v3 = vrot.slane %v4115_v40, 5  ;;  %v5294_v45 = vshll.u32 %v5171_v52, 16  ;;  %v8482_v40 = vmul.bf16 %v5140_v37, %v9544_v8  ;;  %v9550_v37 = vld [vmem:[#allocation47_spill] sm:$0xff] }
 0x1aa   : > { %v4945_v8 = vld [vmem:[#allocation2 + $0x40] sm:$0xf] }
 0x1ab   : > { %v3638_v2 = vpop.permute.xlu1 %3637  ;;  %5530 = vrot.lane.b32.xlu1 %v5267_v4, %s6713_s6  ;;  %v4604_v4 = vshll.u32 %v4491_v1, 16  ;;  %v5139_v1 = vld [vmem:[#allocation2 + $0x44] sm:$0xf]  ;;  %v4608_v14 = vrot.slane %v4603_v33, 4 }
 0x1ac   : > { %3719 = vst.msk [vmem:[#allocation3 + $0x3c] sm:$0xf] %vm3703_vm6, %v3638_v2  ;;  %v3803_v9 = vpop.permute.xlu0 %3802  ;;  %5532 = vrot.lane.b32.xlu0 %v5277_v6, %s6713_s6  ;;  %v4113_v6 = vrot.slane %v4112_v43, 4  ;;  %v5170_v2 = vmul.bf16 %v5137_v35, %v9539_v12  ;;  %v4622_v12 = vshll.u32 %v4493_v48, 16  ;;  %v5296_v48 = vrot.slane %v5294_v45, 5 }
 0x1ad   : > { %3898 = vst.msk [vmem:[#allocation3 + $0x4] sm:$0xf] %vm3896_vm1, %v3803_v9  ;;  %v4606_v39 = vor.u32 %v4604_v4, %v4603_v33  ;;  %v4612_v9 = vrot.slane %v4610_v53, 7  ;;  %v3942_v33 = vld [vmem:[#allocation2 + $0x44] sm:$0xf]  ;;  %v5314_v4 = vshll.u32 %v8482_v40, 16 }
 0x1ae   : > { %v4118_v63 = vsel %vm6912_vm10, %v4113_v6, %v8442_v3  ;;  %v5284_v38 = vshll.u32 %v5170_v2, 16  ;;  %v4624_v24 = vor.u32 %v4622_v12, %v8458_v62  ;;  %v9547_v6 = vld [vmem:[#allocation14_spill] sm:$0xff] }
 0x1af   : > { %v3801_v49 = vpop.permute.xlu1 %3800  ;;  %3816 = vrot.lane.b32.xlu1 %v3744_v41, %s6709_s27  ;;  %v4613_v41 = vshll.u32 %v4492_v29, 16  ;;  %v4607_v10 = vsel %vm6876_vm9, %v4599_v19, %v4606_v39  ;;  %v4617_v50 = vrot.slane %v4612_v9, 4  ;;  %v5298_v29 = vshrl.u32 %v5171_v52, 16  ;;  %v3944_v19 = vld [vmem:[#allocation2 + $0x4c] sm:$0xf] }
 0x1b0   : > { %3897 = vst.msk [vmem:[#allocation3] sm:$0xf] %vm3896_vm1, %v3801_v49  ;;  %v3807_v59 = vpop.permute.xlu0 %3806  ;;  %3818 = vrot.lane.b32.xlu0 %v3745_v47, %s6709_s27  ;;  %v4598_v47 = vsel %vm6876_vm9, %v4590_v18, %v4597_v61  ;;  %v5278_v49 = vshrl.u32 %v8382_v31, 16  ;;  %v5286_v36 = vrot.slane %v5284_v38, 5  ;;  %v3975_v16 = vmul.bf16 %v3942_v33, %v9547_v6 }
 0x1b1   : > { %3900 = vst.msk [vmem:[#allocation3 + $0xc] sm:$0xf] %vm3896_vm1, %v3807_v59  ;;  %v4615_v55 = vor.u32 %v4613_v41, %v4612_v9  ;;  %v5288_v59 = vshrl.u32 %v5170_v2, 16  ;;  %v8491_v61 = vrot.slane %v5314_v4, 5 }
 0x1b2   : > { %v5280_v31 = vrot.slane %v5278_v49, 4  ;;  %v4125_v41 = vshll.u32 %v3975_v16, 16  ;;  %v4129_v5 = vshrl.u32 %v3975_v16, 16  ;;  %v4461_v49 = vld [vmem:[#allocation2 + $0x48] sm:$0xf]  ;;  %v9553_v16 = vld [vmem:[#allocation51_spill] sm:$0xff] }
 0x1b3   : > { %v3805_v34 = vpop.permute.xlu1 %3804  ;;  %3820 = vrot.lane.b32.xlu1 %v3746_v51, %s6709_s27  ;;  %v5172_v51 = vmul.bf16 %v5139_v1, %v9541_v60  ;;  %v4616_v58 = vsel %vm6876_vm9, %v4608_v14, %v4615_v55  ;;  %v5290_v60 = vrot.slane %v5288_v59, 4  ;;  %v9549_v1 = vld [vmem:[#allocation16_spill] sm:$0xff]  ;;  %v3945_v59 = vld [vmem:[#allocation2 + $0x50] sm:$0xf] }
 0x1b4   : > { %3899 = vst.msk [vmem:[#allocation3 + $0x8] sm:$0xf] %vm3896_vm1, %v3805_v34  ;;  %3822 = vrot.lane.b32.xlu0 %v3747_v11, %s6709_s27  ;;  %v4625_v11 = vsel %vm6876_vm9, %v4617_v50, %v4624_v24  ;;  %v5281_v34 = vor.u32 %v5280_v31, %v8393_v54  ;;  %v4131_v24 = vrot.slane %v4129_v5, 4 }
 0x1b5   : > { %v5304_v32 = vshll.u32 %v5172_v51, 16  ;;  %v5308_v43 = vshrl.u32 %v5172_v51, 16  ;;  %v5291_v56 = vor.u32 %v5290_v60, %v5286_v36  ;;  %v3748_v60 = vld [vmem:[#allocation2 + $0x40] sm:$0xf] }
 0x1b6   : > { %v5282_v53 = vrot.slane %v5281_v34, 4 }
 0x1b7   : > { %4335 = vrot.lane.b32.xlu1 %v4088_v21, %s6710_s28  ;;  %v5300_v21 = vrot.slane %v5298_v29, 4  ;;  %v5306_v13 = vrot.slane %v5304_v32, 5  ;;  %v5310_v44 = vrot.slane %v5308_v43, 4  ;;  %v5292_v54 = vrot.slane %v5291_v56, 4  ;;  %v9551_v43 = vld [vmem:[#allocation17_spill] sm:$0xff] }
 0x1b8   : > { %4337 = vrot.lane.b32.xlu0 %v4098_v22, %s6710_s28  ;;  %v3943_v22 = vld [vmem:[#allocation2 + $0x48] sm:$0xf]  ;;  %v5287_v39 = vsel %vm6912_vm10, %v5282_v53, %v5286_v36  ;;  %v4494_v29 = vmul.bf16 %v4461_v49, %v9550_v37  ;;  %v5141_v49 = vld [vmem:[#allocation2 + $0x4c] sm:$0xf] }
 0x1b9   : > { %v5301_v35 = vor.u32 %v5300_v21, %v5296_v48  ;;  %v5311_v18 = vor.u32 %v5310_v44, %v5306_v13  ;;  %v5297_v12 = vsel %vm6912_vm10, %v5292_v54, %v5296_v48  ;;  %v4464_v44 = vld [vmem:[#allocation2 + $0x54] sm:$0xf]  ;;  %v9554_v54 = vld [vmem:[#allocation53_spill] sm:$0xff] }
 0x1bb   : > { %4339 = vrot.lane.b32.xlu1 %v4108_v0, %s6710_s28  ;;  %v3976_v0 = vmul.bf16 %v3943_v22, %v9548_v23  ;;  %v5302_v9 = vrot.slane %v5301_v35, 4  ;;  %v5312_v46 = vrot.slane %v5311_v18, 4  ;;  %v4497_v18 = vmul.bf16 %v4464_v44, %v9554_v54 }
 0x1bc   : > { %4341 = vrot.lane.b32.xlu0 %v4118_v63, %s6710_s28  ;;  %v4119_v63 = vshrl.u32 %v8422_v30, 16  ;;  %v4127_v30 = vrot.slane %v4125_v41, 5 }
 0x1bd   : > { %v4135_v38 = vshll.u32 %v3976_v0, 16  ;;  %v5307_v55 = vsel %vm6912_vm10, %v5302_v9, %v5306_v13  ;;  %v5317_v50 = vsel %vm6912_vm10, %v5312_v46, %v8491_v61  ;;  %v4463_v13 = vld [vmem:[#allocation2 + $0x50] sm:$0xf] }
 0x1be   : > { %v4121_v52 = vrot.slane %v4119_v63, 4  ;;  %v4132_v48 = vor.u32 %v4131_v24, %v4127_v30  ;;  %v4631_v63 = vshll.u32 %v4494_v29, 16 }
 0x1bf   : > { %4822 = vrot.lane.b32.xlu1 %v4598_v47, %s6711_s29  ;;  %v3977_v47 = vmul.bf16 %v3944_v19, %v9549_v1  ;;  %v4137_v45 = vrot.slane %v4135_v38, 5  ;;  %v3751_v19 = vld [vmem:[#allocation2 + $0x4c] sm:$0xf] }
 0x1c0   : > { %4824 = vrot.lane.b32.xlu0 %v4607_v10, %s6711_s29  ;;  %v4139_v10 = vshrl.u32 %v3976_v0, 16  ;;  %v4122_v32 = vor.u32 %v4121_v52, %v8442_v3  ;;  %v3750_v3 = vld [vmem:[#allocation2 + $0x48] sm:$0xf] }
 0x1c1   : > { %v4145_v51 = vshll.u32 %v3977_v47, 16  ;;  %v4149_v36 = vshrl.u32 %v3977_v47, 16  ;;  %v4655_v47 = vshrl.u32 %v4497_v18, 16 }
 0x1c2   : > { %v4141_v31 = vrot.slane %v4139_v10, 4  ;;  %v4123_v35 = vrot.slane %v4122_v32, 4 }
 0x1c3   : > { %4826 = vrot.lane.b32.xlu1 %v4616_v58, %s6711_s29  ;;  %v4462_v58 = vld [vmem:[#allocation2 + $0x4c] sm:$0xf]  ;;  %v4147_v34 = vrot.slane %v4145_v51, 5  ;;  %v4151_v21 = vrot.slane %v4149_v36, 4  ;;  %v8539_v51 = vrot.slane %v4655_v47, 7  ;;  %v4658_v36 = vshll.u32 %v4497_v18, 16 }
 0x1c4   : > { %4828 = vrot.lane.b32.xlu0 %v4625_v11, %s6711_s29  ;;  %v3749_v11 = vld [vmem:[#allocation2 + $0x44] sm:$0xf]  ;;  %v4142_v4 = vor.u32 %v4141_v31, %v4137_v45  ;;  %v5144_v18 = vld [vmem:[#allocation2 + $0x58] sm:$0xf] }
 0x1c5   : > { %v4152_v0 = vor.u32 %v4151_v21, %v4147_v34  ;;  %v8571_v47 = vmul.bf16 %v5144_v18, %v9551_v43 }
 0x1c6   : > { %v4143_v9 = vrot.slane %v4142_v4, 4 }
 0x1c7   : > { %5015 = vrot.lane.b32.xlu1 %v4943_v25, %s6712_s30  ;;  %v8515_v25 = vmul.bf16 %v3945_v59, %v9551_v43  ;;  %v4153_v10 = vrot.slane %v4152_v0, 4  ;;  %v4949_v43 = vld [vmem:[#allocation2 + $0x50] sm:$0xf] }
 0x1c8   : > { %5017 = vrot.lane.b32.xlu0 %v4944_v57, %s6712_s30  ;;  %v9552_v57 = vld [vmem:[#allocation49_spill] sm:$0xff] }
 0x1c9   : > { %v4495_v56 = vmul.bf16 %v4462_v58, %v9552_v57  ;;  %v4155_v22 = vshll.u32 %v8515_v25, 16  ;;  %v4660_v57 = vor.u32 %v4658_v36, %v8539_v51 }
 0x1cb   : > { %5019 = vrot.lane.b32.xlu1 %v4945_v8, %s6712_s30  ;;  %v4628_v8 = vshrl.u32 %v4494_v29, 16  ;;  %v8529_v46 = vrot.slane %v4155_v22, 5  ;;  %v4640_v52 = vshll.u32 %v4495_v56, 16 }
 0x1cc   : > { %5021 = vrot.lane.b32.xlu0 %v4946_v20, %s6712_s30  ;;  %v4496_v20 = vmul.bf16 %v4463_v13, %v9553_v16  ;;  %v5318_v13 = vshrl.u32 %v8482_v40, 16 }
 0x1cd   : > { %v4322_v2 = vpop.permute.xlu0 %4321  ;;  %v4630_v41 = vrot.slane %v4628_v8, 7  ;;  %v4158_v37 = vsel %vm6912_vm10, %v4153_v10, %v8529_v46  ;;  %v4948_v10 = vld [vmem:[#allocation2 + $0x4c] sm:$0xf] }
 0x1ce   : > { %4417 = vst.msk [vmem:[#allocation3 + $0x4] sm:$0xf] %vm4415_vm3, %v4322_v2  ;;  %v4133_v2 = vrot.slane %v4132_v48, 4  ;;  %v4646_v5 = vshrl.u32 %v4496_v20, 16  ;;  %v4649_v58 = vshll.u32 %v4496_v20, 16 }
 0x1cf   : > { %5534 = vrot.lane.b32.xlu1 %v5287_v39, %s6713_s6  ;;  %v4637_v39 = vshrl.u32 %v4495_v56, 16  ;;  %v4633_v24 = vor.u32 %v4631_v63, %v4630_v41  ;;  %v4635_v29 = vrot.slane %v4630_v41, 4  ;;  %v4947_v63 = vld [vmem:[#allocation2 + $0x48] sm:$0xf] }
 0x1d0   : > { %5536 = vrot.lane.b32.xlu0 %v5297_v12, %s6713_s6  ;;  %v4128_v12 = vsel %vm6912_vm10, %v4123_v35, %v4127_v30  ;;  %v4626_v30 = vrot.slane %v8458_v62, 4  ;;  %v4648_v59 = vrot.slane %v4646_v5, 7  ;;  %v5143_v62 = vld [vmem:[#allocation2 + $0x54] sm:$0xf]  ;;  %v5320_v35 = vrot.slane %v5318_v13, 4 }
 0x1d1   : > { %v4320_v14 = vpop.permute.xlu1 %4319  ;;  %v5176_v8 = vmul.bf16 %v5143_v62, %v9549_v1  ;;  %v3267_v1 = vld [vmem:[#allocation2 + $0x54] sm:$0xf] }
 0x1d2   : > { %4416 = vst.msk [vmem:[#allocation3] sm:$0xf] %vm4415_vm3, %v4320_v14  ;;  %v4138_v14 = vsel %vm6912_vm10, %v4133_v2, %v4137_v45  ;;  %v5142_v45 = vld [vmem:[#allocation2 + $0x50] sm:$0xf]  ;;  %v4634_v32 = vsel %vm6876_vm9, %v4626_v30, %v4633_v24  ;;  %v4653_v21 = vrot.slane %v4648_v59, 4  ;;  %v4651_v56 = vor.u32 %v4649_v58, %v4648_v59 }
 0x1d3   : > { %5538 = vrot.lane.b32.xlu1 %v5307_v55, %s6713_s6  ;;  %v4639_v55 = vrot.slane %v4637_v39, 7  ;;  %v5348_v2 = vshrl.u32 %v5176_v8, 16  ;;  %v3268_v39 = vld [vmem:[#allocation2 + $0x58] sm:$0xf]  ;;  %v5321_v5 = vor.u32 %v5320_v35, %v8491_v61  ;;  %v3269_v24 = vld [vmem:[#allocation2 + $0x5c] sm:$0xf] }
 0x1d4   : > { %5540 = vrot.lane.b32.xlu0 %v5317_v50, %s6713_s6  ;;  %v4148_v50 = vsel %vm6912_vm10, %v4143_v9, %v4147_v34  ;;  %v5175_v34 = vmul.bf16 %v5142_v45, %v9548_v23  ;;  %v4661_v40 = vsel %vm6876_vm9, %v4653_v21, %v4660_v57  ;;  %v9555_v9 = vld [vmem:[#allocation55_spill] sm:$0xff]  ;;  %v5354_v58 = vshll.u32 %v8571_v47, 16 }
 0x1d5   : > { %v4644_v48 = vrot.slane %v4639_v55, 4  ;;  %v3300_v41 = vmul.bf16 %v3267_v1, %v9555_v9  ;;  %v5322_v36 = vrot.slane %v5321_v5, 4  ;;  %v9558_v35 = vld [vmem:[#allocation59_spill] sm:$0xff] }
 0x1d6   : > { %v5334_v23 = vshll.u32 %v5175_v34, 16  ;;  %v5338_v22 = vshrl.u32 %v5175_v34, 16  ;;  %v9560_v5 = vld [vmem:[#allocation19_spill] sm:$0xff] }
 0x1d7   : > { %3824 = vrot.lane.b32.xlu1 %v3748_v60, %s6709_s27  ;;  %v5174_v60 = vmul.bf16 %v5141_v49, %v9547_v6  ;;  %v5350_v49 = vrot.slane %v5348_v2, 4  ;;  %v3474_v61 = vshrl.u32 %v3300_v41, 16  ;;  %v3477_v21 = vshll.u32 %v3300_v41, 16 }
 0x1d8   : > { %v4326_v33 = vpop.permute.xlu0 %4325  ;;  %3826 = vrot.lane.b32.xlu0 %v3749_v11, %s6709_s27  ;;  %v4642_v11 = vor.u32 %v4640_v52, %v4639_v55  ;;  %v4159_v2 = vshrl.u32 %v8515_v25, 16 }
 0x1d9   : > { %4419 = vst.msk [vmem:[#allocation3 + $0xc] sm:$0xf] %vm4415_vm3, %v4326_v33  ;;  %v4324_v53 = vpop.permute.xlu1 %4323  ;;  %v5324_v33 = vshll.u32 %v5174_v60, 16  ;;  %v5328_v4 = vshrl.u32 %v5174_v60, 16  ;;  %v3476_v34 = vrot.slane %v3474_v61, 7 }
 0x1da   : > { %4418 = vst.msk [vmem:[#allocation3 + $0x8] sm:$0xf] %vm4415_vm3, %v4324_v53  ;;  %v4643_v44 = vsel %vm6876_vm9, %v4635_v29, %v4642_v11  ;;  %v4652_v53 = vsel %vm6876_vm9, %v4644_v48, %v4651_v56  ;;  %v4950_v11 = vld [vmem:[#allocation2 + $0x54] sm:$0xf]  ;;  %v8586_v56 = vrot.slane %v5354_v58, 5 }
 0x1db   : > { %3828 = vrot.lane.b32.xlu1 %v3750_v3, %s6709_s27  ;;  %v5326_v20 = vrot.slane %v5324_v33, 5  ;;  %v5330_v54 = vrot.slane %v5328_v4, 4  ;;  %v3479_v1 = vor.u32 %v3477_v21, %v3476_v34 }
 0x1dc   : > { %3830 = vrot.lane.b32.xlu0 %v3751_v19, %s6709_s27  ;;  %v5344_v19 = vshll.u32 %v5176_v8, 16 }
 0x1dd   : > { %v5331_v55 = vor.u32 %v5330_v54, %v5326_v20  ;;  %v5327_v57 = vsel %vm6912_vm10, %v5322_v36, %v5326_v20 }
 0x1de   : > { %v4809_v38 = vpop.permute.xlu0 %4808  ;;  %v5346_v52 = vrot.slane %v5344_v19, 5 }
 0x1df   : > { %4904 = vst.msk [vmem:[#allocation3 + $0x4] sm:$0xf] %vm4902_vm4, %v4809_v38  ;;  %4343 = vrot.lane.b32.xlu1 %v4128_v12, %s6710_s28  ;;  %v5336_v12 = vrot.slane %v5334_v23, 5  ;;  %v5332_v60 = vrot.slane %v5331_v55, 4 }
 0x1e0   : > { %4345 = vrot.lane.b32.xlu0 %v4138_v14, %s6710_s28  ;;  %v5340_v14 = vrot.slane %v5338_v22, 4  ;;  %v5351_v62 = vor.u32 %v5350_v49, %v5346_v52  ;;  %v3472_v22 = vrot.slane %v9558_v35, 4 }
 0x1e1   : > { %v4807_v31 = vpop.permute.xlu1 %4806  ;;  %v5337_v4 = vsel %vm6912_vm10, %v5332_v60, %v5336_v12 }
 0x1e2   : > { %4903 = vst.msk [vmem:[#allocation3] sm:$0xf] %vm4902_vm4, %v4807_v31  ;;  %v5341_v45 = vor.u32 %v5340_v14, %v5336_v12  ;;  %v9557_v31 = vld [vmem:[#allocation57_spill] sm:$0xff]  ;;  %v5352_v8 = vrot.slane %v5351_v62, 4  ;;  %v3480_v25 = vsel %vm6876_vm9, %v3472_v22, %v3479_v1  ;;  %v3753_v1 = vld [vmem:[#allocation2 + $0x54] sm:$0xf] }
 0x1e3   : > { %4347 = vrot.lane.b32.xlu1 %v4148_v50, %s6710_s28  ;;  %v9556_v50 = vld [vmem:[#allocation56_spill] sm:$0xff] }
 0x1e4   : > { %4349 = vrot.lane.b32.xlu0 %v4158_v37, %s6710_s28  ;;  %v3301_v30 = vmul.bf16 %v3268_v39, %v9556_v50  ;;  %v3302_v37 = vmul.bf16 %v3269_v24, %v9557_v31  ;;  %v5342_v13 = vrot.slane %v5341_v45, 4  ;;  %v5357_v41 = vsel %vm6912_vm10, %v5352_v8, %v8586_v56 }
 0x1e5   : > { %v4811_v6 = vpop.permute.xlu1 %4810  ;;  %v4161_v24 = vrot.slane %v4159_v2, 4 }
 0x1e6   : > { %v4813_v3 = vpop.permute.xlu0 %4812  ;;  %4905 = vst.msk [vmem:[#allocation3 + $0x8] sm:$0xf] %vm4902_vm4, %v4811_v6  ;;  %v3492_v6 = vshrl.u32 %v3302_v37, 16  ;;  %v3486_v23 = vshll.u32 %v3301_v30, 16  ;;  %v5347_v54 = vsel %vm6912_vm10, %v5342_v13, %v5346_v52  ;;  %v3495_v19 = vshll.u32 %v3302_v37, 16  ;;  %v9561_v52 = vld [vmem:[#allocation20_spill] sm:$0xff] }
 0x1e7   : > { %4906 = vst.msk [vmem:[#allocation3 + $0xc] sm:$0xf] %vm4902_vm4, %v4813_v3  ;;  %4830 = vrot.lane.b32.xlu1 %v4634_v32, %s6711_s29  ;;  %v3483_v32 = vshrl.u32 %v3301_v30, 16 }
 0x1e8   : > { %4832 = vrot.lane.b32.xlu0 %v4643_v44, %s6711_s29  ;;  %v3946_v44 = vld [vmem:[#allocation2 + $0x54] sm:$0xf]  ;;  %v8598_v18 = vrot.slane %v3492_v6, 7  ;;  %v3752_v6 = vld [vmem:[#allocation2 + $0x50] sm:$0xf] }
 0x1e9   : > { %v5000_v16 = vpop.permute.xlu1 %4999  ;;  %v3485_v3 = vrot.slane %v3483_v32, 7 }
 0x1ea   : > { %v5002_v0 = vpop.permute.xlu0 %5001  ;;  %5096 = vst.msk [vmem:[#allocation3] sm:$0xf] %vm5095_vm5, %v5000_v16  ;;  %v9559_v16 = vld [vmem:[#allocation18_spill] sm:$0xff]  ;;  %v3497_v30 = vor.u32 %v3495_v19, %v8598_v18 }
 0x1eb   : > { %5097 = vst.msk [vmem:[#allocation3 + $0x4] sm:$0xf] %vm5095_vm5, %v5002_v0  ;;  %4834 = vrot.lane.b32.xlu1 %v4652_v53, %s6711_s29  ;;  %v3947_v53 = vld [vmem:[#allocation2 + $0x58] sm:$0xf]  ;;  %v3979_v20 = vmul.bf16 %v3946_v44, %v9559_v16  ;;  %v3948_v0 = vld [vmem:[#allocation2 + $0x5c] sm:$0xf]  ;;  %v3488_v12 = vor.u32 %v3486_v23, %v3485_v3 }
 0x1ec   : > { %4836 = vrot.lane.b32.xlu0 %v4661_v40, %s6711_s29  ;;  %v3980_v14 = vmul.bf16 %v3947_v53, %v9560_v5  ;;  %v3490_v55 = vrot.slane %v3485_v3, 4  ;;  %v3981_v49 = vmul.bf16 %v3948_v0, %v9561_v52  ;;  %v4466_v3 = vld [vmem:[#allocation2 + $0x5c] sm:$0xf]  ;;  %v9563_v53 = vld [vmem:[#allocation21_spill] sm:$0xff]  ;;  %v3754_v0 = vld [vmem:[#allocation2 + $0x58] sm:$0xf] }
 0x1ed   : > { %v5004_v38 = vpop.permute.xlu1 %5003  ;;  %v4169_v61 = vshrl.u32 %v3979_v20, 16  ;;  %v4499_v19 = vmul.bf16 %v4466_v3, %v9555_v9  ;;  %v3755_v9 = vld [vmem:[#allocation2 + $0x5c] sm:$0xf] }
 0x1ee   : > { %v5006_v59 = vpop.permute.xlu0 %5005  ;;  %5098 = vst.msk [vmem:[#allocation3 + $0x8] sm:$0xf] %vm5095_vm5, %v5004_v38  ;;  %v4175_v58 = vshll.u32 %v3980_v14, 16  ;;  %v4179_v45 = vshrl.u32 %v3980_v14, 16  ;;  %v4185_v60 = vshll.u32 %v3981_v49, 16  ;;  %v4189_v62 = vshrl.u32 %v3981_v49, 16 }
 0x1ef   : > { %5099 = vst.msk [vmem:[#allocation3 + $0xc] sm:$0xf] %vm5095_vm5, %v5006_v59  ;;  %5023 = vrot.lane.b32.xlu1 %v4947_v63, %s6712_s30  ;;  %v3481_v63 = vrot.slane %v3476_v34, 4  ;;  %v4165_v59 = vshll.u32 %v3979_v20, 16  ;;  %v3498_v32 = vsel %vm6876_vm9, %v3490_v55, %v3497_v30  ;;  %v4171_v21 = vrot.slane %v4169_v61, 4 }
 0x1f0   : > { %5025 = vrot.lane.b32.xlu0 %v4948_v10, %s6712_s30  ;;  %v8624_v44 = vrot.slane %v4175_v58, 5  ;;  %v4191_v22 = vrot.slane %v4189_v62, 4 }
 0x1f1   : > { %v5519_v29 = vpop.permute.xlu1 %5518  ;;  %v3489_v36 = vsel %vm6876_vm9, %v3481_v63, %v3488_v12  ;;  %v4167_v34 = vrot.slane %v4165_v59, 5  ;;  %v4468_v12 = vld [vmem:[#allocation2 + $0x64] sm:$0xf] }
 0x1f2   : > { %v5521_v48 = vpop.permute.xlu0 %5520  ;;  %5615 = vst.msk [vmem:[#allocation3] sm:$0xf] %vm5614_vm7, %v5519_v29  ;;  %v4501_v30 = vmul.bf16 %v4468_v12, %v9557_v31 }
 0x1f3   : > { %5616 = vst.msk [vmem:[#allocation3 + $0x4] sm:$0xf] %vm5614_vm7, %v5521_v48  ;;  %5027 = vrot.lane.b32.xlu1 %v4949_v43, %s6712_s30  ;;  %v4162_v48 = vor.u32 %v4161_v24, %v8529_v46  ;;  %v4187_v46 = vrot.slane %v4185_v60, 5  ;;  %v4676_v60 = vshll.u32 %v4499_v19, 16 }
 0x1f4   : > { %5029 = vrot.lane.b32.xlu0 %v4950_v11, %s6712_s30  ;;  %v4465_v11 = vld [vmem:[#allocation2 + $0x58] sm:$0xf]  ;;  %v4691_v62 = vshrl.u32 %v4501_v30, 16 }
 0x1f5   : > { %v5523_v33 = vpop.permute.xlu1 %5522  ;;  %v4163_v20 = vrot.slane %v4162_v48, 4 }
 0x1f6   : > { %v5525_v40 = vpop.permute.xlu0 %5524  ;;  %5617 = vst.msk [vmem:[#allocation3 + $0x8] sm:$0xf] %vm5614_vm7, %v5523_v33  ;;  %v4181_v33 = vrot.slane %v4179_v45, 4 }
 0x1f7   : > { %5618 = vst.msk [vmem:[#allocation3 + $0xc] sm:$0xf] %vm5614_vm7, %v5525_v40  ;;  %5542 = vrot.lane.b32.xlu1 %v5327_v57, %s6713_s6  ;;  %v3949_v57 = vld [vmem:[#allocation2 + $0x60] sm:$0xf]  ;;  %v4168_v55 = vsel %vm6912_vm10, %v4163_v20, %v4167_v34 }
 0x1f8   : > { %5544 = vrot.lane.b32.xlu0 %v5337_v4, %s6713_s6  ;;  %v9562_v4 = vld [vmem:[#allocation54_spill] sm:$0xff]  ;;  %v4467_v40 = vld [vmem:[#allocation2 + $0x60] sm:$0xf]  ;;  %v8631_v35 = vmul.bf16 %v3949_v57, %v9563_v53 }
 0x1f9   : > { %v3809_v39 = vpop.permute.xlu1 %3808  ;;  %v4498_v8 = vmul.bf16 %v4465_v11, %v9562_v4  ;;  %v4500_v63 = vmul.bf16 %v4467_v40, %v9556_v50  ;;  %v4673_v50 = vshrl.u32 %v4499_v19, 16  ;;  %v5358_v4 = vshrl.u32 %v8571_v47, 16  ;;  %v5147_v19 = vld [vmem:[#allocation2 + $0x64] sm:$0xf] }
 0x1fa   : > { %v3811_v38 = vpop.permute.xlu0 %3810  ;;  %3901 = vst.msk [vmem:[#allocation3 + $0x10] sm:$0xf] %vm3896_vm1, %v3809_v39  ;;  %v6677_v10 = vld [vmem:[#allocation3] sm:$0xff]   ;;  %v4182_v39 = vor.u32 %v4181_v33, %v8624_v44  ;;  %v4694_v40 = vshll.u32 %v4501_v30, 16 }
 0x1fb   : > { %3902 = vst.msk [vmem:[#allocation3 + $0x14] sm:$0xf] %vm3896_vm1, %v3811_v38  ;;  %5546 = vrot.lane.b32.xlu1 %v5347_v54, %s6713_s6  ;;  %6613 = vmatprep.mubr.msk.bf16.mxu0 %vm5786_vm8, %v6677_v10  ;;  %v4172_v54 = vor.u32 %v4171_v21, %v4167_v34  ;;  %v4192_v38 = vor.u32 %v4191_v22, %v4187_v46  ;;  %v4195_v10 = vshll.u32 %v8631_v35, 16  ;;  %v4675_v11 = vrot.slane %v4673_v50, 7  ;;  %v5148_v50 = vld [vmem:[#allocation2 + $0x68] sm:$0xf] }
 0x1fc   : > { %5548 = vrot.lane.b32.xlu0 %v5357_v41, %s6713_s6  ;;  %v4664_v41 = vshrl.u32 %v4498_v8, 16  ;;  %v4183_v59 = vrot.slane %v4182_v39, 4 }
 0x1fd   : > { %v3813_v43 = vpop.permute.xlu1 %3812  ;;  %v4173_v49 = vrot.slane %v4172_v54, 4  ;;  %v4193_v45 = vrot.slane %v4192_v38, 4  ;;  %v4678_v3 = vor.u32 %v4676_v60, %v4675_v11  ;;  %v8697_v60 = vmul.bf16 %v5148_v50, %v9563_v53 }
 0x1fe   : > { %v3815_v37 = vpop.permute.xlu0 %3814  ;;  %3903 = vst.msk [vmem:[#allocation3 + $0x18] sm:$0xf] %vm3896_vm1, %v3813_v43  ;;  %v6678_v29 = vld [vmem:[#allocation3 + $0x8] sm:$0xff]   ;;  %v4666_v61 = vrot.slane %v4664_v41, 7  ;;  %v4667_v43 = vshll.u32 %v4498_v8, 16  ;;  %v4188_v34 = vsel %vm6912_vm10, %v4183_v59, %v4187_v46 }
 0x1ff   : > { %3904 = vst.msk [vmem:[#allocation3 + $0x1c] sm:$0xf] %vm3896_vm1, %v3815_v37  ;;  %3641 = vrot.lane.b32.xlu1 %v3480_v25, %s6708_s26  ;;  %6614 = vmatmul.mubr.msk.bf16.vlgmr.msra.gmra.mxu0 %vm5786_vm8, %v6678_v29  ;;  %v283_v25 = vld [vmem:[%s6766_s23 + $0x7c] sm:$0xf]  ;;  %v8650_v37 = vrot.slane %v4195_v10, 5  ;;  %v4662_v29 = vrot.slane %v8539_v51, 4  ;;  %v4178_v31 = vsel %vm6912_vm10, %v4173_v49, %v8624_v44 }
 0x200   : > { %3643 = vrot.lane.b32.xlu0 %v3489_v36, %s6708_s26  ;;  %315 = vst.msk [vmem:[#allocation2 + $0x8c] sm:$0xf] %vm243_vm0, %v283_v25  ;;  %v4682_v36 = vshrl.u32 %v4500_v63, 16  ;;  %v4669_v21 = vor.u32 %v4667_v43, %v4666_v61  ;;  %v5146_v51 = vld [vmem:[#allocation2 + $0x60] sm:$0xf]  ;;  %v4671_v8 = vrot.slane %v4666_v61, 4 }
 0x201   : > { %v4328_v13 = vpop.permute.xlu1 %4327  ;;  %v4198_v44 = vsel %vm6912_vm10, %v4193_v45, %v8650_v37  ;;  %v5179_v54 = vmul.bf16 %v5146_v51, %v9560_v5  ;;  %v5180_v5 = vmul.bf16 %v5147_v19, %v9561_v52  ;;  %v3271_v61 = vld [vmem:[#allocation2 + $0x64] sm:$0xf]  ;;  %v4953_v51 = vld [vmem:[#allocation2 + $0x60] sm:$0xf]  ;;  %v5394_v53 = vshll.u32 %v8697_v60, 16  ;;  %v9567_v19 = vld [vmem:[#allocation62_spill] sm:$0xff] }
 0x202   : > { %v4330_v23 = vpop.permute.xlu0 %4329  ;;  %4420 = vst.msk [vmem:[#allocation3 + $0x10] sm:$0xf] %vm4415_vm3, %v4328_v13  ;;  %v4684_v57 = vrot.slane %v4682_v36, 7  ;;  %v4685_v13 = vshll.u32 %v4500_v63, 16  ;;  %v4670_v22 = vsel %vm6876_vm9, %v4662_v29, %v4669_v21  ;;  %v4679_v39 = vsel %vm6876_vm9, %v4671_v8, %v4678_v3  ;;  %v4951_v36 = vld [vmem:[#allocation2 + $0x58] sm:$0xf] }
 0x203   : > { %4421 = vst.msk [vmem:[#allocation3 + $0x14] sm:$0xf] %vm4415_vm3, %v4330_v23  ;;  %3645 = vrot.lane.b32.xlu1 %v3498_v32, %s6708_s26  ;;  %v5145_v32 = vld [vmem:[#allocation2 + $0x5c] sm:$0xf]  ;;  %v8668_v23 = vrot.slane %v4691_v62, 7  ;;  %v5374_v38 = vshll.u32 %v5179_v54, 16 }
 0x204   : > { %3832 = vrot.lane.b32.xlu0 %v3752_v6, %s6709_s27  ;;  %v5178_v33 = vmul.bf16 %v5145_v32, %v9559_v16  ;;  %v4687_v20 = vor.u32 %v4685_v13, %v4684_v57  ;;  %v4689_v47 = vrot.slane %v4684_v57, 4  ;;  %v5360_v16 = vrot.slane %v5358_v4, 4  ;;  %v9564_v29 = vld [vmem:[#allocation58_spill] sm:$0xff]  ;;  %v9565_v62 = vld [vmem:[#allocation60_spill] sm:$0xff]  ;;  %v9566_v4 = vld [vmem:[#allocation61_spill] sm:$0xff] }
 0x205   : > { %v4332_v2 = vpop.permute.xlu1 %4331  ;;  %v4696_v41 = vor.u32 %v4694_v40, %v8668_v23  ;;  %v5378_v10 = vshrl.u32 %v5179_v54, 16  ;;  %v5388_v59 = vshrl.u32 %v5180_v5, 16  ;;  %v3304_v32 = vmul.bf16 %v3271_v61, %v9565_v62  ;;  %v3273_v3 = vld [vmem:[#allocation2 + $0x6c] sm:$0xf] }
 0x206   : > { %v4334_v14 = vpop.permute.xlu0 %4333  ;;  %4422 = vst.msk [vmem:[#allocation3 + $0x18] sm:$0xf] %vm4415_vm3, %v4332_v2  ;;  %v5368_v63 = vshrl.u32 %v5178_v33, 16  ;;  %vm6128_vm0 = vcmask 60416  }
 0x207   : > { %4423 = vst.msk [vmem:[#allocation3 + $0x1c] sm:$0xf] %vm4415_vm3, %v4334_v14  ;;  %3834 = vrot.lane.b32.xlu1 %v3753_v1, %s6709_s27  ;;  %v4680_v1 = vrot.slane %v4675_v11, 4  ;;  %v4697_v52 = vsel %vm6876_vm9, %v4689_v47, %v4696_v41  ;;  %v5380_v45 = vrot.slane %v5378_v10, 4  ;;  %v5390_v13 = vrot.slane %v5388_v59, 4 }
 0x208   : > { %3836 = vrot.lane.b32.xlu0 %v3754_v0, %s6709_s27  ;;  %v5364_v0 = vshll.u32 %v5178_v33, 16  ;;  %v5370_v30 = vrot.slane %v5368_v63, 4  ;;  %v4964_v27 = vld [vmem:[#allocation2 + $0x8c] sm:$0xf] }
 0x209   : > { %v4815_v24 = vpop.permute.xlu1 %4814  ;;  %v4688_v14 = vsel %vm6876_vm9, %v4680_v1, %v4687_v20 }
 0x20a   : > { %v4817_v58 = vpop.permute.xlu0 %4816  ;;  %4907 = vst.msk [vmem:[#allocation3 + $0x10] sm:$0xf] %vm4902_vm4, %v4815_v24  ;;  %v5366_v49 = vrot.slane %v5364_v0, 5  ;;  %v5384_v24 = vshll.u32 %v5180_v5, 16 }
 0x20b   : > { %4908 = vst.msk [vmem:[#allocation3 + $0x14] sm:$0xf] %vm4902_vm4, %v4817_v58  ;;  %3838 = vrot.lane.b32.xlu1 %v3755_v9, %s6709_s27  ;;  %v3270_v9 = vld [vmem:[#allocation2 + $0x60] sm:$0xf]  ;;  %v8690_v58 = vrot.slane %v5374_v38, 5  ;;  %v3513_v38 = vshll.u32 %v3304_v32, 16 }
 0x20c   : > { %4351 = vrot.lane.b32.xlu0 %v4168_v55, %s6710_s28  ;;  %v5361_v55 = vor.u32 %v5360_v16, %v8586_v56  ;;  %v3272_v56 = vld [vmem:[#allocation2 + $0x68] sm:$0xf]  ;;  %v5371_v21 = vor.u32 %v5370_v30, %v5366_v49  ;;  %v5386_v57 = vrot.slane %v5384_v24, 5 }
 0x20d   : > { %v4819_v48 = vpop.permute.xlu1 %4818  ;;  %v3305_v8 = vmul.bf16 %v3272_v56, %v9566_v4 }
 0x20e   : > { %v4821_v6 = vpop.permute.xlu0 %4820  ;;  %4909 = vst.msk [vmem:[#allocation3 + $0x18] sm:$0xf] %vm4902_vm4, %v4819_v48  ;;  %v4952_v48 = vld [vmem:[#allocation2 + $0x5c] sm:$0xf]  ;;  %v5372_v20 = vrot.slane %v5371_v21, 4  ;;  %v5391_v54 = vor.u32 %v5390_v13, %v5386_v57 }
 0x20f   : > { %4910 = vst.msk [vmem:[#allocation3 + $0x1c] sm:$0xf] %vm4902_vm4, %v4821_v6  ;;  %4353 = vrot.lane.b32.xlu1 %v4178_v31, %s6710_s28  ;;  %v3303_v31 = vmul.bf16 %v3270_v9, %v9564_v29  ;;  %v3519_v41 = vshrl.u32 %v3305_v8, 16  ;;  %v8720_v9 = vrot.slane %v5394_v53, 5  ;;  %v3522_v24 = vshll.u32 %v3305_v8, 16 }
 0x210   : > { %4355 = vrot.lane.b32.xlu0 %v4188_v34, %s6710_s28  ;;  %v5362_v34 = vrot.slane %v5361_v55, 4  ;;  %v5377_v10 = vsel %vm6912_vm10, %v5372_v20, %v8690_v58 }
 0x211   : > { %v5008_v46 = vpop.permute.xlu1 %5007  ;;  %v3501_v33 = vshrl.u32 %v3303_v31, 16  ;;  %v3521_v30 = vrot.slane %v3519_v41, 7 }
 0x212   : > { %v5010_v2 = vpop.permute.xlu0 %5009  ;;  %5100 = vst.msk [vmem:[#allocation3 + $0x10] sm:$0xf] %vm5095_vm5, %v5008_v46  ;;  %v3510_v46 = vshrl.u32 %v3304_v32, 16  ;;  %v5367_v1 = vsel %vm6912_vm10, %v5362_v34, %v5366_v49  ;;  %v3950_v49 = vld [vmem:[#allocation2 + $0x64] sm:$0xf] }
 0x213   : > { %5101 = vst.msk [vmem:[#allocation3 + $0x14] sm:$0xf] %vm5095_vm5, %v5010_v2  ;;  %4357 = vrot.lane.b32.xlu1 %v4198_v44, %s6710_s28  ;;  %v5381_v44 = vor.u32 %v5380_v45, %v8690_v58  ;;  %v3306_v2 = vmul.bf16 %v3273_v3, %v9567_v19  ;;  %v3503_v0 = vrot.slane %v3501_v33, 7  ;;  %v9568_v45 = vld [vmem:[#allocation22_spill] sm:$0xff]  ;;  %v3952_v34 = vld [vmem:[#allocation2 + $0x6c] sm:$0xf] }
 0x214   : > { %4838 = vrot.lane.b32.xlu0 %v4670_v22, %s6711_s29  ;;  %v4954_v22 = vld [vmem:[#allocation2 + $0x64] sm:$0xf]  ;;  %v3526_v53 = vrot.slane %v3521_v30, 4 }
 0x215   : > { %v5012_v12 = vpop.permute.xlu1 %5011  ;;  %v5382_v16 = vrot.slane %v5381_v44, 4  ;;  %v3528_v55 = vshrl.u32 %v3306_v2, 16  ;;  %v3531_v32 = vshll.u32 %v3306_v2, 16  ;;  %v9570_v3 = vld [vmem:[#allocation24_spill] sm:$0xff] }
 0x216   : > { %v5014_v25 = vpop.permute.xlu0 %5013  ;;  %5102 = vst.msk [vmem:[#allocation3 + $0x18] sm:$0xf] %vm5095_vm5, %v5012_v12  ;;  %v3499_v12 = vrot.slane %v8598_v18, 4 }
 0x217   : > { %5103 = vst.msk [vmem:[#allocation3 + $0x1c] sm:$0xf] %vm5095_vm5, %v5014_v25  ;;  %4840 = vrot.lane.b32.xlu1 %v4679_v39, %s6711_s29  ;;  %v3504_v39 = vshll.u32 %v3303_v31, 16  ;;  %v5392_v25 = vrot.slane %v5391_v54, 4  ;;  %v3983_v31 = vmul.bf16 %v3950_v49, %v9568_v45  ;;  %v8733_v56 = vrot.slane %v3528_v55, 7 }
 0x218   : > { %4842 = vrot.lane.b32.xlu0 %v4688_v14, %s6711_s29  ;;  %v3512_v14 = vrot.slane %v3510_v46, 7 }
 0x219   : > { %v5527_v43 = vpop.permute.xlu1 %5526  ;;  %v3506_v18 = vor.u32 %v3504_v39, %v3503_v0  ;;  %v3533_v46 = vor.u32 %v3531_v32, %v8733_v56 }
 0x21a   : > { %v5529_v11 = vpop.permute.xlu0 %5528  ;;  %5619 = vst.msk [vmem:[#allocation3 + $0x10] sm:$0xf] %vm5614_vm7, %v5527_v43  ;;  %v3951_v43 = vld [vmem:[#allocation2 + $0x68] sm:$0xf]  ;;  %v3515_v58 = vor.u32 %v3513_v38, %v3512_v14  ;;  %v3517_v13 = vrot.slane %v3512_v14, 4 }
 0x21b   : > { %5620 = vst.msk [vmem:[#allocation3 + $0x14] sm:$0xf] %vm5614_vm7, %v5529_v11  ;;  %4844 = vrot.lane.b32.xlu1 %v4697_v52, %s6711_s29  ;;  %v5387_v52 = vsel %vm6912_vm10, %v5382_v16, %v5386_v57  ;;  %v5397_v11 = vsel %vm6912_vm10, %v5392_v25, %v8720_v9  ;;  %v3507_v57 = vsel %vm6876_vm9, %v3499_v12, %v3506_v18  ;;  %v3953_v38 = vld [vmem:[#allocation2 + $0x70] sm:$0xf]  ;;  %v3756_v25 = vld [vmem:[#allocation2 + $0x60] sm:$0xf] }
 0x21c   : > { %5031 = vrot.lane.b32.xlu0 %v4951_v36, %s6712_s30  ;;  %v3508_v36 = vrot.slane %v3503_v0, 4  ;;  %v4469_v0 = vld [vmem:[#allocation2 + $0x68] sm:$0xf] }
 0x21d   : > { %v5531_v6 = vpop.permute.xlu1 %5530 }
 0x21e   : > { %v5533_v40 = vpop.permute.xlu0 %5532  ;;  %5621 = vst.msk [vmem:[#allocation3 + $0x18] sm:$0xf] %vm5614_vm7, %v5531_v6  ;;  %v3524_v6 = vor.u32 %v3522_v24, %v3521_v30  ;;  %v3516_v8 = vsel %vm6876_vm9, %v3508_v36, %v3515_v58  ;;  %v4471_v30 = vld [vmem:[#allocation2 + $0x70] sm:$0xf] }
 0x21f   : > { %5622 = vst.msk [vmem:[#allocation3 + $0x1c] sm:$0xf] %vm5614_vm7, %v5533_v40  ;;  %5033 = vrot.lane.b32.xlu1 %v4952_v48, %s6712_s30  ;;  %v4199_v48 = vshrl.u32 %v8631_v35, 16  ;;  %v4205_v35 = vshll.u32 %v3983_v31, 16  ;;  %v3985_v40 = vmul.bf16 %v3952_v34, %v9570_v3  ;;  %v4504_v34 = vmul.bf16 %v4471_v30, %v9566_v4  ;;  %v5151_v30 = vld [vmem:[#allocation2 + $0x74] sm:$0xf] }
 0x220   : > { %5035 = vrot.lane.b32.xlu0 %v4953_v51, %s6712_s30  ;;  %v9569_v51 = vld [vmem:[#allocation23_spill] sm:$0xff]  ;;  %v3525_v54 = vsel %vm6876_vm9, %v3517_v13, %v3524_v6 }
 0x221   : > { %v3817_v47 = vpop.permute.xlu1 %3816  ;;  %v3984_v44 = vmul.bf16 %v3951_v43, %v9569_v51  ;;  %v4225_v39 = vshll.u32 %v3985_v40, 16  ;;  %v4229_v41 = vshrl.u32 %v3985_v40, 16  ;;  %v4207_v12 = vrot.slane %v4205_v35, 5  ;;  %v3757_v43 = vld [vmem:[#allocation2 + $0x64] sm:$0xf] }
 0x222   : > { %v3819_v63 = vpop.permute.xlu0 %3818  ;;  %3905 = vst.msk [vmem:[#allocation3 + $0x20] sm:$0xf] %vm3896_vm1, %v3817_v47  ;;  %v6679_v5 = vld [vmem:[#allocation3 + $0x10] sm:$0xff]  }
 0x223   : > { %3906 = vst.msk [vmem:[#allocation3 + $0x24] sm:$0xf] %vm3896_vm1, %v3819_v63  ;;  %5037 = vrot.lane.b32.xlu1 %v4954_v22, %s6712_s30  ;;  %6617 = vmatprep.mubr.msk.bf16.mxu0 %vm5786_vm8, %v6679_v5  ;;  %v4201_v22 = vrot.slane %v4199_v48, 4  ;;  %v4215_v2 = vshll.u32 %v3984_v44, 16  ;;  %v4219_v47 = vshrl.u32 %v3984_v44, 16  ;;  %v3534_v63 = vsel %vm6876_vm9, %v3526_v53, %v3533_v46 }
 0x224   : > { %5550 = vrot.lane.b32.xlu0 %v5367_v1, %s6713_s6  ;;  %v4209_v1 = vshrl.u32 %v3983_v31, 16  ;;  %v4227_v24 = vrot.slane %v4225_v39, 5 }
 0x225   : > { %v3821_v50 = vpop.permute.xlu1 %3820  ;;  %v4202_v5 = vor.u32 %v4201_v22, %v8650_v37  ;;  %v4217_v55 = vrot.slane %v4215_v2, 5  ;;  %v4221_v49 = vrot.slane %v4219_v47, 4  ;;  %v9571_v37 = vld [vmem:[#allocation26_spill] sm:$0xff]  ;;  %v4718_v22 = vshrl.u32 %v4504_v34, 16 }
 0x226   : > { %v3823_v59 = vpop.permute.xlu0 %3822  ;;  %3907 = vst.msk [vmem:[#allocation3 + $0x28] sm:$0xf] %vm3896_vm1, %v3821_v50  ;;  %v6680_v61 = vld [vmem:[#allocation3 + $0x18] sm:$0xff]   ;;  %v4211_v14 = vrot.slane %v4209_v1, 4  ;;  %v4502_v50 = vmul.bf16 %v4469_v0, %v9564_v29  ;;  %v4698_v2 = vrot.slane %v8668_v23, 4 }
 0x227   : > { %3908 = vst.msk [vmem:[#allocation3 + $0x2c] sm:$0xf] %vm3896_vm1, %v3823_v59  ;;  %5552 = vrot.lane.b32.xlu1 %v5377_v10, %s6713_s6  ;;  %6618 = vmatmul.mubr.msk.bf16.gmra.mxu0 %vm5786_vm8, %v6680_v61  ;;  %v8761_v59 = vmul.bf16 %v3953_v38, %v9571_v37  ;;  %v4231_v61 = vrot.slane %v4229_v41, 4  ;;  %v4203_v36 = vrot.slane %v4202_v5, 4  ;;  %v4222_v32 = vor.u32 %v4221_v49, %v4217_v55  ;;  %v5150_v23 = vld [vmem:[#allocation2 + $0x70] sm:$0xf] }
 0x228   : > { %5554 = vrot.lane.b32.xlu0 %v5387_v52, %s6713_s6  ;;  %v4470_v52 = vld [vmem:[#allocation2 + $0x6c] sm:$0xf]  ;;  %v4212_v58 = vor.u32 %v4211_v14, %v4207_v12  ;;  %v4700_v48 = vshrl.u32 %v4502_v50, 16  ;;  %v4703_v46 = vshll.u32 %v4502_v50, 16  ;;  %v4720_v5 = vrot.slane %v4718_v22, 7 }
 0x229   : > { %v4336_v21 = vpop.permute.xlu1 %4335  ;;  %v4503_v29 = vmul.bf16 %v4470_v52, %v9565_v62  ;;  %v4232_v13 = vor.u32 %v4231_v61, %v4227_v24  ;;  %v4235_v6 = vshll.u32 %v8761_v59, 16  ;;  %v3759_v62 = vld [vmem:[#allocation2 + $0x6c] sm:$0xf]  ;;  %v4208_v44 = vsel %vm6912_vm10, %v4203_v36, %v4207_v12 }
 0x22a   : > { %v4338_v33 = vpop.permute.xlu0 %4337  ;;  %4424 = vst.msk [vmem:[#allocation3 + $0x20] sm:$0xf] %vm4415_vm3, %v4336_v21  ;;  %v4472_v21 = vld [vmem:[#allocation2 + $0x74] sm:$0xf]  ;;  %v4223_v40 = vrot.slane %v4222_v32, 4  ;;  %v4702_v53 = vrot.slane %v4700_v48, 7 }
 0x22b   : > { %4425 = vst.msk [vmem:[#allocation3 + $0x24] sm:$0xf] %vm4415_vm3, %v4338_v33  ;;  %5556 = vrot.lane.b32.xlu1 %v5397_v11, %s6713_s6  ;;  %v3758_v11 = vld [vmem:[#allocation2 + $0x68] sm:$0xf]  ;;  %v4213_v33 = vrot.slane %v4212_v58, 4  ;;  %v4505_v4 = vmul.bf16 %v4472_v21, %v9567_v19  ;;  %v4721_v12 = vshll.u32 %v4504_v34, 16  ;;  %v5183_v58 = vmul.bf16 %v5150_v23, %v9569_v51 }
 0x22c   : > { %3647 = vrot.lane.b32.xlu0 %v3507_v57, %s6708_s26  ;;  %v4228_v41 = vsel %vm6912_vm10, %v4223_v40, %v4227_v24  ;;  %v5149_v14 = vld [vmem:[#allocation2 + $0x6c] sm:$0xf] }
 0x22d   : > { %v4340_v20 = vpop.permute.xlu1 %4339  ;;  %v4218_v19 = vsel %vm6912_vm10, %v4213_v33, %v4217_v55  ;;  %v4727_v0 = vshrl.u32 %v4505_v4, 16  ;;  %v5398_v55 = vshrl.u32 %v8697_v60, 16  ;;  %v4730_v52 = vshll.u32 %v4505_v4, 16 }
 0x22e   : > { %v4342_v16 = vpop.permute.xlu0 %4341  ;;  %4426 = vst.msk [vmem:[#allocation3 + $0x28] sm:$0xf] %vm4415_vm3, %v4340_v20  ;;  %v4233_v20 = vrot.slane %v4232_v13, 4  ;;  %v4723_v36 = vor.u32 %v4721_v12, %v4720_v5  ;;  %v4725_v60 = vrot.slane %v4720_v5, 4  ;;  %v5418_v13 = vshrl.u32 %v5183_v58, 16 }
 0x22f   : > { %4427 = vst.msk [vmem:[#allocation3 + $0x2c] sm:$0xf] %vm4415_vm3, %v4342_v16  ;;  %3649 = vrot.lane.b32.xlu1 %v3516_v8, %s6708_s26  ;;  %v4709_v8 = vshrl.u32 %v4503_v29, 16  ;;  %v4712_v16 = vshll.u32 %v4503_v29, 16  ;;  %v8793_v50 = vrot.slane %v4727_v0, 7 }
 0x230   : > { %3651 = vrot.lane.b32.xlu0 %v3525_v54, %s6708_s26  ;;  %v8777_v54 = vrot.slane %v4235_v6, 5  ;;  %v3276_v0 = vld [vmem:[#allocation2 + $0x78] sm:$0xf]  ;;  %v4957_v5 = vld [vmem:[#allocation2 + $0x70] sm:$0xf] }
 0x231   : > { %v4823_v10 = vpop.permute.xlu1 %4822  ;;  %v4711_v47 = vrot.slane %v4709_v8, 7  ;;  %v4732_v32 = vor.u32 %v4730_v52, %v8793_v50  ;;  %v4955_v8 = vld [vmem:[#allocation2 + $0x68] sm:$0xf] }
 0x232   : > { %v4825_v18 = vpop.permute.xlu0 %4824  ;;  %4911 = vst.msk [vmem:[#allocation3 + $0x20] sm:$0xf] %vm4902_vm4, %v4823_v10  ;;  %v4238_v10 = vsel %vm6912_vm10, %v4233_v20, %v8777_v54  ;;  %v9572_v20 = vld [vmem:[#allocation63_spill] sm:$0xff] }
 0x233   : > { %4912 = vst.msk [vmem:[#allocation3 + $0x24] sm:$0xf] %vm4902_vm4, %v4825_v18  ;;  %3653 = vrot.lane.b32.xlu1 %v3534_v63, %s6708_s26  ;;  %v4705_v63 = vor.u32 %v4703_v46, %v4702_v53  ;;  %v4714_v49 = vor.u32 %v4712_v16, %v4711_v47  ;;  %v5182_v18 = vmul.bf16 %v5149_v14, %v9568_v45 }
 0x234   : > { %3840 = vrot.lane.b32.xlu0 %v3756_v25, %s6709_s27  ;;  %v4707_v25 = vrot.slane %v4702_v53, 4  ;;  %v5184_v45 = vmul.bf16 %v5151_v30, %v9570_v3  ;;  %v4733_v33 = vsel %vm6876_vm9, %v4725_v60, %v4732_v32  ;;  %v5152_v53 = vld [vmem:[#allocation2 + $0x78] sm:$0xf] }
 0x235   : > { %v4827_v31 = vpop.permute.xlu1 %4826  ;;  %v4706_v61 = vsel %vm6876_vm9, %v4698_v2, %v4705_v63  ;;  %v5404_v48 = vshll.u32 %v5182_v18, 16  ;;  %v5408_v51 = vshrl.u32 %v5182_v18, 16  ;;  %v4956_v63 = vld [vmem:[#allocation2 + $0x6c] sm:$0xf]  ;;  %v3277_v18 = vld [vmem:[#allocation2 + $0x7c] sm:$0xf] }
 0x236   : > { %v4829_v57 = vpop.permute.xlu0 %4828  ;;  %4913 = vst.msk [vmem:[#allocation3 + $0x28] sm:$0xf] %vm4902_vm4, %v4827_v31  ;;  %v5400_v31 = vrot.slane %v5398_v55, 4  ;;  %v5424_v3 = vshll.u32 %v5184_v45, 16  ;;  %v3310_v60 = vmul.bf16 %v3277_v18, %v8058_v26 }
 0x237   : > { %4914 = vst.msk [vmem:[#allocation3 + $0x2c] sm:$0xf] %vm4902_vm4, %v4829_v57  ;;  %3842 = vrot.lane.b32.xlu1 %v3757_v43, %s6709_s27  ;;  %v4716_v43 = vrot.slane %v4711_v47, 4  ;;  %v5414_v57 = vshll.u32 %v5183_v58, 16  ;;  %v5410_v40 = vrot.slane %v5408_v51, 4 }
 0x238   : > { %3844 = vrot.lane.b32.xlu0 %v3758_v11, %s6709_s27  ;;  %v4715_v11 = vsel %vm6876_vm9, %v4707_v25, %v4714_v49  ;;  %v5401_v4 = vor.u32 %v5400_v31, %v8720_v9  ;;  %v5426_v9 = vrot.slane %v5424_v3, 5  ;;  %v9574_v49 = vld [vmem:[#allocation67_spill] sm:$0xff]  ;;  %v3564_v3 = vshrl.u32 %v3310_v60, 16 }
 0x239   : > { %v5016_v35 = vpop.permute.xlu1 %5015  ;;  %v4724_v21 = vsel %vm6876_vm9, %v4716_v43, %v4723_v36  ;;  %v8816_v22 = vrot.slane %v5414_v57, 5  ;;  %v3309_v52 = vmul.bf16 %v3276_v0, %v9574_v49  ;;  %v4958_v43 = vld [vmem:[#allocation2 + $0x74] sm:$0xf]  ;;  %v3535_v57 = vrot.slane %v8733_v56, 4  ;;  %v3955_v56 = vld [vmem:[#allocation2 + $0x78] sm:$0xf] }
 0x23a   : > { %v5018_v1 = vpop.permute.xlu0 %5017  ;;  %5104 = vst.msk [vmem:[#allocation3 + $0x20] sm:$0xf] %vm5095_vm5, %v5016_v35  ;;  %v5406_v35 = vrot.slane %v5404_v48, 5  ;;  %v5402_v12 = vrot.slane %v5401_v4, 4 }
 0x23b   : > { %5105 = vst.msk [vmem:[#allocation3 + $0x24] sm:$0xf] %vm5095_vm5, %v5018_v1  ;;  %3846 = vrot.lane.b32.xlu1 %v3759_v62, %s6709_s27  ;;  %v3274_v62 = vld [vmem:[#allocation2 + $0x70] sm:$0xf]  ;;  %v5420_v1 = vrot.slane %v5418_v13, 4  ;;  %v3555_v48 = vshrl.u32 %v3309_v52, 16 }
 0x23c   : > { %4359 = vrot.lane.b32.xlu0 %v4208_v44, %s6710_s28  ;;  %v5428_v44 = vshrl.u32 %v5184_v45, 16  ;;  %v3307_v2 = vmul.bf16 %v3274_v62, %v9572_v20  ;;  %v5411_v14 = vor.u32 %v5410_v40, %v5406_v35  ;;  %v5407_v36 = vsel %vm6912_vm10, %v5402_v12, %v5406_v35  ;;  %v3954_v40 = vld [vmem:[#allocation2 + $0x74] sm:$0xf] }
 0x23d   : > { %v5020_v39 = vpop.permute.xlu1 %5019  ;;  %v5421_v25 = vor.u32 %v5420_v1, %v8816_v22  ;;  %v3557_v4 = vrot.slane %v3555_v48, 7  ;;  %v3558_v35 = vshll.u32 %v3309_v52, 16  ;;  %v4239_v1 = vshrl.u32 %v8761_v59, 16 }
 0x23e   : > { %v5022_v38 = vpop.permute.xlu0 %5021  ;;  %5106 = vst.msk [vmem:[#allocation3 + $0x28] sm:$0xf] %vm5095_vm5, %v5020_v39  ;;  %v8823_v39 = vmul.bf16 %v5152_v53, %v9571_v37  ;;  %v3537_v55 = vshrl.u32 %v3307_v2, 16  ;;  %v5412_v58 = vrot.slane %v5411_v14, 4  ;;  %v3540_v32 = vshll.u32 %v3307_v2, 16  ;;  %v9576_v14 = vld [vmem:[#allocation29_spill] sm:$0xff] }
 0x23f   : > { %5107 = vst.msk [vmem:[#allocation3 + $0x2c] sm:$0xf] %vm5095_vm5, %v5022_v38  ;;  %4361 = vrot.lane.b32.xlu1 %v4218_v19, %s6710_s28  ;;  %v3275_v19 = vld [vmem:[#allocation2 + $0x74] sm:$0xf]  ;;  %v9573_v38 = vld [vmem:[#allocation65_spill] sm:$0xff]  ;;  %v5422_v45 = vrot.slane %v5421_v25, 4  ;;  %v3560_v12 = vor.u32 %v3558_v35, %v3557_v4 }
 0x240   : > { %4363 = vrot.lane.b32.xlu0 %v4228_v41, %s6710_s28  ;;  %v5430_v41 = vrot.slane %v5428_v44, 4  ;;  %v3308_v23 = vmul.bf16 %v3275_v19, %v9573_v38  ;;  %v5417_v13 = vsel %vm6912_vm10, %v5412_v58, %v8816_v22  ;;  %v8859_v19 = vrot.slane %v3564_v3, 7 }
 0x241   : > { %v5535_v24 = vpop.permute.xlu1 %5534  ;;  %v3562_v59 = vrot.slane %v3557_v4, 4  ;;  %v4241_v25 = vrot.slane %v4239_v1, 4  ;;  %v3762_v1 = vld [vmem:[#allocation2 + $0x78] sm:$0xf] }
 0x242   : > { %v5537_v29 = vpop.permute.xlu0 %5536  ;;  %5623 = vst.msk [vmem:[#allocation3 + $0x20] sm:$0xf] %vm5614_vm7, %v5535_v24  ;;  %v5431_v24 = vor.u32 %v5430_v41, %v5426_v9  ;;  %v3549_v62 = vshll.u32 %v3308_v23, 16 }
 0x243   : > { %5624 = vst.msk [vmem:[#allocation3 + $0x24] sm:$0xf] %vm5614_vm7, %v5537_v29  ;;  %4365 = vrot.lane.b32.xlu1 %v4238_v10, %s6710_s28  ;;  %v3546_v29 = vshrl.u32 %v3308_v23, 16  ;;  %v3988_v23 = vmul.bf16 %v3955_v56, %v9576_v14 }
 0x244   : > { %4846 = vrot.lane.b32.xlu0 %v4706_v61, %s6711_s29  ;;  %v5434_v61 = vshll.u32 %v8823_v39, 16 }
 0x245   : > { %v5539_v34 = vpop.permute.xlu1 %5538  ;;  %v4259_v58 = vshrl.u32 %v3988_v23, 16 }
 0x246   : > { %v5541_v6 = vpop.permute.xlu0 %5540  ;;  %5625 = vst.msk [vmem:[#allocation3 + $0x28] sm:$0xf] %vm5614_vm7, %v5539_v34  ;;  %v5432_v34 = vrot.slane %v5431_v24, 4 }
 0x247   : > { %5626 = vst.msk [vmem:[#allocation3 + $0x2c] sm:$0xf] %vm5614_vm7, %v5541_v6  ;;  %4848 = vrot.lane.b32.xlu1 %v4715_v11, %s6711_s29  ;;  %v3539_v11 = vrot.slane %v3537_v55, 7  ;;  %v3548_v6 = vrot.slane %v3546_v29, 7  ;;  %v9577_v55 = vld [vmem:[#allocation30_spill] sm:$0xff] }
 0x248   : > { %4850 = vrot.lane.b32.xlu0 %v4724_v21, %s6711_s29  ;;  %v8842_v21 = vrot.slane %v5434_v61, 5 }
 0x249   : > { %v3825_v46 = vpop.permute.xlu1 %3824  ;;  %v3544_v22 = vrot.slane %v3539_v11, 4  ;;  %v3551_v2 = vor.u32 %v3549_v62, %v3548_v6  ;;  %v4261_v62 = vrot.slane %v4259_v58, 4 }
 0x24a   : > { %v3827_v47 = vpop.permute.xlu0 %3826  ;;  %3909 = vst.msk [vmem:[#allocation3 + $0x30] sm:$0xf] %vm3896_vm1, %v3825_v46  ;;  %v6681_v16 = vld [vmem:[#allocation3 + $0x20] sm:$0xff]   ;;  %v5437_v46 = vsel %vm6912_vm10, %v5432_v34, %v8842_v21 }
 0x24b   : > { %3910 = vst.msk [vmem:[#allocation3 + $0x34] sm:$0xf] %vm3896_vm1, %v3827_v47  ;;  %4852 = vrot.lane.b32.xlu1 %v4733_v33, %s6711_s29  ;;  %6621 = vmatprep.mubr.msk.bf16.mxu0 %vm5786_vm8, %v6681_v16  ;;  %v5427_v33 = vsel %vm6912_vm10, %v5422_v45, %v5426_v9  ;;  %v3567_v47 = vshll.u32 %v3310_v60, 16  ;;  %v9575_v16 = vld [vmem:[#allocation27_spill] sm:$0xff]  ;;  %v3552_v18 = vsel %vm6876_vm9, %v3544_v22, %v3551_v2  ;;  %v3957_v34 = vld [vmem:[#allocation2 + $0x80] sm:$0xf] }
 0x24c   : > { %5039 = vrot.lane.b32.xlu0 %v4955_v8, %s6712_s30  ;;  %v3542_v8 = vor.u32 %v3540_v32, %v3539_v11  ;;  %v3987_v0 = vmul.bf16 %v3954_v40, %v9575_v16  ;;  %v3956_v9 = vld [vmem:[#allocation2 + $0x7c] sm:$0xf]  ;;  %v4473_v60 = vld [vmem:[#allocation2 + $0x78] sm:$0xf]  ;;  %v4242_v32 = vor.u32 %v4241_v25, %v8777_v54  ;;  %v9578_v54 = vld [vmem:[#allocation33_spill] sm:$0xff] }
 0x24d   : > { %v3829_v10 = vpop.permute.xlu1 %3828  ;;  %v3989_v52 = vmul.bf16 %v3956_v9, %v9577_v55  ;;  %v4506_v3 = vmul.bf16 %v4473_v60, %v9572_v20  ;;  %v8887_v35 = vmul.bf16 %v3957_v34, %v9578_v54  ;;  %v4476_v9 = vld [vmem:[#allocation2 + $0x84] sm:$0xf]  ;;  %v5153_v60 = vld [vmem:[#allocation2 + $0x7c] sm:$0xf] }
 0x24e   : > { %v3831_v37 = vpop.permute.xlu0 %3830  ;;  %3911 = vst.msk [vmem:[#allocation3 + $0x38] sm:$0xf] %vm3896_vm1, %v3829_v10  ;;  %v6682_v30 = vld [vmem:[#allocation3 + $0x28] sm:$0xff]   ;;  %v4249_v24 = vshrl.u32 %v3987_v0, 16  ;;  %v4243_v56 = vrot.slane %v4242_v32, 4 }
 0x24f   : > { %3912 = vst.msk [vmem:[#allocation3 + $0x3c] sm:$0xf] %vm3896_vm1, %v3831_v37  ;;  %5041 = vrot.lane.b32.xlu1 %v4956_v63, %s6712_s30  ;;  %6622 = vmatmul.mubr.msk.bf16.gmra.mxu0 %vm5786_vm8, %v6682_v30  ;;  %v3543_v63 = vsel %vm6876_vm9, %v3535_v57, %v3542_v8  ;;  %v3569_v37 = vor.u32 %v3567_v47, %v8859_v19  ;;  %v4245_v30 = vshll.u32 %v3987_v0, 16  ;;  %v4269_v45 = vshrl.u32 %v3989_v52, 16  ;;  %v4475_v8 = vld [vmem:[#allocation2 + $0x80] sm:$0xf] }
 0x250   : > { %5043 = vrot.lane.b32.xlu0 %v4957_v5, %s6712_s30  ;;  %v3553_v5 = vrot.slane %v3548_v6, 4  ;;  %v4736_v47 = vshrl.u32 %v4506_v3, 16  ;;  %v4508_v0 = vmul.bf16 %v4475_v8, %v9574_v49  ;;  %v4509_v49 = vmul.bf16 %v4476_v9, %v8058_v26 }
 0x251   : > { %v4344_v31 = vpop.permute.xlu1 %4343  ;;  %v3570_v11 = vsel %vm6876_vm9, %v3562_v59, %v3569_v37  ;;  %v4247_v48 = vrot.slane %v4245_v30, 5  ;;  %v4271_v40 = vrot.slane %v4269_v45, 4 }
 0x252   : > { %v4346_v51 = vpop.permute.xlu0 %4345  ;;  %4428 = vst.msk [vmem:[#allocation3 + $0x30] sm:$0xf] %vm4415_vm3, %v4344_v31  ;;  %v4265_v31 = vshll.u32 %v3989_v52, 16  ;;  %v4738_v52 = vrot.slane %v4736_v47, 7  ;;  %v4754_v37 = vshrl.u32 %v4508_v0, 16 }
 0x253   : > { %4429 = vst.msk [vmem:[#allocation3 + $0x34] sm:$0xf] %vm4415_vm3, %v4346_v51  ;;  %5045 = vrot.lane.b32.xlu1 %v4958_v43, %s6712_s30  ;;  %v3561_v43 = vsel %vm6876_vm9, %v3553_v5, %v3560_v12  ;;  %v4251_v51 = vrot.slane %v4249_v24, 4  ;;  %v4275_v5 = vshll.u32 %v8887_v35, 16  ;;  %v4248_v12 = vsel %vm6912_vm10, %v4243_v56, %v4247_v48  ;;  %v5155_v56 = vld [vmem:[#allocation2 + $0x84] sm:$0xf] }
 0x254   : > { %5558 = vrot.lane.b32.xlu0 %v5407_v36, %s6713_s6  ;;  %v4255_v36 = vshll.u32 %v3988_v23, 16  ;;  %v4267_v4 = vrot.slane %v4265_v31, 5  ;;  %v4756_v32 = vrot.slane %v4754_v37, 7  ;;  %v5188_v47 = vmul.bf16 %v5155_v56, %v9577_v55 }
 0x255   : > { %v4348_v44 = vpop.permute.xlu1 %4347 }
 0x256   : > { %v4350_v53 = vpop.permute.xlu0 %4349  ;;  %4430 = vst.msk [vmem:[#allocation3 + $0x38] sm:$0xf] %vm4415_vm3, %v4348_v44  ;;  %v4257_v6 = vrot.slane %v4255_v36, 5  ;;  %v4474_v44 = vld [vmem:[#allocation2 + $0x7c] sm:$0xf] }
 0x257   : > { %4431 = vst.msk [vmem:[#allocation3 + $0x3c] sm:$0xf] %vm4415_vm3, %v4350_v53  ;;  %5560 = vrot.lane.b32.xlu1 %v5417_v13, %s6713_s6  ;;  %v3760_v13 = vld [vmem:[#allocation2 + $0x70] sm:$0xf]  ;;  %v3761_v53 = vld [vmem:[#allocation2 + $0x74] sm:$0xf]  ;;  %v4507_v20 = vmul.bf16 %v4474_v44, %v9573_v38 }
 0x258   : > { %5562 = vrot.lane.b32.xlu0 %v5427_v33, %s6713_s6  ;;  %v4262_v2 = vor.u32 %v4261_v62, %v4257_v6  ;;  %v3763_v38 = vld [vmem:[#allocation2 + $0x7c] sm:$0xf]  ;;  %v4766_v44 = vshll.u32 %v4509_v49, 16 }
 0x259   : > { %v4831_v41 = vpop.permute.xlu1 %4830  ;;  %v4748_v58 = vshll.u32 %v4507_v20, 16 }
 0x25a   : > { %v4833_v10 = vpop.permute.xlu0 %4832  ;;  %4915 = vst.msk [vmem:[#allocation3 + $0x30] sm:$0xf] %vm4902_vm4, %v4831_v41  ;;  %v4263_v25 = vrot.slane %v4262_v2, 4 }
 0x25b   : > { %4916 = vst.msk [vmem:[#allocation3 + $0x34] sm:$0xf] %vm4902_vm4, %v4833_v10  ;;  %5564 = vrot.lane.b32.xlu1 %v5437_v46, %s6713_s6  ;;  %v4252_v46 = vor.u32 %v4251_v51, %v4247_v48  ;;  %v4745_v10 = vshrl.u32 %v4507_v20, 16  ;;  %v4757_v48 = vshll.u32 %v4508_v0, 16 }
 0x25c   : > { %3655 = vrot.lane.b32.xlu0 %v3543_v63, %s6708_s26  ;;  %v4272_v63 = vor.u32 %v4271_v40, %v4267_v4  ;;  %v4268_v45 = vsel %vm6912_vm10, %v4263_v25, %v4267_v4  ;;  %v5464_v25 = vshll.u32 %v5188_v47, 16 }
 0x25d   : > { %v4835_v61 = vpop.permute.xlu1 %4834  ;;  %v4253_v23 = vrot.slane %v4252_v46, 4  ;;  %v4747_v36 = vrot.slane %v4745_v10, 7  ;;  %v4759_v40 = vor.u32 %v4757_v48, %v4756_v32  ;;  %v4761_v46 = vrot.slane %v4756_v32, 4 }
 0x25e   : > { %v4837_v29 = vpop.permute.xlu0 %4836  ;;  %4917 = vst.msk [vmem:[#allocation3 + $0x38] sm:$0xf] %vm4902_vm4, %v4835_v61  ;;  %v4273_v24 = vrot.slane %v4272_v63, 4  ;;  %v8903_v61 = vrot.slane %v4275_v5, 5 }
 0x25f   : > { %4918 = vst.msk [vmem:[#allocation3 + $0x3c] sm:$0xf] %vm4902_vm4, %v4837_v29  ;;  %3657 = vrot.lane.b32.xlu1 %v3552_v18, %s6708_s26  ;;  %v4739_v18 = vshll.u32 %v4506_v3, 16  ;;  %v4258_v26 = vsel %vm6912_vm10, %v4253_v23, %v4257_v6  ;;  %v4763_v29 = vshrl.u32 %v4509_v49, 16  ;;  %v4743_v6 = vrot.slane %v4738_v52, 4 }
 0x260   : > { %3659 = vrot.lane.b32.xlu0 %v3561_v43, %s6708_s26  ;;  %v4734_v43 = vrot.slane %v8793_v50, 4  ;;  %v5154_v50 = vld [vmem:[#allocation2 + $0x80] sm:$0xf]  ;;  %v4278_v34 = vsel %vm6912_vm10, %v4273_v24, %v8903_v61  ;;  %v4750_v62 = vor.u32 %v4748_v58, %v4747_v36  ;;  %v4752_v4 = vrot.slane %v4747_v36, 4  ;;  %v5156_v49 = vld [vmem:[#allocation2 + $0x88] sm:$0xf] }
 0x261   : > { %v5024_v57 = vpop.permute.xlu1 %5023  ;;  %v8920_v3 = vrot.slane %v4763_v29, 7  ;;  %v3280_v36 = vld [vmem:[#allocation2 + $0x88] sm:$0xf]  ;;  %v8949_v58 = vmul.bf16 %v5156_v49, %v9578_v54 }
 0x262   : > { %v5026_v33 = vpop.permute.xlu0 %5025  ;;  %5108 = vst.msk [vmem:[#allocation3 + $0x30] sm:$0xf] %vm5095_vm5, %v5024_v57  ;;  %v5186_v57 = vmul.bf16 %v5153_v60, %v9575_v16  ;;  %v4760_v9 = vsel %vm6876_vm9, %v4752_v4, %v4759_v40  ;;  %v4960_v60 = vld [vmem:[#allocation2 + $0x7c] sm:$0xf] }
 0x263   : > { %5109 = vst.msk [vmem:[#allocation3 + $0x34] sm:$0xf] %vm5095_vm5, %v5026_v33  ;;  %3661 = vrot.lane.b32.xlu1 %v3570_v11, %s6708_s26  ;;  %v4741_v11 = vor.u32 %v4739_v18, %v4738_v52  ;;  %v5468_v52 = vshrl.u32 %v5188_v47, 16  ;;  %v3279_v18 = vld [vmem:[#allocation2 + $0x84] sm:$0xf] }
 0x264   : > { %3848 = vrot.lane.b32.xlu0 %v3760_v13, %s6709_s27  ;;  %v5438_v13 = vshrl.u32 %v8823_v39, 16  ;;  %v5448_v2 = vshrl.u32 %v5186_v57, 16  ;;  %v3312_v29 = vmul.bf16 %v3279_v18, %v8194_v15 }
 0x265   : > { %v5028_v22 = vpop.permute.xlu1 %5027  ;;  %v4742_v8 = vsel %vm6876_vm9, %v4734_v43, %v4741_v11  ;;  %v5466_v11 = vrot.slane %v5464_v25, 5  ;;  %v5470_v32 = vrot.slane %v5468_v52, 4 }
 0x266   : > { %v5030_v41 = vpop.permute.xlu0 %5029  ;;  %5110 = vst.msk [vmem:[#allocation3 + $0x38] sm:$0xf] %vm5095_vm5, %v5028_v22  ;;  %v5440_v20 = vrot.slane %v5438_v13, 4  ;;  %v5444_v22 = vshll.u32 %v5186_v57, 16  ;;  %v3313_v57 = vmul.bf16 %v3280_v36, %v8210_v42  ;;  %v3281_v13 = vld [vmem:[#allocation2 + $0x8c] sm:$0xf] }
 0x267   : > { %5111 = vst.msk [vmem:[#allocation3 + $0x3c] sm:$0xf] %vm5095_vm5, %v5030_v41  ;;  %3850 = vrot.lane.b32.xlu1 %v3761_v53, %s6709_s27  ;;  %v5187_v53 = vmul.bf16 %v5154_v50, %v9576_v14  ;;  %v4768_v14 = vor.u32 %v4766_v44, %v8920_v3  ;;  %v4962_v44 = vld [vmem:[#allocation2 + $0x84] sm:$0xf]  ;;  %v5471_v4 = vor.u32 %v5470_v32, %v5466_v11 }
 0x268   : > { %3852 = vrot.lane.b32.xlu0 %v3762_v1, %s6709_s27  ;;  %v4751_v1 = vsel %vm6876_vm9, %v4743_v6, %v4750_v62  ;;  %v5441_v23 = vor.u32 %v5440_v20, %v8842_v21  ;;  %v5446_v10 = vrot.slane %v5444_v22, 5  ;;  %v5474_v6 = vshll.u32 %v8949_v58, 16 }
 0x269   : > { %v5543_v59 = vpop.permute.xlu1 %5542  ;;  %v5454_v41 = vshll.u32 %v5187_v53, 16  ;;  %v5458_v63 = vshrl.u32 %v5187_v53, 16  ;;  %v4769_v55 = vsel %vm6876_vm9, %v4761_v46, %v4768_v14  ;;  %v3582_v62 = vshrl.u32 %v3312_v29, 16 }
 0x26a   : > { %v5545_v30 = vpop.permute.xlu0 %5544  ;;  %5627 = vst.msk [vmem:[#allocation3 + $0x30] sm:$0xf] %vm5614_vm7, %v5543_v59  ;;  %v5450_v59 = vrot.slane %v5448_v2, 4  ;;  %v3314_v40 = vmul.bf16 %v3281_v13, %v8220_v7  ;;  %v3591_v46 = vshrl.u32 %v3313_v57, 16  ;;  %v3571_v22 = vrot.slane %v8859_v19, 4 }
 0x26b   : > { %5628 = vst.msk [vmem:[#allocation3 + $0x34] sm:$0xf] %vm5614_vm7, %v5545_v30  ;;  %3854 = vrot.lane.b32.xlu1 %v3763_v38, %s6709_s27  ;;  %v4959_v30 = vld [vmem:[#allocation2 + $0x78] sm:$0xf]  ;;  %v5456_v24 = vrot.slane %v5454_v41, 5  ;;  %v5460_v43 = vrot.slane %v5458_v63, 4 }
 0x26c   : > { %4367 = vrot.lane.b32.xlu0 %v4248_v12, %s6710_s28  ;;  %v3278_v12 = vld [vmem:[#allocation2 + $0x80] sm:$0xf]  ;;  %v3585_v14 = vshll.u32 %v3312_v29, 16  ;;  %v5472_v47 = vrot.slane %v5471_v4, 4  ;;  %v3958_v41 = vld [vmem:[#allocation2 + $0x84] sm:$0xf] }
 0x26d   : > { %v5547_v31 = vpop.permute.xlu1 %5546  ;;  %v5461_v50 = vor.u32 %v5460_v43, %v5456_v24  ;;  %v9580_v29 = vld [vmem:[#allocation37_spill] sm:$0xff] }
 0x26e   : > { %v5549_v51 = vpop.permute.xlu0 %5548  ;;  %5629 = vst.msk [vmem:[#allocation3 + $0x38] sm:$0xf] %vm5614_vm7, %v5547_v31  ;;  %v5442_v31 = vrot.slane %v5441_v23, 4  ;;  %v3594_v23 = vshll.u32 %v3313_v57, 16 }
 0x26f   : > { %5630 = vst.msk [vmem:[#allocation3 + $0x3c] sm:$0xf] %vm5614_vm7, %v5549_v51  ;;  %4369 = vrot.lane.b32.xlu1 %v4258_v26, %s6710_s28  ;;  %v3311_v26 = vmul.bf16 %v3278_v12, %v8087_v28  ;;  %v4961_v51 = vld [vmem:[#allocation2 + $0x80] sm:$0xf]  ;;  %v5462_v56 = vrot.slane %v5461_v50, 4  ;;  %v3593_v12 = vrot.slane %v3591_v46, 7 }
 0x270   : > { %4371 = vrot.lane.b32.xlu0 %v4268_v45, %s6710_s28  ;;  %v5451_v45 = vor.u32 %v5450_v59, %v5446_v10  ;;  %v9579_v59 = vld [vmem:[#allocation34_spill] sm:$0xff]  ;;  %v3764_v46 = vld [vmem:[#allocation2 + $0x80] sm:$0xf] }
 0x271   : > { %v3642_v33 = vpop.permute.xlu1 %3641  ;;  %v3991_v25 = vmul.bf16 %v3958_v41, %v9579_v59  ;;  %v3596_v36 = vor.u32 %v3594_v23, %v3593_v12  ;;  %v4480_v23 = vld [vmem:[#allocation2 + $0x94] sm:$0xf] }
 0x272   : > { %3721 = vst.msk [vmem:[#allocation3 + $0x44] sm:$0xf] %vm3703_vm6, %v3642_v33  ;;  %v6683_v16 = vld [vmem:[#allocation3 + $0x30] sm:$0xff]   ;;  %v3644_v39 = vpop.permute.xlu0 %3643  ;;  %v5447_v33 = vsel %vm6912_vm10, %v5442_v31, %v5446_v10  ;;  %v3959_v10 = vld [vmem:[#allocation2 + $0x88] sm:$0xf] }
 0x273   : > { %4373 = vrot.lane.b32.xlu1 %v4278_v34, %s6710_s28  ;;  %3722 = vst.msk [vmem:[#allocation3 + $0x48] sm:$0xf] %vm3703_vm6, %v3644_v39  ;;  %6625 = vmatprep.mubr.msk.bf16.mxu0 %vm5786_vm8, %v6683_v16  ;;  %v3573_v34 = vshrl.u32 %v3311_v26, 16  ;;  %v3576_v39 = vshll.u32 %v3311_v26, 16 }
 0x274   : > { %4854 = vrot.lane.b32.xlu0 %v4742_v8, %s6711_s29  ;;  %v5452_v8 = vrot.slane %v5451_v45, 4 }
 0x275   : > { %v3646_v0 = vpop.permute.xlu1 %3645  ;;  %v3575_v16 = vrot.slane %v3573_v34, 7  ;;  %v4289_v34 = vshrl.u32 %v3991_v25, 16 }
 0x276   : > { %3723 = vst.msk [vmem:[#allocation3 + $0x4c] sm:$0xf] %vm3703_vm6, %v3646_v0  ;;  %v6684_v5 = vld [vmem:[#allocation3 + $0x38] sm:$0xff]   ;;  %v3833_v38 = vpop.permute.xlu0 %3832  ;;  %v5457_v2 = vsel %vm6912_vm10, %v5452_v8, %v5456_v24  ;;  %v8969_v0 = vrot.slane %v5474_v6, 5  ;;  %v3960_v24 = vld [vmem:[#allocation2 + $0x8c] sm:$0xf] }
 0x277   : > { %4856 = vrot.lane.b32.xlu1 %v4751_v1, %s6711_s29  ;;  %3913 = vst.msk [vmem:[#allocation3 + $0x40] sm:$0xf] %vm3896_vm1, %v3833_v38  ;;  %6626 = vmatmul.mubr.msk.bf16.gmra.mxu0 %vm5786_vm8, %v6684_v5  ;;  %v3584_v1 = vrot.slane %v3582_v62, 7  ;;  %v5467_v5 = vsel %vm6912_vm10, %v5462_v56, %v5466_v11  ;;  %v3578_v38 = vor.u32 %v3576_v39, %v3575_v16  ;;  %v3580_v49 = vrot.slane %v3575_v16, 4  ;;  %v9581_v11 = vld [vmem:[#allocation38_spill] sm:$0xff] }
 0x278   : > { %4858 = vrot.lane.b32.xlu0 %v4760_v9, %s6711_s29  ;;  %v3600_v9 = vshrl.u32 %v3314_v40, 16  ;;  %v5477_v52 = vsel %vm6912_vm10, %v5472_v47, %v8969_v0  ;;  %v3993_v32 = vmul.bf16 %v3960_v24, %v9581_v11  ;;  %v4291_v56 = vrot.slane %v4289_v34, 4  ;;  %v3961_v16 = vld [vmem:[#allocation2 + $0x90] sm:$0x1] }
 0x279   : > { %v3835_v37 = vpop.permute.xlu1 %3834  ;;  %v3579_v26 = vsel %vm6876_vm9, %v3571_v22, %v3578_v38  ;;  %v4479_v47 = vld [vmem:[#allocation2 + $0x90] sm:$0xf] }
 0x27a   : > { %3914 = vst.msk [vmem:[#allocation3 + $0x44] sm:$0xf] %vm3896_vm1, %v3835_v37  ;;  %v3837_v21 = vpop.permute.xlu0 %3836  ;;  %v3602_v18 = vrot.slane %v3600_v9, 7  ;;  %v3603_v37 = vshll.u32 %v3314_v40, 16  ;;  %v4309_v8 = vshrl.u32 %v3993_v32, 16 }
 0x27b   : > { %4860 = vrot.lane.b32.xlu1 %v4769_v55, %s6711_s29  ;;  %3915 = vst.msk [vmem:[#allocation3 + $0x48] sm:$0xf] %vm3896_vm1, %v3837_v21  ;;  %v3587_v55 = vor.u32 %v3585_v14, %v3584_v1  ;;  %v3589_v21 = vrot.slane %v3584_v1, 4  ;;  %v4478_v14 = vld [vmem:[#allocation2 + $0x8c] sm:$0xf] }
 0x27c   : > { %5047 = vrot.lane.b32.xlu0 %v4959_v30, %s6712_s30  ;;  %v4279_v30 = vshrl.u32 %v8887_v35, 16  ;;  %v4285_v35 = vshll.u32 %v3991_v25, 16  ;;  %v4512_v25 = vmul.bf16 %v4479_v47, %v8210_v42  ;;  %v5159_v47 = vld [vmem:[#allocation2 + $0x94] sm:$0xf] }
 0x27d   : > { %v3839_v48 = vpop.permute.xlu1 %3838  ;;  %v3588_v45 = vsel %vm6876_vm9, %v3580_v49, %v3587_v55  ;;  %v3597_v13 = vsel %vm6876_vm9, %v3589_v21, %v3596_v36 }
 0x27e   : > { %3916 = vst.msk [vmem:[#allocation3 + $0x4c] sm:$0xf] %vm3896_vm1, %v3839_v48  ;;  %v4352_v54 = vpop.permute.xlu0 %4351  ;;  %v3598_v48 = vrot.slane %v3593_v12, 4  ;;  %v4281_v50 = vrot.slane %v4279_v30, 4  ;;  %v4513_v30 = vmul.bf16 %v4480_v23, %v8220_v7 }
 0x27f   : > { %5049 = vrot.lane.b32.xlu1 %v4960_v60, %s6712_s30  ;;  %4432 = vst.msk [vmem:[#allocation3 + $0x40] sm:$0xf] %vm4415_vm3, %v4352_v54  ;;  %v3992_v60 = vmul.bf16 %v3959_v10, %v9580_v29  ;;  %v3766_v10 = vld [vmem:[#allocation2 + $0x88] sm:$0xf] }
 0x280   : > { %5051 = vrot.lane.b32.xlu0 %v4961_v51, %s6712_s30  ;;  %v3605_v51 = vor.u32 %v3603_v37, %v3602_v18  ;;  %v4282_v40 = vor.u32 %v4281_v50, %v8903_v61  ;;  %v9582_v61 = vld [vmem:[#allocation41_spill] sm:$0xff] }
 0x281   : > { %v4354_v53 = vpop.permute.xlu1 %4353  ;;  %v4295_v54 = vshll.u32 %v3992_v60, 16  ;;  %v4299_v6 = vshrl.u32 %v3992_v60, 16  ;;  %v3994_v41 = vmul.bf16 %v3961_v16, %v9582_v61 }
 0x282   : > { %4433 = vst.msk [vmem:[#allocation3 + $0x44] sm:$0xf] %vm4415_vm3, %v4354_v53  ;;  %v4356_v20 = vpop.permute.xlu0 %4355  ;;  %v3606_v4 = vsel %vm6876_vm9, %v3598_v48, %v3605_v51  ;;  %v4287_v53 = vrot.slane %v4285_v35, 5  ;;  %v4283_v38 = vrot.slane %v4282_v40, 4  ;;  %v4770_v51 = vrot.slane %v8920_v3, 4 }
 0x283   : > { %5053 = vrot.lane.b32.xlu1 %v4962_v44, %s6712_s30  ;;  %4434 = vst.msk [vmem:[#allocation3 + $0x48] sm:$0xf] %vm4415_vm3, %v4356_v20  ;;  %v4477_v44 = vld [vmem:[#allocation2 + $0x88] sm:$0xf]  ;;  %v4297_v20 = vrot.slane %v4295_v54, 5  ;;  %v4301_v22 = vrot.slane %v4299_v6, 4 }
 0x284   : > { %5566 = vrot.lane.b32.xlu0 %v5447_v33, %s6713_s6  ;;  %v4305_v33 = vshll.u32 %v3993_v32, 16  ;;  %v4510_v1 = vmul.bf16 %v4477_v44, %v8087_v28  ;;  %v4292_v12 = vor.u32 %v4291_v56, %v4287_v53  ;;  %v4511_v28 = vmul.bf16 %v4478_v14, %v8194_v15  ;;  %v3767_v15 = vld [vmem:[#allocation2 + $0x8c] sm:$0xf] }
 0x285   : > { %v4358_v63 = vpop.permute.xlu1 %4357  ;;  %v4302_v49 = vor.u32 %v4301_v22, %v4297_v20  ;;  %v4315_v37 = vshll.u32 %v3994_v41, 16  ;;  %v4288_v24 = vsel %vm6912_vm10, %v4283_v38, %v4287_v53  ;;  %v4799_v32 = vshrl.u32 %v4513_v30, 16  ;;  %v5157_v44 = vld [vmem:[#allocation2 + $0x8c] sm:$0xf] }
 0x286   : > { %4435 = vst.msk [vmem:[#allocation3 + $0x4c] sm:$0xf] %vm4415_vm3, %v4358_v63  ;;  %v4839_v19 = vpop.permute.xlu0 %4838  ;;  %v4307_v9 = vrot.slane %v4305_v33, 5  ;;  %v4311_v63 = vrot.slane %v4309_v8, 4  ;;  %v4772_v55 = vshrl.u32 %v4510_v1, 16  ;;  %v4775_v60 = vshll.u32 %v4510_v1, 16 }
 0x287   : > { %5568 = vrot.lane.b32.xlu1 %v5457_v2, %s6713_s6  ;;  %4919 = vst.msk [vmem:[#allocation3 + $0x40] sm:$0xf] %vm4902_vm4, %v4839_v19  ;;  %v4303_v21 = vrot.slane %v4302_v49, 4  ;;  %v4317_v35 = vrot.slane %v4315_v37, 5  ;;  %v4784_v34 = vshll.u32 %v4511_v28, 16  ;;  %v4802_v40 = vshll.u32 %v4513_v30, 16 }
 0x288   : > { %5570 = vrot.lane.b32.xlu0 %v5467_v5, %s6713_s6  ;;  %v3765_v5 = vld [vmem:[#allocation2 + $0x84] sm:$0xf]  ;;  %v4312_v18 = vor.u32 %v4311_v63, %v4307_v9  ;;  %v4774_v36 = vrot.slane %v4772_v55, 7  ;;  %v5158_v8 = vld [vmem:[#allocation2 + $0x90] sm:$0xf]  ;;  %v5478_v14 = vshrl.u32 %v8949_v58, 16 }
 0x289   : > { %v4841_v43 = vpop.permute.xlu1 %4840  ;;  %v4963_v30 = vld [vmem:[#allocation2 + $0x88] sm:$0xf] }
 0x28a   : > { %4920 = vst.msk [vmem:[#allocation3 + $0x44] sm:$0xf] %vm4902_vm4, %v4841_v43  ;;  %v4843_v31 = vpop.permute.xlu0 %4842  ;;  %v4293_v43 = vrot.slane %v4292_v12, 4  ;;  %v4313_v7 = vrot.slane %v4312_v18, 4  ;;  %v4777_v54 = vor.u32 %v4775_v60, %v4774_v36  ;;  %v4779_v53 = vrot.slane %v4774_v36, 4 }
 0x28b   : > { %5572 = vrot.lane.b32.xlu1 %v5477_v52, %s6713_s6  ;;  %4921 = vst.msk [vmem:[#allocation3 + $0x48] sm:$0xf] %vm4902_vm4, %v4843_v31  ;;  %v4790_v31 = vshrl.u32 %v4512_v25, 16  ;;  %v5480_v23 = vrot.slane %v5478_v14, 4 }
 0x28c   : > { %3663 = vrot.lane.b32.xlu0 %v3579_v26, %s6708_s26  ;;  %v4781_v26 = vshrl.u32 %v4511_v28, 16  ;;  %v4298_v48 = vsel %vm6912_vm10, %v4293_v43, %v4297_v20  ;;  %v4318_v3 = vsel %vm6912_vm10, %v4313_v7, %v4317_v35  ;;  %v4778_v22 = vsel %vm6876_vm9, %v4770_v51, %v4777_v54 }
 0x28d   : > { %v4845_v57 = vpop.permute.xlu1 %4844  ;;  %v4792_v6 = vrot.slane %v4790_v31, 7 }
 0x28e   : > { %4922 = vst.msk [vmem:[#allocation3 + $0x4c] sm:$0xf] %vm4902_vm4, %v4845_v57  ;;  %v5032_v62 = vpop.permute.xlu0 %5031  ;;  %v4783_v50 = vrot.slane %v4781_v26, 7  ;;  %v5160_v26 = vld [vmem:[#allocation2 + $0x98] sm:$0x1] }
 0x28f   : > { %3665 = vrot.lane.b32.xlu1 %v3588_v45, %s6708_s26  ;;  %5112 = vst.msk [vmem:[#allocation3 + $0x40] sm:$0xf] %vm5095_vm5, %v5032_v62  ;;  %v4793_v62 = vshll.u32 %v4512_v25, 16  ;;  %v5193_v60 = vmul.bf16 %v5160_v26, %v9582_v61 }
 0x290   : > { %3667 = vrot.lane.b32.xlu0 %v3597_v13, %s6708_s26  ;;  %v4308_v13 = vsel %vm6912_vm10, %v4303_v21, %v4307_v9  ;;  %v4786_v56 = vor.u32 %v4784_v34, %v4783_v50  ;;  %v4788_v16 = vrot.slane %v4783_v50, 4 }
 0x291   : > { %v5034_v39 = vpop.permute.xlu1 %5033  ;;  %v4795_v1 = vor.u32 %v4793_v62, %v4792_v6  ;;  %v5514_v34 = vshll.u32 %v5193_v60, 16 }
 0x292   : > { %5113 = vst.msk [vmem:[#allocation3 + $0x44] sm:$0xf] %vm5095_vm5, %v5034_v39  ;;  %v5036_v2 = vpop.permute.xlu0 %5035  ;;  %v5190_v39 = vmul.bf16 %v5157_v44, %v9579_v59  ;;  %v4797_v59 = vrot.slane %v4792_v6, 4  ;;  %v4787_v63 = vsel %vm6876_vm9, %v4779_v53, %v4786_v56 }
 0x293   : > { %3669 = vrot.lane.b32.xlu1 %v3606_v4, %s6708_s26  ;;  %5114 = vst.msk [vmem:[#allocation3 + $0x48] sm:$0xf] %vm5095_vm5, %v5036_v2  ;;  %v4801_v4 = vrot.slane %v4799_v32, 7  ;;  %v5191_v2 = vmul.bf16 %v5158_v8, %v9580_v29  ;;  %v5192_v29 = vmul.bf16 %v5159_v47, %v9581_v11  ;;  %v4796_v28 = vsel %vm6876_vm9, %v4788_v16, %v4795_v1  ;;  %v9086_v16 = vld [vmem:[%s9330_s2] ss:$0 sm:$0xff] }
 0x294   : > { %3856 = vrot.lane.b32.xlu0 %v3764_v46, %s6709_s27  ;;  %v5484_v58 = vshll.u32 %v5190_v39, 16  ;;  %v5516_v44 = vrot.slane %v5514_v34, 5 }
 0x295   : > { %v5038_v19 = vpop.permute.xlu1 %5037  ;;  %v4804_v41 = vor.u32 %v4802_v40, %v4801_v4  ;;  %v5508_v18 = vshrl.u32 %v5192_v29, 16 }
 0x296   : > { %5115 = vst.msk [vmem:[#allocation3 + $0x4c] sm:$0xf] %vm5095_vm5, %v5038_v19  ;;  %v5551_v52 = vpop.permute.xlu0 %5550  ;;  %v5494_v19 = vshll.u32 %v5191_v2, 16  ;;  %v5486_v55 = vrot.slane %v5484_v58, 5 }
 0x297   : > { %3858 = vrot.lane.b32.xlu1 %v3765_v5, %s6709_s27  ;;  %5631 = vst.msk [vmem:[#allocation3 + $0x40] sm:$0xf] %vm5614_vm7, %v5551_v52  ;;  %v5488_v5 = vshrl.u32 %v5190_v39, 16  ;;  %v4805_v11 = vsel %vm6876_vm9, %v4797_v59, %v4804_v41  ;;  %v5504_v52 = vshll.u32 %v5192_v29, 16  ;;  %v5510_v31 = vrot.slane %v5508_v18, 4 }
 0x298   : > { %3860 = vrot.lane.b32.xlu0 %v3766_v10, %s6709_s27  ;;  %v5498_v10 = vshrl.u32 %v5191_v2, 16  ;;  %vm6161_vm9 = vcmask 64512  }
 0x299   : > { %v5553_v42 = vpop.permute.xlu1 %5552  ;;  %v5490_v25 = vrot.slane %v5488_v5, 4  ;;  %v5506_v36 = vrot.slane %v5504_v52, 5 }
 0x29a   : > { %5632 = vst.msk [vmem:[#allocation3 + $0x44] sm:$0xf] %vm5614_vm7, %v5553_v42  ;;  %v5555_v45 = vpop.permute.xlu0 %5554  ;;  %v5500_v43 = vrot.slane %v5498_v10, 4 }
 0x29b   : > { %3862 = vrot.lane.b32.xlu1 %v3767_v15, %s6709_s27  ;;  %5633 = vst.msk [vmem:[#allocation3 + $0x48] sm:$0xf] %vm5614_vm7, %v5555_v45  ;;  %v5481_v15 = vor.u32 %v5480_v23, %v8969_v0  ;;  %v5491_v21 = vor.u32 %v5490_v25, %v5486_v55  ;;  %v4965_v0 = vld [vmem:[#allocation2 + $0x90] sm:$0xf]  ;;  %v5511_v50 = vor.u32 %v5510_v31, %v5506_v36 }
 0x29c   : > { %4375 = vrot.lane.b32.xlu0 %v4288_v24, %s6710_s28  ;;  %v5496_v24 = vrot.slane %v5494_v19, 5 }
 0x29d   : > { %v5557_v57 = vpop.permute.xlu1 %5556  ;;  %v5482_v7 = vrot.slane %v5481_v15, 4  ;;  %v5492_v51 = vrot.slane %v5491_v21, 4  ;;  %v5512_v62 = vrot.slane %v5511_v50, 4 }
 0x29e   : > { %5634 = vst.msk [vmem:[#allocation3 + $0x4c] sm:$0xf] %vm5614_vm7, %v5557_v57  ;;  %v3648_v33 = vpop.permute.xlu0 %3647  ;;  %v5501_v35 = vor.u32 %v5500_v43, %v5496_v24 }
 0x29f   : > { %4377 = vrot.lane.b32.xlu1 %v4298_v48, %s6710_s28  ;;  %3724 = vst.msk [vmem:[#allocation3 + $0x50] sm:$0xf] %vm3703_vm6, %v3648_v33  ;;  %v4966_v48 = vld [vmem:[#allocation2 + $0x94] sm:$0xf]  ;;  %v5487_v61 = vsel %vm6912_vm10, %v5482_v7, %v5486_v55  ;;  %v5497_v6 = vsel %vm6912_vm10, %v5492_v51, %v5496_v24  ;;  %v5517_v4 = vsel %vm6912_vm10, %v5512_v62, %v5516_v44 }
 0x2a0   : > { %4379 = vrot.lane.b32.xlu0 %v4308_v13, %s6710_s28  ;;  %v5502_v13 = vrot.slane %v5501_v35, 4 }
 0x2a1   : > { %v3650_v46 = vpop.permute.xlu1 %3649  ;;  %v6685_v20 = vld [vmem:[#allocation3 + $0x40] sm:$0xff]  }
 0x2a2   : > { %3725 = vst.msk [vmem:[#allocation3 + $0x54] sm:$0xf] %vm3703_vm6, %v3650_v46  ;;  %v3652_v9 = vpop.permute.xlu0 %3651  ;;  %6629 = vmatprep.mubr.msk.bf16.mxu1 %vm5786_vm8, %v6685_v20  ;;  %v5507_v8 = vsel %vm6912_vm10, %v5502_v13, %v5506_v36  ;;  %vm6231_vm10 = vcmask 57344  }
 0x2a3   : > { %4381 = vrot.lane.b32.xlu1 %v4318_v3, %s6710_s28  ;;  %3726 = vst.msk [vmem:[#allocation3 + $0x58] sm:$0xf] %vm3703_vm6, %v3652_v9 }
 0x2a4   : > { %4862 = vrot.lane.b32.xlu0 %v4778_v22, %s6711_s29 }
 0x2a5   : > { %v3654_v38 = vpop.permute.xlu1 %3653  ;;  %v6686_v12 = vld [vmem:[#allocation3 + $0x48] sm:$0xff]  }
 0x2a6   : > { %3727 = vst.msk [vmem:[#allocation3 + $0x5c] sm:$0xf] %vm3703_vm6, %v3654_v38  ;;  %v3841_v49 = vpop.permute.xlu0 %3840  ;;  %6630 = vmatmul.mubr.msk.bf16.vlgmr.msra.gmra.mxu1 %vm5786_vm8, %v6686_v12 }
 0x2a7   : > { %4864 = vrot.lane.b32.xlu1 %v4787_v63, %s6711_s29  ;;  %3917 = vst.msk [vmem:[#allocation3 + $0x50] sm:$0xf] %vm3896_vm1, %v3841_v49 }
 0x2a8   : > { %4866 = vrot.lane.b32.xlu0 %v4796_v28, %s6711_s29 }
 0x2a9   : > { %v3843_v37 = vpop.permute.xlu1 %3842 }
 0x2aa   : > { %3918 = vst.msk [vmem:[#allocation3 + $0x54] sm:$0xf] %vm3896_vm1, %v3843_v37  ;;  %v3845_v42 = vpop.permute.xlu0 %3844 }
 0x2ab   : > { %4868 = vrot.lane.b32.xlu1 %v4805_v11, %s6711_s29  ;;  %3919 = vst.msk [vmem:[#allocation3 + $0x58] sm:$0xf] %vm3896_vm1, %v3845_v42 }
 0x2ac   : > { %5055 = vrot.lane.b32.xlu0 %v4963_v30, %s6712_s30 }
 0x2ad   : > { %v3847_v45 = vpop.permute.xlu1 %3846 }
 0x2ae   : > { %3920 = vst.msk [vmem:[#allocation3 + $0x5c] sm:$0xf] %vm3896_vm1, %v3847_v45  ;;  %v4360_v32 = vpop.permute.xlu0 %4359 }
 0x2af   : > { %5057 = vrot.lane.b32.xlu1 %v4964_v27, %s6712_s30  ;;  %4436 = vst.msk [vmem:[#allocation3 + $0x50] sm:$0xf] %vm4415_vm3, %v4360_v32 }
 0x2b0   : > { %5059 = vrot.lane.b32.xlu0 %v4965_v0, %s6712_s30 }
 0x2b1   : > { %v4362_v57 = vpop.permute.xlu1 %4361 }
 0x2b2   : > { %4437 = vst.msk [vmem:[#allocation3 + $0x54] sm:$0xf] %vm4415_vm3, %v4362_v57  ;;  %v4364_v54 = vpop.permute.xlu0 %4363 }
 0x2b3   : > { %5061 = vrot.lane.b32.xlu1 %v4966_v48, %s6712_s30  ;;  %4438 = vst.msk [vmem:[#allocation3 + $0x58] sm:$0xf] %vm4415_vm3, %v4364_v54 }
 0x2b4   : > { %5574 = vrot.lane.b32.xlu0 %v5487_v61, %s6713_s6 }
 0x2b5   : > { %v4366_v33 = vpop.permute.xlu1 %4365 }
 0x2b6   : > { %4439 = vst.msk [vmem:[#allocation3 + $0x5c] sm:$0xf] %vm4415_vm3, %v4366_v33  ;;  %v4847_v3 = vpop.permute.xlu0 %4846 }
 0x2b7   : > { %5576 = vrot.lane.b32.xlu1 %v5497_v6, %s6713_s6  ;;  %4923 = vst.msk [vmem:[#allocation3 + $0x50] sm:$0xf] %vm4902_vm4, %v4847_v3 }
 0x2b8   : > { %5578 = vrot.lane.b32.xlu0 %v5507_v8, %s6713_s6 }
 0x2b9   : > { %v4849_v40 = vpop.permute.xlu1 %4848 }
 0x2ba   : > { %4924 = vst.msk [vmem:[#allocation3 + $0x54] sm:$0xf] %vm4902_vm4, %v4849_v40  ;;  %v4851_v53 = vpop.permute.xlu0 %4850 }
 0x2bb   : > { %5580 = vrot.lane.b32.xlu1 %v5517_v4, %s6713_s6  ;;  %4925 = vst.msk [vmem:[#allocation3 + $0x58] sm:$0xf] %vm4902_vm4, %v4851_v53 }
 0x2bd   : > { %v4853_v56 = vpop.permute.xlu1 %4852 }
 0x2be   : > { %4926 = vst.msk [vmem:[#allocation3 + $0x5c] sm:$0xf] %vm4902_vm4, %v4853_v56  ;;  %v5040_v39 = vpop.permute.xlu0 %5039 }
 0x2bf   : > { %5116 = vst.msk [vmem:[#allocation3 + $0x50] sm:$0xf] %vm5095_vm5, %v5040_v39  ;;  %v6615_v17 = vpop.f32.mrf.mxu0 }
 0x2c0   : > { %v5882_v46 = vadd.f32 %v6615_v17, %v9086_v16 }
 0x2c1   : > { %v5042_v20 = vpop.permute.xlu1 %5041  ;;  %v5873_v22 = vpop.f32.mrf.mxu0 }
 0x2c2   : > { %5117 = vst.msk [vmem:[#allocation3 + $0x54] sm:$0xf] %vm5095_vm5, %v5042_v20  ;;  %v5044_v1 = vpop.permute.xlu0 %5043  ;;  %v6558_v14 = vpack.c.bf16 %v5882_v46, %v5882_v46  ;;  %v5874_v2 = vadd.f32 %v9086_v16, %v5873_v22  ;;  %v6235_v38 = vmul.f32 %v5882_v46, %v5882_v46  ;;  %v6165_v25 = vsel %vm6161_vm9, %v5882_v46, 0.0 }
 0x2c3   : > { %5118 = vst.msk [vmem:[#allocation3 + $0x58] sm:$0xf] %vm5095_vm5, %v5044_v1  ;;  %v6616_v47 = vpop.f32.mrf.mxu0 }
 0x2c4   : > { %6131 = vst.msk [vmem:[%s9095_s17 + $0x8] sm:$0xf] %vm6128_vm0, %v6558_v14  ;;  %v6556_v9 = vpack.c.bf16 %v5874_v2, %v5874_v2  ;;  %v5885_v41 = vadd.f32 %v6616_v47, %v9086_v16  ;;  %v6233_v5 = vmul.f32 %v5874_v2, %v5874_v2  ;;  %v6162_v28 = vsel %vm6161_vm9, %v5874_v2, 0.0 }
 0x2c5   : > { %v5046_v59 = vpop.permute.xlu1 %5045  ;;  %v5876_v63 = vpop.f32.mrf.mxu0  ;;  %v6268_v24 = vsel %vm6161_vm9, %v6235_v38, 0.0 }
 0x2c6   : > { %5119 = vst.msk [vmem:[#allocation3 + $0x5c] sm:$0xf] %vm5095_vm5, %v5046_v59  ;;  %v5559_v58 = vpop.permute.xlu0 %5558  ;;  %v5877_v29 = vadd.f32 %v9086_v16, %v5876_v63  ;;  %v6559_v12 = vpack.c.bf16 %v5885_v41, %v5885_v41  ;;  %v6265_v52 = vsel %vm6161_vm9, %v6233_v5, 0.0  ;;  %v6236_v18 = vmul.f32 %v5885_v41, %v5885_v41 }
 0x2c7   : > { %6129 = vst.msk [vmem:[%s9095_s17] sm:$0xf] %vm6128_vm0, %v6556_v9  ;;  %v6167_v43 = vsel %vm6161_vm9, %v5885_v41, 0.0 }
 0x2c8   : > { %5635 = vst.msk [vmem:[#allocation3 + $0x50] sm:$0xf] %vm5614_vm7, %v5559_v58  ;;  %v6557_v23 = vpack.c.bf16 %v5877_v29, %v5877_v29  ;;  %v6163_v19 = vsel %vm6161_vm9, %v5877_v29, 0.0  ;;  %v6234_v10 = vmul.f32 %v5877_v29, %v5877_v29  ;;  %v6270_v36 = vsel %vm6161_vm9, %v6236_v18, 0.0 }
 0x2c9   : > { %v5561_v49 = vpop.permute.xlu1 %5560  ;;  %6132 = vst.msk [vmem:[%s9095_s17 + $0xc] sm:$0xf] %vm6128_vm0, %v6559_v12  ;;  %v6164_v11 = vadd.f32 %v6163_v19, %v6162_v28 }
 0x2ca   : > { %5636 = vst.msk [vmem:[#allocation3 + $0x54] sm:$0xf] %vm5614_vm7, %v5561_v49  ;;  %v5563_v55 = vpop.permute.xlu0 %5562  ;;  %v6266_v37 = vsel %vm6161_vm9, %v6234_v10, 0.0 }
 0x2cb   : > { %6130 = vst.msk [vmem:[%s9095_s17 + $0x4] sm:$0xf] %vm6128_vm0, %v6557_v23  ;;  %v6166_v30 = vadd.f32 %v6165_v25, %v6164_v11  ;;  %v6267_v15 = vadd.f32 %v6266_v37, %v6265_v52 }
 0x2cc   : > { %5637 = vst.msk [vmem:[#allocation3 + $0x58] sm:$0xf] %vm5614_vm7, %v5563_v55 }
 0x2cd   : > { %v5565_v26 = vpop.permute.xlu1 %5564  ;;  %v6269_v42 = vadd.f32 %v6268_v24, %v6267_v15  ;;  %v6168_v21 = vadd.f32 %v6167_v43, %v6166_v30 }
 0x2ce   : > { %5638 = vst.msk [vmem:[#allocation3 + $0x5c] sm:$0xf] %vm5614_vm7, %v5565_v26  ;;  %v3656_v27 = vpop.permute.xlu0 %3655 }
 0x2cf   : > { %3728 = vst.msk [vmem:[#allocation3 + $0x60] sm:$0xf] %vm3703_vm6, %v3656_v27  ;;  %v6271_v60 = vadd.f32 %v6270_v36, %v6269_v42 }
 0x2d1   : > { %v3658_v31 = vpop.permute.xlu1 %3657  ;;  %v6687_v45 = vld [vmem:[#allocation3 + $0x50] sm:$0xff]  }
 0x2d2   : > { %3729 = vst.msk [vmem:[#allocation3 + $0x64] sm:$0xf] %vm3703_vm6, %v3658_v31  ;;  %v3660_v0 = vpop.permute.xlu0 %3659  ;;  %6633 = vmatprep.mubr.msk.bf16.mxu1 %vm5786_vm8, %v6687_v45 }
 0x2d3   : > { %3730 = vst.msk [vmem:[#allocation3 + $0x68] sm:$0xf] %vm3703_vm6, %v3660_v0 }
 0x2d5   : > { %v3662_v7 = vpop.permute.xlu1 %3661  ;;  %v6688_v35 = vld [vmem:[#allocation3 + $0x58] sm:$0xff]  }
 0x2d6   : > { %3731 = vst.msk [vmem:[#allocation3 + $0x6c] sm:$0xf] %vm3703_vm6, %v3662_v7  ;;  %v3849_v32 = vpop.permute.xlu0 %3848  ;;  %6634 = vmatmul.mubr.msk.bf16.gmra.mxu1 %vm5786_vm8, %v6688_v35 }
 0x2d7   : > { %3921 = vst.msk [vmem:[#allocation3 + $0x60] sm:$0xf] %vm3896_vm1, %v3849_v32 }
 0x2d9   : > { %v3851_v48 = vpop.permute.xlu1 %3850 }
 0x2da   : > { %3922 = vst.msk [vmem:[#allocation3 + $0x64] sm:$0xf] %vm3896_vm1, %v3851_v48  ;;  %v3853_v51 = vpop.permute.xlu0 %3852 }
 0x2db   : > { %3923 = vst.msk [vmem:[#allocation3 + $0x68] sm:$0xf] %vm3896_vm1, %v3853_v51 }
 0x2dd   : > { %v3855_v50 = vpop.permute.xlu1 %3854 }
 0x2de   : > { %3924 = vst.msk [vmem:[#allocation3 + $0x6c] sm:$0xf] %vm3896_vm1, %v3855_v50  ;;  %v4368_v34 = vpop.permute.xlu0 %4367 }
 0x2df   : > { %4440 = vst.msk [vmem:[#allocation3 + $0x60] sm:$0xf] %vm4415_vm3, %v4368_v34 }
 0x2e1   : > { %v4370_v57 = vpop.permute.xlu1 %4369 }
 0x2e2   : > { %4441 = vst.msk [vmem:[#allocation3 + $0x64] sm:$0xf] %vm4415_vm3, %v4370_v57  ;;  %v4372_v61 = vpop.permute.xlu0 %4371 }
 0x2e3   : > { %4442 = vst.msk [vmem:[#allocation3 + $0x68] sm:$0xf] %vm4415_vm3, %v4372_v61 }
 0x2e5   : > { %v4374_v13 = vpop.permute.xlu1 %4373 }
 0x2e6   : > { %4443 = vst.msk [vmem:[#allocation3 + $0x6c] sm:$0xf] %vm4415_vm3, %v4374_v13  ;;  %v4855_v54 = vpop.permute.xlu0 %4854 }
 0x2e7   : > { %4927 = vst.msk [vmem:[#allocation3 + $0x60] sm:$0xf] %vm4902_vm4, %v4855_v54  ;;  %v6619_v6 = vpop.f32.mrf.mxu0 }
 0x2e8   : > { %v5898_v62 = vadd.f32 %v6619_v6, %v9086_v16 }
 0x2e9   : > { %v4857_v44 = vpop.permute.xlu1 %4856  ;;  %v5889_v33 = vpop.f32.mrf.mxu0 }
 0x2ea   : > { %4928 = vst.msk [vmem:[#allocation3 + $0x64] sm:$0xf] %vm4902_vm4, %v4857_v44  ;;  %v4859_v8 = vpop.permute.xlu0 %4858  ;;  %v6562_v3 = vpack.c.bf16 %v5898_v62, %v5898_v62  ;;  %v5890_v4 = vadd.f32 %v9086_v16, %v5889_v33  ;;  %v6239_v59 = vmul.f32 %v5898_v62, %v5898_v62  ;;  %v6173_v12 = vsel %vm6161_vm9, %v5898_v62, 0.0 }
 0x2eb   : > { %4929 = vst.msk [vmem:[#allocation3 + $0x68] sm:$0xf] %vm4902_vm4, %v4859_v8  ;;  %v6620_v40 = vpop.f32.mrf.mxu0 }
 0x2ec   : > { %6135 = vst.msk [vmem:[%s9095_s17 + $0x18] sm:$0xf] %vm6128_vm0, %v6562_v3  ;;  %v6560_v53 = vpack.c.bf16 %v5890_v4, %v5890_v4  ;;  %v6169_v56 = vsel %vm6161_vm9, %v5890_v4, 0.0  ;;  %v6237_v39 = vmul.f32 %v5890_v4, %v5890_v4  ;;  %v5901_v20 = vadd.f32 %v6620_v40, %v9086_v16 }
 0x2ed   : > { %v4861_v17 = vpop.permute.xlu1 %4860  ;;  %v6170_v46 = vadd.f32 %v6169_v56, %v6168_v21  ;;  %v5892_v22 = vpop.f32.mrf.mxu0  ;;  %v6276_v49 = vsel %vm6161_vm9, %v6239_v59, 0.0 }
 0x2ee   : > { %4930 = vst.msk [vmem:[#allocation3 + $0x6c] sm:$0xf] %vm4902_vm4, %v4861_v17  ;;  %v5048_v1 = vpop.permute.xlu0 %5047  ;;  %v6272_v14 = vsel %vm6161_vm9, %v6237_v39, 0.0  ;;  %v5893_v2 = vadd.f32 %v9086_v16, %v5892_v22  ;;  %v6563_v9 = vpack.c.bf16 %v5901_v20, %v5901_v20  ;;  %v6240_v28 = vmul.f32 %v5901_v20, %v5901_v20 }
 0x2ef   : > { %6133 = vst.msk [vmem:[%s9095_s17 + $0x10] sm:$0xf] %vm6128_vm0, %v6560_v53  ;;  %v6273_v47 = vadd.f32 %v6272_v14, %v6271_v60  ;;  %v6175_v11 = vsel %vm6161_vm9, %v5901_v20, 0.0 }
 0x2f0   : > { %5120 = vst.msk [vmem:[#allocation3 + $0x60] sm:$0xf] %vm5095_vm5, %v5048_v1  ;;  %v6561_v41 = vpack.c.bf16 %v5893_v2, %v5893_v2  ;;  %v6171_v63 = vsel %vm6161_vm9, %v5893_v2, 0.0  ;;  %v6238_v58 = vmul.f32 %v5893_v2, %v5893_v2  ;;  %v6278_v37 = vsel %vm6161_vm9, %v6240_v28, 0.0 }
 0x2f1   : > { %v5050_v5 = vpop.permute.xlu1 %5049  ;;  %6136 = vst.msk [vmem:[%s9095_s17 + $0x1c] sm:$0xf] %vm6128_vm0, %v6563_v9  ;;  %v6172_v29 = vadd.f32 %v6171_v63, %v6170_v46 }
 0x2f2   : > { %5121 = vst.msk [vmem:[#allocation3 + $0x64] sm:$0xf] %vm5095_vm5, %v5050_v5  ;;  %v5052_v38 = vpop.permute.xlu0 %5051  ;;  %v6274_v23 = vsel %vm6161_vm9, %v6238_v58, 0.0 }
 0x2f3   : > { %6134 = vst.msk [vmem:[%s9095_s17 + $0x14] sm:$0xf] %vm6128_vm0, %v6561_v41  ;;  %v6174_v19 = vadd.f32 %v6173_v12, %v6172_v29  ;;  %v6275_v10 = vadd.f32 %v6274_v23, %v6273_v47 }
 0x2f4   : > { %5122 = vst.msk [vmem:[#allocation3 + $0x68] sm:$0xf] %vm5095_vm5, %v5052_v38 }
 0x2f5   : > { %v5054_v55 = vpop.permute.xlu1 %5053  ;;  %v6277_v25 = vadd.f32 %v6276_v49, %v6275_v10  ;;  %v6176_v18 = vadd.f32 %v6175_v11, %v6174_v19 }
 0x2f6   : > { %5123 = vst.msk [vmem:[#allocation3 + $0x6c] sm:$0xf] %vm5095_vm5, %v5054_v55  ;;  %v5567_v52 = vpop.permute.xlu0 %5566 }
 0x2f7   : > { %5639 = vst.msk [vmem:[#allocation3 + $0x60] sm:$0xf] %vm5614_vm7, %v5567_v52  ;;  %v6279_v30 = vadd.f32 %v6278_v37, %v6277_v25 }
 0x2f9   : > { %v5569_v15 = vpop.permute.xlu1 %5568 }
 0x2fa   : > { %5640 = vst.msk [vmem:[#allocation3 + $0x64] sm:$0xf] %vm5614_vm7, %v5569_v15  ;;  %v5571_v24 = vpop.permute.xlu0 %5570 }
 0x2fb   : > { %5641 = vst.msk [vmem:[#allocation3 + $0x68] sm:$0xf] %vm5614_vm7, %v5571_v24 }
 0x2fd   : > { %v5573_v43 = vpop.permute.xlu1 %5572 }
 0x2fe   : > { %5642 = vst.msk [vmem:[#allocation3 + $0x6c] sm:$0xf] %vm5614_vm7, %v5573_v43  ;;  %v3664_v26 = vpop.permute.xlu0 %3663 }
 0x2ff   : > { %3732 = vst.msk [vmem:[#allocation3 + $0x70] sm:$0xf] %vm3703_vm6, %v3664_v26 }
 0x301   : > { %v3666_v42 = vpop.permute.xlu1 %3665  ;;  %v6689_v27 = vld [vmem:[#allocation3 + $0x60] sm:$0xff]  }
 0x302   : > { %3733 = vst.msk [vmem:[#allocation3 + $0x74] sm:$0xf] %vm3703_vm6, %v3666_v42  ;;  %v3668_v21 = vpop.permute.xlu0 %3667  ;;  %6637 = vmatprep.mubr.msk.bf16.mxu1 %vm5786_vm8, %v6689_v27 }
 0x303   : > { %3734 = vst.msk [vmem:[#allocation3 + $0x78] sm:$0xf] %vm3703_vm6, %v3668_v21 }
 0x305   : > { %v3670_v36 = vpop.permute.xlu1 %3669  ;;  %v6690_v60 = vld [vmem:[#allocation3 + $0x68] sm:$0xff]  }
 0x306   : > { %3735 = vst.msk [vmem:[#allocation3 + $0x7c] sm:$0xf] %vm3703_vm6, %v3670_v36  ;;  %v3857_v31 = vpop.permute.xlu0 %3856  ;;  %6638 = vmatmul.mubr.msk.bf16.gmra.mxu1 %vm5786_vm8, %v6690_v60 }
 0x307   : > { %3925 = vst.msk [vmem:[#allocation3 + $0x70] sm:$0xf] %vm3896_vm1, %v3857_v31 }
 0x309   : > { %v3859_v45 = vpop.permute.xlu1 %3858 }
 0x30a   : > { %3926 = vst.msk [vmem:[#allocation3 + $0x74] sm:$0xf] %vm3896_vm1, %v3859_v45  ;;  %v3861_v0 = vpop.permute.xlu0 %3860 }
 0x30b   : > { %3927 = vst.msk [vmem:[#allocation3 + $0x78] sm:$0xf] %vm3896_vm1, %v3861_v0 }
 0x30d   : > { %v3863_v7 = vpop.permute.xlu1 %3862 }
 0x30e   : > { %3928 = vst.msk [vmem:[#allocation3 + $0x7c] sm:$0xf] %vm3896_vm1, %v3863_v7  ;;  %v4376_v35 = vpop.permute.xlu0 %4375 }
 0x30f   : > { %4444 = vst.msk [vmem:[#allocation3 + $0x70] sm:$0xf] %vm4415_vm3, %v4376_v35  ;;  %v6623_v32 = vpop.f32.mrf.mxu0 }
 0x310   : > { %v5914_v48 = vadd.f32 %v6623_v32, %v9086_v16 }
 0x311   : > { %v4378_v51 = vpop.permute.xlu1 %4377  ;;  %v5905_v50 = vpop.f32.mrf.mxu0 }
 0x312   : > { %4445 = vst.msk [vmem:[#allocation3 + $0x74] sm:$0xf] %vm4415_vm3, %v4378_v51  ;;  %v4380_v34 = vpop.permute.xlu0 %4379  ;;  %v6566_v57 = vpack.c.bf16 %v5914_v48, %v5914_v48  ;;  %v5906_v61 = vadd.f32 %v9086_v16, %v5905_v50  ;;  %v6243_v17 = vmul.f32 %v5914_v48, %v5914_v48  ;;  %v6181_v47 = vsel %vm6161_vm9, %v5914_v48, 0.0 }
 0x313   : > { %4446 = vst.msk [vmem:[#allocation3 + $0x78] sm:$0xf] %vm4415_vm3, %v4380_v34  ;;  %v6624_v13 = vpop.f32.mrf.mxu0 }
 0x314   : > { %6139 = vst.msk [vmem:[%s9095_s17 + $0x28] sm:$0xf] %vm6128_vm0, %v6566_v57  ;;  %v6564_v54 = vpack.c.bf16 %v5906_v61, %v5906_v61  ;;  %v6177_v6 = vsel %vm6161_vm9, %v5906_v61, 0.0  ;;  %v6241_v62 = vmul.f32 %v5906_v61, %v5906_v61  ;;  %v5917_v8 = vadd.f32 %v6624_v13, %v9086_v16 }
 0x315   : > { %v4382_v44 = vpop.permute.xlu1 %4381  ;;  %v6178_v33 = vadd.f32 %v6177_v6, %v6176_v18  ;;  %v5908_v3 = vpop.f32.mrf.mxu0  ;;  %v6284_v58 = vsel %vm6161_vm9, %v6243_v17, 0.0 }
 0x316   : > { %4447 = vst.msk [vmem:[#allocation3 + $0x7c] sm:$0xf] %vm4415_vm3, %v4382_v44  ;;  %v4863_v4 = vpop.permute.xlu0 %4862  ;;  %v6280_v40 = vsel %vm6161_vm9, %v6241_v62, 0.0  ;;  %v5909_v53 = vadd.f32 %v9086_v16, %v5908_v3  ;;  %v6567_v39 = vpack.c.bf16 %v5917_v8, %v5917_v8  ;;  %v6244_v9 = vmul.f32 %v5917_v8, %v5917_v8 }
 0x317   : > { %6137 = vst.msk [vmem:[%s9095_s17 + $0x20] sm:$0xf] %vm6128_vm0, %v6564_v54  ;;  %v6281_v56 = vadd.f32 %v6280_v40, %v6279_v30  ;;  %v6183_v5 = vsel %vm6161_vm9, %v5917_v8, 0.0 }
 0x318   : > { %4931 = vst.msk [vmem:[#allocation3 + $0x70] sm:$0xf] %vm4902_vm4, %v4863_v4  ;;  %v6565_v46 = vpack.c.bf16 %v5909_v53, %v5909_v53  ;;  %v6179_v20 = vsel %vm6161_vm9, %v5909_v53, 0.0  ;;  %v6242_v22 = vmul.f32 %v5909_v53, %v5909_v53  ;;  %v6286_v23 = vsel %vm6161_vm9, %v6244_v9, 0.0 }
 0x319   : > { %v4865_v1 = vpop.permute.xlu1 %4864  ;;  %6140 = vst.msk [vmem:[%s9095_s17 + $0x2c] sm:$0xf] %vm6128_vm0, %v6567_v39  ;;  %v6180_v14 = vadd.f32 %v6179_v20, %v6178_v33 }
 0x31a   : > { %4932 = vst.msk [vmem:[#allocation3 + $0x74] sm:$0xf] %vm4902_vm4, %v4865_v1  ;;  %v4867_v2 = vpop.permute.xlu0 %4866  ;;  %v6282_v59 = vsel %vm6161_vm9, %v6242_v22, 0.0 }
 0x31b   : > { %6138 = vst.msk [vmem:[%s9095_s17 + $0x24] sm:$0xf] %vm6128_vm0, %v6565_v46  ;;  %v6182_v41 = vadd.f32 %v6181_v47, %v6180_v14  ;;  %v6283_v63 = vadd.f32 %v6282_v59, %v6281_v56 }
 0x31c   : > { %4933 = vst.msk [vmem:[#allocation3 + $0x78] sm:$0xf] %vm4902_vm4, %v4867_v2 }
 0x31d   : > { %v4869_v29 = vpop.permute.xlu1 %4868  ;;  %v6285_v38 = vadd.f32 %v6284_v58, %v6283_v63  ;;  %v6184_v28 = vadd.f32 %v6183_v5, %v6182_v41 }
 0x31e   : > { %4934 = vst.msk [vmem:[#allocation3 + $0x7c] sm:$0xf] %vm4902_vm4, %v4869_v29  ;;  %v5056_v12 = vpop.permute.xlu0 %5055 }
 0x31f   : > { %5124 = vst.msk [vmem:[#allocation3 + $0x70] sm:$0xf] %vm5095_vm5, %v5056_v12  ;;  %v6287_v19 = vadd.f32 %v6286_v23, %v6285_v38 }
 0x321   : > { %v5058_v10 = vpop.permute.xlu1 %5057 }
 0x322   : > { %5125 = vst.msk [vmem:[#allocation3 + $0x74] sm:$0xf] %vm5095_vm5, %v5058_v10  ;;  %v5060_v49 = vpop.permute.xlu0 %5059 }
 0x323   : > { %5126 = vst.msk [vmem:[#allocation3 + $0x78] sm:$0xf] %vm5095_vm5, %v5060_v49 }
 0x325   : > { %v5062_v11 = vpop.permute.xlu1 %5061 }
 0x326   : > { %5127 = vst.msk [vmem:[#allocation3 + $0x7c] sm:$0xf] %vm5095_vm5, %v5062_v11  ;;  %v5575_v55 = vpop.permute.xlu0 %5574 }
 0x327   : > { %5643 = vst.msk [vmem:[#allocation3 + $0x70] sm:$0xf] %vm5614_vm7, %v5575_v55 }
 0x329   : > { %v5577_v25 = vpop.permute.xlu1 %5576 }
 0x32a   : > { %5644 = vst.msk [vmem:[#allocation3 + $0x74] sm:$0xf] %vm5614_vm7, %v5577_v25  ;;  %v5579_v52 = vpop.permute.xlu0 %5578 }
 0x32b   : > { %5645 = vst.msk [vmem:[#allocation3 + $0x78] sm:$0xf] %vm5614_vm7, %v5579_v52 }
 0x32d   : > { %v5581_v18 = vpop.permute.xlu1 %5580 }
 0x32e   : > { %5646 = vst.msk [vmem:[#allocation3 + $0x7c] sm:$0xf] %vm5614_vm7, %v5581_v18 }
 0x331   : > { %v6691_v37 = vld [vmem:[#allocation3 + $0x70] sm:$0xff]  }
 0x332   : > { %6641 = vmatprep.mubr.msk.bf16.mxu1 %vm5786_vm8, %v6691_v37 }
 0x335   : > { %v6692_v30 = vld [vmem:[#allocation3 + $0x78] sm:$0xff]  }
 0x336   : > { %6642 = vmatmul.mubr.msk.bf16.gmra.mxu1 %vm5786_vm8, %v6692_v30 }
 0x337   : > { %v6627_v15 = vpop.f32.mrf.mxu0 }
 0x338   : > { %v5930_v24 = vadd.f32 %v6627_v15, %v9086_v16 }
 0x339   : > { %v5921_v43 = vpop.f32.mrf.mxu0 }
 0x33a   : > { %v6570_v26 = vpack.c.bf16 %v5930_v24, %v5930_v24  ;;  %v5922_v42 = vadd.f32 %v9086_v16, %v5921_v43  ;;  %v6247_v51 = vmul.f32 %v5930_v24, %v5930_v24  ;;  %v6189_v13 = vsel %vm6161_vm9, %v5930_v24, 0.0 }
 0x33b   : > { %v6628_v27 = vpop.f32.mrf.mxu0 }
 0x33c   : > { %6143 = vst.msk [vmem:[%s9095_s17 + $0x38] sm:$0xf] %vm6128_vm0, %v6570_v26  ;;  %v6568_v21 = vpack.c.bf16 %v5922_v42, %v5922_v42  ;;  %v6185_v36 = vsel %vm6161_vm9, %v5922_v42, 0.0  ;;  %v6245_v60 = vmul.f32 %v5922_v42, %v5922_v42  ;;  %v5933_v45 = vadd.f32 %v6628_v27, %v9086_v16 }
 0x33d   : > { %v6186_v31 = vadd.f32 %v6185_v36, %v6184_v28  ;;  %v5924_v0 = vpop.f32.mrf.mxu0  ;;  %v6292_v33 = vsel %vm6161_vm9, %v6247_v51, 0.0 }
 0x33e   : > { %6141 = vst.msk [vmem:[%s9095_s17 + $0x30] sm:$0xf] %vm6128_vm0, %v6568_v21  ;;  %v6288_v7 = vsel %vm6161_vm9, %v6245_v60, 0.0  ;;  %v5925_v35 = vadd.f32 %v9086_v16, %v5924_v0  ;;  %v6571_v48 = vpack.c.bf16 %v5933_v45, %v5933_v45  ;;  %v6248_v54 = vmul.f32 %v5933_v45, %v5933_v45 }
 0x33f   : > { %v6289_v32 = vadd.f32 %v6288_v7, %v6287_v19  ;;  %v6191_v8 = vsel %vm6161_vm9, %v5933_v45, 0.0 }
 0x340   : > { %v6569_v50 = vpack.c.bf16 %v5925_v35, %v5925_v35  ;;  %v6187_v34 = vsel %vm6161_vm9, %v5925_v35, 0.0  ;;  %v6246_v57 = vmul.f32 %v5925_v35, %v5925_v35  ;;  %6144 = vst.msk [vmem:[%s9095_s17 + $0x3c] sm:$0xf] %vm6128_vm0, %v6571_v48  ;;  %v6294_v40 = vsel %vm6161_vm9, %v6248_v54, 0.0 }
 0x341   : > { %v6188_v61 = vadd.f32 %v6187_v34, %v6186_v31 }
 0x342   : > { %6142 = vst.msk [vmem:[%s9095_s17 + $0x34] sm:$0xf] %vm6128_vm0, %v6569_v50  ;;  %v6290_v6 = vsel %vm6161_vm9, %v6246_v57, 0.0 }
 0x343   : > { %v6190_v62 = vadd.f32 %v6189_v13, %v6188_v61  ;;  %v6291_v44 = vadd.f32 %v6290_v6, %v6289_v32 }
 0x345   : > { %v6293_v3 = vadd.f32 %v6292_v33, %v6291_v44  ;;  %v6192_v4 = vadd.f32 %v6191_v8, %v6190_v62 }
 0x347   : > { %v6295_v53 = vadd.f32 %v6294_v40, %v6293_v3 }
 0x366   : > { %v6631_v56 = vpop.f32.mrf.mxu1 }
 0x367   : > { %v5946_v39 = vadd.f32 %v6631_v56, %v9086_v16 }
 0x368   : > { %v5937_v17 = vpop.f32.mrf.mxu1 }
 0x369   : > { %v6574_v46 = vpack.c.bf16 %v5946_v39, %v5946_v39  ;;  %v5938_v20 = vadd.f32 %v9086_v16, %v5937_v17  ;;  %v6251_v29 = vmul.f32 %v5946_v39, %v5946_v39  ;;  %v6197_v19 = vsel %vm6161_vm9, %v5946_v39, 0.0 }
 0x36a   : > { %v6632_v22 = vpop.f32.mrf.mxu1 }
 0x36b   : > { %6147 = vst.msk [vmem:[%s9095_s17 + $0x48] sm:$0xf] %vm6128_vm0, %v6574_v46  ;;  %v6572_v1 = vpack.c.bf16 %v5938_v20, %v5938_v20  ;;  %v6193_v14 = vsel %vm6161_vm9, %v5938_v20, 0.0  ;;  %v6249_v2 = vmul.f32 %v5938_v20, %v5938_v20  ;;  %v5949_v9 = vadd.f32 %v6632_v22, %v9086_v16 }
 0x36c   : > { %v6194_v47 = vadd.f32 %v6193_v14, %v6192_v4  ;;  %v5940_v59 = vpop.f32.mrf.mxu1  ;;  %v6300_v25 = vsel %vm6161_vm9, %v6251_v29, 0.0 }
 0x36d   : > { %6145 = vst.msk [vmem:[%s9095_s17 + $0x40] sm:$0xf] %vm6128_vm0, %v6572_v1  ;;  %v6296_v41 = vsel %vm6161_vm9, %v6249_v2, 0.0  ;;  %v5941_v63 = vadd.f32 %v9086_v16, %v5940_v59  ;;  %v6575_v5 = vpack.c.bf16 %v5949_v9, %v5949_v9  ;;  %v6252_v10 = vmul.f32 %v5949_v9, %v5949_v9 }
 0x36e   : > { %v6297_v58 = vadd.f32 %v6296_v41, %v6295_v53  ;;  %v6199_v52 = vsel %vm6161_vm9, %v5949_v9, 0.0 }
 0x36f   : > { %v6573_v38 = vpack.c.bf16 %v5941_v63, %v5941_v63  ;;  %v6195_v12 = vsel %vm6161_vm9, %v5941_v63, 0.0  ;;  %v6250_v28 = vmul.f32 %v5941_v63, %v5941_v63  ;;  %6148 = vst.msk [vmem:[%s9095_s17 + $0x4c] sm:$0xf] %vm6128_vm0, %v6575_v5  ;;  %v6302_v30 = vsel %vm6161_vm9, %v6252_v10, 0.0 }
 0x370   : > { %v6196_v23 = vadd.f32 %v6195_v12, %v6194_v47 }
 0x371   : > { %6146 = vst.msk [vmem:[%s9095_s17 + $0x44] sm:$0xf] %vm6128_vm0, %v6573_v38  ;;  %v6298_v49 = vsel %vm6161_vm9, %v6250_v28, 0.0 }
 0x372   : > { %v6198_v11 = vadd.f32 %v6197_v19, %v6196_v23  ;;  %v6299_v55 = vadd.f32 %v6298_v49, %v6297_v58 }
 0x374   : > { %v6301_v18 = vadd.f32 %v6300_v25, %v6299_v55  ;;  %v6200_v37 = vadd.f32 %v6199_v52, %v6198_v11 }
 0x376   : > { %v6303_v15 = vadd.f32 %v6302_v30, %v6301_v18 }
 0x396   : > { %v6635_v24 = vpop.f32.mrf.mxu1 }
 0x397   : > { %v5962_v43 = vadd.f32 %v6635_v24, %v9086_v16 }
 0x398   : > { %v5953_v26 = vpop.f32.mrf.mxu1 }
 0x399   : > { %v6578_v42 = vpack.c.bf16 %v5962_v43, %v5962_v43  ;;  %v5954_v27 = vadd.f32 %v9086_v16, %v5953_v26  ;;  %v6255_v50 = vmul.f32 %v5962_v43, %v5962_v43  ;;  %v6205_v54 = vsel %vm6161_vm9, %v5962_v43, 0.0 }
 0x39a   : > { %v6636_v21 = vpop.f32.mrf.mxu1 }
 0x39b   : > { %6151 = vst.msk [vmem:[%s9095_s17 + $0x58] sm:$0xf] %vm6128_vm0, %v6578_v42  ;;  %v6576_v36 = vpack.c.bf16 %v5954_v27, %v5954_v27  ;;  %v6201_v60 = vsel %vm6161_vm9, %v5954_v27, 0.0  ;;  %v6253_v31 = vmul.f32 %v5954_v27, %v5954_v27  ;;  %v5965_v0 = vadd.f32 %v6636_v21, %v9086_v16 }
 0x39c   : > { %v6202_v45 = vadd.f32 %v6201_v60, %v6200_v37  ;;  %v5956_v7 = vpop.f32.mrf.mxu1  ;;  %v6308_v8 = vsel %vm6161_vm9, %v6255_v50, 0.0 }
 0x39d   : > { %6149 = vst.msk [vmem:[%s9095_s17 + $0x50] sm:$0xf] %vm6128_vm0, %v6576_v36  ;;  %v6304_v35 = vsel %vm6161_vm9, %v6253_v31, 0.0  ;;  %v5957_v32 = vadd.f32 %v9086_v16, %v5956_v7  ;;  %v6579_v51 = vpack.c.bf16 %v5965_v0, %v5965_v0  ;;  %v6256_v6 = vmul.f32 %v5965_v0, %v5965_v0 }
 0x39e   : > { %v6305_v48 = vadd.f32 %v6304_v35, %v6303_v15  ;;  %v6207_v3 = vsel %vm6161_vm9, %v5965_v0, 0.0 }
 0x39f   : > { %v6577_v34 = vpack.c.bf16 %v5957_v32, %v5957_v32  ;;  %v6203_v57 = vsel %vm6161_vm9, %v5957_v32, 0.0  ;;  %v6254_v61 = vmul.f32 %v5957_v32, %v5957_v32  ;;  %6152 = vst.msk [vmem:[%s9095_s17 + $0x5c] sm:$0xf] %vm6128_vm0, %v6579_v51  ;;  %v6310_v53 = vsel %vm6161_vm9, %v6256_v6, 0.0 }
 0x3a0   : > { %v6204_v13 = vadd.f32 %v6203_v57, %v6202_v45 }
 0x3a1   : > { %6150 = vst.msk [vmem:[%s9095_s17 + $0x54] sm:$0xf] %vm6128_vm0, %v6577_v34  ;;  %v6306_v62 = vsel %vm6161_vm9, %v6254_v61, 0.0 }
 0x3a2   : > { %v6206_v44 = vadd.f32 %v6205_v54, %v6204_v13  ;;  %v6307_v33 = vadd.f32 %v6306_v62, %v6305_v48 }
 0x3a4   : > { %v6309_v4 = vadd.f32 %v6308_v8, %v6307_v33  ;;  %v6208_v40 = vadd.f32 %v6207_v3, %v6206_v44 }
 0x3a6   : > { %v6311_v56 = vadd.f32 %v6310_v53, %v6309_v4 }
 0x3c6   : > { %v6639_v39 = vpop.f32.mrf.mxu1 }
 0x3c7   : > { %v5978_v17 = vadd.f32 %v6639_v39, %v9086_v16 }
 0x3c8   : > { %v5969_v46 = vpop.f32.mrf.mxu1 }
 0x3c9   : > { %v6582_v20 = vpack.c.bf16 %v5978_v17, %v5978_v17  ;;  %v5970_v22 = vadd.f32 %v9086_v16, %v5969_v46  ;;  %v6259_v10 = vmul.f32 %v5978_v17, %v5978_v17  ;;  %v6213_v55 = vsel %vm6161_vm9, %v5978_v17, 0.0 }
 0x3ca   : > { %v6640_v1 = vpop.f32.mrf.mxu1 }
 0x3cb   : > { %6155 = vst.msk [vmem:[%s9095_s17 + $0x68] sm:$0xf] %vm6128_vm0, %v6582_v20  ;;  %v6580_v14 = vpack.c.bf16 %v5970_v22, %v5970_v22  ;;  %v5981_v2 = vadd.f32 %v6640_v1, %v9086_v16  ;;  %v6257_v63 = vmul.f32 %v5970_v22, %v5970_v22  ;;  %v6209_v58 = vsel %vm6161_vm9, %v5970_v22, 0.0 }
 0x3cc   : > { %v5972_v47 = vpop.f32.mrf.mxu1  ;;  %v6210_v12 = vadd.f32 %v6209_v58, %v6208_v40  ;;  %v6316_v37 = vsel %vm6161_vm9, %v6259_v10, 0.0 }
 0x3cd   : > { %6153 = vst.msk [vmem:[%s9095_s17 + $0x60] sm:$0xf] %vm6128_vm0, %v6580_v14  ;;  %v5973_v9 = vadd.f32 %v9086_v16, %v5972_v47  ;;  %v6583_v59 = vpack.c.bf16 %v5981_v2, %v5981_v2  ;;  %v6312_v29 = vsel %vm6161_vm9, %v6257_v63, 0.0  ;;  %v6260_v30 = vmul.f32 %v5981_v2, %v5981_v2 }
 0x3ce   : > { %v6313_v23 = vadd.f32 %v6312_v29, %v6311_v56  ;;  %v6215_v42 = vsel %vm6161_vm9, %v5981_v2, 0.0 }
 0x3cf   : > { %v6581_v41 = vpack.c.bf16 %v5973_v9, %v5973_v9  ;;  %6156 = vst.msk [vmem:[%s9095_s17 + $0x6c] sm:$0xf] %vm6128_vm0, %v6583_v59  ;;  %v6258_v5 = vmul.f32 %v5973_v9, %v5973_v9  ;;  %v6211_v38 = vsel %vm6161_vm9, %v5973_v9, 0.0  ;;  %v6318_v0 = vsel %vm6161_vm9, %v6260_v30, 0.0 }
 0x3d0   : > { %v6212_v19 = vadd.f32 %v6211_v38, %v6210_v12 }
 0x3d1   : > { %6154 = vst.msk [vmem:[%s9095_s17 + $0x64] sm:$0xf] %vm6128_vm0, %v6581_v41  ;;  %v6314_v28 = vsel %vm6161_vm9, %v6258_v5, 0.0 }
 0x3d2   : > { %v6315_v49 = vadd.f32 %v6314_v28, %v6313_v23  ;;  %v6214_v52 = vadd.f32 %v6213_v55, %v6212_v19 }
 0x3d4   : > { %v6317_v43 = vadd.f32 %v6316_v37, %v6315_v49  ;;  %v6216_v60 = vadd.f32 %v6215_v42, %v6214_v52 }
 0x3d6   : > { %v6319_v48 = vadd.f32 %v6318_v0, %v6317_v43 }
 0x3f6   : > { %v6643_v11 = vpop.f32.mrf.mxu1 }
 0x3f7   : > { %v5994_v25 = vadd.f32 %v6643_v11, %v9086_v16 }
 0x3f8   : > { %v5985_v18 = vpop.f32.mrf.mxu1 }
 0x3f9   : > { %v6586_v15 = vpack.c.bf16 %v5994_v25, %v5994_v25  ;;  %v5986_v24 = vadd.f32 %v9086_v16, %v5985_v18  ;;  %v6263_v50 = vmul.f32 %v5994_v25, %v5994_v25  ;;  %v6221_v6 = vsel %vm6161_vm9, %v5994_v25, 0.0 }
 0x3fa   : > { %v6644_v26 = vpop.f32.mrf.mxu1 }
 0x3fb   : > { %6159 = vst.msk [vmem:[%s9095_s17 + $0x78] sm:$0xf] %vm6128_vm0, %v6586_v15  ;;  %v6584_v27 = vpack.c.bf16 %v5986_v24, %v5986_v24  ;;  %v6217_v21 = vsel %vm6161_vm9, %v5986_v24, 0.0  ;;  %v6261_v36 = vmul.f32 %v5986_v24, %v5986_v24  ;;  %v5997_v31 = vadd.f32 %v6644_v26, %v9086_v16 }
 0x3fc   : > { %v5988_v45 = vpop.f32.mrf.mxu1  ;;  %v6218_v32 = vadd.f32 %v6217_v21, %v6216_v60  ;;  %v6324_v8 = vsel %vm6161_vm9, %v6263_v50, 0.0 }
 0x3fd   : > { %6157 = vst.msk [vmem:[%s9095_s17 + $0x70] sm:$0xf] %vm6128_vm0, %v6584_v27  ;;  %v6320_v7 = vsel %vm6161_vm9, %v6261_v36, 0.0  ;;  %v5989_v35 = vadd.f32 %v9086_v16, %v5988_v45  ;;  %v6587_v51 = vpack.c.bf16 %v5997_v31, %v5997_v31  ;;  %v6264_v62 = vmul.f32 %v5997_v31, %v5997_v31 }
 0x3fe   : > { %v6321_v13 = vadd.f32 %v6320_v7, %v6319_v48  ;;  %v6223_v3 = vsel %vm6161_vm9, %v5997_v31, 0.0 }
 0x3ff   : > { %v6585_v34 = vpack.c.bf16 %v5989_v35, %v5989_v35  ;;  %v6219_v57 = vsel %vm6161_vm9, %v5989_v35, 0.0  ;;  %v6262_v61 = vmul.f32 %v5989_v35, %v5989_v35  ;;  %6160 = vst.msk [vmem:[%s9095_s17 + $0x7c] sm:$0xf] %vm6128_vm0, %v6587_v51  ;;  %v6326_v53 = vsel %vm6161_vm9, %v6264_v62, 0.0 }
 0x400   : > { %v6220_v54 = vadd.f32 %v6219_v57, %v6218_v32 }
 0x401   : > { %6158 = vst.msk [vmem:[%s9095_s17 + $0x74] sm:$0xf] %vm6128_vm0, %v6585_v34  ;;  %v6322_v44 = vsel %vm6161_vm9, %v6262_v61, 0.0 }
 0x402   : > { %v6222_v16 = vadd.f32 %v6221_v6, %v6220_v54  ;;  %v6323_v33 = vadd.f32 %v6322_v44, %v6321_v13 }
 0x404   : > { %v6224_v4 = vadd.f32 %v6223_v3, %v6222_v16  ;;  %v6325_v40 = vadd.f32 %v6324_v8, %v6323_v33 }
 0x406   : > { %v6225_v56 = vrot.slane %v6224_v4, 4  ;;  %v6327_v39 = vadd.f32 %v6326_v53, %v6325_v40 }
 0x408   : > { %v6226_v17 = vadd.f32 %v6225_v56, %v6224_v4  ;;  %v6328_v46 = vrot.slane %v6327_v39, 4 }
 0x40a   : > { %v6227_v20 = vrot.slane %v6226_v17, 2  ;;  %v6329_v22 = vadd.f32 %v6328_v46, %v6327_v39 }
 0x40c   : > { %v6228_v1 = vadd.f32 %v6227_v20, %v6226_v17  ;;  %v6330_v14 = vrot.slane %v6329_v22, 2 }
 0x40e   : > { %v6229_v2 = vrot.slane %v6228_v1, 1  ;;  %v6331_v47 = vadd.f32 %v6330_v14, %v6329_v22 }
 0x410   : > { %v6230_v9 = vadd.f32 %v6229_v2, %v6228_v1  ;;  %v6332_v59 = vrot.slane %v6331_v47, 1 }
 0x412   : > { %6232 = vst.msk [vmem:[%s238_s22] sm:$0x1] %vm6231_vm10, %v6230_v9  ;;  %v6333_v41 = vadd.f32 %v6332_v59, %v6331_v47 }
 0x414   : > { %6334 = vst.msk [vmem:[%s241_s25] sm:$0x1] %vm6231_vm10, %v6333_v41 }
 0x415 PF: > { %s16_s18 = sadd.s32 1, %s6699_s18  }
 0x416   : > { %p13_p4 = scmp.ge.s32.totalorder %s16_s18, 4  }
 0x418   :  { %15 = sbr.rel (!%p13_p4) target bundleno = 1 (0x1), region = 86 }

</bundles_post_ra>
